<compile_context>
chip_gen: v7x
topology: tpu7x:2x2x1
jax: 0.10.0
libtpu: 0.0.40
codegen_flags: <defaults>
</compile_context>

<pallas_src>
import functools

import numpy as np
import jax
import jax.numpy as jnp
from jax import lax
from jax.experimental import pallas as pl
from jax.experimental.pallas import tpu as pltpu


_LANE = 128
_SUB = 256                   # in-kernel row sub-tile for conv1 (bounds live ranges)
_CONV_ROW_CAP = 1024         # rows per grid step, conv1 kernel
_TAIL_ROW_CAP = 256          # images per grid step, conv2+MLP kernel
_VMEM_LIMIT = 32 * 1024 * 1024


def _round_up(n, m):
    return ((n + m - 1) // m) * m


def _row_plan(m, cap):
    """(padded_rows, tile).  Pads only to sublane multiples, caps the per-step tile,
    and keeps >=2 grid steps when there is enough work (v7x megacore sharding)."""
    mp = _round_up(max(m, 1), 8)
    steps = max(1, -(-mp // cap))
    if steps == 1 and mp >= 16:
        steps = 2
    tm = _round_up(-(-mp // steps), 8)
    return steps * tm, tm


def _pad_rows(x, rows):
    if x.shape[-2] == rows:
        return x
    pad = [(0, 0)] * x.ndim
    pad[-2] = (0, rows - x.shape[-2])
    return jnp.pad(x, pad)


# ----------------------------------------------------------------------------
# Pallas kernels
# ----------------------------------------------------------------------------
def _conv1_kernel(p_ref, w_ref, b_ref, o_ref):
    """relu(maxpool2x2(conv1(x)+b)) on one tile of pool-corner patch rows.

    p_ref : [4, tm, 75] bf16  (4 pool corners x im2col patches, K order (kh,kw,c))
    w_ref : [75, 8]     bf16  (OC=6 zero-padded to 8)
    b_ref : [1, 8]      f32
    o_ref : [tm, 8]     bf16
    maxpool(relu(conv+b)) == relu(max_corners(conv)+b): per-channel bias + monotone ReLU.
    """
    w = w_ref[...]
    b = b_ref[...]
    tm = o_ref.shape[0]
    for r0 in range(0, tm, _SUB):                       # static row sub-tiling
        sz = min(_SUB, tm - r0)
        rows = pl.ds(r0, sz)
        acc = jnp.dot(p_ref[0, rows], w, preferred_element_type=jnp.float32)
        for j in range(1, 4):                           # sequential max-accumulate
            acc = jnp.maximum(
                acc, jnp.dot(p_ref[j, rows], w, preferred_element_type=jnp.float32))
        o_ref[rows, :] = jnp.maximum(acc + b, 0.0).astype(o_ref.dtype)


def _tail_kernel(x_ref, m_ref, cb_ref, w1_ref, b1_ref, w2_ref, b2_ref,
                 w3_ref, b3_ref, o_ref):
    """conv2(+bias)+maxpool+relu (as x @ M_corner) -> fc1+ReLU -> fc2+ReLU -> fc3.

    x_ref : [tb, 1176]      bf16  flattened (h,w,c) pooled conv1 activations
    m_ref : [4, 1176, 512]  bf16  per-pool-corner conv2 matrices, cols (oc,ph,pw)
    cb_ref: [1, 512] f32 ;  fc weights [K,128]/[K,n3] bf16, biases [1,*] f32
    """
    x = x_ref[...]
    h = jnp.dot(x, m_ref[0], preferred_element_type=jnp.float32)
    for j in range(1, 4):                               # sequential max-accumulate
        h = jnp.maximum(h, jnp.dot(x, m_ref[j], preferred_element_type=jnp.float32))
    h = jnp.maximum(h + cb_ref[...], 0.0)               # [tb,512]; cols >= 400 stay 0
    h = jnp.dot(h.astype(jnp.bfloat16), w1_ref[...], preferred_element_type=jnp.float32)
    h = jnp.maximum(h + b1_ref[...], 0.0)
    h = jnp.dot(h.astype(jnp.bfloat16), w2_ref[...], preferred_element_type=jnp.float32)
    h = jnp.maximum(h + b2_ref[...], 0.0)
    h = jnp.dot(h.astype(jnp.bfloat16), w3_ref[...], preferred_element_type=jnp.float32)
    o_ref[...] = h + b3_ref[...]


# ----------------------------------------------------------------------------
# Wrappers
# ----------------------------------------------------------------------------
def _conv1_corner_patches(x_nhwc):
    """[B,32,32,3] bf16 -> [4, B*196, 75] bf16 pool-corner im2col patches.
    K ordering is explicit: (kh, kw, c) with c fastest (matches pack_params)."""
    B = x_nhwc.shape[0]
    corners = []
    for di in (0, 1):
        for dj in (0, 1):
            taps = [x_nhwc[:, di + kh:di + kh + 27:2, dj + kw:dj + kw + 27:2, :]
                    for kh in range(5) for kw in range(5)]        # 25 x [B,14,14,3]
            corners.append(jnp.stack(taps, axis=3).reshape(B * 196, 75))
    return jnp.stack(corners, axis=0)                              # [4, B*196, 75]


def conv1_stage(x_nhwc_bf16, packed):
    """Conv1 + bias + ReLU + MaxPool2d(2,2) -> flattened [B, 14*14*6] bf16."""
    B = x_nhwc_bf16.shape[0]
    M = B * 196
    Mp, tm = _row_plan(M, _CONV_ROW_CAP)
    p = _pad_rows(_conv1_corner_patches(x_nhwc_bf16), Mp)          # [4, Mp, 75]

    out = pl.pallas_call(
        _conv1_kernel,
        out_shape=jax.ShapeDtypeStruct((Mp, 8), jnp.bfloat16),
        grid=(Mp // tm,),
        in_specs=[pl.BlockSpec((4, tm, 75), lambda i: (0, i, 0)),
                  pl.BlockSpec((75, 8), lambda i: (0, 0)),
                  pl.BlockSpec((1, 8), lambda i: (0, 0))],
        out_specs=pl.BlockSpec((tm, 8), lambda i: (i, 0)),
        compiler_params=pltpu.CompilerParams(
            dimension_semantics=("parallel",), vmem_limit_bytes=_VMEM_LIMIT),
    )(p, packed["c1_w"], packed["c1_b"])
    # rows are (b, ph, pw) with 6 valid channels -> per-image (h, w, c) flat vector.
    return out[:M, :6].reshape(B, 14 * 14 * 6)


def tail_stage(a1_flat, packed, classes):
    """Fused conv2 + pool + ReLU + fc1/ReLU/fc2/ReLU/fc3 on [B, 1176] activations."""
    B, K = a1_flat.shape
    Bp, tb = _row_plan(B, _TAIL_ROW_CAP)
    x = _pad_rows(a1_flat, Bp)
    n3 = packed["fc3_w"].shape[1]

    def full2(shape):
        return pl.BlockSpec(shape, lambda i: (0, 0))

    out = pl.pallas_call(
        _tail_kernel,
        out_shape=jax.ShapeDtypeStruct((Bp, n3), jnp.float32),
        grid=(Bp // tb,),
        in_specs=[pl.BlockSpec((tb, K), lambda i: (i, 0)),
                  pl.BlockSpec(packed["c2_m"].shape, lambda i: (0, 0, 0)),
                  full2(packed["c2_b"].shape),
                  full2(packed["fc1_w"].shape), full2(packed["fc1_b"].shape),
                  full2(packed["fc2_w"].shape), full2(packed["fc2_b"].shape),
                  full2(packed["fc3_w"].shape), full2(packed["fc3_b"].shape)],
        out_specs=pl.BlockSpec((tb, n3), lambda i: (i, 0)),
        compiler_params=pltpu.CompilerParams(
            dimension_semantics=("parallel",), vmem_limit_bytes=_VMEM_LIMIT),
    )(x, packed["c2_m"], packed["c2_b"], packed["fc1_w"], packed["fc1_b"],
      packed["fc2_w"], packed["fc2_b"], packed["fc3_w"], packed["fc3_b"])
    return out[:B, :classes]


# ----------------------------------------------------------------------------
# Parameters
# ----------------------------------------------------------------------------
def init_params(classes, key):
    """Deterministic synthetic parameters with the PyTorch LeNet shapes."""
    ks = jax.random.split(key, 10)

    def lin(kw_, kb_, fan_in, shape_w, shape_b):
        s = 1.0 / jnp.sqrt(jnp.float32(fan_in))
        return (jax.random.uniform(kw_, shape_w, jnp.float32, -s, s),
                jax.random.uniform(kb_, shape_b, jnp.float32, -s, s))

    p = {}
    p["conv1_w"], p["conv1_b"] = lin(ks[0], ks[1], 3 * 5 * 5, (6, 3, 5, 5), (6,))
    p["conv2_w"], p["conv2_b"] = lin(ks[2], ks[3], 6 * 5 * 5, (16, 6, 5, 5), (16,))
    p["fc1_w"], p["fc1_b"] = lin(ks[4], ks[5], 400, (120, 400), (120,))
    p["fc2_w"], p["fc2_b"] = lin(ks[6], ks[7], 120, (84, 120), (84,))
    p["fc3_w"], p["fc3_b"] = lin(ks[8], ks[9], 84, (classes, 84), (classes,))
    return p


def pack_params(p, classes):
    """One-time repack into kernel layout (bf16 weights, f32 biases, zero padding)."""
    n3 = _round_up(classes, _LANE)

    def pad2(a, rows, cols):
        out = np.zeros((rows, cols), np.float32)
        out[:a.shape[0], :a.shape[1]] = np.asarray(a, np.float32)
        return out

    def bias(b, n):
        return jnp.asarray(pad2(np.asarray(b, np.float32).reshape(1, -1), 1, n))

    # conv1: [OC,C,KH,KW] -> [K=(kh,kw,c), OC] padded to 8 cols.
    w1 = np.asarray(p["conv1_w"], np.float32).transpose(2, 3, 1, 0).reshape(75, 6)
    c1_w = jnp.asarray(pad2(w1, 75, 8), jnp.bfloat16)

    # conv2 + maxpool folded into 4 dense [1176, 512] matrices (one per pool corner).
    # Rows index the flattened (h,w,c) conv1 activation; cols index (oc,ph,pw), i.e.
    # PyTorch's NCHW flatten order, so fc1 weights need no permutation.
    w2 = np.asarray(p["conv2_w"], np.float32)                        # [16,6,5,5]
    m = np.zeros((2, 2, 14, 14, 6, 16, 5, 5), np.float32)
    for di in range(2):
        for dj in range(2):
            for ph in range(5):
                for pw in range(5):
                    for kh in range(5):
                        for kw in range(5):
                            h, w = 2 * ph + di + kh, 2 * pw + dj + kw
                            m[di, dj, h, w, :, :, ph, pw] = w2[:, :, kh, kw].T
    m = m.reshape(4, 14 * 14 * 6, 400)
    c2_m = np.zeros((4, 14 * 14 * 6, 512), np.float32)
    c2_m[:, :, :400] = m
    c2_b = np.zeros((1, 512), np.float32)
    c2_b[0, :400] = np.repeat(np.asarray(p["conv2_b"], np.float32), 25)

    return {
        "c1_w": c1_w, "c1_b": bias(p["conv1_b"], 8),
        "c2_m": jnp.asarray(c2_m, jnp.bfloat16), "c2_b": jnp.asarray(c2_b),
        "fc1_w": jnp.asarray(pad2(np.asarray(p["fc1_w"]).T, 512, _LANE), jnp.bfloat16),
        "fc1_b": bias(p["fc1_b"], _LANE),
        "fc2_w": jnp.asarray(pad2(np.asarray(p["fc2_w"]).T, _LANE, _LANE), jnp.bfloat16),
        "fc2_b": bias(p["fc2_b"], _LANE),
        "fc3_w": jnp.asarray(pad2(np.asarray(p["fc3_w"]).T, _LANE, n3), jnp.bfloat16),
        "fc3_b": bias(p["fc3_b"], n3),
    }


# ----------------------------------------------------------------------------
# Forward pass + f32 reference
# ----------------------------------------------------------------------------
def lenet_forward(packed, x_nchw, classes):
    x = jnp.transpose(x_nchw, (0, 2, 3, 1)).astype(jnp.bfloat16)   # NCHW->NHWC, bf16 DMA
    a1 = conv1_stage(x, packed)                                    # [B, 1176] bf16
    return tail_stage(a1, packed, classes)                         # [B, classes] f32


def lenet_reference(p, x_nchw):
    """Pure-XLA f32 reference mirroring the PyTorch module exactly."""
    def conv(x, w, b):
        y = lax.conv_general_dilated(x, w, (1, 1), "VALID",
                                     dimension_numbers=("NCHW", "OIHW", "NCHW"))
        return jax.nn.relu(y + b.reshape(1, -1, 1, 1))

    def pool(x):
        return lax.reduce_window(x, -jnp.inf, lax.max,
                                 (1, 1, 2, 2), (1, 1, 2, 2), "VALID")

    x = pool(conv(x_nchw, p["conv1_w"], p["conv1_b"]))
    x = pool(conv(x, p["conv2_w"], p["conv2_b"]))
    x = x.reshape(x.shape[0], -1)                                  # NCHW flatten
    x = jax.nn.relu(x @ p["fc1_w"].T + p["fc1_b"])
    x = jax.nn.relu(x @ p["fc2_w"].T + p["fc2_b"])
    return x @ p["fc3_w"].T + p["fc3_b"]


if __name__ == "__main__":
    classes = 10
    key = jax.random.PRNGKey(0)
    k_param, k_x = jax.random.split(key)

    params = init_params(classes, k_param)
    packed = pack_params(params, classes)

    # The 16*5*5 flatten in the classifier implies 3x32x32 inputs.
    x = jax.random.normal(k_x, (2, 3, 32, 32), dtype=jnp.float32)

    fwd = jax.jit(functools.partial(lenet_forward, classes=classes))
    out = jax.block_until_ready(fwd(packed, x))

    assert out.shape == (2, classes), out.shape
    assert out.dtype == jnp.float32

    ref = jax.block_until_ready(lenet_reference(params, x))
    err = float(jnp.max(jnp.abs(out - ref)))
    assert err < 5e-2, f"max abs err vs f32 reference: {err}"
    print("KERNEL_OK")
</pallas_src>

<mosaic_0001>
module attributes {stable_mosaic.version = 11 : i64} {
  func.func @_conv1_kernel(%arg0: i32, %arg1: memref<4x200x75xbf16, #tpu.memory_space<vmem>>, %arg2: memref<75x8xbf16, #tpu.memory_space<vmem>>, %arg3: memref<1x8xf32, #tpu.memory_space<vmem>>, %arg4: memref<200x8xbf16, #tpu.memory_space<vmem>>) attributes {dimension_semantics = [#tpu.dimension_semantics<parallel>], iteration_bounds = array<i64: 2>, scalar_prefetch = 0 : i64, scratch_operands = 0 : i64, tpu.core_type = #tpu.core_type<tc>, window_params = [{transform_indices = @transform_0, window_bounds = array<i64: 4, 200, 75>}, {pipeline_mode = #tpu.pipeline_mode<synchronous>, transform_indices = @transform_1, window_bounds = array<i64: 75, 8>}, {pipeline_mode = #tpu.pipeline_mode<synchronous>, transform_indices = @transform_2, window_bounds = array<i64: 1, 8>}, {transform_indices = @transform_3, window_bounds = array<i64: 200, 8>}]} {
    %c0 = arith.constant 0 : index
    %c0_0 = arith.constant 0 : index
    %0 = vector.load %arg2[%c0, %c0_0] : memref<75x8xbf16, #tpu.memory_space<vmem>>, vector<75x8xbf16>
    %c0_1 = arith.constant 0 : index
    %c0_2 = arith.constant 0 : index
    %1 = vector.load %arg3[%c0_1, %c0_2] : memref<1x8xf32, #tpu.memory_space<vmem>>, vector<1x8xf32>
    %c0_3 = arith.constant 0 : index
    %c0_4 = arith.constant 0 : index
    %c0_5 = arith.constant 0 : index
    %2 = vector.load %arg1[%c0_3, %c0_4, %c0_5] : memref<4x200x75xbf16, #tpu.memory_space<vmem>>, vector<1x200x75xbf16>
    %3 = vector.shape_cast %2 : vector<1x200x75xbf16> to vector<200x75xbf16>
    %cst = arith.constant dense<0.000000e+00> : vector<200x8xf32>
    %4 = tpu.matmul %3, %0, %cst {dimension_numbers = #tpu.dot_dimension_numbers<[1], [0], [0], [1], [0, 0, 1, 1], [], []>} : vector<200x75xbf16>, vector<75x8xbf16>, vector<200x8xf32> -> vector<200x8xf32>
    %c1 = arith.constant 1 : index
    %c0_6 = arith.constant 0 : index
    %c0_7 = arith.constant 0 : index
    %5 = vector.load %arg1[%c1, %c0_6, %c0_7] : memref<4x200x75xbf16, #tpu.memory_space<vmem>>, vector<1x200x75xbf16>
    %6 = vector.shape_cast %5 : vector<1x200x75xbf16> to vector<200x75xbf16>
    %cst_8 = arith.constant dense<0.000000e+00> : vector<200x8xf32>
    %7 = tpu.matmul %6, %0, %cst_8 {dimension_numbers = #tpu.dot_dimension_numbers<[1], [0], [0], [1], [0, 0, 1, 1], [], []>} : vector<200x75xbf16>, vector<75x8xbf16>, vector<200x8xf32> -> vector<200x8xf32>
    %8 = arith.maximumf %4, %7 : vector<200x8xf32>
    %c2 = arith.constant 2 : index
    %c0_9 = arith.constant 0 : index
    %c0_10 = arith.constant 0 : index
    %9 = vector.load %arg1[%c2, %c0_9, %c0_10] : memref<4x200x75xbf16, #tpu.memory_space<vmem>>, vector<1x200x75xbf16>
    %10 = vector.shape_cast %9 : vector<1x200x75xbf16> to vector<200x75xbf16>
    %cst_11 = arith.constant dense<0.000000e+00> : vector<200x8xf32>
    %11 = tpu.matmul %10, %0, %cst_11 {dimension_numbers = #tpu.dot_dimension_numbers<[1], [0], [0], [1], [0, 0, 1, 1], [], []>} : vector<200x75xbf16>, vector<75x8xbf16>, vector<200x8xf32> -> vector<200x8xf32>
    %12 = arith.maximumf %8, %11 : vector<200x8xf32>
    %c3 = arith.constant 3 : index
    %c0_12 = arith.constant 0 : index
    %c0_13 = arith.constant 0 : index
    %13 = vector.load %arg1[%c3, %c0_12, %c0_13] : memref<4x200x75xbf16, #tpu.memory_space<vmem>>, vector<1x200x75xbf16>
    %14 = vector.shape_cast %13 : vector<1x200x75xbf16> to vector<200x75xbf16>
    %cst_14 = arith.constant dense<0.000000e+00> : vector<200x8xf32>
    %15 = tpu.matmul %14, %0, %cst_14 {dimension_numbers = #tpu.dot_dimension_numbers<[1], [0], [0], [1], [0, 0, 1, 1], [], []>} : vector<200x75xbf16>, vector<75x8xbf16>, vector<200x8xf32> -> vector<200x8xf32>
    %16 = arith.maximumf %12, %15 : vector<200x8xf32>
    %17 = vector.broadcast %1 : vector<1x8xf32> to vector<200x8xf32>
    %18 = arith.addf %16, %17 : vector<200x8xf32>
    %cst_15 = arith.constant 0.000000e+00 : f32
    %19 = vector.broadcast %cst_15 : f32 to vector<200x8xf32>
    %20 = arith.maximumf %18, %19 : vector<200x8xf32>
    %21 = arith.truncf %20 : vector<200x8xf32> to vector<200x8xbf16>
    %c0_16 = arith.constant 0 : index
    %c0_17 = arith.constant 0 : index
    %22 = vector.load %arg4[%c0_16, %c0_17] : memref<200x8xbf16, #tpu.memory_space<vmem>>, vector<200x8xbf16>
    tpu.vector_store %arg4[%c0_16, %c0_17], %21 {strides = array<i32>} : memref<200x8xbf16, #tpu.memory_space<vmem>>, vector<200x8xbf16>,
    return
  }
  func.func @transform_0(%arg0: i32) -> (i32, i32, i32) {
    %c0_i32 = arith.constant 0 : i32
    %c0_i32_0 = arith.constant 0 : i32
    %c0_i32_1 = arith.constant 0 : i32
    return %c0_i32, %arg0, %c0_i32_0 : i32, i32, i32
  }
  func.func @transform_1(%arg0: i32) -> (i32, i32) {
    %c0_i32 = arith.constant 0 : i32
    %c0_i32_0 = arith.constant 0 : i32
    %c0_i32_1 = arith.constant 0 : i32
    return %c0_i32, %c0_i32_0 : i32, i32
  }
  func.func @transform_2(%arg0: i32) -> (i32, i32) {
    %c0_i32 = arith.constant 0 : i32
    %c0_i32_0 = arith.constant 0 : i32
    %c0_i32_1 = arith.constant 0 : i32
    return %c0_i32, %c0_i32_0 : i32, i32
  }
  func.func @transform_3(%arg0: i32) -> (i32, i32) {
    %c0_i32 = arith.constant 0 : i32
    %c0_i32_0 = arith.constant 0 : i32
    return %arg0, %c0_i32 : i32, i32
  }
}

module attributes {stable_mosaic.version = 11 : i64} {
  func.func @_tail_kernel(%arg0: i32, %arg1: memref<8x1176xbf16, #tpu.memory_space<vmem>>, %arg2: memref<4x1176x512xbf16, #tpu.memory_space<vmem>>, %arg3: memref<1x512xf32, #tpu.memory_space<vmem>>, %arg4: memref<512x128xbf16, #tpu.memory_space<vmem>>, %arg5: memref<1x128xf32, #tpu.memory_space<vmem>>, %arg6: memref<128x128xbf16, #tpu.memory_space<vmem>>, %arg7: memref<1x128xf32, #tpu.memory_space<vmem>>, %arg8: memref<128x128xbf16, #tpu.memory_space<vmem>>, %arg9: memref<1x128xf32, #tpu.memory_space<vmem>>, %arg10: memref<8x128xf32, #tpu.memory_space<vmem>>) attributes {dimension_semantics = [#tpu.dimension_semantics<parallel>], iteration_bounds = array<i64: 1>, scalar_prefetch = 0 : i64, scratch_operands = 0 : i64, tpu.core_type = #tpu.core_type<tc>, window_params = [{transform_indices = @transform_0, window_bounds = array<i64: 8, 1176>}, {pipeline_mode = #tpu.pipeline_mode<synchronous>, transform_indices = @transform_1, window_bounds = array<i64: 4, 1176, 512>}, {pipeline_mode = #tpu.pipeline_mode<synchronous>, transform_indices = @transform_2, window_bounds = array<i64: 1, 512>}, {pipeline_mode = #tpu.pipeline_mode<synchronous>, transform_indices = @transform_3, window_bounds = array<i64: 512, 128>}, {pipeline_mode = #tpu.pipeline_mode<synchronous>, transform_indices = @transform_4, window_bounds = array<i64: 1, 128>}, {pipeline_mode = #tpu.pipeline_mode<synchronous>, transform_indices = @transform_5, window_bounds = array<i64: 128, 128>}, {pipeline_mode = #tpu.pipeline_mode<synchronous>, transform_indices = @transform_6, window_bounds = array<i64: 1, 128>}, {pipeline_mode = #tpu.pipeline_mode<synchronous>, transform_indices = @transform_7, window_bounds = array<i64: 128, 128>}, {pipeline_mode = #tpu.pipeline_mode<synchronous>, transform_indices = @transform_8, window_bounds = array<i64: 1, 128>}, {transform_indices = @transform_9, window_bounds = array<i64: 8, 128>}]} {
    %c0 = arith.constant 0 : index
    %c0_0 = arith.constant 0 : index
    %0 = vector.load %arg1[%c0, %c0_0] : memref<8x1176xbf16, #tpu.memory_space<vmem>>, vector<8x1176xbf16>
    %c0_1 = arith.constant 0 : index
    %c0_2 = arith.constant 0 : index
    %c0_3 = arith.constant 0 : index
    %1 = vector.load %arg2[%c0_1, %c0_2, %c0_3] : memref<4x1176x512xbf16, #tpu.memory_space<vmem>>, vector<1x1176x512xbf16>
    %2 = vector.shape_cast %1 : vector<1x1176x512xbf16> to vector<1176x512xbf16>
    %cst = arith.constant dense<0.000000e+00> : vector<8x512xf32>
    %3 = tpu.matmul %0, %2, %cst {dimension_numbers = #tpu.dot_dimension_numbers<[1], [0], [0], [1], [0, 0, 1, 1], [], []>} : vector<8x1176xbf16>, vector<1176x512xbf16>, vector<8x512xf32> -> vector<8x512xf32>
    %c1 = arith.constant 1 : index
    %c0_4 = arith.constant 0 : index
    %c0_5 = arith.constant 0 : index
    %4 = vector.load %arg2[%c1, %c0_4, %c0_5] : memref<4x1176x512xbf16, #tpu.memory_space<vmem>>, vector<1x1176x512xbf16>
    %5 = vector.shape_cast %4 : vector<1x1176x512xbf16> to vector<1176x512xbf16>
    %cst_6 = arith.constant dense<0.000000e+00> : vector<8x512xf32>
    %6 = tpu.matmul %0, %5, %cst_6 {dimension_numbers = #tpu.dot_dimension_numbers<[1], [0], [0], [1], [0, 0, 1, 1], [], []>} : vector<8x1176xbf16>, vector<1176x512xbf16>, vector<8x512xf32> -> vector<8x512xf32>
    %7 = arith.maximumf %3, %6 : vector<8x512xf32>
    %c2 = arith.constant 2 : index
    %c0_7 = arith.constant 0 : index
    %c0_8 = arith.constant 0 : index
    %8 = vector.load %arg2[%c2, %c0_7, %c0_8] : memref<4x1176x512xbf16, #tpu.memory_space<vmem>>, vector<1x1176x512xbf16>
    %9 = vector.shape_cast %8 : vector<1x1176x512xbf16> to vector<1176x512xbf16>
    %cst_9 = arith.constant dense<0.000000e+00> : vector<8x512xf32>
    %10 = tpu.matmul %0, %9, %cst_9 {dimension_numbers = #tpu.dot_dimension_numbers<[1], [0], [0], [1], [0, 0, 1, 1], [], []>} : vector<8x1176xbf16>, vector<1176x512xbf16>, vector<8x512xf32> -> vector<8x512xf32>
    %11 = arith.maximumf %7, %10 : vector<8x512xf32>
    %c3 = arith.constant 3 : index
    %c0_10 = arith.constant 0 : index
    %c0_11 = arith.constant 0 : index
    %12 = vector.load %arg2[%c3, %c0_10, %c0_11] : memref<4x1176x512xbf16, #tpu.memory_space<vmem>>, vector<1x1176x512xbf16>
    %13 = vector.shape_cast %12 : vector<1x1176x512xbf16> to vector<1176x512xbf16>
    %cst_12 = arith.constant dense<0.000000e+00> : vector<8x512xf32>
    %14 = tpu.matmul %0, %13, %cst_12 {dimension_numbers = #tpu.dot_dimension_numbers<[1], [0], [0], [1], [0, 0, 1, 1], [], []>} : vector<8x1176xbf16>, vector<1176x512xbf16>, vector<8x512xf32> -> vector<8x512xf32>
    %15 = arith.maximumf %11, %14 : vector<8x512xf32>
    %c0_13 = arith.constant 0 : index
    %c0_14 = arith.constant 0 : index
    %16 = vector.load %arg3[%c0_13, %c0_14] : memref<1x512xf32, #tpu.memory_space<vmem>>, vector<1x512xf32>
    %17 = vector.broadcast %16 : vector<1x512xf32> to vector<8x512xf32>
    %18 = arith.addf %15, %17 : vector<8x512xf32>
    %cst_15 = arith.constant 0.000000e+00 : f32
    %19 = vector.broadcast %cst_15 : f32 to vector<8x512xf32>
    %20 = arith.maximumf %18, %19 : vector<8x512xf32>
    %21 = arith.truncf %20 : vector<8x512xf32> to vector<8x512xbf16>
    %c0_16 = arith.constant 0 : index
    %c0_17 = arith.constant 0 : index
    %22 = vector.load %arg4[%c0_16, %c0_17] : memref<512x128xbf16, #tpu.memory_space<vmem>>, vector<512x128xbf16>
    %cst_18 = arith.constant dense<0.000000e+00> : vector<8x128xf32>
    %23 = tpu.matmul %21, %22, %cst_18 {dimension_numbers = #tpu.dot_dimension_numbers<[1], [0], [0], [1], [0, 0, 1, 1], [], []>} : vector<8x512xbf16>, vector<512x128xbf16>, vector<8x128xf32> -> vector<8x128xf32>
    %c0_19 = arith.constant 0 : index
    %c0_20 = arith.constant 0 : index
    %24 = vector.load %arg5[%c0_19, %c0_20] : memref<1x128xf32, #tpu.memory_space<vmem>>, vector<1x128xf32>
    %25 = vector.broadcast %24 : vector<1x128xf32> to vector<8x128xf32>
    %26 = arith.addf %23, %25 : vector<8x128xf32>
    %cst_21 = arith.constant 0.000000e+00 : f32
    %27 = vector.broadcast %cst_21 : f32 to vector<8x128xf32>
    %28 = arith.maximumf %26, %27 : vector<8x128xf32>
    %29 = arith.truncf %28 : vector<8x128xf32> to vector<8x128xbf16>
    %c0_22 = arith.constant 0 : index
    %c0_23 = arith.constant 0 : index
    %30 = vector.load %arg6[%c0_22, %c0_23] : memref<128x128xbf16, #tpu.memory_space<vmem>>, vector<128x128xbf16>
    %cst_24 = arith.constant dense<0.000000e+00> : vector<8x128xf32>
    %31 = tpu.matmul %29, %30, %cst_24 {dimension_numbers = #tpu.dot_dimension_numbers<[1], [0], [0], [1], [0, 0, 1, 1], [], []>} : vector<8x128xbf16>, vector<128x128xbf16>, vector<8x128xf32> -> vector<8x128xf32>
    %c0_25 = arith.constant 0 : index
    %c0_26 = arith.constant 0 : index
    %32 = vector.load %arg7[%c0_25, %c0_26] : memref<1x128xf32, #tpu.memory_space<vmem>>, vector<1x128xf32>
    %33 = vector.broadcast %32 : vector<1x128xf32> to vector<8x128xf32>
    %34 = arith.addf %31, %33 : vector<8x128xf32>
    %cst_27 = arith.constant 0.000000e+00 : f32
    %35 = vector.broadcast %cst_27 : f32 to vector<8x128xf32>
    %36 = arith.maximumf %34, %35 : vector<8x128xf32>
    %37 = arith.truncf %36 : vector<8x128xf32> to vector<8x128xbf16>
    %c0_28 = arith.constant 0 : index
    %c0_29 = arith.constant 0 : index
    %38 = vector.load %arg8[%c0_28, %c0_29] : memref<128x128xbf16, #tpu.memory_space<vmem>>, vector<128x128xbf16>
    %cst_30 = arith.constant dense<0.000000e+00> : vector<8x128xf32>
    %39 = tpu.matmul %37, %38, %cst_30 {dimension_numbers = #tpu.dot_dimension_numbers<[1], [0], [0], [1], [0, 0, 1, 1], [], []>} : vector<8x128xbf16>, vector<128x128xbf16>, vector<8x128xf32> -> vector<8x128xf32>
    %c0_31 = arith.constant 0 : index
    %c0_32 = arith.constant 0 : index
    %40 = vector.load %arg9[%c0_31, %c0_32] : memref<1x128xf32, #tpu.memory_space<vmem>>, vector<1x128xf32>
    %41 = vector.broadcast %40 : vector<1x128xf32> to vector<8x128xf32>
    %42 = arith.addf %39, %41 : vector<8x128xf32>
    %c0_33 = arith.constant 0 : index
    %c0_34 = arith.constant 0 : index
    %43 = vector.load %arg10[%c0_33, %c0_34] : memref<8x128xf32, #tpu.memory_space<vmem>>, vector<8x128xf32>
    tpu.vector_store %arg10[%c0_33, %c0_34], %42 {strides = array<i32>} : memref<8x128xf32, #tpu.memory_space<vmem>>, vector<8x128xf32>,
    return
  }
  func.func @transform_0(%arg0: i32) -> (i32, i32) {
    %c0_i32 = arith.constant 0 : i32
    %c0_i32_0 = arith.constant 0 : i32
    return %arg0, %c0_i32 : i32, i32
  }
  func.func @transform_1(%arg0: i32) -> (i32, i32, i32) {
    %c0_i32 = arith.constant 0 : i32
    %c0_i32_0 = arith.constant 0 : i32
    %c0_i32_1 = arith.constant 0 : i32
    %c0_i32_2 = arith.constant 0 : i32
    return %c0_i32, %c0_i32_0, %c0_i32_1 : i32, i32, i32
  }
  func.func @transform_2(%arg0: i32) -> (i32, i32) {
    %c0_i32 = arith.constant 0 : i32
    %c0_i32_0 = arith.constant 0 : i32
    %c0_i32_1 = arith.constant 0 : i32
    return %c0_i32, %c0_i32_0 : i32, i32
  }
  func.func @transform_3(%arg0: i32) -> (i32, i32) {
    %c0_i32 = arith.constant 0 : i32
    %c0_i32_0 = arith.constant 0 : i32
    %c0_i32_1 = arith.constant 0 : i32
    return %c0_i32, %c0_i32_0 : i32, i32
  }
  func.func @transform_4(%arg0: i32) -> (i32, i32) {
    %c0_i32 = arith.constant 0 : i32
    %c0_i32_0 = arith.constant 0 : i32
    %c0_i32_1 = arith.constant 0 : i32
    return %c0_i32, %c0_i32_0 : i32, i32
  }
  func.func @transform_5(%arg0: i32) -> (i32, i32) {
    %c0_i32 = arith.constant 0 : i32
    %c0_i32_0 = arith.constant 0 : i32
    %c0_i32_1 = arith.constant 0 : i32
    return %c0_i32, %c0_i32_0 : i32, i32
  }
  func.func @transform_6(%arg0: i32) -> (i32, i32) {
    %c0_i32 = arith.constant 0 : i32
    %c0_i32_0 = arith.constant 0 : i32
    %c0_i32_1 = arith.constant 0 : i32
    return %c0_i32, %c0_i32_0 : i32, i32
  }
  func.func @transform_7(%arg0: i32) -> (i32, i32) {
    %c0_i32 = arith.constant 0 : i32
    %c0_i32_0 = arith.constant 0 : i32
    %c0_i32_1 = arith.constant 0 : i32
    return %c0_i32, %c0_i32_0 : i32, i32
  }
  func.func @transform_8(%arg0: i32) -> (i32, i32) {
    %c0_i32 = arith.constant 0 : i32
    %c0_i32_0 = arith.constant 0 : i32
    %c0_i32_1 = arith.constant 0 : i32
    return %c0_i32, %c0_i32_0 : i32, i32
  }
  func.func @transform_9(%arg0: i32) -> (i32, i32) {
    %c0_i32 = arith.constant 0 : i32
    %c0_i32_0 = arith.constant 0 : i32
    return %arg0, %c0_i32 : i32, i32
  }
}

</mosaic_0001>

<bundles_post_ra>
// kernel: lenet_forward.2
= control target key start
LH: loop header
LB: loop body
LE: loop exit
PB: predicated region body
PF: predicated region fallthrough
CT: control target
= control target key end

     0   :  { %s2733_s12 = smov 0   ;;  %s2735_s13 = smov 0   ;;  %s3445_s0 = inlined_call_operand.vmem [shape: bf16[4,400,75], index: 0, kind: input, shape index: {}]   ;;  %s3446_s1 = inlined_call_operand.vmem [shape: bf16[75,8], index: 1, kind: input, shape index: {}]   ;;  %s3447_s2 = inlined_call_operand.vmem [shape: f32[1,8], index: 2, kind: input, shape index: {}]   ;;  %s3448_s3 = inlined_call_operand.vmem [shape: bf16[400,8], index: 3, kind: output, shape index: {}]  }
   0x1   :  { %s2737_s14 = smov 0  }
   0x2 LB: > { %s2035_s15 = sadd.s32 4294967295, %s2708_s14   ;;  %s2750_s16 = sadd.s32 1, %s2708_s14   ;;  %s2708_s14 = sphi %s2737_s14, %s3474_s14   ;;  %s2704_s13 = sphi %s2735_s13, %s3473_s13   ;;  %s2700_s12 = sphi %s2733_s12, %s3472_s12  }
   0x3   : > { %s17_s17 = ssub.s32 %s2708_s14, %s2750_s16  ;;  %s20_s18 = sadd.s32 1, %s2704_s13 }
   0x4   : > { %p18_p0 = scmp.eq.s32.totalorder %s17_s17, 0  ;;  %p27_p1 = scmp.ne.s32.totalorder %s2704_s13, %s2700_s12 }
   0x5   : > { %p28_p2 = scmp.eq.s32.totalorder %s2708_s14, 0  ;;  %p2038_p4 = scmp.ge.s32.totalorder %s2708_s14, 2 }
   0x6   : > { %s2759_s19 = scalar_select %p18_p0, %s2704_s13, %s20_s18  }
   0x7   : > { %p29_p3 = por %p28_p2, %p27_p1  ;;  %127 = sbr.rel (%p2038_p4) target bundleno = 45 (0x2d), region = 24 }
   0xe   : > { %130 = sbr.rel (!%p29_p3) target bundleno = 45 (0x2d), region = 28  ;;  %s132_s20 = sand.u32 (%p29_p3), 1, %s2704_s13  }
   0xf   : > { %s2254_s21 = smul.u32 (%p29_p3), 100, %s2708_s14 }
  0x10   : > { %s2600_s22 = smul.u32 (%p29_p3), 400, %s132_s20 }
  0x11   : > { %s2767_s25 = scalar_lea.vmem (%p29_p3), %s3445_s0, %s2254_s21 }
  0x12   : > { %v153_v0 = vld [vmem:[%s2767_s25] sm:$0xff] (%p29_p3)   ;;  %v157_v1 = vld [vmem:[%s2767_s25 + $0x8] sm:$0xff] (%p29_p3)   ;;  %v161_v2 = vld [vmem:[%s2767_s25 + $0x10] sm:$0xff] (%p29_p3)   ;;  %s2772_s26 = scalar_lea.vmem (%p29_p3), [#allocation2], %s2600_s22 }
  0x13   : > { %154 = vst [vmem:[%s2772_s26] sm:$0xff] (%p29_p3), %v153_v0   ;;  %158 = vst [vmem:[%s2772_s26 + $0x8] sm:$0xff] (%p29_p3), %v157_v1   ;;  %v165_v3 = vld [vmem:[%s2767_s25 + $0x18] sm:$0xff] (%p29_p3)   ;;  %v169_v4 = vld [vmem:[%s2767_s25 + $0x20] sm:$0xff] (%p29_p3)  }
  0x14   : > { %162 = vst [vmem:[%s2772_s26 + $0x10] sm:$0xff] (%p29_p3), %v161_v2   ;;  %v173_v5 = vld [vmem:[%s2767_s25 + $0x28] sm:$0xff] (%p29_p3)   ;;  %166 = vst [vmem:[%s2772_s26 + $0x18] sm:$0xff] (%p29_p3), %v165_v3   ;;  %v177_v6 = vld [vmem:[%s2767_s25 + $0x30] sm:$0xff] (%p29_p3)  }
  0x15   : > { %170 = vst [vmem:[%s2772_s26 + $0x20] sm:$0xff] %v169_v4   ;;  %174 = vst [vmem:[%s2772_s26 + $0x28] sm:$0xff] %v173_v5   ;;  %v181_v7 = vld [vmem:[%s2767_s25 + $0x38] sm:$0xff]   ;;  %v185_v8 = vld [vmem:[%s2767_s25 + $0x40] sm:$0xff]  }
  0x16   : > { %178 = vst [vmem:[%s2772_s26 + $0x30] sm:$0xff] %v177_v6   ;;  %182 = vst [vmem:[%s2772_s26 + $0x38] sm:$0xff] %v181_v7   ;;  %v189_v9 = vld [vmem:[%s2767_s25 + $0x48] sm:$0xff]   ;;  %v193_v10 = vld [vmem:[%s2767_s25 + $0x50] sm:$0xff]  }
  0x17   : > { %186 = vst [vmem:[%s2772_s26 + $0x40] sm:$0xff] %v185_v8   ;;  %v197_v11 = vld [vmem:[%s2767_s25 + $0x58] sm:$0xff]   ;;  %190 = vst [vmem:[%s2772_s26 + $0x48] sm:$0xff] %v189_v9   ;;  %v201_v12 = vld [vmem:[%s2767_s25 + $0x60] sm:$0xf] }
  0x18   : > { %194 = vst [vmem:[%s2772_s26 + $0x50] sm:$0xff] %v193_v10   ;;  %198 = vst [vmem:[%s2772_s26 + $0x58] sm:$0xff] %v197_v11   ;;  %v203_v13 = vld [vmem:[%s2767_s25 + $0xc8] sm:$0xff]   ;;  %v207_v14 = vld [vmem:[%s2767_s25 + $0xd0] sm:$0xff]  }
  0x19   : > { %202 = vst [vmem:[%s2772_s26 + $0x60] sm:$0xf] %v201_v12  ;;  %204 = vst [vmem:[%s2772_s26 + $0x64] sm:$0xff] %v203_v13   ;;  %v211_v15 = vld [vmem:[%s2767_s25 + $0xd8] sm:$0xff]   ;;  %v215_v16 = vld [vmem:[%s2767_s25 + $0xe0] sm:$0xff]  }
  0x1a   : > { %208 = vst [vmem:[%s2772_s26 + $0x6c] sm:$0xff] %v207_v14   ;;  %v219_v17 = vld [vmem:[%s2767_s25 + $0xe8] sm:$0xff]   ;;  %212 = vst [vmem:[%s2772_s26 + $0x74] sm:$0xff] %v211_v15   ;;  %v223_v18 = vld [vmem:[%s2767_s25 + $0xf0] sm:$0xff]  }
  0x1b   : > { %216 = vst [vmem:[%s2772_s26 + $0x7c] sm:$0xff] %v215_v16   ;;  %220 = vst [vmem:[%s2772_s26 + $0x84] sm:$0xff] %v219_v17   ;;  %v227_v19 = vld [vmem:[%s2767_s25 + $0xf8] sm:$0xff]   ;;  %v231_v20 = vld [vmem:[%s2767_s25 + $0x100] sm:$0xff]  }
  0x1c   : > { %224 = vst [vmem:[%s2772_s26 + $0x8c] sm:$0xff] %v223_v18   ;;  %228 = vst [vmem:[%s2772_s26 + $0x94] sm:$0xff] %v227_v19   ;;  %v235_v21 = vld [vmem:[%s2767_s25 + $0x108] sm:$0xff]   ;;  %v239_v22 = vld [vmem:[%s2767_s25 + $0x110] sm:$0xff]  }
  0x1d   : > { %232 = vst [vmem:[%s2772_s26 + $0x9c] sm:$0xff] %v231_v20   ;;  %v243_v23 = vld [vmem:[%s2767_s25 + $0x118] sm:$0xff]   ;;  %236 = vst [vmem:[%s2772_s26 + $0xa4] sm:$0xff] %v235_v21   ;;  %v247_v24 = vld [vmem:[%s2767_s25 + $0x120] sm:$0xff]  }
  0x1e   : > { %240 = vst [vmem:[%s2772_s26 + $0xac] sm:$0xff] %v239_v22   ;;  %244 = vst [vmem:[%s2772_s26 + $0xb4] sm:$0xff] %v243_v23   ;;  %v251_v25 = vld [vmem:[%s2767_s25 + $0x128] sm:$0xf]  ;;  %v253_v26 = vld [vmem:[%s2767_s25 + $0x190] sm:$0xff]  }
  0x1f   : > { %248 = vst [vmem:[%s2772_s26 + $0xbc] sm:$0xff] %v247_v24   ;;  %252 = vst [vmem:[%s2772_s26 + $0xc4] sm:$0xf] %v251_v25  ;;  %v257_v27 = vld [vmem:[%s2767_s25 + $0x198] sm:$0xff]   ;;  %v261_v28 = vld [vmem:[%s2767_s25 + $0x1a0] sm:$0xff]  }
  0x20   : > { %254 = vst [vmem:[%s2772_s26 + $0xc8] sm:$0xff] %v253_v26   ;;  %v265_v29 = vld [vmem:[%s2767_s25 + $0x1a8] sm:$0xff]   ;;  %258 = vst [vmem:[%s2772_s26 + $0xd0] sm:$0xff] %v257_v27   ;;  %v269_v30 = vld [vmem:[%s2767_s25 + $0x1b0] sm:$0xff]  }
  0x21   : > { %262 = vst [vmem:[%s2772_s26 + $0xd8] sm:$0xff] %v261_v28   ;;  %266 = vst [vmem:[%s2772_s26 + $0xe0] sm:$0xff] %v265_v29   ;;  %v273_v31 = vld [vmem:[%s2767_s25 + $0x1b8] sm:$0xff]   ;;  %v277_v32 = vld [vmem:[%s2767_s25 + $0x1c0] sm:$0xff]  }
  0x22   : > { %270 = vst [vmem:[%s2772_s26 + $0xe8] sm:$0xff] %v269_v30   ;;  %274 = vst [vmem:[%s2772_s26 + $0xf0] sm:$0xff] %v273_v31   ;;  %v281_v33 = vld [vmem:[%s2767_s25 + $0x1c8] sm:$0xff]   ;;  %v285_v34 = vld [vmem:[%s2767_s25 + $0x1d0] sm:$0xff]  }
  0x23   : > { %278 = vst [vmem:[%s2772_s26 + $0xf8] sm:$0xff] %v277_v32   ;;  %v289_v35 = vld [vmem:[%s2767_s25 + $0x1d8] sm:$0xff]   ;;  %282 = vst [vmem:[%s2772_s26 + $0x100] sm:$0xff] %v281_v33   ;;  %v293_v36 = vld [vmem:[%s2767_s25 + $0x1e0] sm:$0xff]  }
  0x24   : > { %286 = vst [vmem:[%s2772_s26 + $0x108] sm:$0xff] %v285_v34   ;;  %290 = vst [vmem:[%s2772_s26 + $0x110] sm:$0xff] %v289_v35   ;;  %v297_v37 = vld [vmem:[%s2767_s25 + $0x1e8] sm:$0xff]   ;;  %v301_v38 = vld [vmem:[%s2767_s25 + $0x1f0] sm:$0xf] }
  0x25   : > { %294 = vst [vmem:[%s2772_s26 + $0x118] sm:$0xff] %v293_v36   ;;  %298 = vst [vmem:[%s2772_s26 + $0x120] sm:$0xff] %v297_v37   ;;  %v303_v39 = vld [vmem:[%s2767_s25 + $0x258] sm:$0xff]   ;;  %v307_v40 = vld [vmem:[%s2767_s25 + $0x260] sm:$0xff]  }
  0x26   : > { %302 = vst [vmem:[%s2772_s26 + $0x128] sm:$0xf] %v301_v38  ;;  %v311_v41 = vld [vmem:[%s2767_s25 + $0x268] sm:$0xff]   ;;  %304 = vst [vmem:[%s2772_s26 + $0x12c] sm:$0xff] %v303_v39   ;;  %v315_v42 = vld [vmem:[%s2767_s25 + $0x270] sm:$0xff]  }
  0x27   : > { %308 = vst [vmem:[%s2772_s26 + $0x134] sm:$0xff] %v307_v40   ;;  %312 = vst [vmem:[%s2772_s26 + $0x13c] sm:$0xff] %v311_v41   ;;  %v319_v43 = vld [vmem:[%s2767_s25 + $0x278] sm:$0xff]   ;;  %v323_v44 = vld [vmem:[%s2767_s25 + $0x280] sm:$0xff]  }
  0x28   : > { %316 = vst [vmem:[%s2772_s26 + $0x144] sm:$0xff] %v315_v42   ;;  %320 = vst [vmem:[%s2772_s26 + $0x14c] sm:$0xff] %v319_v43   ;;  %v327_v45 = vld [vmem:[%s2767_s25 + $0x288] sm:$0xff]   ;;  %v331_v46 = vld [vmem:[%s2767_s25 + $0x290] sm:$0xff]  }
  0x29   : > { %324 = vst [vmem:[%s2772_s26 + $0x154] sm:$0xff] %v323_v44   ;;  %v335_v47 = vld [vmem:[%s2767_s25 + $0x298] sm:$0xff]   ;;  %328 = vst [vmem:[%s2772_s26 + $0x15c] sm:$0xff] %v327_v45   ;;  %v339_v48 = vld [vmem:[%s2767_s25 + $0x2a0] sm:$0xff]  }
  0x2a   : > { %332 = vst [vmem:[%s2772_s26 + $0x164] sm:$0xff] %v331_v46   ;;  %336 = vst [vmem:[%s2772_s26 + $0x16c] sm:$0xff] %v335_v47   ;;  %v343_v49 = vld [vmem:[%s2767_s25 + $0x2a8] sm:$0xff]   ;;  %v347_v50 = vld [vmem:[%s2767_s25 + $0x2b0] sm:$0xff]  }
  0x2b   : > { %340 = vst [vmem:[%s2772_s26 + $0x174] sm:$0xff] %v339_v48   ;;  %344 = vst [vmem:[%s2772_s26 + $0x17c] sm:$0xff] %v343_v49   ;;  %v351_v51 = vld [vmem:[%s2767_s25 + $0x2b8] sm:$0xf] }
  0x2c   : > { %348 = vst [vmem:[%s2772_s26 + $0x184] sm:$0xff] %v347_v50   ;;  %352 = vst [vmem:[%s2772_s26 + $0x18c] sm:$0xf] %v351_v51 }
  0x2d PF: > { %p2040_p5 = scmp.ge.s32.totalorder %s2708_s14, 1  ;;  %p574_p6 = scmp.lt.s32.totalorder %s2708_s14, 3 }
  0x2f   : > { %p575_p7 = pnand %p2040_p5, %p574_p6 }
  0x30   : > { %v2629_v52 = vld [vmem:[%s3446_s1] sm:$0xff] (!%p575_p7)   ;;  %v2710_v53 = vmov (!%p575_p7), 0.0   ;;  %v2630_v54 = vld [vmem:[%s3446_s1 + $0x8] sm:$0xff] (!%p575_p7)   ;;  %vm780_vm0 = vcmask (!%p575_p7), 1044480   ;;  %s581_s4 = sand.u32 (!%p575_p7), 1, %s2700_s12   ;;  %v2631_v55 = vld [vmem:[%s3446_s1 + $0x10] sm:$0xff] (!%p575_p7)  }
  0x31   : > { %578 = sbr.rel (%p575_p7) target bundleno = 492 (0x1ec), region = 69  ;;  %2352 = vmatprep.subr.bf16.mxu0 (!%p575_p7), %v2710_v53  ;;  %2414 = vmatprep.subr.bf16.mxu1 (!%p575_p7), %v2710_v53  ;;  %vm781_vm1 = vcmask (!%p575_p7), 1045504   ;;  %v2711_v56 = vmov (!%p575_p7), 65535   ;;  %vm2712_vm2 = vmmov (!%p575_p7), 0   ;;  %v2632_v58 = vld [vmem:[%s3446_s1 + $0x18] sm:$0xff] (!%p575_p7)   ;;  %vm740_vm3 = vcmask (!%p575_p7), 613376  }
  0x32   : > { %2353 = vmatpush3.bf16.msra.mxu0 (!%p575_p7), %v2629_v52  ;;  %2415 = vmatpush3.bf16.msra.mxu1 (!%p575_p7), %v2629_v52  ;;  %s2601_s7 = smul.u32 (!%p575_p7), 400, %s581_s4  ;;  %v782_v57 = vsel (!%p575_p7), %vm780_vm0, 4294967295, %v2711_v56  ;;  %v2633_v59 = vld [vmem:[%s3446_s1 + $0x20] sm:$0x3f] (!%p575_p7)   ;;  %vm1947_vm4 = vcmask (!%p575_p7), 60416  }
  0x33   : > { %2354 = vmatprep.subr.bf16.mxu0 (!%p575_p7), %v2710_v53  ;;  %2416 = vmatprep.subr.bf16.mxu1 (!%p575_p7), %v2710_v53  ;;  %v783_v60 = vsel (!%p575_p7), %vm781_vm1, %v782_v57, 0  ;;  %s605_s17 = smul.u32 (!%p575_p7), 25, %s2035_s15 }
  0x34   : > { %2362 = vmatprep.mubr.msk.bf16.mxu0 (!%p575_p7), %vm2712_vm2, %v2710_v53  ;;  %2424 = vmatprep.mubr.msk.bf16.mxu1 (!%p575_p7), %vm2712_vm2, %v2710_v53  ;;  %s2900_s10 = scalar_lea.vmem (!%p575_p7), [#allocation2], %s2601_s7  ;;  %v785_v61 = vand.u32 (!%p575_p7), %v2633_v59, %v783_v60 }
  0x35   : > { %v2634_v62 = vld [vmem:[%s2900_s10] sm:$0xff] (!%p575_p7)   ;;  %v2636_v0 = vld [vmem:[%s2900_s10 + $0x8] sm:$0xff] (!%p575_p7)   ;;  %v2638_v2 = vld [vmem:[%s2900_s10 + $0x10] sm:$0xff] (!%p575_p7)   ;;  %p606_p8 = scmp.lt.s32.totalorder (!%p575_p7), %s605_s17, 49 }
  0x36   : > { %2355 = vmatpush3.bf16.msra.mxu0 (!%p575_p7), %v2630_v54  ;;  %2417 = vmatpush3.bf16.msra.mxu1 (!%p575_p7), %v2630_v54  ;;  %v2635_v63 = vld [vmem:[%s2900_s10 + $0x64] sm:$0xff] (!%p575_p7)   ;;  %v2637_v1 = vld [vmem:[%s2900_s10 + $0x6c] sm:$0xff] (!%p575_p7)   ;;  %v2639_v3 = vld [vmem:[%s2900_s10 + $0x74] sm:$0xff] (!%p575_p7)  }
  0x37   : > { %2356 = vmatprep.subr.bf16.mxu0 (!%p575_p7), %v2710_v53  ;;  %2418 = vmatprep.subr.bf16.mxu1 (!%p575_p7), %v2710_v53  ;;  %v2640_v4 = vld [vmem:[%s2900_s10 + $0x18] sm:$0xff] (!%p575_p7)   ;;  %v2642_v6 = vld [vmem:[%s2900_s10 + $0x20] sm:$0xff] (!%p575_p7)   ;;  %v2644_v8 = vld [vmem:[%s2900_s10 + $0x28] sm:$0xff] (!%p575_p7)  }
  0x38   : > { %v2641_v5 = vld [vmem:[%s2900_s10 + $0x7c] sm:$0xff]   ;;  %v2643_v7 = vld [vmem:[%s2900_s10 + $0x84] sm:$0xff]   ;;  %v2645_v9 = vld [vmem:[%s2900_s10 + $0x8c] sm:$0xff]   ;;  %s3476_s17 = smov (!%p606_p8, %s605_s17), 49 }
  0x39   : > { %v2646_v10 = vld [vmem:[%s2900_s10 + $0x30] sm:$0xff]   ;;  %v2648_v12 = vld [vmem:[%s2900_s10 + $0x38] sm:$0xff]   ;;  %v2650_v14 = vld [vmem:[%s2900_s10 + $0x40] sm:$0xff]   ;;  %s2041_s14 = sshll.u32 %s3476_s17, 2 }
  0x3a   : > { %2357 = vmatpush3.bf16.msra.mxu0 %v2631_v55  ;;  %2419 = vmatpush3.bf16.msra.mxu1 %v2631_v55  ;;  %v2647_v11 = vld [vmem:[%s2900_s10 + $0x94] sm:$0xff]   ;;  %v2649_v13 = vld [vmem:[%s2900_s10 + $0x9c] sm:$0xff]   ;;  %v2651_v15 = vld [vmem:[%s2900_s10 + $0xa4] sm:$0xff]   ;;  %s3291_s22 = scalar_lea.vmem %s3448_s3, %s2041_s14 }
  0x3b   : > { %2358 = vmatprep.subr.bf16.mxu0 %v2710_v53  ;;  %2420 = vmatprep.subr.bf16.mxu1 %v2710_v53  ;;  %v2652_v16 = vld [vmem:[%s2900_s10 + $0x48] sm:$0xff]   ;;  %v2654_v18 = vld [vmem:[%s2900_s10 + $0x50] sm:$0xff]   ;;  %v2656_v20 = vld [vmem:[%s2900_s10 + $0x58] sm:$0xff]  }
  0x3c   : > { %v2653_v17 = vld [vmem:[%s2900_s10 + $0xac] sm:$0xff]   ;;  %v2655_v19 = vld [vmem:[%s2900_s10 + $0xb4] sm:$0xff]   ;;  %v2657_v21 = vld [vmem:[%s2900_s10 + $0xbc] sm:$0xff]  }
  0x3d   : > { %v2658_v22 = vld [vmem:[%s2900_s10 + $0x60] ss:$0 sps:$4 sm:$0xff]   ;;  %v2659_v23 = vld [vmem:[%s2900_s10 + $0xc4] ss:$0 sps:$4 sm:$0xff]   ;;  %v2660_v24 = vld [vmem:[%s2900_s10 + $0xc8] sm:$0xff]  }
  0x3e   : > { %2359 = vmatpush3.bf16.msra.mxu0 %v2632_v58  ;;  %2421 = vmatpush3.bf16.msra.mxu1 %v2632_v58  ;;  %v2661_v25 = vld [vmem:[%s2900_s10 + $0x12c] sm:$0xff]   ;;  %v2663_v27 = vld [vmem:[%s2900_s10 + $0x134] sm:$0xff]   ;;  %v2665_v29 = vld [vmem:[%s2900_s10 + $0x13c] sm:$0xff]  }
  0x3f   : > { %2360 = vmatprep.subr.bf16.mxu0 %v2710_v53  ;;  %2422 = vmatprep.subr.bf16.mxu1 %v2710_v53  ;;  %v2662_v26 = vld [vmem:[%s2900_s10 + $0xd0] sm:$0xff]   ;;  %v2664_v28 = vld [vmem:[%s2900_s10 + $0xd8] sm:$0xff]   ;;  %v2666_v30 = vld [vmem:[%s2900_s10 + $0xe0] sm:$0xff]  }
  0x40   : > { %v2667_v31 = vld [vmem:[%s2900_s10 + $0x144] sm:$0xff]   ;;  %v2669_v33 = vld [vmem:[%s2900_s10 + $0x14c] sm:$0xff]   ;;  %v2671_v35 = vld [vmem:[%s2900_s10 + $0x154] sm:$0xff]  }
  0x41   : > { %v2668_v32 = vld [vmem:[%s2900_s10 + $0xe8] sm:$0xff]   ;;  %v2670_v34 = vld [vmem:[%s2900_s10 + $0xf0] sm:$0xff]   ;;  %v2672_v36 = vld [vmem:[%s2900_s10 + $0xf8] sm:$0xff]  }
  0x42   : > { %2361 = vmatpush3.bf16.msra.mxu0 %v785_v61  ;;  %2423 = vmatpush3.bf16.msra.mxu1 %v785_v61  ;;  %v2673_v37 = vld [vmem:[%s2900_s10 + $0x15c] sm:$0xff]   ;;  %v2675_v39 = vld [vmem:[%s2900_s10 + $0x164] sm:$0xff]   ;;  %v2677_v41 = vld [vmem:[%s2900_s10 + $0x16c] sm:$0xff]  }
  0x43   : > { %2476 = vmatprep.subr.bf16.mxu0 %v2710_v53  ;;  %2538 = vmatprep.subr.bf16.mxu1 %v2710_v53  ;;  %v2674_v38 = vld [vmem:[%s2900_s10 + $0x100] sm:$0xff]   ;;  %v2676_v40 = vld [vmem:[%s2900_s10 + $0x108] sm:$0xff]   ;;  %v2678_v42 = vld [vmem:[%s2900_s10 + $0x110] sm:$0xff]  }
  0x44   : > { %v2679_v43 = vld [vmem:[%s2900_s10 + $0x174] sm:$0xff]   ;;  %v2681_v45 = vld [vmem:[%s2900_s10 + $0x17c] sm:$0xff]   ;;  %v2683_v47 = vld [vmem:[%s2900_s10 + $0x184] sm:$0xff]  }
  0x45   : > { %2363 = vmatmul.mubr.msk.bf16.vlgmr.msra.gmra.mrb[0].mxu0 %vm740_vm3, %v2634_v62  ;;  %2425 = vmatmul.mubr.msk.bf16.vlgmr.msra.gmra.mrb[0].mxu1 %vm740_vm3, %v2635_v63  ;;  %v2680_v44 = vld [vmem:[%s2900_s10 + $0x118] sm:$0xff]   ;;  %v2682_v46 = vld [vmem:[%s2900_s10 + $0x120] sm:$0xff]   ;;  %v2684_v48 = vld [vmem:[%s2900_s10 + $0x128] ss:$0 sps:$4 sm:$0xff]  }
  0x46   : > { %2477 = vmatpush3.bf16.msra.mxu0 %v2629_v52  ;;  %2539 = vmatpush3.bf16.msra.mxu1 %v2629_v52  ;;  %v2685_v49 = vld [vmem:[%s2900_s10 + $0x18c] ss:$0 sps:$4 sm:$0xff]  }
  0x47   : > { %2366 = vmatprep.mubr.msk.bf16.mxu0 %vm2712_vm2, %v2710_v53  ;;  %2428 = vmatprep.mubr.msk.bf16.mxu1 %vm2712_vm2, %v2710_v53 }
  0x48   : > { %2478 = vmatprep.subr.bf16.mxu0 %v2710_v53  ;;  %2540 = vmatprep.subr.bf16.mxu1 %v2710_v53 }
  0x4a   : > { %2479 = vmatpush3.bf16.msra.mxu0 %v2630_v54  ;;  %2541 = vmatpush3.bf16.msra.mxu1 %v2630_v54 }
  0x4b   : > { %2480 = vmatprep.subr.bf16.mxu0 %v2710_v53  ;;  %2542 = vmatprep.subr.bf16.mxu1 %v2710_v53 }
  0x4d   : > { %2367 = vmatmul.mubr.msk.bf16.gmra.mrb[4].mxu0 %vm740_vm3, %v2636_v0  ;;  %2429 = vmatmul.mubr.msk.bf16.gmra.mrb[4].mxu1 %vm740_vm3, %v2637_v1 }
  0x4e   : > { %2370 = vmatprep.mubr.msk.bf16.mxu0 %vm2712_vm2, %v2710_v53  ;;  %2432 = vmatprep.mubr.msk.bf16.mxu1 %vm2712_vm2, %v2710_v53 }
  0x4f   : > { %2481 = vmatpush3.bf16.msra.mxu0 %v2631_v55  ;;  %2543 = vmatpush3.bf16.msra.mxu1 %v2631_v55 }
  0x50   : > { %2482 = vmatprep.subr.bf16.mxu0 %v2710_v53  ;;  %2544 = vmatprep.subr.bf16.mxu1 %v2710_v53 }
  0x53   : > { %2483 = vmatpush3.bf16.msra.mxu0 %v2632_v58  ;;  %2545 = vmatpush3.bf16.msra.mxu1 %v2632_v58 }
  0x54   : > { %2484 = vmatprep.subr.bf16.mxu0 %v2710_v53  ;;  %2546 = vmatprep.subr.bf16.mxu1 %v2710_v53 }
  0x55   : > { %2371 = vmatmul.mubr.msk.bf16.gmra.mrb[8].mxu0 %vm740_vm3, %v2638_v2  ;;  %2433 = vmatmul.mubr.msk.bf16.gmra.mrb[8].mxu1 %vm740_vm3, %v2639_v3 }
  0x56   : > { %2374 = vmatprep.mubr.msk.bf16.mxu0 %vm2712_vm2, %v2710_v53  ;;  %2436 = vmatprep.mubr.msk.bf16.mxu1 %vm2712_vm2, %v2710_v53 }
  0x57   : > { %2485 = vmatpush3.bf16.msra.mxu0 %v785_v61  ;;  %2547 = vmatpush3.bf16.msra.mxu1 %v785_v61 }
  0x5d   : > { %2375 = vmatmul.mubr.msk.bf16.gmra.mrb[12].mxu0 %vm740_vm3, %v2640_v4  ;;  %2437 = vmatmul.mubr.msk.bf16.gmra.mrb[12].mxu1 %vm740_vm3, %v2641_v5 }
  0x5e   : > { %2378 = vmatprep.mubr.msk.bf16.mxu0 %vm2712_vm2, %v2710_v53  ;;  %2440 = vmatprep.mubr.msk.bf16.mxu1 %vm2712_vm2, %v2710_v53 }
  0x65   : > { %2379 = vmatmul.mubr.msk.bf16.gmra.mrb[16].mxu0 %vm740_vm3, %v2642_v6  ;;  %2441 = vmatmul.mubr.msk.bf16.gmra.mrb[16].mxu1 %vm740_vm3, %v2643_v7 }
  0x66   : > { %2382 = vmatprep.mubr.msk.bf16.mxu0 %vm2712_vm2, %v2710_v53  ;;  %2444 = vmatprep.mubr.msk.bf16.mxu1 %vm2712_vm2, %v2710_v53 }
  0x6d   : > { %2383 = vmatmul.mubr.msk.bf16.gmra.mrb[20].mxu0 %vm740_vm3, %v2644_v8  ;;  %2445 = vmatmul.mubr.msk.bf16.gmra.mrb[20].mxu1 %vm740_vm3, %v2645_v9 }
  0x6e   : > { %2386 = vmatprep.mubr.msk.bf16.mxu0 %vm2712_vm2, %v2710_v53  ;;  %2448 = vmatprep.mubr.msk.bf16.mxu1 %vm2712_vm2, %v2710_v53 }
  0x75   : > { %2387 = vmatmul.mubr.msk.bf16.gmra.mrb[24].mxu0 %vm740_vm3, %v2646_v10  ;;  %2449 = vmatmul.mubr.msk.bf16.gmra.mrb[24].mxu1 %vm740_vm3, %v2647_v11 }
  0x76   : > { %2390 = vmatprep.mubr.msk.bf16.mxu0 %vm2712_vm2, %v2710_v53  ;;  %2452 = vmatprep.mubr.msk.bf16.mxu1 %vm2712_vm2, %v2710_v53 }
  0x7d   : > { %2391 = vmatmul.mubr.msk.bf16.gmra.mrb[28].mxu0 %vm740_vm3, %v2648_v12  ;;  %2453 = vmatmul.mubr.msk.bf16.gmra.mrb[28].mxu1 %vm740_vm3, %v2649_v13 }
  0x7e   : > { %2394 = vmatprep.mubr.msk.bf16.mxu0 %vm2712_vm2, %v2710_v53  ;;  %2456 = vmatprep.mubr.msk.bf16.mxu1 %vm2712_vm2, %v2710_v53 }
  0x85   : > { %2395 = vmatmul.mubr.msk.bf16.gmra.mrb[32].mxu0 %vm740_vm3, %v2650_v14  ;;  %2457 = vmatmul.mubr.msk.bf16.gmra.mrb[32].mxu1 %vm740_vm3, %v2651_v15 }
  0x86   : > { %2398 = vmatprep.mubr.msk.bf16.mxu0 %vm2712_vm2, %v2710_v53  ;;  %2460 = vmatprep.mubr.msk.bf16.mxu1 %vm2712_vm2, %v2710_v53 }
  0x8d   : > { %2399 = vmatmul.mubr.msk.bf16.gmra.mrb[36].mxu0 %vm740_vm3, %v2652_v16  ;;  %2461 = vmatmul.mubr.msk.bf16.gmra.mrb[36].mxu1 %vm740_vm3, %v2653_v17 }
  0x8e   : > { %2402 = vmatprep.mubr.msk.bf16.mxu0 %vm2712_vm2, %v2710_v53  ;;  %2464 = vmatprep.mubr.msk.bf16.mxu1 %vm2712_vm2, %v2710_v53 }
  0x95   : > { %2403 = vmatmul.mubr.msk.bf16.gmra.mrb[40].mxu0 %vm740_vm3, %v2654_v18  ;;  %2465 = vmatmul.mubr.msk.bf16.gmra.mrb[40].mxu1 %vm740_vm3, %v2655_v19 }
  0x96   : > { %2406 = vmatprep.mubr.msk.bf16.mxu0 %vm2712_vm2, %v2710_v53  ;;  %2468 = vmatprep.mubr.msk.bf16.mxu1 %vm2712_vm2, %v2710_v53 }
  0x9d   : > { %2407 = vmatmul.mubr.msk.bf16.gmra.mrb[44].mxu0 %vm740_vm3, %v2656_v20  ;;  %2469 = vmatmul.mubr.msk.bf16.gmra.mrb[44].mxu1 %vm740_vm3, %v2657_v21 }
  0x9e   : > { %2410 = vmatprep.mubr.msk.bf16.mxu0 %vm2712_vm2, %v2710_v53  ;;  %2472 = vmatprep.mubr.msk.bf16.mxu1 %vm2712_vm2, %v2710_v53 }
  0xa5   : > { %2411 = vmatmul.mubr.msk.bf16.gmra.mrb[48].mxu0 %vm740_vm3, %v2658_v22  ;;  %2473 = vmatmul.mubr.msk.bf16.gmra.mrb[48].mxu1 %vm740_vm3, %v2659_v23 }
  0xa6   : > { %2486 = vmatprep.mubr.msk.bf16.mxu0 %vm2712_vm2, %v2710_v53  ;;  %2548 = vmatprep.mubr.msk.bf16.mxu1 %vm2712_vm2, %v2710_v53 }
  0xad   : > { %2487 = vmatmul.mubr.msk.bf16.vlgmr.msra.gmra.mrb[52].mxu0 %vm740_vm3, %v2660_v24  ;;  %2549 = vmatmul.mubr.msk.bf16.vlgmr.msra.gmra.mrb[52].mxu1 %vm740_vm3, %v2661_v25 }
  0xae   : > { %2490 = vmatprep.mubr.msk.bf16.mxu0 %vm2712_vm2, %v2710_v53  ;;  %2552 = vmatprep.mubr.msk.bf16.mxu1 %vm2712_vm2, %v2710_v53 }
  0xb5   : > { %2491 = vmatmul.mubr.msk.bf16.gmra.mrb[56].mxu0 %vm740_vm3, %v2662_v26  ;;  %2553 = vmatmul.mubr.msk.bf16.gmra.mrb[56].mxu1 %vm740_vm3, %v2663_v27 }
  0xb6   : > { %2494 = vmatprep.mubr.msk.bf16.mxu0 %vm2712_vm2, %v2710_v53  ;;  %2556 = vmatprep.mubr.msk.bf16.mxu1 %vm2712_vm2, %v2710_v53 }
  0xbd   : > { %2495 = vmatmul.mubr.msk.bf16.gmra.mrb[60].mxu0 %vm740_vm3, %v2664_v28  ;;  %2557 = vmatmul.mubr.msk.bf16.gmra.mrb[60].mxu1 %vm740_vm3, %v2665_v29 }
  0xbe   : > { %2498 = vmatprep.mubr.msk.bf16.mxu0 %vm2712_vm2, %v2710_v53  ;;  %2560 = vmatprep.mubr.msk.bf16.mxu1 %vm2712_vm2, %v2710_v53 }
  0xc5   : > { %2499 = vmatmul.mubr.msk.bf16.gmra.mrb[64].mxu0 %vm740_vm3, %v2666_v30  ;;  %2561 = vmatmul.mubr.msk.bf16.gmra.mrb[64].mxu1 %vm740_vm3, %v2667_v31 }
  0xc6   : > { %2502 = vmatprep.mubr.msk.bf16.mxu0 %vm2712_vm2, %v2710_v53  ;;  %2564 = vmatprep.mubr.msk.bf16.mxu1 %vm2712_vm2, %v2710_v53 }
  0xcd   : > { %2503 = vmatmul.mubr.msk.bf16.gmra.mrb[68].mxu0 %vm740_vm3, %v2668_v32  ;;  %2565 = vmatmul.mubr.msk.bf16.gmra.mrb[68].mxu1 %vm740_vm3, %v2669_v33 }
  0xce   : > { %2506 = vmatprep.mubr.msk.bf16.mxu0 %vm2712_vm2, %v2710_v53  ;;  %2568 = vmatprep.mubr.msk.bf16.mxu1 %vm2712_vm2, %v2710_v53 }
  0xd5   : > { %2507 = vmatmul.mubr.msk.bf16.gmra.mrb[72].mxu0 %vm740_vm3, %v2670_v34  ;;  %2569 = vmatmul.mubr.msk.bf16.gmra.mrb[72].mxu1 %vm740_vm3, %v2671_v35 }
  0xd6   : > { %2510 = vmatprep.mubr.msk.bf16.mxu0 %vm2712_vm2, %v2710_v53  ;;  %2572 = vmatprep.mubr.msk.bf16.mxu1 %vm2712_vm2, %v2710_v53 }
  0xdd   : > { %2511 = vmatmul.mubr.msk.bf16.gmra.mrb[76].mxu0 %vm740_vm3, %v2672_v36  ;;  %2573 = vmatmul.mubr.msk.bf16.gmra.mrb[76].mxu1 %vm740_vm3, %v2673_v37 }
  0xde   : > { %2514 = vmatprep.mubr.msk.bf16.mxu0 %vm2712_vm2, %v2710_v53  ;;  %2576 = vmatprep.mubr.msk.bf16.mxu1 %vm2712_vm2, %v2710_v53 }
  0xe5   : > { %2515 = vmatmul.mubr.msk.bf16.gmra.mrb[80].mxu0 %vm740_vm3, %v2674_v38  ;;  %2577 = vmatmul.mubr.msk.bf16.gmra.mrb[80].mxu1 %vm740_vm3, %v2675_v39 }
  0xe6   : > { %2518 = vmatprep.mubr.msk.bf16.mxu0 %vm2712_vm2, %v2710_v53  ;;  %2580 = vmatprep.mubr.msk.bf16.mxu1 %vm2712_vm2, %v2710_v53 }
  0xed   : > { %2519 = vmatmul.mubr.msk.bf16.gmra.mrb[84].mxu0 %vm740_vm3, %v2676_v40  ;;  %2581 = vmatmul.mubr.msk.bf16.gmra.mrb[84].mxu1 %vm740_vm3, %v2677_v41 }
  0xee   : > { %2522 = vmatprep.mubr.msk.bf16.mxu0 %vm2712_vm2, %v2710_v53  ;;  %2584 = vmatprep.mubr.msk.bf16.mxu1 %vm2712_vm2, %v2710_v53 }
  0xf5   : > { %2523 = vmatmul.mubr.msk.bf16.gmra.mrb[88].mxu0 %vm740_vm3, %v2678_v42  ;;  %2585 = vmatmul.mubr.msk.bf16.gmra.mrb[88].mxu1 %vm740_vm3, %v2679_v43 }
  0xf6   : > { %2526 = vmatprep.mubr.msk.bf16.mxu0 %vm2712_vm2, %v2710_v53  ;;  %2588 = vmatprep.mubr.msk.bf16.mxu1 %vm2712_vm2, %v2710_v53 }
  0xfd   : > { %2527 = vmatmul.mubr.msk.bf16.gmra.mrb[92].mxu0 %vm740_vm3, %v2680_v44  ;;  %2589 = vmatmul.mubr.msk.bf16.gmra.mrb[92].mxu1 %vm740_vm3, %v2681_v45 }
  0xfe   : > { %2530 = vmatprep.mubr.msk.bf16.mxu0 %vm2712_vm2, %v2710_v53  ;;  %2592 = vmatprep.mubr.msk.bf16.mxu1 %vm2712_vm2, %v2710_v53 }
 0x105   : > { %2531 = vmatmul.mubr.msk.bf16.gmra.mrb[96].mxu0 %vm740_vm3, %v2682_v46  ;;  %2593 = vmatmul.mubr.msk.bf16.gmra.mrb[96].mxu1 %vm740_vm3, %v2683_v47 }
 0x106   : > { %2534 = vmatprep.mubr.msk.bf16.mxu0 %vm2712_vm2, %v2710_v53  ;;  %2596 = vmatprep.mubr.msk.bf16.mxu1 %vm2712_vm2, %v2710_v53 }
 0x10d   : > { %2535 = vmatmul.mubr.msk.bf16.gmra.mrb[100].mxu0 %vm740_vm3, %v2684_v48  ;;  %2597 = vmatmul.mubr.msk.bf16.gmra.mrb[100].mxu1 %vm740_vm3, %v2685_v49 }
 0x118   : > { %v3123_v50 = vpop.f32.mrb[0].mxu0  ;;  %v3125_v51 = vpop.f32.mrb[0].mxu1 }
 0x119   : > { %v1187_v52 = vmax.f32 %v3123_v50, %v3125_v51  ;;  %v2364_v54 = vpop.f32.mrb[1].mxu0  ;;  %v2426_v55 = vpop.f32.mrb[1].mxu1 }
 0x11a   : > { %v3129_v56 = vpop.f32.mrb[2].mxu0  ;;  %v3131_v57 = vpop.f32.mrb[2].mxu1 }
 0x11b   : > { %v1188_v53 = vmax.f32 %v3129_v56, %v3131_v57  ;;  %v2365_v58 = vpop.f32.mrb[3].mxu0  ;;  %v2427_v59 = vpop.f32.mrb[3].mxu1 }
 0x120   : > { %v3135_v60 = vpop.f32.mrb[4].mxu0  ;;  %v3137_v61 = vpop.f32.mrb[4].mxu1 }
 0x121   : > { %v2368_v63 = vpop.f32.mrb[5].mxu0  ;;  %v2430_v0 = vpop.f32.mrb[5].mxu1 }
 0x122   : > { %v3141_v1 = vpop.f32.mrb[6].mxu0  ;;  %v3143_v2 = vpop.f32.mrb[6].mxu1 }
 0x123   : > { %v2369_v4 = vpop.f32.mrb[7].mxu0  ;;  %v2431_v5 = vpop.f32.mrb[7].mxu1 }
 0x128   : > { %v3147_v6 = vpop.f32.mrb[8].mxu0  ;;  %v3149_v7 = vpop.f32.mrb[8].mxu1 }
 0x129   : > { %v2372_v9 = vpop.f32.mrb[9].mxu0  ;;  %v2434_v10 = vpop.f32.mrb[9].mxu1 }
 0x12a   : > { %v3153_v11 = vpop.f32.mrb[10].mxu0  ;;  %v3155_v12 = vpop.f32.mrb[10].mxu1 }
 0x12b   : > { %v2373_v14 = vpop.f32.mrb[11].mxu0  ;;  %v2435_v15 = vpop.f32.mrb[11].mxu1 }
 0x130   : > { %v3159_v16 = vpop.f32.mrb[12].mxu0  ;;  %v3161_v17 = vpop.f32.mrb[12].mxu1 }
 0x131   : > { %v2376_v19 = vpop.f32.mrb[13].mxu0  ;;  %v2438_v20 = vpop.f32.mrb[13].mxu1 }
 0x132   : > { %v3165_v21 = vpop.f32.mrb[14].mxu0  ;;  %v3167_v22 = vpop.f32.mrb[14].mxu1 }
 0x133   : > { %v2377_v24 = vpop.f32.mrb[15].mxu0  ;;  %v2439_v25 = vpop.f32.mrb[15].mxu1 }
 0x138   : > { %v3171_v26 = vpop.f32.mrb[16].mxu0  ;;  %v3173_v27 = vpop.f32.mrb[16].mxu1 }
 0x139   : > { %v2380_v29 = vpop.f32.mrb[17].mxu0  ;;  %v2442_v30 = vpop.f32.mrb[17].mxu1 }
 0x13a   : > { %v3177_v31 = vpop.f32.mrb[18].mxu0  ;;  %v3179_v32 = vpop.f32.mrb[18].mxu1 }
 0x13b   : > { %v2381_v34 = vpop.f32.mrb[19].mxu0  ;;  %v2443_v35 = vpop.f32.mrb[19].mxu1 }
 0x140   : > { %v3183_v36 = vpop.f32.mrb[20].mxu0  ;;  %v3185_v37 = vpop.f32.mrb[20].mxu1 }
 0x141   : > { %v2384_v39 = vpop.f32.mrb[21].mxu0  ;;  %v2446_v40 = vpop.f32.mrb[21].mxu1 }
 0x142   : > { %v3189_v41 = vpop.f32.mrb[22].mxu0  ;;  %v3191_v42 = vpop.f32.mrb[22].mxu1 }
 0x143   : > { %v2385_v44 = vpop.f32.mrb[23].mxu0  ;;  %v2447_v45 = vpop.f32.mrb[23].mxu1 }
 0x148   : > { %v3195_v46 = vpop.f32.mrb[24].mxu0  ;;  %v3197_v47 = vpop.f32.mrb[24].mxu1 }
 0x149   : > { %v2388_v49 = vpop.f32.mrb[25].mxu0  ;;  %v2450_v54 = vpop.f32.mrb[25].mxu1 }
 0x14a   : > { %v3201_v55 = vpop.f32.mrb[26].mxu0  ;;  %v3203_v58 = vpop.f32.mrb[26].mxu1 }
 0x14b   : > { %v2389_v63 = vpop.f32.mrb[27].mxu0  ;;  %v2451_v0 = vpop.f32.mrb[27].mxu1 }
 0x150   : > { %v3207_v4 = vpop.f32.mrb[28].mxu0  ;;  %v3209_v5 = vpop.f32.mrb[28].mxu1 }
 0x151   : > { %v2392_v10 = vpop.f32.mrb[29].mxu0  ;;  %v2454_v14 = vpop.f32.mrb[29].mxu1 }
 0x152   : > { %v3213_v15 = vpop.f32.mrb[30].mxu0  ;;  %v3215_v19 = vpop.f32.mrb[30].mxu1 }
 0x153   : > { %v2393_v24 = vpop.f32.mrb[31].mxu0  ;;  %v2455_v25 = vpop.f32.mrb[31].mxu1 }
 0x158   : > { %v3219_v29 = vpop.f32.mrb[32].mxu0  ;;  %v3221_v30 = vpop.f32.mrb[32].mxu1 }
 0x159   : > { %v2396_v35 = vpop.f32.mrb[33].mxu0  ;;  %v2458_v39 = vpop.f32.mrb[33].mxu1 }
 0x15a   : > { %v3225_v40 = vpop.f32.mrb[34].mxu0  ;;  %v3227_v44 = vpop.f32.mrb[34].mxu1 }
 0x15b   : > { %v2397_v49 = vpop.f32.mrb[35].mxu0  ;;  %v2459_v54 = vpop.f32.mrb[35].mxu1 }
 0x160   : > { %v3231_v63 = vpop.f32.mrb[36].mxu0  ;;  %v3233_v0 = vpop.f32.mrb[36].mxu1 }
 0x161   : > { %v2400_v14 = vpop.f32.mrb[37].mxu0  ;;  %v2462_v24 = vpop.f32.mrb[37].mxu1 }
 0x162   : > { %v3237_v25 = vpop.f32.mrb[38].mxu0  ;;  %v3239_v35 = vpop.f32.mrb[38].mxu1 }
 0x163   : > { %v2401_v34 = vpop.f32.mrb[39].mxu0  ;;  %v2463_v45 = vpop.f32.mrb[39].mxu1 }
 0x168   : > { %v3243_v49 = vpop.f32.mrb[40].mxu0  ;;  %v3245_v54 = vpop.f32.mrb[40].mxu1 }
 0x169   : > { %v2404_v9 = vpop.f32.mrb[41].mxu0  ;;  %v2466_v10 = vpop.f32.mrb[41].mxu1 }
 0x16a   : > { %v3249_v14 = vpop.f32.mrb[42].mxu0  ;;  %v3251_v24 = vpop.f32.mrb[42].mxu1 }
 0x16b   : > { %v2405_v48 = vpop.f32.mrb[43].mxu0  ;;  %v2467_v39 = vpop.f32.mrb[43].mxu1 }
 0x170   : > { %v3255_v34 = vpop.f32.mrb[44].mxu0  ;;  %v3257_v45 = vpop.f32.mrb[44].mxu1 }
 0x171   : > { %v2408_v20 = vpop.f32.mrb[45].mxu0  ;;  %v2470_v9 = vpop.f32.mrb[45].mxu1 }
 0x172   : > { %v3261_v10 = vpop.f32.mrb[46].mxu0  ;;  %v3263_v38 = vpop.f32.mrb[46].mxu1 }
 0x173   : > { %v2409_v59 = vpop.f32.mrb[47].mxu0  ;;  %v2471_v48 = vpop.f32.mrb[47].mxu1 }
 0x178   : > { %v3267_v39 = vpop.f32.mrb[48].mxu0  ;;  %v3269_v28 = vpop.f32.mrb[48].mxu1 }
 0x179   : > { %v2412_v18 = vpop.f32.mrb[49].mxu0  ;;  %v2474_v43 = vpop.f32.mrb[49].mxu1 }
 0x17a   : > { %v920_v20 = vpop.f32.mrb[50].mxu0  ;;  %v1184_v9 = vpop.f32.mrb[50].mxu1  ;;  %v3281_v18 = vld [vmem:[%s3447_s2] ss:$0 sm:$0xff] }
 0x17b   : > { %v2413_v13 = vpop.f32.mrb[51].mxu0  ;;  %v2475_v8 = vpop.f32.mrb[51].mxu1 }
 0x180   : > { %v1374_v3 = vpop.f32.mrb[52].mxu0  ;;  %v1663_v33 = vpop.f32.mrb[52].mxu1 }
 0x181   : > { %v1476_v59 = vmax.f32 %v1187_v52, %v1374_v3  ;;  %v2488_v48 = vpop.f32.mrb[53].mxu0  ;;  %v2550_v62 = vpop.f32.mrb[53].mxu1 }
 0x182   : > { %v1377_v43 = vpop.f32.mrb[54].mxu0  ;;  %v1666_v20 = vpop.f32.mrb[54].mxu1 }
 0x183   : > { %v1765_v9 = vmax.f32 %v1476_v59, %v1663_v33  ;;  %v1477_v8 = vmax.f32 %v1188_v53, %v1377_v43  ;;  %v2489_v13 = vpop.f32.mrb[55].mxu0  ;;  %v2551_v23 = vpop.f32.mrb[55].mxu1 }
 0x184   : > { %v3449_v23 = vmax.f32 %v3135_v60, %v3137_v61  ;;  %v3450_v13 = vmax.f32 %v3141_v1, %v3143_v2  ;;  %v3451_v1 = vmax.f32 %v3147_v6, %v3149_v7 }
 0x185   : > { %v1796_v50 = vadd.f32 %v3281_v18, %v1765_v9  ;;  %v1766_v51 = vmax.f32 %v1477_v8, %v1666_v20 }
 0x187   : > { %v1821_v52 = vmax.f32 %v1796_v50, 0.0  ;;  %v1797_v62 = vadd.f32 %v3281_v18, %v1766_v51 }
 0x188   : > { %v1382_v3 = vpop.f32.mrb[56].mxu0  ;;  %v1671_v56 = vpop.f32.mrb[56].mxu1 }
 0x189   : > { %v2255_v57 = vpack.c.bf16 %v1821_v52, %v1821_v52  ;;  %v1822_v53 = vmax.f32 %v1797_v62, 0.0  ;;  %v1478_v33 = vmax.f32 %v3449_v23, %v1382_v3  ;;  %v2492_v59 = vpop.f32.mrb[57].mxu0  ;;  %v2554_v48 = vpop.f32.mrb[57].mxu1 }
 0x18a   : > { %v1385_v43 = vpop.f32.mrb[58].mxu0  ;;  %v1674_v20 = vpop.f32.mrb[58].mxu1 }
 0x18b   : > { %1948 = vst.msk [vmem:[%s3291_s22] sm:$0xf] %vm1947_vm4, %v2255_v57  ;;  %v2256_v9 = vpack.c.bf16 %v1822_v53, %v1822_v53  ;;  %v1767_v8 = vmax.f32 %v1478_v33, %v1671_v56  ;;  %v1479_v50 = vmax.f32 %v3450_v13, %v1385_v43  ;;  %v2493_v51 = vpop.f32.mrb[59].mxu0  ;;  %v2555_v52 = vpop.f32.mrb[59].mxu1 }
 0x18d   : > { %1949 = vst.msk [vmem:[%s3291_s22 + $0x4] sm:$0xf] %vm1947_vm4, %v2256_v9  ;;  %v1798_v60 = vadd.f32 %v3281_v18, %v1767_v8  ;;  %v1768_v61 = vmax.f32 %v1479_v50, %v1674_v20  ;;  %v3452_v8 = vmax.f32 %v3153_v11, %v3155_v12  ;;  %v3453_v11 = vmax.f32 %v3159_v16, %v3161_v17 }
 0x18f   : > { %v1823_v62 = vmax.f32 %v1798_v60, 0.0  ;;  %v1799_v3 = vadd.f32 %v3281_v18, %v1768_v61 }
 0x190   : > { %v1390_v23 = vpop.f32.mrb[60].mxu0  ;;  %v1679_v57 = vpop.f32.mrb[60].mxu1 }
 0x191   : > { %v2257_v53 = vpack.c.bf16 %v1823_v62, %v1823_v62  ;;  %v1824_v56 = vmax.f32 %v1799_v3, 0.0  ;;  %v1480_v2 = vmax.f32 %v3451_v1, %v1390_v23  ;;  %v2496_v33 = vpop.f32.mrb[61].mxu0  ;;  %v2558_v59 = vpop.f32.mrb[61].mxu1 }
 0x192   : > { %v1393_v48 = vpop.f32.mrb[62].mxu0  ;;  %v1682_v43 = vpop.f32.mrb[62].mxu1  ;;  %v3454_v59 = vmax.f32 %v3165_v21, %v3167_v22  ;;  %v3455_v21 = vmax.f32 %v3171_v26, %v3173_v27 }
 0x193   : > { %1950 = vst.msk [vmem:[%s3291_s22 + $0x8] sm:$0xf] %vm1947_vm4, %v2257_v53  ;;  %v2258_v9 = vpack.c.bf16 %v1824_v56, %v1824_v56  ;;  %v1769_v20 = vmax.f32 %v1480_v2, %v1679_v57  ;;  %v1481_v13 = vmax.f32 %v3452_v8, %v1393_v48  ;;  %v2497_v50 = vpop.f32.mrb[63].mxu0  ;;  %v2559_v51 = vpop.f32.mrb[63].mxu1 }
 0x195   : > { %1951 = vst.msk [vmem:[%s3291_s22 + $0xc] sm:$0xf] %vm1947_vm4, %v2258_v9  ;;  %v1800_v6 = vadd.f32 %v3281_v18, %v1769_v20  ;;  %v1770_v7 = vmax.f32 %v1481_v13, %v1682_v43 }
 0x197   : > { %v1825_v52 = vmax.f32 %v1800_v6, 0.0  ;;  %v1801_v60 = vadd.f32 %v3281_v18, %v1770_v7 }
 0x198   : > { %v1398_v61 = vpop.f32.mrb[64].mxu0  ;;  %v1687_v62 = vpop.f32.mrb[64].mxu1 }
 0x199   : > { %v2259_v3 = vpack.c.bf16 %v1825_v52, %v1825_v52  ;;  %v1826_v23 = vmax.f32 %v1801_v60, 0.0  ;;  %v1482_v12 = vmax.f32 %v3453_v11, %v1398_v61  ;;  %v2500_v57 = vpop.f32.mrb[65].mxu0  ;;  %v2562_v53 = vpop.f32.mrb[65].mxu1 }
 0x19a   : > { %v1401_v56 = vpop.f32.mrb[66].mxu0  ;;  %v1690_v1 = vpop.f32.mrb[66].mxu1 }
 0x19b   : > { %1952 = vst.msk [vmem:[%s3291_s22 + $0x10] sm:$0xf] %vm1947_vm4, %v2259_v3  ;;  %v2260_v2 = vpack.c.bf16 %v1826_v23, %v1826_v23  ;;  %v1771_v33 = vmax.f32 %v1482_v12, %v1687_v62  ;;  %v1483_v48 = vmax.f32 %v3454_v59, %v1401_v56  ;;  %v2501_v43 = vpop.f32.mrb[67].mxu0  ;;  %v2563_v9 = vpop.f32.mrb[67].mxu1  ;;  %v3456_v23 = vmax.f32 %v3177_v31, %v3179_v32 }
 0x19c   : > { %v3457_v31 = vmax.f32 %v3183_v36, %v3185_v37 }
 0x19d   : > { %1953 = vst.msk [vmem:[%s3291_s22 + $0x14] sm:$0xf] %vm1947_vm4, %v2260_v2  ;;  %v1802_v16 = vadd.f32 %v3281_v18, %v1771_v33  ;;  %v1772_v17 = vmax.f32 %v1483_v48, %v1690_v1 }
 0x19f   : > { %v1827_v20 = vmax.f32 %v1802_v16, 0.0  ;;  %v1803_v8 = vadd.f32 %v3281_v18, %v1772_v17 }
 0x1a0   : > { %v1406_v13 = vpop.f32.mrb[68].mxu0  ;;  %v1695_v50 = vpop.f32.mrb[68].mxu1 }
 0x1a1   : > { %v2261_v51 = vpack.c.bf16 %v1827_v20, %v1827_v20  ;;  %v1828_v6 = vmax.f32 %v1803_v8, 0.0  ;;  %v1484_v22 = vmax.f32 %v3455_v21, %v1406_v13  ;;  %v2504_v7 = vpop.f32.mrb[69].mxu0  ;;  %v2566_v52 = vpop.f32.mrb[69].mxu1  ;;  %v3458_v8 = vmax.f32 %v3189_v41, %v3191_v42 }
 0x1a2   : > { %v1409_v60 = vpop.f32.mrb[70].mxu0  ;;  %v1698_v61 = vpop.f32.mrb[70].mxu1  ;;  %v3459_v41 = vmax.f32 %v3195_v46, %v3197_v47 }
 0x1a3   : > { %1954 = vst.msk [vmem:[%s3291_s22 + $0x18] sm:$0xf] %vm1947_vm4, %v2261_v51  ;;  %v2262_v62 = vpack.c.bf16 %v1828_v6, %v1828_v6  ;;  %v1773_v3 = vmax.f32 %v1484_v22, %v1695_v50  ;;  %v1485_v11 = vmax.f32 %v3456_v23, %v1409_v60  ;;  %v2505_v12 = vpop.f32.mrb[71].mxu0  ;;  %v2567_v57 = vpop.f32.mrb[71].mxu1 }
 0x1a4   : > { %v3460_v57 = vmax.f32 %v3201_v55, %v3203_v58  ;;  %v3461_v55 = vmax.f32 %v3207_v4, %v3209_v5 }
 0x1a5   : > { %1955 = vst.msk [vmem:[%s3291_s22 + $0x1c] sm:$0xf] %vm1947_vm4, %v2262_v62  ;;  %v1804_v26 = vadd.f32 %v3281_v18, %v1773_v3  ;;  %v1774_v27 = vmax.f32 %v1485_v11, %v1698_v61 }
 0x1a7   : > { %v1829_v53 = vmax.f32 %v1804_v26, 0.0  ;;  %v1805_v56 = vadd.f32 %v3281_v18, %v1774_v27 }
 0x1a8   : > { %v1414_v1 = vpop.f32.mrb[72].mxu0  ;;  %v1703_v2 = vpop.f32.mrb[72].mxu1 }
 0x1a9   : > { %v2263_v33 = vpack.c.bf16 %v1829_v53, %v1829_v53  ;;  %v1830_v59 = vmax.f32 %v1805_v56, 0.0  ;;  %v1486_v32 = vmax.f32 %v3457_v31, %v1414_v1  ;;  %v2508_v48 = vpop.f32.mrb[73].mxu0  ;;  %v2570_v43 = vpop.f32.mrb[73].mxu1 }
 0x1aa   : > { %v1417_v9 = vpop.f32.mrb[74].mxu0  ;;  %v1706_v16 = vpop.f32.mrb[74].mxu1 }
 0x1ab   : > { %1956 = vst.msk [vmem:[%s3291_s22 + $0x20] sm:$0xf] %vm1947_vm4, %v2263_v33  ;;  %v2264_v17 = vpack.c.bf16 %v1830_v59, %v1830_v59  ;;  %v1775_v20 = vmax.f32 %v1486_v32, %v1703_v2  ;;  %v1487_v13 = vmax.f32 %v3458_v8, %v1417_v9  ;;  %v2509_v50 = vpop.f32.mrb[75].mxu0  ;;  %v2571_v51 = vpop.f32.mrb[75].mxu1 }
 0x1ad   : > { %1957 = vst.msk [vmem:[%s3291_s22 + $0x24] sm:$0xf] %vm1947_vm4, %v2264_v17  ;;  %v1806_v36 = vadd.f32 %v3281_v18, %v1775_v20  ;;  %v1776_v37 = vmax.f32 %v1487_v13, %v1706_v16  ;;  %v3462_v20 = vmax.f32 %v3213_v15, %v3215_v19  ;;  %v3463_v15 = vmax.f32 %v3219_v29, %v3221_v30 }
 0x1af   : > { %v1831_v6 = vmax.f32 %v1806_v36, 0.0  ;;  %v1807_v21 = vadd.f32 %v3281_v18, %v1776_v37 }
 0x1b0   : > { %v1422_v22 = vpop.f32.mrb[76].mxu0  ;;  %v1711_v7 = vpop.f32.mrb[76].mxu1 }
 0x1b1   : > { %v2265_v52 = vpack.c.bf16 %v1831_v6, %v1831_v6  ;;  %v1832_v60 = vmax.f32 %v1807_v21, 0.0  ;;  %v1488_v42 = vmax.f32 %v3459_v41, %v1422_v22  ;;  %v2512_v61 = vpop.f32.mrb[77].mxu0  ;;  %v2574_v62 = vpop.f32.mrb[77].mxu1 }
 0x1b2   : > { %v1425_v3 = vpop.f32.mrb[78].mxu0  ;;  %v1714_v23 = vpop.f32.mrb[78].mxu1  ;;  %v3464_v62 = vmax.f32 %v3225_v40, %v3227_v44  ;;  %v3465_v40 = vmax.f32 %v3231_v63, %v3233_v0 }
 0x1b3   : > { %1958 = vst.msk [vmem:[%s3291_s22 + $0x28] sm:$0xf] %vm1947_vm4, %v2265_v52  ;;  %v2266_v11 = vpack.c.bf16 %v1832_v60, %v1832_v60  ;;  %v1777_v12 = vmax.f32 %v1488_v42, %v1711_v7  ;;  %v1489_v26 = vmax.f32 %v3460_v57, %v1425_v3  ;;  %v2513_v27 = vpop.f32.mrb[79].mxu0  ;;  %v2575_v53 = vpop.f32.mrb[79].mxu1 }
 0x1b5   : > { %1959 = vst.msk [vmem:[%s3291_s22 + $0x2c] sm:$0xf] %vm1947_vm4, %v2266_v11  ;;  %v1808_v46 = vadd.f32 %v3281_v18, %v1777_v12  ;;  %v1778_v47 = vmax.f32 %v1489_v26, %v1714_v23 }
 0x1b7   : > { %v1833_v56 = vmax.f32 %v1808_v46, 0.0  ;;  %v1809_v1 = vadd.f32 %v3281_v18, %v1778_v47 }
 0x1b8   : > { %v1430_v2 = vpop.f32.mrb[80].mxu0  ;;  %v1719_v33 = vpop.f32.mrb[80].mxu1 }
 0x1b9   : > { %v2267_v59 = vpack.c.bf16 %v1833_v56, %v1833_v56  ;;  %v1834_v31 = vmax.f32 %v1809_v1, 0.0  ;;  %v1490_v58 = vmax.f32 %v3461_v55, %v1430_v2  ;;  %v2516_v32 = vpop.f32.mrb[81].mxu0  ;;  %v2578_v48 = vpop.f32.mrb[81].mxu1 }
 0x1ba   : > { %v1433_v43 = vpop.f32.mrb[82].mxu0  ;;  %v1722_v9 = vpop.f32.mrb[82].mxu1 }
 0x1bb   : > { %1960 = vst.msk [vmem:[%s3291_s22 + $0x30] sm:$0xf] %vm1947_vm4, %v2267_v59  ;;  %v2268_v16 = vpack.c.bf16 %v1834_v31, %v1834_v31  ;;  %v1779_v17 = vmax.f32 %v1490_v58, %v1719_v33  ;;  %v1491_v8 = vmax.f32 %v3462_v20, %v1433_v43  ;;  %v2517_v13 = vpop.f32.mrb[83].mxu0  ;;  %v2579_v50 = vpop.f32.mrb[83].mxu1  ;;  %v3466_v31 = vmax.f32 %v3237_v25, %v3239_v35 }
 0x1bc   : > { %v3467_v25 = vmax.f32 %v3243_v49, %v3245_v54 }
 0x1bd   : > { %1961 = vst.msk [vmem:[%s3291_s22 + $0x34] sm:$0xf] %vm1947_vm4, %v2268_v16  ;;  %v1810_v4 = vadd.f32 %v3281_v18, %v1779_v17  ;;  %v1780_v5 = vmax.f32 %v1491_v8, %v1722_v9 }
 0x1bf   : > { %v1835_v51 = vmax.f32 %v1810_v4, 0.0  ;;  %v1811_v36 = vadd.f32 %v3281_v18, %v1780_v5 }
 0x1c0   : > { %v1438_v37 = vpop.f32.mrb[84].mxu0  ;;  %v1727_v6 = vpop.f32.mrb[84].mxu1 }
 0x1c1   : > { %v2269_v21 = vpack.c.bf16 %v1835_v51, %v1835_v51  ;;  %v1836_v22 = vmax.f32 %v1811_v36, 0.0  ;;  %v1492_v19 = vmax.f32 %v3463_v15, %v1438_v37  ;;  %v2520_v7 = vpop.f32.mrb[85].mxu0  ;;  %v2582_v52 = vpop.f32.mrb[85].mxu1  ;;  %v3468_v36 = vmax.f32 %v3249_v14, %v3251_v24 }
 0x1c2   : > { %v1441_v60 = vpop.f32.mrb[86].mxu0  ;;  %v1730_v41 = vpop.f32.mrb[86].mxu1  ;;  %v3469_v14 = vmax.f32 %v3255_v34, %v3257_v45 }
 0x1c3   : > { %1962 = vst.msk [vmem:[%s3291_s22 + $0x38] sm:$0xf] %vm1947_vm4, %v2269_v21  ;;  %v2270_v42 = vpack.c.bf16 %v1836_v22, %v1836_v22  ;;  %v1781_v61 = vmax.f32 %v1492_v19, %v1727_v6  ;;  %v1493_v3 = vmax.f32 %v3464_v62, %v1441_v60  ;;  %v2521_v23 = vpop.f32.mrb[87].mxu0  ;;  %v2583_v11 = vpop.f32.mrb[87].mxu1 }
 0x1c4   : > { %v3470_v11 = vmax.f32 %v3261_v10, %v3263_v38  ;;  %v3471_v38 = vmax.f32 %v3267_v39, %v3269_v28 }
 0x1c5   : > { %1963 = vst.msk [vmem:[%s3291_s22 + $0x3c] sm:$0xf] %vm1947_vm4, %v2270_v42  ;;  %v1812_v29 = vadd.f32 %v3281_v18, %v1781_v61  ;;  %v1782_v30 = vmax.f32 %v1493_v3, %v1730_v41 }
 0x1c7   : > { %v1837_v12 = vmax.f32 %v1812_v29, 0.0  ;;  %v1813_v57 = vadd.f32 %v3281_v18, %v1782_v30 }
 0x1c8   : > { %v1446_v26 = vpop.f32.mrb[88].mxu0  ;;  %v1735_v27 = vpop.f32.mrb[88].mxu1 }
 0x1c9   : > { %v2271_v53 = vpack.c.bf16 %v1837_v12, %v1837_v12  ;;  %v1838_v46 = vmax.f32 %v1813_v57, 0.0  ;;  %v1494_v44 = vmax.f32 %v3465_v40, %v1446_v26  ;;  %v2524_v47 = vpop.f32.mrb[89].mxu0  ;;  %v2586_v56 = vpop.f32.mrb[89].mxu1 }
 0x1ca   : > { %v1449_v1 = vpop.f32.mrb[90].mxu0  ;;  %v1738_v2 = vpop.f32.mrb[90].mxu1 }
 0x1cb   : > { %1964 = vst.msk [vmem:[%s3291_s22 + $0x40] sm:$0xf] %vm1947_vm4, %v2271_v53  ;;  %v2272_v33 = vpack.c.bf16 %v1838_v46, %v1838_v46  ;;  %v1783_v59 = vmax.f32 %v1494_v44, %v1735_v27  ;;  %v1495_v55 = vmax.f32 %v3466_v31, %v1449_v1  ;;  %v2525_v58 = vpop.f32.mrb[91].mxu0  ;;  %v2587_v32 = vpop.f32.mrb[91].mxu1 }
 0x1cd   : > { %1965 = vst.msk [vmem:[%s3291_s22 + $0x44] sm:$0xf] %vm1947_vm4, %v2272_v33  ;;  %v1814_v63 = vadd.f32 %v3281_v18, %v1783_v59  ;;  %v1784_v0 = vmax.f32 %v1495_v55, %v1738_v2 }
 0x1cf   : > { %v1839_v48 = vmax.f32 %v1814_v63, 0.0  ;;  %v1815_v43 = vadd.f32 %v3281_v18, %v1784_v0 }
 0x1d0   : > { %v1454_v9 = vpop.f32.mrb[92].mxu0  ;;  %v1743_v16 = vpop.f32.mrb[92].mxu1 }
 0x1d1   : > { %v2273_v17 = vpack.c.bf16 %v1839_v48, %v1839_v48  ;;  %v1840_v20 = vmax.f32 %v1815_v43, 0.0  ;;  %v1496_v35 = vmax.f32 %v3467_v25, %v1454_v9  ;;  %v2528_v8 = vpop.f32.mrb[93].mxu0  ;;  %v2590_v13 = vpop.f32.mrb[93].mxu1 }
 0x1d2   : > { %v1457_v50 = vpop.f32.mrb[94].mxu0  ;;  %v1746_v4 = vpop.f32.mrb[94].mxu1 }
 0x1d3   : > { %1966 = vst.msk [vmem:[%s3291_s22 + $0x48] sm:$0xf] %vm1947_vm4, %v2273_v17  ;;  %v2274_v5 = vpack.c.bf16 %v1840_v20, %v1840_v20  ;;  %v1785_v51 = vmax.f32 %v1496_v35, %v1743_v16  ;;  %v1497_v37 = vmax.f32 %v3468_v36, %v1457_v50  ;;  %v2529_v6 = vpop.f32.mrb[95].mxu0  ;;  %v2591_v21 = vpop.f32.mrb[95].mxu1 }
 0x1d5   : > { %1967 = vst.msk [vmem:[%s3291_s22 + $0x4c] sm:$0xf] %vm1947_vm4, %v2274_v5  ;;  %v1816_v49 = vadd.f32 %v3281_v18, %v1785_v51  ;;  %v1786_v54 = vmax.f32 %v1497_v37, %v1746_v4 }
 0x1d7   : > { %v1841_v22 = vmax.f32 %v1816_v49, 0.0  ;;  %v1817_v15 = vadd.f32 %v3281_v18, %v1786_v54 }
 0x1d8   : > { %v1462_v19 = vpop.f32.mrb[96].mxu0  ;;  %v1751_v7 = vpop.f32.mrb[96].mxu1 }
 0x1d9   : > { %v2275_v52 = vpack.c.bf16 %v1841_v22, %v1841_v22  ;;  %v1842_v60 = vmax.f32 %v1817_v15, 0.0  ;;  %v1498_v24 = vmax.f32 %v3469_v14, %v1462_v19  ;;  %v2532_v41 = vpop.f32.mrb[97].mxu0  ;;  %v2594_v42 = vpop.f32.mrb[97].mxu1 }
 0x1da   : > { %v1465_v61 = vpop.f32.mrb[98].mxu0  ;;  %v1754_v62 = vpop.f32.mrb[98].mxu1 }
 0x1db   : > { %1968 = vst.msk [vmem:[%s3291_s22 + $0x50] sm:$0xf] %vm1947_vm4, %v2275_v52  ;;  %v2276_v3 = vpack.c.bf16 %v1842_v60, %v1842_v60  ;;  %v1787_v23 = vmax.f32 %v1498_v24, %v1751_v7  ;;  %v1499_v29 = vmax.f32 %v3470_v11, %v1465_v61  ;;  %v2533_v30 = vpop.f32.mrb[99].mxu0  ;;  %v2595_v12 = vpop.f32.mrb[99].mxu1 }
 0x1dd   : > { %1969 = vst.msk [vmem:[%s3291_s22 + $0x54] sm:$0xf] %vm1947_vm4, %v2276_v3  ;;  %v1818_v34 = vadd.f32 %v3281_v18, %v1787_v23  ;;  %v1788_v45 = vmax.f32 %v1499_v29, %v1754_v62 }
 0x1df   : > { %v1843_v57 = vmax.f32 %v1818_v34, 0.0  ;;  %v1819_v26 = vadd.f32 %v3281_v18, %v1788_v45 }
 0x1e0   : > { %v1470_v27 = vpop.f32.mrb[100].mxu0  ;;  %v1759_v53 = vpop.f32.mrb[100].mxu1 }
 0x1e1   : > { %v2277_v46 = vpack.c.bf16 %v1843_v57, %v1843_v57  ;;  %v1844_v40 = vmax.f32 %v1819_v26, 0.0  ;;  %v1500_v10 = vmax.f32 %v3471_v38, %v1470_v27  ;;  %v2536_v44 = vpop.f32.mrb[101].mxu0  ;;  %v2598_v47 = vpop.f32.mrb[101].mxu1 }
 0x1e2   : > { %v1473_v56 = vpop.f32.mrb[102].mxu0  ;;  %v1762_v1 = vpop.f32.mrb[102].mxu1 }
 0x1e3   : > { %1970 = vst.msk [vmem:[%s3291_s22 + $0x58] sm:$0xf] %vm1947_vm4, %v2277_v46  ;;  %v2278_v2 = vpack.c.bf16 %v1844_v40, %v1844_v40  ;;  %v1789_v33 = vmax.f32 %v1500_v10, %v1759_v53  ;;  %v2537_v59 = vpop.f32.mrb[103].mxu0  ;;  %v2599_v31 = vpop.f32.mrb[103].mxu1 }
 0x1e5   : > { %1971 = vst.msk [vmem:[%s3291_s22 + $0x5c] sm:$0xf] %vm1947_vm4, %v2278_v2  ;;  %v1820_v55 = vadd.f32 %v3281_v18, %v1789_v33 }
 0x1e7   : > { %v1845_v58 = vmax.f32 %v1820_v55, 0.0 }
 0x1e9   : > { %v2279_v32 = vpack.c.bf16 %v1845_v58, %v1845_v58 }
 0x1eb   : > { %1972 = vst.msk [vmem:[%s3291_s22 + $0x60] sm:$0xf] %vm1947_vm4, %v2279_v32 }
 0x1ec PF: > { %p10_p9 = scmp.ge.s32.totalorder %s2750_s16, 4   ;;  %s3472_s12 = smov %s2704_s13 }
 0x1ed   : > { %s3473_s13 = smov %s2759_s19  ;;  %s3474_s14 = smov %s2750_s16 }
 0x1ee   :  { %12 = sbr.rel (!%p10_p9) target bundleno = 2 (0x2), region = 111 }

// kernel: lenet_forward.3
= control target key start
LH: loop header
LB: loop body
LE: loop exit
PB: predicated region body
PF: predicated region fallthrough
CT: control target
= control target key end

     0   :  { %vm1836_vm0 = vcmask 195584   ;;  %vm1840_vm1 = vcmask 1043456   ;;  %vm13646_vm2 = vmmov 0   ;;  %s17613_s1 = inlined_call_operand.vmem [shape: bf16[4,1176,512], index: 1, kind: input, shape index: {}]   ;;  %s17614_s0 = inlined_call_operand.vmem [shape: bf16[8,1176], index: 0, kind: input, shape index: {}]   ;;  %s17615_s3 = inlined_call_operand.vmem [shape: bf16[512,128], index: 3, kind: input, shape index: {}]   ;;  %s17616_s5 = inlined_call_operand.vmem [shape: bf16[128,128], index: 5, kind: input, shape index: {}]   ;;  %s17617_s2 = inlined_call_operand.vmem [shape: f32[1,512], index: 2, kind: input, shape index: {}]   ;;  %s17618_s7 = inlined_call_operand.vmem [shape: bf16[128,128], index: 7, kind: input, shape index: {}]   ;;  %s17619_s4 = inlined_call_operand.vmem [shape: f32[1,128], index: 4, kind: input, shape index: {}]   ;;  %s17620_s6 = inlined_call_operand.vmem [shape: f32[1,128], index: 6, kind: input, shape index: {}]   ;;  %s17621_s8 = inlined_call_operand.vmem [shape: f32[1,128], index: 8, kind: input, shape index: {}]   ;;  %s17622_s9 = inlined_call_operand.vmem [shape: f32[8,128], index: 9, kind: output, shape index: {}]  }
   0x1   :  { %v11819_v0 = vld [vmem:[%s17613_s1 + $0x4] ss:$16 sps:$4 sm:$0xff]   ;;  %v11821_v1 = vld [vmem:[%s17613_s1 + $0xc] ss:$16 sps:$4 sm:$0xff]   ;;  %v11823_v2 = vld [vmem:[%s17613_s1] ss:$16 sps:$4 sm:$0xff]  }
   0x2   :  { %1853 = vmatprep.subr.bf16.mxu0 %v11819_v0  ;;  %v11824_v3 = vld [vmem:[%s17613_s1 + $0x8] ss:$16 sps:$4 sm:$0xff]   ;;  %2058 = vmatprep.subr.bf16.mxu1 %v11821_v1  ;;  %v11825_v4 = vld [vmem:[%s17613_s1 + $0x24] ss:$16 sps:$4 sm:$0xff]   ;;  %v11827_v5 = vld [vmem:[%s17613_s1 + $0x2c] ss:$16 sps:$4 sm:$0xff]  }
   0x3   :  { %1854 = vmatpush1.bf16.msra.mxu0 %v11823_v2  ;;  %2059 = vmatpush1.bf16.msra.mxu1 %v11824_v3  ;;  %v11829_v6 = vld [vmem:[%s17613_s1 + $0x20] ss:$16 sps:$4 sm:$0xff]   ;;  %v11830_v7 = vld [vmem:[%s17613_s1 + $0x28] ss:$16 sps:$4 sm:$0xff]   ;;  %v11831_v8 = vld [vmem:[%s17613_s1 + $0x44] ss:$16 sps:$4 sm:$0xff]  }
   0x4   :  { %1855 = vmatprep.subr.bf16.mxu0 %v11825_v4  ;;  %2060 = vmatprep.subr.bf16.mxu1 %v11827_v5  ;;  %v11833_v9 = vld [vmem:[%s17613_s1 + $0x4c] ss:$16 sps:$4 sm:$0xff]   ;;  %v11835_v10 = vld [vmem:[%s17613_s1 + $0x40] ss:$16 sps:$4 sm:$0xff]   ;;  %v11836_v11 = vld [vmem:[%s17613_s1 + $0x48] ss:$16 sps:$4 sm:$0xff]  }
   0x5   :  { %v11837_v12 = vld [vmem:[%s17613_s1 + $0x64] ss:$16 sps:$4 sm:$0xff]   ;;  %v11839_v13 = vld [vmem:[%s17613_s1 + $0x6c] ss:$16 sps:$4 sm:$0xff]   ;;  %v11841_v14 = vld [vmem:[%s17613_s1 + $0x60] ss:$16 sps:$4 sm:$0xff]  }
   0x6   :  { %v11842_v15 = vld [vmem:[%s17613_s1 + $0x68] ss:$16 sps:$4 sm:$0xff]   ;;  %v11843_v16 = vld [vmem:[%s17613_s1 + $0x84] ss:$16 sps:$4 sm:$0xff]   ;;  %v11845_v17 = vld [vmem:[%s17613_s1 + $0x8c] ss:$16 sps:$4 sm:$0xff]  }
   0x7   :  { %1856 = vmatpush1.bf16.msra.mxu0 %v11829_v6  ;;  %2061 = vmatpush1.bf16.msra.mxu1 %v11830_v7  ;;  %v11847_v18 = vld [vmem:[%s17613_s1 + $0x80] ss:$16 sps:$4 sm:$0xff]   ;;  %v11848_v19 = vld [vmem:[%s17613_s1 + $0x88] ss:$16 sps:$4 sm:$0xff]   ;;  %v11849_v20 = vld [vmem:[%s17613_s1 + $0xa4] ss:$16 sps:$4 sm:$0xff]  }
   0x8   :  { %1857 = vmatprep.subr.bf16.mxu0 %v11831_v8  ;;  %2062 = vmatprep.subr.bf16.mxu1 %v11833_v9  ;;  %v11851_v21 = vld [vmem:[%s17613_s1 + $0xac] ss:$16 sps:$4 sm:$0xff]   ;;  %v11853_v22 = vld [vmem:[%s17613_s1 + $0xa0] ss:$16 sps:$4 sm:$0xff]   ;;  %v11854_v23 = vld [vmem:[%s17613_s1 + $0xa8] ss:$16 sps:$4 sm:$0xff]  }
   0x9   :  { %v11855_v24 = vld [vmem:[%s17613_s1 + $0xc4] ss:$16 sps:$4 sm:$0xff]   ;;  %v11857_v25 = vld [vmem:[%s17613_s1 + $0xcc] ss:$16 sps:$4 sm:$0xff]   ;;  %v11859_v26 = vld [vmem:[%s17613_s1 + $0xc0] ss:$16 sps:$4 sm:$0xff]  }
   0xa   :  { %v11860_v27 = vld [vmem:[%s17613_s1 + $0xc8] ss:$16 sps:$4 sm:$0xff]   ;;  %v11861_v28 = vld [vmem:[%s17613_s1 + $0xe4] ss:$16 sps:$4 sm:$0xff]   ;;  %v11863_v29 = vld [vmem:[%s17613_s1 + $0xec] ss:$16 sps:$4 sm:$0xff]  }
   0xb   :  { %1858 = vmatpush1.bf16.msra.mxu0 %v11835_v10  ;;  %2063 = vmatpush1.bf16.msra.mxu1 %v11836_v11  ;;  %v11865_v30 = vld [vmem:[%s17613_s1 + $0xe0] ss:$16 sps:$4 sm:$0xff]   ;;  %v11866_v31 = vld [vmem:[%s17613_s1 + $0xe8] ss:$16 sps:$4 sm:$0xff]   ;;  %v11867_v32 = vld [vmem:[%s17613_s1 + $0x104] ss:$16 sps:$4 sm:$0xff]  }
   0xc   :  { %1859 = vmatprep.subr.bf16.mxu0 %v11837_v12  ;;  %2064 = vmatprep.subr.bf16.mxu1 %v11839_v13  ;;  %v11869_v33 = vld [vmem:[%s17613_s1 + $0x10c] ss:$16 sps:$4 sm:$0xff]   ;;  %v11871_v34 = vld [vmem:[%s17613_s1 + $0x100] ss:$16 sps:$4 sm:$0xff]   ;;  %v11872_v35 = vld [vmem:[%s17613_s1 + $0x108] ss:$16 sps:$4 sm:$0xff]  }
   0xd   :  { %v11873_v36 = vld [vmem:[%s17613_s1 + $0x124] ss:$16 sps:$4 sm:$0xff]   ;;  %v11875_v37 = vld [vmem:[%s17613_s1 + $0x12c] ss:$16 sps:$4 sm:$0xff]   ;;  %v11877_v38 = vld [vmem:[%s17613_s1 + $0x120] ss:$16 sps:$4 sm:$0xff]  }
   0xe   :  { %v11878_v39 = vld [vmem:[%s17613_s1 + $0x128] ss:$16 sps:$4 sm:$0xff]   ;;  %v11879_v40 = vld [vmem:[%s17613_s1 + $0x144] ss:$16 sps:$4 sm:$0xff]   ;;  %v11881_v41 = vld [vmem:[%s17613_s1 + $0x14c] ss:$16 sps:$4 sm:$0xff]  }
   0xf   :  { %1860 = vmatpush1.bf16.msra.mxu0 %v11841_v14  ;;  %2065 = vmatpush1.bf16.msra.mxu1 %v11842_v15  ;;  %v11883_v42 = vld [vmem:[%s17613_s1 + $0x140] ss:$16 sps:$4 sm:$0xff]   ;;  %v11884_v43 = vld [vmem:[%s17613_s1 + $0x148] ss:$16 sps:$4 sm:$0xff]   ;;  %v11885_v44 = vld [vmem:[%s17613_s1 + $0x164] ss:$16 sps:$4 sm:$0xff]  }
  0x10   :  { %1861 = vmatprep.subr.bf16.mxu0 %v11843_v16  ;;  %2066 = vmatprep.subr.bf16.mxu1 %v11845_v17  ;;  %v11887_v45 = vld [vmem:[%s17613_s1 + $0x16c] ss:$16 sps:$4 sm:$0xff]   ;;  %v33_v46 = vld [vmem:[%s17614_s0] sm:$0xff]  ;;  %v11890_v49 = vld [vmem:[%s17613_s1 + $0x168] ss:$16 sps:$4 sm:$0xff]  }
  0x11   :  { %v11889_v47 = vld [vmem:[%s17613_s1 + $0x160] ss:$16 sps:$4 sm:$0xff]   ;;  %v13841_v48 = vcombine.high %v33_v46, %v33_v46  ;;  %v11891_v50 = vld [vmem:[%s17613_s1 + $0x184] ss:$16 sps:$4 sm:$0xff]   ;;  %v11893_v51 = vld [vmem:[%s17613_s1 + $0x18c] ss:$16 sps:$4 sm:$0xff]   ;;  %v13905_v5 = vcombine.low %v33_v46, %v33_v46 }
  0x12   :  { %v11895_v52 = vld [vmem:[%s17613_s1 + $0x180] ss:$16 sps:$4 sm:$0xff]   ;;  %v11896_v53 = vld [vmem:[%s17613_s1 + $0x188] ss:$16 sps:$4 sm:$0xff]   ;;  %v11897_v54 = vld [vmem:[%s17613_s1 + $0x1a4] ss:$16 sps:$4 sm:$0xff]  }
  0x13   :  { %1862 = vmatpush1.bf16.msra.mxu0 %v11847_v18  ;;  %2067 = vmatpush1.bf16.msra.mxu1 %v11848_v19  ;;  %v11899_v55 = vld [vmem:[%s17613_s1 + $0x1ac] ss:$16 sps:$4 sm:$0xff]   ;;  %v11901_v56 = vld [vmem:[%s17613_s1 + $0x1a0] ss:$16 sps:$4 sm:$0xff]   ;;  %v11902_v57 = vld [vmem:[%s17613_s1 + $0x1a8] ss:$16 sps:$4 sm:$0xff]  }
  0x14   :  { %1863 = vmatprep.subr.bf16.mxu0 %v11849_v20  ;;  %2068 = vmatprep.subr.bf16.mxu1 %v11851_v21  ;;  %v11903_v58 = vld [vmem:[%s17613_s1 + $0x1c4] ss:$16 sps:$4 sm:$0xff]   ;;  %v11905_v59 = vld [vmem:[%s17613_s1 + $0x1cc] ss:$16 sps:$4 sm:$0xff]   ;;  %v11907_v60 = vld [vmem:[%s17613_s1 + $0x1c0] ss:$16 sps:$4 sm:$0xff]  }
  0x15   :  { %1885 = vmatprep.mubr.bf16.mxu0 %v13841_v48  ;;  %2090 = vmatprep.mubr.bf16.mxu1 %v13841_v48  ;;  %v11908_v61 = vld [vmem:[%s17613_s1 + $0x1c8] ss:$16 sps:$4 sm:$0xff]   ;;  %v11909_v62 = vld [vmem:[%s17613_s1 + $0x1e4] ss:$16 sps:$4 sm:$0xff]   ;;  %v11911_v63 = vld [vmem:[%s17613_s1 + $0x1ec] ss:$16 sps:$4 sm:$0xff]  }
  0x16   :  { %v11913_v0 = vld [vmem:[%s17613_s1 + $0x1e0] ss:$16 sps:$4 sm:$0xff]   ;;  %v11914_v1 = vld [vmem:[%s17613_s1 + $0x1e8] ss:$16 sps:$4 sm:$0xff]   ;;  %v11918_v2 = vld [vmem:[%s17613_s1 + $0x204] ss:$16 sps:$4 sm:$0xff]  }
  0x17   :  { %1864 = vmatpush1.bf16.msra.mxu0 %v11853_v22  ;;  %2069 = vmatpush1.bf16.msra.mxu1 %v11854_v23  ;;  %v11921_v3 = vld [vmem:[%s17613_s1 + $0x20c] ss:$16 sps:$4 sm:$0xff]   ;;  %v11916_v4 = vld [vmem:[%s17613_s1 + $0x200] ss:$16 sps:$4 sm:$0xff]   ;;  %v11919_v6 = vld [vmem:[%s17613_s1 + $0x208] ss:$16 sps:$4 sm:$0xff]  }
  0x18   :  { %1865 = vmatprep.subr.bf16.mxu0 %v11855_v24  ;;  %2070 = vmatprep.subr.bf16.mxu1 %v11857_v25  ;;  %v11925_v7 = vld [vmem:[%s17613_s1 + $0x224] ss:$16 sps:$4 sm:$0xff]   ;;  %v11928_v8 = vld [vmem:[%s17613_s1 + $0x22c] ss:$16 sps:$4 sm:$0xff]   ;;  %v11923_v9 = vld [vmem:[%s17613_s1 + $0x220] ss:$16 sps:$4 sm:$0xff]  }
  0x19   :  { %v11926_v10 = vld [vmem:[%s17613_s1 + $0x228] ss:$16 sps:$4 sm:$0xff]   ;;  %v11931_v11 = vld [vmem:[%s17613_s1 + $0x244] ss:$16 sps:$4 sm:$0xff]   ;;  %v11934_v12 = vld [vmem:[%s17613_s1 + $0x24c] ss:$16 sps:$4 sm:$0xff]  }
  0x1a   :  { %v11929_v13 = vld [vmem:[%s17613_s1 + $0x240] ss:$16 sps:$4 sm:$0xff]   ;;  %v11932_v14 = vld [vmem:[%s17613_s1 + $0x248] ss:$16 sps:$4 sm:$0xff]   ;;  %v11937_v15 = vld [vmem:[%s17613_s1 + $0x264] ss:$16 sps:$4 sm:$0xff]  }
  0x1b   :  { %1866 = vmatpush1.bf16.msra.mxu0 %v11859_v26  ;;  %2071 = vmatpush1.bf16.msra.mxu1 %v11860_v27  ;;  %v11940_v16 = vld [vmem:[%s17613_s1 + $0x26c] ss:$16 sps:$4 sm:$0xff]   ;;  %v11935_v17 = vld [vmem:[%s17613_s1 + $0x260] ss:$16 sps:$4 sm:$0xff]   ;;  %v11938_v18 = vld [vmem:[%s17613_s1 + $0x268] ss:$16 sps:$4 sm:$0xff]  }
  0x1c   :  { %1867 = vmatprep.subr.bf16.mxu0 %v11861_v28  ;;  %2072 = vmatprep.subr.bf16.mxu1 %v11863_v29  ;;  %v11943_v19 = vld [vmem:[%s17613_s1 + $0x284] ss:$16 sps:$4 sm:$0xff]   ;;  %v11946_v20 = vld [vmem:[%s17613_s1 + $0x28c] ss:$16 sps:$4 sm:$0xff]   ;;  %v11941_v21 = vld [vmem:[%s17613_s1 + $0x280] ss:$16 sps:$4 sm:$0xff]  }
  0x1d   :  { %v11944_v22 = vld [vmem:[%s17613_s1 + $0x288] ss:$16 sps:$4 sm:$0xff]   ;;  %v11949_v23 = vld [vmem:[%s17613_s1 + $0x2a4] ss:$16 sps:$4 sm:$0xff]   ;;  %v11952_v24 = vld [vmem:[%s17613_s1 + $0x2ac] ss:$16 sps:$4 sm:$0xff]  }
  0x1e   :  { %v11947_v25 = vld [vmem:[%s17613_s1 + $0x2a0] ss:$16 sps:$4 sm:$0xff]   ;;  %v11950_v26 = vld [vmem:[%s17613_s1 + $0x2a8] ss:$16 sps:$4 sm:$0xff]   ;;  %v11955_v27 = vld [vmem:[%s17613_s1 + $0x2c4] ss:$16 sps:$4 sm:$0xff]  }
  0x1f   :  { %1868 = vmatpush1.bf16.msra.mxu0 %v11865_v30  ;;  %2073 = vmatpush1.bf16.msra.mxu1 %v11866_v31  ;;  %v11958_v28 = vld [vmem:[%s17613_s1 + $0x2cc] ss:$16 sps:$4 sm:$0xff]   ;;  %v11953_v31 = vld [vmem:[%s17613_s1 + $0x2c0] ss:$16 sps:$4 sm:$0xff]  }
  0x20   :  { %1869 = vmatprep.subr.bf16.mxu0 %v11867_v32  ;;  %2074 = vmatprep.subr.bf16.mxu1 %v11869_v33  ;;  %v13981_v29 = vld [vmem:[%s17614_s0 + $0x8] sm:$0xff]  ;;  %v11961_v33 = vld [vmem:[%s17613_s1 + $0x2e4] ss:$16 sps:$4 sm:$0xff]  }
  0x21   :  { %v13985_v30 = vcombine.high %v13981_v29, %v13981_v29  ;;  %v11956_v32 = vld [vmem:[%s17613_s1 + $0x2c8] ss:$16 sps:$4 sm:$0xff]   ;;  %v11982_v46 = vld [vmem:[%s17613_s1 + $0x34c] ss:$16 sps:$4 sm:$0xff]  }
  0x23   :  { %1870 = vmatpush1.bf16.msra.mxu0 %v11871_v34  ;;  %2075 = vmatpush1.bf16.msra.mxu1 %v11872_v35  ;;  %v11964_v34 = vld [vmem:[%s17613_s1 + $0x2ec] ss:$16 sps:$4 sm:$0xff]   ;;  %v11959_v35 = vld [vmem:[%s17613_s1 + $0x2e0] ss:$16 sps:$4 sm:$0xff]  }
  0x24   :  { %1871 = vmatprep.subr.bf16.mxu0 %v11873_v36  ;;  %2076 = vmatprep.subr.bf16.mxu1 %v11875_v37  ;;  %v11962_v36 = vld [vmem:[%s17613_s1 + $0x2e8] ss:$16 sps:$4 sm:$0xff]   ;;  %v11967_v37 = vld [vmem:[%s17613_s1 + $0x304] ss:$16 sps:$4 sm:$0xff]  }
  0x27   :  { %1872 = vmatpush1.bf16.msra.mxu0 %v11877_v38  ;;  %2077 = vmatpush1.bf16.msra.mxu1 %v11878_v39  ;;  %v11970_v38 = vld [vmem:[%s17613_s1 + $0x30c] ss:$16 sps:$4 sm:$0xff]   ;;  %v11965_v39 = vld [vmem:[%s17613_s1 + $0x300] ss:$16 sps:$4 sm:$0xff]  }
  0x28   :  { %1873 = vmatprep.subr.bf16.mxu0 %v11879_v40  ;;  %2078 = vmatprep.subr.bf16.mxu1 %v11881_v41  ;;  %v11968_v40 = vld [vmem:[%s17613_s1 + $0x308] ss:$16 sps:$4 sm:$0xff]   ;;  %v11973_v41 = vld [vmem:[%s17613_s1 + $0x324] ss:$16 sps:$4 sm:$0xff]  }
  0x2b   :  { %1874 = vmatpush1.bf16.msra.mxu0 %v11883_v42  ;;  %2079 = vmatpush1.bf16.msra.mxu1 %v11884_v43  ;;  %v11976_v42 = vld [vmem:[%s17613_s1 + $0x32c] ss:$16 sps:$4 sm:$0xff]   ;;  %v11971_v43 = vld [vmem:[%s17613_s1 + $0x320] ss:$16 sps:$4 sm:$0xff]  }
  0x2c   :  { %1875 = vmatprep.subr.bf16.mxu0 %v11885_v44  ;;  %2080 = vmatprep.subr.bf16.mxu1 %v11887_v45  ;;  %v11974_v44 = vld [vmem:[%s17613_s1 + $0x328] ss:$16 sps:$4 sm:$0xff]   ;;  %v11979_v45 = vld [vmem:[%s17613_s1 + $0x344] ss:$16 sps:$4 sm:$0xff]  }
  0x2f   :  { %1876 = vmatpush1.bf16.msra.mxu0 %v11889_v47  ;;  %2081 = vmatpush1.bf16.msra.mxu1 %v11890_v49  ;;  %v11977_v47 = vld [vmem:[%s17613_s1 + $0x340] ss:$16 sps:$4 sm:$0xff]   ;;  %v11980_v49 = vld [vmem:[%s17613_s1 + $0x348] ss:$16 sps:$4 sm:$0xff]  }
  0x30   :  { %1877 = vmatprep.subr.bf16.mxu0 %v11891_v50  ;;  %2082 = vmatprep.subr.bf16.mxu1 %v11893_v51  ;;  %v11985_v50 = vld [vmem:[%s17613_s1 + $0x364] ss:$16 sps:$4 sm:$0xff]   ;;  %v11988_v51 = vld [vmem:[%s17613_s1 + $0x36c] ss:$16 sps:$4 sm:$0xff]  }
  0x33   :  { %1878 = vmatpush1.bf16.msra.mxu0 %v11895_v52  ;;  %2083 = vmatpush1.bf16.msra.mxu1 %v11896_v53  ;;  %v11983_v52 = vld [vmem:[%s17613_s1 + $0x360] ss:$16 sps:$4 sm:$0xff]   ;;  %v11986_v53 = vld [vmem:[%s17613_s1 + $0x368] ss:$16 sps:$4 sm:$0xff]  }
  0x34   :  { %1879 = vmatprep.subr.bf16.mxu0 %v11897_v54  ;;  %2084 = vmatprep.subr.bf16.mxu1 %v11899_v55  ;;  %v11991_v54 = vld [vmem:[%s17613_s1 + $0x384] ss:$16 sps:$4 sm:$0xff]   ;;  %v11994_v55 = vld [vmem:[%s17613_s1 + $0x38c] ss:$16 sps:$4 sm:$0xff]  }
  0x37   :  { %1880 = vmatpush1.bf16.msra.mxu0 %v11901_v56  ;;  %2085 = vmatpush1.bf16.msra.mxu1 %v11902_v57  ;;  %v11989_v56 = vld [vmem:[%s17613_s1 + $0x380] ss:$16 sps:$4 sm:$0xff]   ;;  %v11992_v57 = vld [vmem:[%s17613_s1 + $0x388] ss:$16 sps:$4 sm:$0xff]  }
  0x38   :  { %1881 = vmatprep.subr.bf16.mxu0 %v11903_v58  ;;  %2086 = vmatprep.subr.bf16.mxu1 %v11905_v59  ;;  %v11997_v58 = vld [vmem:[%s17613_s1 + $0x3a4] ss:$16 sps:$4 sm:$0xff]   ;;  %v12000_v59 = vld [vmem:[%s17613_s1 + $0x3ac] ss:$16 sps:$4 sm:$0xff]  }
  0x3b   :  { %1882 = vmatpush1.bf16.msra.mxu0 %v11907_v60  ;;  %2087 = vmatpush1.bf16.msra.mxu1 %v11908_v61  ;;  %v11995_v60 = vld [vmem:[%s17613_s1 + $0x3a0] ss:$16 sps:$4 sm:$0xff]   ;;  %v11998_v61 = vld [vmem:[%s17613_s1 + $0x3a8] ss:$16 sps:$4 sm:$0xff]  }
  0x3c   :  { %1883 = vmatprep.subr.bf16.mxu0 %v11909_v62  ;;  %2088 = vmatprep.subr.bf16.mxu1 %v11911_v63  ;;  %v12003_v62 = vld [vmem:[%s17613_s1 + $0x3c4] ss:$16 sps:$4 sm:$0xff]   ;;  %v12006_v63 = vld [vmem:[%s17613_s1 + $0x3cc] ss:$16 sps:$4 sm:$0xff]  }
  0x3f   :  { %1884 = vmatpush1.bf16.msra.mxu0 %v11913_v0  ;;  %2089 = vmatpush1.bf16.msra.mxu1 %v11914_v1  ;;  %v12001_v0 = vld [vmem:[%s17613_s1 + $0x3c0] ss:$16 sps:$4 sm:$0xff]   ;;  %v12004_v1 = vld [vmem:[%s17613_s1 + $0x3c8] ss:$16 sps:$4 sm:$0xff]  }
  0x40   :  { %1894 = vmatprep.subr.bf16.mxu0 %v11918_v2  ;;  %2099 = vmatprep.subr.bf16.mxu1 %v11921_v3  ;;  %v12009_v2 = vld [vmem:[%s17613_s1 + $0x3e4] ss:$16 sps:$4 sm:$0xff]   ;;  %v12012_v3 = vld [vmem:[%s17613_s1 + $0x3ec] ss:$16 sps:$4 sm:$0xff]  }
  0x42   :  { %1886 = vmatmul.mubr.bf16.vlgmr.msra.gmra.mrb[0].mxu0 %v13905_v5  ;;  %2091 = vmatmul.mubr.bf16.vlgmr.msra.gmra.mrb[0].mxu1 %v13905_v5 }
  0x43   :  { %1895 = vmatpush1.bf16.msra.mxu0 %v11916_v4  ;;  %2100 = vmatpush1.bf16.msra.mxu1 %v11919_v6  ;;  %v12007_v4 = vld [vmem:[%s17613_s1 + $0x3e0] ss:$16 sps:$4 sm:$0xff]   ;;  %v12010_v6 = vld [vmem:[%s17613_s1 + $0x3e8] ss:$16 sps:$4 sm:$0xff]  }
  0x44   :  { %1896 = vmatprep.subr.bf16.mxu0 %v11925_v7  ;;  %2101 = vmatprep.subr.bf16.mxu1 %v11928_v8  ;;  %v12016_v7 = vld [vmem:[%s17613_s1 + $0x404] ss:$16 sps:$4 sm:$0xff]   ;;  %v12019_v8 = vld [vmem:[%s17613_s1 + $0x40c] ss:$16 sps:$4 sm:$0xff]  }
  0x45   :  { %1926 = vmatprep.mubr.bf16.mxu0 %v13985_v30  ;;  %2131 = vmatprep.mubr.bf16.mxu1 %v13985_v30 }
  0x47   :  { %1897 = vmatpush1.bf16.msra.mxu0 %v11923_v9  ;;  %2102 = vmatpush1.bf16.msra.mxu1 %v11926_v10  ;;  %v12014_v9 = vld [vmem:[%s17613_s1 + $0x400] ss:$16 sps:$4 sm:$0xff]   ;;  %v14114_v10 = vcombine.low %v13981_v29, %v13981_v29  ;;  %v12042_v29 = vld [vmem:[%s17613_s1 + $0x488] ss:$16 sps:$4 sm:$0xff]  }
  0x48   :  { %1898 = vmatprep.subr.bf16.mxu0 %v11931_v11  ;;  %2103 = vmatprep.subr.bf16.mxu1 %v11934_v12  ;;  %v12017_v11 = vld [vmem:[%s17613_s1 + $0x408] ss:$16 sps:$4 sm:$0xff]   ;;  %v12023_v12 = vld [vmem:[%s17613_s1 + $0x424] ss:$16 sps:$4 sm:$0xff]  }
  0x4b   :  { %1899 = vmatpush1.bf16.msra.mxu0 %v11929_v13  ;;  %2104 = vmatpush1.bf16.msra.mxu1 %v11932_v14  ;;  %v14125_v13 = vld [vmem:[%s17614_s0 + $0x10] sm:$0xff]  ;;  %v12026_v14 = vld [vmem:[%s17613_s1 + $0x42c] ss:$16 sps:$4 sm:$0xff]  }
  0x4c   :  { %1900 = vmatprep.subr.bf16.mxu0 %v11937_v15  ;;  %2105 = vmatprep.subr.bf16.mxu1 %v11940_v16  ;;  %v14132_v15 = vcombine.high %v14125_v13, %v14125_v13  ;;  %v12021_v16 = vld [vmem:[%s17613_s1 + $0x420] ss:$16 sps:$4 sm:$0xff]  }
  0x4f   :  { %1901 = vmatpush1.bf16.msra.mxu0 %v11935_v17  ;;  %2106 = vmatpush1.bf16.msra.mxu1 %v11938_v18  ;;  %v12024_v17 = vld [vmem:[%s17613_s1 + $0x428] ss:$16 sps:$4 sm:$0xff]   ;;  %v12029_v18 = vld [vmem:[%s17613_s1 + $0x444] ss:$16 sps:$4 sm:$0xff]  }
  0x50   :  { %1902 = vmatprep.subr.bf16.mxu0 %v11943_v19  ;;  %2107 = vmatprep.subr.bf16.mxu1 %v11946_v20  ;;  %v12032_v19 = vld [vmem:[%s17613_s1 + $0x44c] ss:$16 sps:$4 sm:$0xff]   ;;  %v12027_v20 = vld [vmem:[%s17613_s1 + $0x440] ss:$16 sps:$4 sm:$0xff]  }
  0x53   :  { %1903 = vmatpush1.bf16.msra.mxu0 %v11941_v21  ;;  %2108 = vmatpush1.bf16.msra.mxu1 %v11944_v22  ;;  %v12030_v21 = vld [vmem:[%s17613_s1 + $0x448] ss:$16 sps:$4 sm:$0xff]   ;;  %v12035_v22 = vld [vmem:[%s17613_s1 + $0x464] ss:$16 sps:$4 sm:$0xff]  }
  0x54   :  { %1904 = vmatprep.subr.bf16.mxu0 %v11949_v23  ;;  %2109 = vmatprep.subr.bf16.mxu1 %v11952_v24  ;;  %v12038_v23 = vld [vmem:[%s17613_s1 + $0x46c] ss:$16 sps:$4 sm:$0xff]   ;;  %v12033_v24 = vld [vmem:[%s17613_s1 + $0x460] ss:$16 sps:$4 sm:$0xff]  }
  0x57   :  { %1905 = vmatpush1.bf16.msra.mxu0 %v11947_v25  ;;  %2110 = vmatpush1.bf16.msra.mxu1 %v11950_v26  ;;  %v12036_v25 = vld [vmem:[%s17613_s1 + $0x468] ss:$16 sps:$4 sm:$0xff]   ;;  %v12041_v26 = vld [vmem:[%s17613_s1 + $0x484] ss:$16 sps:$4 sm:$0xff]  }
  0x58   :  { %1906 = vmatprep.subr.bf16.mxu0 %v11955_v27  ;;  %2111 = vmatprep.subr.bf16.mxu1 %v11958_v28  ;;  %v12044_v27 = vld [vmem:[%s17613_s1 + $0x48c] ss:$16 sps:$4 sm:$0xff]   ;;  %v12039_v28 = vld [vmem:[%s17613_s1 + $0x480] ss:$16 sps:$4 sm:$0xff]  }
  0x5b   :  { %1907 = vmatpush1.bf16.msra.mxu0 %v11953_v31  ;;  %2112 = vmatpush1.bf16.msra.mxu1 %v11956_v32  ;;  %v12047_v31 = vld [vmem:[%s17613_s1 + $0x4a4] ss:$16 sps:$4 sm:$0xff]   ;;  %v12050_v32 = vld [vmem:[%s17613_s1 + $0x4ac] ss:$16 sps:$4 sm:$0xff]  }
  0x5c   :  { %1908 = vmatprep.subr.bf16.mxu0 %v11961_v33  ;;  %2113 = vmatprep.subr.bf16.mxu1 %v11964_v34  ;;  %v12045_v33 = vld [vmem:[%s17613_s1 + $0x4a0] ss:$16 sps:$4 sm:$0xff]   ;;  %v12048_v34 = vld [vmem:[%s17613_s1 + $0x4a8] ss:$16 sps:$4 sm:$0xff]  }
  0x5f   :  { %1909 = vmatpush1.bf16.msra.mxu0 %v11959_v35  ;;  %2114 = vmatpush1.bf16.msra.mxu1 %v11962_v36  ;;  %v12053_v35 = vld [vmem:[%s17613_s1 + $0x4c4] ss:$16 sps:$4 sm:$0xff]   ;;  %v12056_v36 = vld [vmem:[%s17613_s1 + $0x4cc] ss:$16 sps:$4 sm:$0xff]  }
  0x60   :  { %1910 = vmatprep.subr.bf16.mxu0 %v11967_v37  ;;  %2115 = vmatprep.subr.bf16.mxu1 %v11970_v38  ;;  %v12051_v37 = vld [vmem:[%s17613_s1 + $0x4c0] ss:$16 sps:$4 sm:$0xff]   ;;  %v12054_v38 = vld [vmem:[%s17613_s1 + $0x4c8] ss:$16 sps:$4 sm:$0xff]  }
  0x63   :  { %1911 = vmatpush1.bf16.msra.mxu0 %v11965_v39  ;;  %2116 = vmatpush1.bf16.msra.mxu1 %v11968_v40  ;;  %v12059_v39 = vld [vmem:[%s17613_s1 + $0x4e4] ss:$16 sps:$4 sm:$0xff]   ;;  %v12062_v40 = vld [vmem:[%s17613_s1 + $0x4ec] ss:$16 sps:$4 sm:$0xff]  }
  0x64   :  { %1912 = vmatprep.subr.bf16.mxu0 %v11973_v41  ;;  %2117 = vmatprep.subr.bf16.mxu1 %v11976_v42  ;;  %v12057_v41 = vld [vmem:[%s17613_s1 + $0x4e0] ss:$16 sps:$4 sm:$0xff]   ;;  %v12060_v42 = vld [vmem:[%s17613_s1 + $0x4e8] ss:$16 sps:$4 sm:$0xff]  }
  0x67   :  { %1913 = vmatpush1.bf16.msra.mxu0 %v11971_v43  ;;  %2118 = vmatpush1.bf16.msra.mxu1 %v11974_v44  ;;  %v12065_v43 = vld [vmem:[%s17613_s1 + $0x504] ss:$16 sps:$4 sm:$0xff]   ;;  %v12068_v44 = vld [vmem:[%s17613_s1 + $0x50c] ss:$16 sps:$4 sm:$0xff]  }
  0x68   :  { %1914 = vmatprep.subr.bf16.mxu0 %v11979_v45  ;;  %2119 = vmatprep.subr.bf16.mxu1 %v11982_v46  ;;  %v12063_v45 = vld [vmem:[%s17613_s1 + $0x500] ss:$16 sps:$4 sm:$0xff]   ;;  %v12066_v46 = vld [vmem:[%s17613_s1 + $0x508] ss:$16 sps:$4 sm:$0xff]  }
  0x6b   :  { %1915 = vmatpush1.bf16.msra.mxu0 %v11977_v47  ;;  %2120 = vmatpush1.bf16.msra.mxu1 %v11980_v49  ;;  %v12071_v47 = vld [vmem:[%s17613_s1 + $0x524] ss:$16 sps:$4 sm:$0xff]   ;;  %v12074_v49 = vld [vmem:[%s17613_s1 + $0x52c] ss:$16 sps:$4 sm:$0xff]  }
  0x6c   :  { %1916 = vmatprep.subr.bf16.mxu0 %v11985_v50  ;;  %2121 = vmatprep.subr.bf16.mxu1 %v11988_v51  ;;  %v12069_v50 = vld [vmem:[%s17613_s1 + $0x520] ss:$16 sps:$4 sm:$0xff]   ;;  %v12072_v51 = vld [vmem:[%s17613_s1 + $0x528] ss:$16 sps:$4 sm:$0xff]  }
  0x6f   :  { %1917 = vmatpush1.bf16.msra.mxu0 %v11983_v52  ;;  %2122 = vmatpush1.bf16.msra.mxu1 %v11986_v53  ;;  %v12077_v52 = vld [vmem:[%s17613_s1 + $0x544] ss:$16 sps:$4 sm:$0xff]   ;;  %v12080_v53 = vld [vmem:[%s17613_s1 + $0x54c] ss:$16 sps:$4 sm:$0xff]  }
  0x70   :  { %1918 = vmatprep.subr.bf16.mxu0 %v11991_v54  ;;  %2123 = vmatprep.subr.bf16.mxu1 %v11994_v55  ;;  %v12075_v54 = vld [vmem:[%s17613_s1 + $0x540] ss:$16 sps:$4 sm:$0xff]   ;;  %v12078_v55 = vld [vmem:[%s17613_s1 + $0x548] ss:$16 sps:$4 sm:$0xff]  }
  0x73   :  { %1919 = vmatpush1.bf16.msra.mxu0 %v11989_v56  ;;  %2124 = vmatpush1.bf16.msra.mxu1 %v11992_v57  ;;  %v12083_v56 = vld [vmem:[%s17613_s1 + $0x564] ss:$16 sps:$4 sm:$0xff]   ;;  %v12086_v57 = vld [vmem:[%s17613_s1 + $0x56c] ss:$16 sps:$4 sm:$0xff]  }
  0x74   :  { %1920 = vmatprep.subr.bf16.mxu0 %v11997_v58  ;;  %2125 = vmatprep.subr.bf16.mxu1 %v12000_v59  ;;  %v12081_v58 = vld [vmem:[%s17613_s1 + $0x560] ss:$16 sps:$4 sm:$0xff]   ;;  %v12084_v59 = vld [vmem:[%s17613_s1 + $0x568] ss:$16 sps:$4 sm:$0xff]  }
  0x77   :  { %1921 = vmatpush1.bf16.msra.mxu0 %v11995_v60  ;;  %2126 = vmatpush1.bf16.msra.mxu1 %v11998_v61  ;;  %v12089_v60 = vld [vmem:[%s17613_s1 + $0x584] ss:$16 sps:$4 sm:$0xff]   ;;  %v12092_v61 = vld [vmem:[%s17613_s1 + $0x58c] ss:$16 sps:$4 sm:$0xff]  }
  0x78   :  { %1922 = vmatprep.subr.bf16.mxu0 %v12003_v62  ;;  %2127 = vmatprep.subr.bf16.mxu1 %v12006_v63  ;;  %v12087_v62 = vld [vmem:[%s17613_s1 + $0x580] ss:$16 sps:$4 sm:$0xff]   ;;  %v12090_v63 = vld [vmem:[%s17613_s1 + $0x588] ss:$16 sps:$4 sm:$0xff]  }
  0x7b   :  { %1923 = vmatpush1.bf16.msra.mxu0 %v12001_v0  ;;  %2128 = vmatpush1.bf16.msra.mxu1 %v12004_v1  ;;  %v12095_v0 = vld [vmem:[%s17613_s1 + $0x5a4] ss:$16 sps:$4 sm:$0xff]   ;;  %v12098_v1 = vld [vmem:[%s17613_s1 + $0x5ac] ss:$16 sps:$4 sm:$0xff]  }
  0x7c   :  { %1924 = vmatprep.subr.bf16.mxu0 %v12009_v2  ;;  %2129 = vmatprep.subr.bf16.mxu1 %v12012_v3  ;;  %v12093_v2 = vld [vmem:[%s17613_s1 + $0x5a0] ss:$16 sps:$4 sm:$0xff]   ;;  %v12096_v3 = vld [vmem:[%s17613_s1 + $0x5a8] ss:$16 sps:$4 sm:$0xff]  }
  0x7f   :  { %1925 = vmatpush1.bf16.msra.mxu0 %v12007_v4  ;;  %2130 = vmatpush1.bf16.msra.mxu1 %v12010_v6  ;;  %v12101_v4 = vld [vmem:[%s17613_s1 + $0x5c4] ss:$16 sps:$4 sm:$0xff]   ;;  %v12104_v6 = vld [vmem:[%s17613_s1 + $0x5cc] ss:$16 sps:$4 sm:$0xff]  }
  0x80   :  { %1935 = vmatprep.subr.bf16.mxu0 %v12016_v7  ;;  %2140 = vmatprep.subr.bf16.mxu1 %v12019_v8  ;;  %v12099_v7 = vld [vmem:[%s17613_s1 + $0x5c0] ss:$16 sps:$4 sm:$0xff]   ;;  %v12102_v8 = vld [vmem:[%s17613_s1 + $0x5c8] ss:$16 sps:$4 sm:$0xff]  }
  0x82   :  { %1927 = vmatmul.mubr.bf16.vlgmr.msra.gmra.mrb[0].mxu0 %v14114_v10  ;;  %2132 = vmatmul.mubr.bf16.vlgmr.msra.gmra.mrb[0].mxu1 %v14114_v10 }
  0x83   :  { %1936 = vmatpush1.bf16.msra.mxu0 %v12014_v9  ;;  %2141 = vmatpush1.bf16.msra.mxu1 %v12017_v11  ;;  %v12107_v9 = vld [vmem:[%s17613_s1 + $0x5e4] ss:$16 sps:$4 sm:$0xff]   ;;  %v12110_v11 = vld [vmem:[%s17613_s1 + $0x5ec] ss:$16 sps:$4 sm:$0xff]  }
  0x84   :  { %1937 = vmatprep.subr.bf16.mxu0 %v12023_v12  ;;  %2142 = vmatprep.subr.bf16.mxu1 %v12026_v14  ;;  %v12105_v12 = vld [vmem:[%s17613_s1 + $0x5e0] ss:$16 sps:$4 sm:$0xff]   ;;  %v12108_v14 = vld [vmem:[%s17613_s1 + $0x5e8] ss:$16 sps:$4 sm:$0xff]  }
  0x85   :  { %1967 = vmatprep.mubr.bf16.mxu0 %v14132_v15  ;;  %2172 = vmatprep.mubr.bf16.mxu1 %v14132_v15 }
  0x87   :  { %1938 = vmatpush1.bf16.msra.mxu0 %v12021_v16  ;;  %2143 = vmatpush1.bf16.msra.mxu1 %v12024_v17  ;;  %v12114_v16 = vld [vmem:[%s17613_s1 + $0x604] ss:$16 sps:$4 sm:$0xff]   ;;  %v12117_v17 = vld [vmem:[%s17613_s1 + $0x60c] ss:$16 sps:$4 sm:$0xff]  }
  0x88   :  { %1939 = vmatprep.subr.bf16.mxu0 %v12029_v18  ;;  %2144 = vmatprep.subr.bf16.mxu1 %v12032_v19  ;;  %v12112_v18 = vld [vmem:[%s17613_s1 + $0x600] ss:$16 sps:$4 sm:$0xff]   ;;  %v12115_v19 = vld [vmem:[%s17613_s1 + $0x608] ss:$16 sps:$4 sm:$0xff]  }
  0x8b   :  { %1940 = vmatpush1.bf16.msra.mxu0 %v12027_v20  ;;  %2145 = vmatpush1.bf16.msra.mxu1 %v12030_v21  ;;  %v14326_v20 = vcombine.low %v14125_v13, %v14125_v13  ;;  %v14331_v21 = vld [vmem:[%s17614_s0 + $0x18] sm:$0xff] }
  0x8c   :  { %1941 = vmatprep.subr.bf16.mxu0 %v12035_v22  ;;  %2146 = vmatprep.subr.bf16.mxu1 %v12038_v23  ;;  %v12121_v22 = vld [vmem:[%s17613_s1 + $0x624] ss:$16 sps:$4 sm:$0xff]   ;;  %v12124_v23 = vld [vmem:[%s17613_s1 + $0x62c] ss:$16 sps:$4 sm:$0xff]   ;;  %v14341_v13 = vcombine.high %v14331_v21, %v14331_v21 }
  0x8f   :  { %1942 = vmatpush1.bf16.msra.mxu0 %v12033_v24  ;;  %2147 = vmatpush1.bf16.msra.mxu1 %v12036_v25  ;;  %v12119_v24 = vld [vmem:[%s17613_s1 + $0x620] ss:$16 sps:$4 sm:$0xff]   ;;  %v12122_v25 = vld [vmem:[%s17613_s1 + $0x628] ss:$16 sps:$4 sm:$0xff]  }
  0x90   :  { %1943 = vmatprep.subr.bf16.mxu0 %v12041_v26  ;;  %2148 = vmatprep.subr.bf16.mxu1 %v12044_v27  ;;  %v12127_v26 = vld [vmem:[%s17613_s1 + $0x644] ss:$16 sps:$4 sm:$0xff]   ;;  %v12130_v27 = vld [vmem:[%s17613_s1 + $0x64c] ss:$16 sps:$4 sm:$0xff]  }
  0x93   :  { %1944 = vmatpush1.bf16.msra.mxu0 %v12039_v28  ;;  %2149 = vmatpush1.bf16.msra.mxu1 %v12042_v29  ;;  %v12125_v28 = vld [vmem:[%s17613_s1 + $0x640] ss:$16 sps:$4 sm:$0xff]   ;;  %v12128_v29 = vld [vmem:[%s17613_s1 + $0x648] ss:$16 sps:$4 sm:$0xff]  }
  0x94   :  { %1945 = vmatprep.subr.bf16.mxu0 %v12047_v31  ;;  %2150 = vmatprep.subr.bf16.mxu1 %v12050_v32  ;;  %v12133_v31 = vld [vmem:[%s17613_s1 + $0x664] ss:$16 sps:$4 sm:$0xff]   ;;  %v12136_v32 = vld [vmem:[%s17613_s1 + $0x66c] ss:$16 sps:$4 sm:$0xff]  }
  0x97   :  { %1946 = vmatpush1.bf16.msra.mxu0 %v12045_v33  ;;  %2151 = vmatpush1.bf16.msra.mxu1 %v12048_v34  ;;  %v12131_v33 = vld [vmem:[%s17613_s1 + $0x660] ss:$16 sps:$4 sm:$0xff]   ;;  %v12134_v34 = vld [vmem:[%s17613_s1 + $0x668] ss:$16 sps:$4 sm:$0xff]  }
  0x98   :  { %1947 = vmatprep.subr.bf16.mxu0 %v12053_v35  ;;  %2152 = vmatprep.subr.bf16.mxu1 %v12056_v36  ;;  %v12139_v35 = vld [vmem:[%s17613_s1 + $0x684] ss:$16 sps:$4 sm:$0xff]   ;;  %v12142_v36 = vld [vmem:[%s17613_s1 + $0x68c] ss:$16 sps:$4 sm:$0xff]  }
  0x9b   :  { %1948 = vmatpush1.bf16.msra.mxu0 %v12051_v37  ;;  %2153 = vmatpush1.bf16.msra.mxu1 %v12054_v38  ;;  %v12137_v37 = vld [vmem:[%s17613_s1 + $0x680] ss:$16 sps:$4 sm:$0xff]   ;;  %v12140_v38 = vld [vmem:[%s17613_s1 + $0x688] ss:$16 sps:$4 sm:$0xff]  }
  0x9c   :  { %1949 = vmatprep.subr.bf16.mxu0 %v12059_v39  ;;  %2154 = vmatprep.subr.bf16.mxu1 %v12062_v40  ;;  %v12145_v39 = vld [vmem:[%s17613_s1 + $0x6a4] ss:$16 sps:$4 sm:$0xff]   ;;  %v12148_v40 = vld [vmem:[%s17613_s1 + $0x6ac] ss:$16 sps:$4 sm:$0xff]  }
  0x9f   :  { %1950 = vmatpush1.bf16.msra.mxu0 %v12057_v41  ;;  %2155 = vmatpush1.bf16.msra.mxu1 %v12060_v42  ;;  %v12143_v41 = vld [vmem:[%s17613_s1 + $0x6a0] ss:$16 sps:$4 sm:$0xff]   ;;  %v12146_v42 = vld [vmem:[%s17613_s1 + $0x6a8] ss:$16 sps:$4 sm:$0xff]  }
  0xa0   :  { %1951 = vmatprep.subr.bf16.mxu0 %v12065_v43  ;;  %2156 = vmatprep.subr.bf16.mxu1 %v12068_v44  ;;  %v12151_v43 = vld [vmem:[%s17613_s1 + $0x6c4] ss:$16 sps:$4 sm:$0xff]   ;;  %v12154_v44 = vld [vmem:[%s17613_s1 + $0x6cc] ss:$16 sps:$4 sm:$0xff]  }
  0xa3   :  { %1952 = vmatpush1.bf16.msra.mxu0 %v12063_v45  ;;  %2157 = vmatpush1.bf16.msra.mxu1 %v12066_v46  ;;  %v12149_v45 = vld [vmem:[%s17613_s1 + $0x6c0] ss:$16 sps:$4 sm:$0xff]   ;;  %v12152_v46 = vld [vmem:[%s17613_s1 + $0x6c8] ss:$16 sps:$4 sm:$0xff]  }
  0xa4   :  { %1953 = vmatprep.subr.bf16.mxu0 %v12071_v47  ;;  %2158 = vmatprep.subr.bf16.mxu1 %v12074_v49  ;;  %v12157_v47 = vld [vmem:[%s17613_s1 + $0x6e4] ss:$16 sps:$4 sm:$0xff]   ;;  %v12160_v49 = vld [vmem:[%s17613_s1 + $0x6ec] ss:$16 sps:$4 sm:$0xff]  }
  0xa7   :  { %1954 = vmatpush1.bf16.msra.mxu0 %v12069_v50  ;;  %2159 = vmatpush1.bf16.msra.mxu1 %v12072_v51  ;;  %v12155_v50 = vld [vmem:[%s17613_s1 + $0x6e0] ss:$16 sps:$4 sm:$0xff]   ;;  %v12158_v51 = vld [vmem:[%s17613_s1 + $0x6e8] ss:$16 sps:$4 sm:$0xff]  }
  0xa8   :  { %1955 = vmatprep.subr.bf16.mxu0 %v12077_v52  ;;  %2160 = vmatprep.subr.bf16.mxu1 %v12080_v53  ;;  %v12163_v52 = vld [vmem:[%s17613_s1 + $0x704] ss:$16 sps:$4 sm:$0xff]   ;;  %v12166_v53 = vld [vmem:[%s17613_s1 + $0x70c] ss:$16 sps:$4 sm:$0xff]  }
  0xab   :  { %1956 = vmatpush1.bf16.msra.mxu0 %v12075_v54  ;;  %2161 = vmatpush1.bf16.msra.mxu1 %v12078_v55  ;;  %v12161_v54 = vld [vmem:[%s17613_s1 + $0x700] ss:$16 sps:$4 sm:$0xff]   ;;  %v12164_v55 = vld [vmem:[%s17613_s1 + $0x708] ss:$16 sps:$4 sm:$0xff]  }
  0xac   :  { %1957 = vmatprep.subr.bf16.mxu0 %v12083_v56  ;;  %2162 = vmatprep.subr.bf16.mxu1 %v12086_v57  ;;  %v12169_v56 = vld [vmem:[%s17613_s1 + $0x724] ss:$16 sps:$4 sm:$0xff]   ;;  %v12172_v57 = vld [vmem:[%s17613_s1 + $0x72c] ss:$16 sps:$4 sm:$0xff]  }
  0xaf   :  { %1958 = vmatpush1.bf16.msra.mxu0 %v12081_v58  ;;  %2163 = vmatpush1.bf16.msra.mxu1 %v12084_v59  ;;  %v12167_v58 = vld [vmem:[%s17613_s1 + $0x720] ss:$16 sps:$4 sm:$0xff]   ;;  %v12170_v59 = vld [vmem:[%s17613_s1 + $0x728] ss:$16 sps:$4 sm:$0xff]  }
  0xb0   :  { %1959 = vmatprep.subr.bf16.mxu0 %v12089_v60  ;;  %2164 = vmatprep.subr.bf16.mxu1 %v12092_v61  ;;  %v12175_v60 = vld [vmem:[%s17613_s1 + $0x744] ss:$16 sps:$4 sm:$0xff]   ;;  %v12178_v61 = vld [vmem:[%s17613_s1 + $0x74c] ss:$16 sps:$4 sm:$0xff]  }
  0xb3   :  { %1960 = vmatpush1.bf16.msra.mxu0 %v12087_v62  ;;  %2165 = vmatpush1.bf16.msra.mxu1 %v12090_v63  ;;  %v12173_v62 = vld [vmem:[%s17613_s1 + $0x740] ss:$16 sps:$4 sm:$0xff]   ;;  %v12176_v63 = vld [vmem:[%s17613_s1 + $0x748] ss:$16 sps:$4 sm:$0xff]  }
  0xb4   :  { %1961 = vmatprep.subr.bf16.mxu0 %v12095_v0  ;;  %2166 = vmatprep.subr.bf16.mxu1 %v12098_v1  ;;  %v12181_v0 = vld [vmem:[%s17613_s1 + $0x764] ss:$16 sps:$4 sm:$0xff]   ;;  %v12184_v1 = vld [vmem:[%s17613_s1 + $0x76c] ss:$16 sps:$4 sm:$0xff]  }
  0xb7   :  { %1962 = vmatpush1.bf16.msra.mxu0 %v12093_v2  ;;  %2167 = vmatpush1.bf16.msra.mxu1 %v12096_v3  ;;  %v12179_v2 = vld [vmem:[%s17613_s1 + $0x760] ss:$16 sps:$4 sm:$0xff]   ;;  %v12182_v3 = vld [vmem:[%s17613_s1 + $0x768] ss:$16 sps:$4 sm:$0xff]  }
  0xb8   :  { %1963 = vmatprep.subr.bf16.mxu0 %v12101_v4  ;;  %2168 = vmatprep.subr.bf16.mxu1 %v12104_v6  ;;  %v12187_v4 = vld [vmem:[%s17613_s1 + $0x784] ss:$16 sps:$4 sm:$0xff]   ;;  %v12190_v6 = vld [vmem:[%s17613_s1 + $0x78c] ss:$16 sps:$4 sm:$0xff]  }
  0xbb   :  { %1964 = vmatpush1.bf16.msra.mxu0 %v12099_v7  ;;  %2169 = vmatpush1.bf16.msra.mxu1 %v12102_v8  ;;  %v12185_v7 = vld [vmem:[%s17613_s1 + $0x780] ss:$16 sps:$4 sm:$0xff]   ;;  %v12188_v8 = vld [vmem:[%s17613_s1 + $0x788] ss:$16 sps:$4 sm:$0xff]  }
  0xbc   :  { %1965 = vmatprep.subr.bf16.mxu0 %v12107_v9  ;;  %2170 = vmatprep.subr.bf16.mxu1 %v12110_v11  ;;  %v12193_v9 = vld [vmem:[%s17613_s1 + $0x7a4] ss:$16 sps:$4 sm:$0xff]   ;;  %v12196_v11 = vld [vmem:[%s17613_s1 + $0x7ac] ss:$16 sps:$4 sm:$0xff]  }
  0xbf   :  { %1966 = vmatpush1.bf16.msra.mxu0 %v12105_v12  ;;  %2171 = vmatpush1.bf16.msra.mxu1 %v12108_v14  ;;  %v12191_v12 = vld [vmem:[%s17613_s1 + $0x7a0] ss:$16 sps:$4 sm:$0xff]   ;;  %v12194_v14 = vld [vmem:[%s17613_s1 + $0x7a8] ss:$16 sps:$4 sm:$0xff]  }
  0xc0   :  { %1976 = vmatprep.subr.bf16.mxu0 %v12114_v16  ;;  %2181 = vmatprep.subr.bf16.mxu1 %v12117_v17  ;;  %v12199_v16 = vld [vmem:[%s17613_s1 + $0x7c4] ss:$16 sps:$4 sm:$0xff]   ;;  %v12202_v17 = vld [vmem:[%s17613_s1 + $0x7cc] ss:$16 sps:$4 sm:$0xff]  }
  0xc2   :  { %1968 = vmatmul.mubr.bf16.vlgmr.msra.gmra.mrb[0].mxu0 %v14326_v20  ;;  %2173 = vmatmul.mubr.bf16.vlgmr.msra.gmra.mrb[0].mxu1 %v14326_v20 }
  0xc3   :  { %1977 = vmatpush1.bf16.msra.mxu0 %v12112_v18  ;;  %2182 = vmatpush1.bf16.msra.mxu1 %v12115_v19  ;;  %v12197_v18 = vld [vmem:[%s17613_s1 + $0x7c0] ss:$16 sps:$4 sm:$0xff]   ;;  %v12200_v19 = vld [vmem:[%s17613_s1 + $0x7c8] ss:$16 sps:$4 sm:$0xff]  }
  0xc4   :  { %1978 = vmatprep.subr.bf16.mxu0 %v12121_v22  ;;  %2183 = vmatprep.subr.bf16.mxu1 %v12124_v23  ;;  %v12205_v22 = vld [vmem:[%s17613_s1 + $0x7e4] ss:$16 sps:$4 sm:$0xff]   ;;  %v12208_v23 = vld [vmem:[%s17613_s1 + $0x7ec] ss:$16 sps:$4 sm:$0xff]  }
  0xc5   :  { %2008 = vmatprep.mubr.bf16.mxu0 %v14341_v13  ;;  %2213 = vmatprep.mubr.bf16.mxu1 %v14341_v13 }
  0xc7   :  { %1979 = vmatpush1.bf16.msra.mxu0 %v12119_v24  ;;  %2184 = vmatpush1.bf16.msra.mxu1 %v12122_v25  ;;  %v12203_v24 = vld [vmem:[%s17613_s1 + $0x7e0] ss:$16 sps:$4 sm:$0xff]   ;;  %v12206_v25 = vld [vmem:[%s17613_s1 + $0x7e8] ss:$16 sps:$4 sm:$0xff]  }
  0xc8   :  { %1980 = vmatprep.subr.bf16.mxu0 %v12127_v26  ;;  %2185 = vmatprep.subr.bf16.mxu1 %v12130_v27  ;;  %v12212_v26 = vld [vmem:[%s17613_s1 + $0x804] ss:$16 sps:$4 sm:$0xff]   ;;  %v12215_v27 = vld [vmem:[%s17613_s1 + $0x80c] ss:$16 sps:$4 sm:$0xff]  }
  0xcb   :  { %1981 = vmatpush1.bf16.msra.mxu0 %v12125_v28  ;;  %2186 = vmatpush1.bf16.msra.mxu1 %v12128_v29  ;;  %v12210_v28 = vld [vmem:[%s17613_s1 + $0x800] ss:$16 sps:$4 sm:$0xff]   ;;  %v14532_v29 = vcombine.low %v14331_v21, %v14331_v21  ;;  %v12222_v21 = vld [vmem:[%s17613_s1 + $0x82c] ss:$16 sps:$4 sm:$0xff]  }
  0xcc   :  { %1982 = vmatprep.subr.bf16.mxu0 %v12133_v31  ;;  %2187 = vmatprep.subr.bf16.mxu1 %v12136_v32  ;;  %v14537_v31 = vld [vmem:[%s17614_s0 + $0x20] sm:$0xff]  ;;  %v12213_v32 = vld [vmem:[%s17613_s1 + $0x808] ss:$16 sps:$4 sm:$0xff]  }
  0xcf   :  { %1983 = vmatpush1.bf16.msra.mxu0 %v12131_v33  ;;  %2188 = vmatpush1.bf16.msra.mxu1 %v12134_v34  ;;  %v12219_v33 = vld [vmem:[%s17613_s1 + $0x824] ss:$16 sps:$4 sm:$0xff]   ;;  %v14550_v34 = vcombine.high %v14537_v31, %v14537_v31 }
  0xd0   :  { %1984 = vmatprep.subr.bf16.mxu0 %v12139_v35  ;;  %2189 = vmatprep.subr.bf16.mxu1 %v12142_v36  ;;  %v12217_v35 = vld [vmem:[%s17613_s1 + $0x820] ss:$16 sps:$4 sm:$0xff]   ;;  %v12220_v36 = vld [vmem:[%s17613_s1 + $0x828] ss:$16 sps:$4 sm:$0xff]  }
  0xd3   :  { %1985 = vmatpush1.bf16.msra.mxu0 %v12137_v37  ;;  %2190 = vmatpush1.bf16.msra.mxu1 %v12140_v38  ;;  %v12225_v37 = vld [vmem:[%s17613_s1 + $0x844] ss:$16 sps:$4 sm:$0xff]   ;;  %v12228_v38 = vld [vmem:[%s17613_s1 + $0x84c] ss:$16 sps:$4 sm:$0xff]  }
  0xd4   :  { %1986 = vmatprep.subr.bf16.mxu0 %v12145_v39  ;;  %2191 = vmatprep.subr.bf16.mxu1 %v12148_v40  ;;  %v12223_v39 = vld [vmem:[%s17613_s1 + $0x840] ss:$16 sps:$4 sm:$0xff]   ;;  %v12226_v40 = vld [vmem:[%s17613_s1 + $0x848] ss:$16 sps:$4 sm:$0xff]  }
  0xd7   :  { %1987 = vmatpush1.bf16.msra.mxu0 %v12143_v41  ;;  %2192 = vmatpush1.bf16.msra.mxu1 %v12146_v42  ;;  %v12231_v41 = vld [vmem:[%s17613_s1 + $0x864] ss:$16 sps:$4 sm:$0xff]   ;;  %v12234_v42 = vld [vmem:[%s17613_s1 + $0x86c] ss:$16 sps:$4 sm:$0xff]  }
  0xd8   :  { %1988 = vmatprep.subr.bf16.mxu0 %v12151_v43  ;;  %2193 = vmatprep.subr.bf16.mxu1 %v12154_v44  ;;  %v12229_v43 = vld [vmem:[%s17613_s1 + $0x860] ss:$16 sps:$4 sm:$0xff]   ;;  %v12232_v44 = vld [vmem:[%s17613_s1 + $0x868] ss:$16 sps:$4 sm:$0xff]  }
  0xdb   :  { %1989 = vmatpush1.bf16.msra.mxu0 %v12149_v45  ;;  %2194 = vmatpush1.bf16.msra.mxu1 %v12152_v46  ;;  %v12237_v45 = vld [vmem:[%s17613_s1 + $0x884] ss:$16 sps:$4 sm:$0xff]   ;;  %v12240_v46 = vld [vmem:[%s17613_s1 + $0x88c] ss:$16 sps:$4 sm:$0xff]  }
  0xdc   :  { %1990 = vmatprep.subr.bf16.mxu0 %v12157_v47  ;;  %2195 = vmatprep.subr.bf16.mxu1 %v12160_v49  ;;  %v12235_v47 = vld [vmem:[%s17613_s1 + $0x880] ss:$16 sps:$4 sm:$0xff]   ;;  %v12238_v49 = vld [vmem:[%s17613_s1 + $0x888] ss:$16 sps:$4 sm:$0xff]  }
  0xdf   :  { %1991 = vmatpush1.bf16.msra.mxu0 %v12155_v50  ;;  %2196 = vmatpush1.bf16.msra.mxu1 %v12158_v51  ;;  %v12243_v50 = vld [vmem:[%s17613_s1 + $0x8a4] ss:$16 sps:$4 sm:$0xff]   ;;  %v12246_v51 = vld [vmem:[%s17613_s1 + $0x8ac] ss:$16 sps:$4 sm:$0xff]  }
  0xe0   :  { %1992 = vmatprep.subr.bf16.mxu0 %v12163_v52  ;;  %2197 = vmatprep.subr.bf16.mxu1 %v12166_v53  ;;  %v12241_v52 = vld [vmem:[%s17613_s1 + $0x8a0] ss:$16 sps:$4 sm:$0xff]   ;;  %v12244_v53 = vld [vmem:[%s17613_s1 + $0x8a8] ss:$16 sps:$4 sm:$0xff]  }
  0xe3   :  { %1993 = vmatpush1.bf16.msra.mxu0 %v12161_v54  ;;  %2198 = vmatpush1.bf16.msra.mxu1 %v12164_v55  ;;  %v12249_v54 = vld [vmem:[%s17613_s1 + $0x8c4] ss:$16 sps:$4 sm:$0xff]   ;;  %v12252_v55 = vld [vmem:[%s17613_s1 + $0x8cc] ss:$16 sps:$4 sm:$0xff]  }
  0xe4   :  { %1994 = vmatprep.subr.bf16.mxu0 %v12169_v56  ;;  %2199 = vmatprep.subr.bf16.mxu1 %v12172_v57  ;;  %v12247_v56 = vld [vmem:[%s17613_s1 + $0x8c0] ss:$16 sps:$4 sm:$0xff]   ;;  %v12250_v57 = vld [vmem:[%s17613_s1 + $0x8c8] ss:$16 sps:$4 sm:$0xff]  }
  0xe7   :  { %1995 = vmatpush1.bf16.msra.mxu0 %v12167_v58  ;;  %2200 = vmatpush1.bf16.msra.mxu1 %v12170_v59  ;;  %v12255_v58 = vld [vmem:[%s17613_s1 + $0x8e4] ss:$16 sps:$4 sm:$0xff]   ;;  %v12258_v59 = vld [vmem:[%s17613_s1 + $0x8ec] ss:$16 sps:$4 sm:$0xff]  }
  0xe8   :  { %1996 = vmatprep.subr.bf16.mxu0 %v12175_v60  ;;  %2201 = vmatprep.subr.bf16.mxu1 %v12178_v61  ;;  %v12253_v60 = vld [vmem:[%s17613_s1 + $0x8e0] ss:$16 sps:$4 sm:$0xff]   ;;  %v12256_v61 = vld [vmem:[%s17613_s1 + $0x8e8] ss:$16 sps:$4 sm:$0xff]  }
  0xeb   :  { %1997 = vmatpush1.bf16.msra.mxu0 %v12173_v62  ;;  %2202 = vmatpush1.bf16.msra.mxu1 %v12176_v63  ;;  %v12261_v62 = vld [vmem:[%s17613_s1 + $0x904] ss:$16 sps:$4 sm:$0xff]   ;;  %v12264_v63 = vld [vmem:[%s17613_s1 + $0x90c] ss:$16 sps:$4 sm:$0xff]  }
  0xec   :  { %1998 = vmatprep.subr.bf16.mxu0 %v12181_v0  ;;  %2203 = vmatprep.subr.bf16.mxu1 %v12184_v1  ;;  %v330_v0 = vld [vmem:[%s17613_s1 + $0x920] sm:$0xff]  ;;  %v331_v1 = vld [vmem:[%s17613_s1 + $0x928] sm:$0xff] }
  0xef   :  { %1999 = vmatpush1.bf16.msra.mxu0 %v12179_v2  ;;  %2204 = vmatpush1.bf16.msra.mxu1 %v12182_v3  ;;  %v12259_v2 = vld [vmem:[%s17613_s1 + $0x900] ss:$16 sps:$4 sm:$0xff]   ;;  %v12262_v3 = vld [vmem:[%s17613_s1 + $0x908] ss:$16 sps:$4 sm:$0xff]  }
  0xf0   :  { %2000 = vmatprep.subr.bf16.mxu0 %v12187_v4  ;;  %2205 = vmatprep.subr.bf16.mxu1 %v12190_v6  ;;  %v9747_v4 = vcombine.high %v330_v0, %v330_v0  ;;  %v9749_v6 = vcombine.high %v331_v1, %v331_v1 }
  0xf3   :  { %2001 = vmatpush1.bf16.msra.mxu0 %v12185_v7  ;;  %2206 = vmatpush1.bf16.msra.mxu1 %v12188_v8  ;;  %v9746_v7 = vcombine.low %v330_v0, %v330_v0  ;;  %v9748_v8 = vcombine.low %v331_v1, %v331_v1  ;;  %v12339_v0 = vld [vmem:[%s17613_s1 + $0xa94] ss:$16 sps:$4 sm:$0xff]   ;;  %v12342_v1 = vld [vmem:[%s17613_s1 + $0xa9c] ss:$16 sps:$4 sm:$0xff]  }
  0xf4   :  { %2002 = vmatprep.subr.bf16.mxu0 %v12193_v9  ;;  %2207 = vmatprep.subr.bf16.mxu1 %v12196_v11  ;;  %v12273_v9 = vld [vmem:[%s17613_s1 + $0x934] ss:$16 sps:$4 sm:$0xff]  }
  0xf5   :  { %v1842_v11 = vsel %vm1840_vm1, %v9746_v7, 0  ;;  %v12343_v7 = vld [vmem:[%s17613_s1 + $0xab0] ss:$16 sps:$4 sm:$0xff]  }
  0xf7   :  { %2003 = vmatpush1.bf16.msra.mxu0 %v12191_v12  ;;  %2208 = vmatpush1.bf16.msra.mxu1 %v12194_v14  ;;  %v1848_v12 = vsel %vm1840_vm1, %v9748_v8, 0  ;;  %v12276_v14 = vld [vmem:[%s17613_s1 + $0x93c] ss:$16 sps:$4 sm:$0xff]   ;;  %v12346_v8 = vld [vmem:[%s17613_s1 + $0xab8] ss:$16 sps:$4 sm:$0xff]  }
  0xf8   :  { %2004 = vmatprep.subr.bf16.mxu0 %v12199_v16  ;;  %2209 = vmatprep.subr.bf16.mxu1 %v12202_v17  ;;  %v14666_v16 = vcombine.low %v14537_v31, %v14537_v31  ;;  %v12271_v17 = vld [vmem:[%s17613_s1 + $0x930] ss:$16 sps:$4 sm:$0xff]   ;;  %v12291_v31 = vld [vmem:[%s17613_s1 + $0x994] ss:$16 sps:$4 sm:$0xff]  }
  0xfb   :  { %2005 = vmatpush1.bf16.msra.mxu0 %v12197_v18  ;;  %2210 = vmatpush1.bf16.msra.mxu1 %v12200_v19  ;;  %v12274_v18 = vld [vmem:[%s17613_s1 + $0x938] ss:$16 sps:$4 sm:$0xff]   ;;  %v12279_v19 = vld [vmem:[%s17613_s1 + $0x954] ss:$16 sps:$4 sm:$0xff]  }
  0xfc   :  { %2006 = vmatprep.subr.bf16.mxu0 %v12205_v22  ;;  %2211 = vmatprep.subr.bf16.mxu1 %v12208_v23  ;;  %v12282_v22 = vld [vmem:[%s17613_s1 + $0x95c] ss:$16 sps:$4 sm:$0xff]   ;;  %v12277_v23 = vld [vmem:[%s17613_s1 + $0x950] ss:$16 sps:$4 sm:$0xff]  }
  0xff   :  { %2007 = vmatpush1.bf16.msra.mxu0 %v12203_v24  ;;  %2212 = vmatpush1.bf16.msra.mxu1 %v12206_v25  ;;  %v12280_v24 = vld [vmem:[%s17613_s1 + $0x958] ss:$16 sps:$4 sm:$0xff]   ;;  %v12285_v25 = vld [vmem:[%s17613_s1 + $0x974] ss:$16 sps:$4 sm:$0xff]  }
 0x100   :  { %2017 = vmatprep.subr.bf16.mxu0 %v12212_v26  ;;  %2222 = vmatprep.subr.bf16.mxu1 %v12215_v27  ;;  %v12288_v26 = vld [vmem:[%s17613_s1 + $0x97c] ss:$16 sps:$4 sm:$0xff]   ;;  %v12283_v27 = vld [vmem:[%s17613_s1 + $0x970] ss:$16 sps:$4 sm:$0xff]  }
 0x102   :  { %2009 = vmatmul.mubr.bf16.vlgmr.msra.gmra.mrb[0].mxu0 %v14532_v29  ;;  %2214 = vmatmul.mubr.bf16.vlgmr.msra.gmra.mrb[0].mxu1 %v14532_v29 }
 0x103   :  { %2018 = vmatpush1.bf16.msra.mxu0 %v12210_v28  ;;  %2223 = vmatpush1.bf16.msra.mxu1 %v12213_v32  ;;  %v12286_v28 = vld [vmem:[%s17613_s1 + $0x978] ss:$16 sps:$4 sm:$0xff]   ;;  %v12294_v32 = vld [vmem:[%s17613_s1 + $0x99c] ss:$16 sps:$4 sm:$0xff]  }
 0x104   :  { %2019 = vmatprep.subr.bf16.mxu0 %v12219_v33  ;;  %2224 = vmatprep.subr.bf16.mxu1 %v12222_v21  ;;  %v12289_v33 = vld [vmem:[%s17613_s1 + $0x990] ss:$16 sps:$4 sm:$0xff]   ;;  %v12292_v21 = vld [vmem:[%s17613_s1 + $0x998] ss:$16 sps:$4 sm:$0xff]  }
 0x105   :  { %9751 = vmatprep.mubr.msk.bf16.mxu0 %vm1836_vm0, %v14550_v34  ;;  %9753 = vmatprep.mubr.msk.bf16.mxu1 %vm1836_vm0, %v14550_v34 }
 0x107   :  { %2020 = vmatpush1.bf16.msra.mxu0 %v12217_v35  ;;  %2225 = vmatpush1.bf16.msra.mxu1 %v12220_v36  ;;  %v12297_v35 = vld [vmem:[%s17613_s1 + $0x9b4] ss:$16 sps:$4 sm:$0xff]   ;;  %v12300_v36 = vld [vmem:[%s17613_s1 + $0x9bc] ss:$16 sps:$4 sm:$0xff]  }
 0x108   :  { %2021 = vmatprep.subr.bf16.mxu0 %v12225_v37  ;;  %2226 = vmatprep.subr.bf16.mxu1 %v12228_v38  ;;  %v12295_v37 = vld [vmem:[%s17613_s1 + $0x9b0] ss:$16 sps:$4 sm:$0xff]   ;;  %v12298_v38 = vld [vmem:[%s17613_s1 + $0x9b8] ss:$16 sps:$4 sm:$0xff]  }
 0x10b   :  { %2022 = vmatpush1.bf16.msra.mxu0 %v12223_v39  ;;  %2227 = vmatpush1.bf16.msra.mxu1 %v12226_v40  ;;  %v12303_v39 = vld [vmem:[%s17613_s1 + $0x9d4] ss:$16 sps:$4 sm:$0xff]   ;;  %v12306_v40 = vld [vmem:[%s17613_s1 + $0x9dc] ss:$16 sps:$4 sm:$0xff]  }
 0x10c   :  { %2023 = vmatprep.subr.bf16.mxu0 %v12231_v41  ;;  %2228 = vmatprep.subr.bf16.mxu1 %v12234_v42  ;;  %v12301_v41 = vld [vmem:[%s17613_s1 + $0x9d0] ss:$16 sps:$4 sm:$0xff]   ;;  %v12304_v42 = vld [vmem:[%s17613_s1 + $0x9d8] ss:$16 sps:$4 sm:$0xff]  }
 0x10f   :  { %2024 = vmatpush1.bf16.msra.mxu0 %v12229_v43  ;;  %2229 = vmatpush1.bf16.msra.mxu1 %v12232_v44  ;;  %v12309_v43 = vld [vmem:[%s17613_s1 + $0x9f4] ss:$16 sps:$4 sm:$0xff]   ;;  %v12312_v44 = vld [vmem:[%s17613_s1 + $0x9fc] ss:$16 sps:$4 sm:$0xff]  }
 0x110   :  { %2025 = vmatprep.subr.bf16.mxu0 %v12237_v45  ;;  %2230 = vmatprep.subr.bf16.mxu1 %v12240_v46  ;;  %v12307_v45 = vld [vmem:[%s17613_s1 + $0x9f0] ss:$16 sps:$4 sm:$0xff]   ;;  %v12310_v46 = vld [vmem:[%s17613_s1 + $0x9f8] ss:$16 sps:$4 sm:$0xff]  }
 0x113   :  { %2026 = vmatpush1.bf16.msra.mxu0 %v12235_v47  ;;  %2231 = vmatpush1.bf16.msra.mxu1 %v12238_v49  ;;  %v12315_v47 = vld [vmem:[%s17613_s1 + $0xa14] ss:$16 sps:$4 sm:$0xff]   ;;  %v12318_v49 = vld [vmem:[%s17613_s1 + $0xa1c] ss:$16 sps:$4 sm:$0xff]  }
 0x114   :  { %2027 = vmatprep.subr.bf16.mxu0 %v12243_v50  ;;  %2232 = vmatprep.subr.bf16.mxu1 %v12246_v51  ;;  %v12313_v50 = vld [vmem:[%s17613_s1 + $0xa10] ss:$16 sps:$4 sm:$0xff]   ;;  %v12316_v51 = vld [vmem:[%s17613_s1 + $0xa18] ss:$16 sps:$4 sm:$0xff]  }
 0x117   :  { %2028 = vmatpush1.bf16.msra.mxu0 %v12241_v52  ;;  %2233 = vmatpush1.bf16.msra.mxu1 %v12244_v53  ;;  %v12321_v52 = vld [vmem:[%s17613_s1 + $0xa34] ss:$16 sps:$4 sm:$0xff]   ;;  %v12324_v53 = vld [vmem:[%s17613_s1 + $0xa3c] ss:$16 sps:$4 sm:$0xff]  }
 0x118   :  { %2029 = vmatprep.subr.bf16.mxu0 %v12249_v54  ;;  %2234 = vmatprep.subr.bf16.mxu1 %v12252_v55  ;;  %v12319_v54 = vld [vmem:[%s17613_s1 + $0xa30] ss:$16 sps:$4 sm:$0xff]   ;;  %v12322_v55 = vld [vmem:[%s17613_s1 + $0xa38] ss:$16 sps:$4 sm:$0xff]  }
 0x11b   :  { %2030 = vmatpush1.bf16.msra.mxu0 %v12247_v56  ;;  %2235 = vmatpush1.bf16.msra.mxu1 %v12250_v57  ;;  %v12327_v56 = vld [vmem:[%s17613_s1 + $0xa54] ss:$16 sps:$4 sm:$0xff]   ;;  %v12330_v57 = vld [vmem:[%s17613_s1 + $0xa5c] ss:$16 sps:$4 sm:$0xff]  }
 0x11c   :  { %2031 = vmatprep.subr.bf16.mxu0 %v12255_v58  ;;  %2236 = vmatprep.subr.bf16.mxu1 %v12258_v59  ;;  %v12325_v58 = vld [vmem:[%s17613_s1 + $0xa50] ss:$16 sps:$4 sm:$0xff]   ;;  %v12328_v59 = vld [vmem:[%s17613_s1 + $0xa58] ss:$16 sps:$4 sm:$0xff]  }
 0x11f   :  { %2032 = vmatpush1.bf16.msra.mxu0 %v12253_v60  ;;  %2237 = vmatpush1.bf16.msra.mxu1 %v12256_v61  ;;  %v12333_v60 = vld [vmem:[%s17613_s1 + $0xa74] ss:$16 sps:$4 sm:$0xff]   ;;  %v12336_v61 = vld [vmem:[%s17613_s1 + $0xa7c] ss:$16 sps:$4 sm:$0xff]  }
 0x120   :  { %2033 = vmatprep.subr.bf16.mxu0 %v12261_v62  ;;  %2238 = vmatprep.subr.bf16.mxu1 %v12264_v63  ;;  %v12331_v62 = vld [vmem:[%s17613_s1 + $0xa70] ss:$16 sps:$4 sm:$0xff]   ;;  %v12334_v63 = vld [vmem:[%s17613_s1 + $0xa78] ss:$16 sps:$4 sm:$0xff]  }
 0x123   :  { %2034 = vmatpush1.bf16.msra.mxu0 %v12259_v2  ;;  %2239 = vmatpush1.bf16.msra.mxu1 %v12262_v3  ;;  %v12337_v2 = vld [vmem:[%s17613_s1 + $0xa90] ss:$16 sps:$4 sm:$0xff]   ;;  %v12340_v3 = vld [vmem:[%s17613_s1 + $0xa98] ss:$16 sps:$4 sm:$0xff]  }
 0x124   :  { %9750 = vmatprep.subr.msk.bf16.mxu0 %vm1840_vm1, %v9747_v4  ;;  %9752 = vmatprep.subr.msk.bf16.mxu1 %vm1840_vm1, %v9749_v6  ;;  %v12345_v4 = vld [vmem:[%s17613_s1 + $0xab4] ss:$16 sps:$4 sm:$0xff]   ;;  %v12348_v6 = vld [vmem:[%s17613_s1 + $0xabc] ss:$16 sps:$4 sm:$0xff]  }
 0x127   :  { %2036 = vmatpush1.bf16.msra.mxu0 %v1842_v11  ;;  %2241 = vmatpush1.bf16.msra.mxu1 %v1848_v12  ;;  %v12354_v11 = vld [vmem:[%s17613_s1 + $0xadc] ss:$16 sps:$4 sm:$0xff]   ;;  %v12349_v12 = vld [vmem:[%s17613_s1 + $0xad0] ss:$16 sps:$4 sm:$0xff]  }
 0x128   :  { %4040 = vmatprep.subr.bf16.mxu0 %v12273_v9  ;;  %4245 = vmatprep.subr.bf16.mxu1 %v12276_v14  ;;  %v12351_v9 = vld [vmem:[%s17613_s1 + $0xad4] ss:$16 sps:$4 sm:$0xff]   ;;  %v12352_v14 = vld [vmem:[%s17613_s1 + $0xad8] ss:$16 sps:$4 sm:$0xff]  }
 0x12a   :  { %2050 = vmatmul.mubr.bf16.vlgmr.msra.gmra.mrb[0].mxu0 %v14666_v16  ;;  %2255 = vmatmul.mubr.bf16.vlgmr.msra.gmra.mrb[0].mxu1 %v14666_v16 }
 0x12b   :  { %4041 = vmatpush1.bf16.msra.mxu0 %v12271_v17  ;;  %4246 = vmatpush1.bf16.msra.mxu1 %v12274_v18  ;;  %v12357_v17 = vld [vmem:[%s17613_s1 + $0xaf4] ss:$16 sps:$4 sm:$0xff]   ;;  %v12360_v18 = vld [vmem:[%s17613_s1 + $0xafc] ss:$16 sps:$4 sm:$0xff]  }
 0x12c   :  { %4042 = vmatprep.subr.bf16.mxu0 %v12279_v19  ;;  %4247 = vmatprep.subr.bf16.mxu1 %v12282_v22  ;;  %v12355_v19 = vld [vmem:[%s17613_s1 + $0xaf0] ss:$16 sps:$4 sm:$0xff]   ;;  %v12358_v22 = vld [vmem:[%s17613_s1 + $0xaf8] ss:$16 sps:$4 sm:$0xff]  }
 0x12d   :  { %4072 = vmatprep.mubr.bf16.mxu0 %v13841_v48  ;;  %4277 = vmatprep.mubr.bf16.mxu1 %v13841_v48 }
 0x12f   :  { %4043 = vmatpush1.bf16.msra.mxu0 %v12277_v23  ;;  %4248 = vmatpush1.bf16.msra.mxu1 %v12280_v24  ;;  %v12363_v23 = vld [vmem:[%s17613_s1 + $0xb14] ss:$16 sps:$4 sm:$0xff]   ;;  %v12366_v24 = vld [vmem:[%s17613_s1 + $0xb1c] ss:$16 sps:$4 sm:$0xff]  }
 0x130   :  { %4044 = vmatprep.subr.bf16.mxu0 %v12285_v25  ;;  %4249 = vmatprep.subr.bf16.mxu1 %v12288_v26  ;;  %v12361_v25 = vld [vmem:[%s17613_s1 + $0xb10] ss:$16 sps:$4 sm:$0xff]   ;;  %v12364_v26 = vld [vmem:[%s17613_s1 + $0xb18] ss:$16 sps:$4 sm:$0xff]  }
 0x133   :  { %4045 = vmatpush1.bf16.msra.mxu0 %v12283_v27  ;;  %4250 = vmatpush1.bf16.msra.mxu1 %v12286_v28  ;;  %v12369_v27 = vld [vmem:[%s17613_s1 + $0xb34] ss:$16 sps:$4 sm:$0xff]   ;;  %v12372_v28 = vld [vmem:[%s17613_s1 + $0xb3c] ss:$16 sps:$4 sm:$0xff]  }
 0x134   :  { %4046 = vmatprep.subr.bf16.mxu0 %v12291_v31  ;;  %4251 = vmatprep.subr.bf16.mxu1 %v12294_v32  ;;  %v12367_v31 = vld [vmem:[%s17613_s1 + $0xb30] ss:$16 sps:$4 sm:$0xff]   ;;  %v12370_v32 = vld [vmem:[%s17613_s1 + $0xb38] ss:$16 sps:$4 sm:$0xff]  }
 0x137   :  { %4047 = vmatpush1.bf16.msra.mxu0 %v12289_v33  ;;  %4252 = vmatpush1.bf16.msra.mxu1 %v12292_v21  ;;  %v12375_v33 = vld [vmem:[%s17613_s1 + $0xb54] ss:$16 sps:$4 sm:$0xff]   ;;  %v12378_v21 = vld [vmem:[%s17613_s1 + $0xb5c] ss:$16 sps:$4 sm:$0xff]  }
 0x138   :  { %4048 = vmatprep.subr.bf16.mxu0 %v12297_v35  ;;  %4253 = vmatprep.subr.bf16.mxu1 %v12300_v36  ;;  %v12373_v35 = vld [vmem:[%s17613_s1 + $0xb50] ss:$16 sps:$4 sm:$0xff]   ;;  %v12376_v36 = vld [vmem:[%s17613_s1 + $0xb58] ss:$16 sps:$4 sm:$0xff]  }
 0x13b   :  { %4049 = vmatpush1.bf16.msra.mxu0 %v12295_v37  ;;  %4254 = vmatpush1.bf16.msra.mxu1 %v12298_v38  ;;  %v12381_v37 = vld [vmem:[%s17613_s1 + $0xb74] ss:$16 sps:$4 sm:$0xff]   ;;  %v12384_v38 = vld [vmem:[%s17613_s1 + $0xb7c] ss:$16 sps:$4 sm:$0xff]  }
 0x13c   :  { %4050 = vmatprep.subr.bf16.mxu0 %v12303_v39  ;;  %4255 = vmatprep.subr.bf16.mxu1 %v12306_v40  ;;  %v12379_v39 = vld [vmem:[%s17613_s1 + $0xb70] ss:$16 sps:$4 sm:$0xff]   ;;  %v12382_v40 = vld [vmem:[%s17613_s1 + $0xb78] ss:$16 sps:$4 sm:$0xff]  }
 0x13f   :  { %4051 = vmatpush1.bf16.msra.mxu0 %v12301_v41  ;;  %4256 = vmatpush1.bf16.msra.mxu1 %v12304_v42  ;;  %v12387_v41 = vld [vmem:[%s17613_s1 + $0xb94] ss:$16 sps:$4 sm:$0xff]   ;;  %v12390_v42 = vld [vmem:[%s17613_s1 + $0xb9c] ss:$16 sps:$4 sm:$0xff]  }
 0x140   :  { %4052 = vmatprep.subr.bf16.mxu0 %v12309_v43  ;;  %4257 = vmatprep.subr.bf16.mxu1 %v12312_v44  ;;  %v12385_v43 = vld [vmem:[%s17613_s1 + $0xb90] ss:$16 sps:$4 sm:$0xff]   ;;  %v12388_v44 = vld [vmem:[%s17613_s1 + $0xb98] ss:$16 sps:$4 sm:$0xff]  }
 0x143   :  { %4053 = vmatpush1.bf16.msra.mxu0 %v12307_v45  ;;  %4258 = vmatpush1.bf16.msra.mxu1 %v12310_v46  ;;  %v12393_v45 = vld [vmem:[%s17613_s1 + $0xbb4] ss:$16 sps:$4 sm:$0xff]   ;;  %v12396_v46 = vld [vmem:[%s17613_s1 + $0xbbc] ss:$16 sps:$4 sm:$0xff]  }
 0x144   :  { %4054 = vmatprep.subr.bf16.mxu0 %v12315_v47  ;;  %4259 = vmatprep.subr.bf16.mxu1 %v12318_v49  ;;  %v12391_v47 = vld [vmem:[%s17613_s1 + $0xbb0] ss:$16 sps:$4 sm:$0xff]   ;;  %v12394_v49 = vld [vmem:[%s17613_s1 + $0xbb8] ss:$16 sps:$4 sm:$0xff]  }
 0x147   :  { %4055 = vmatpush1.bf16.msra.mxu0 %v12313_v50  ;;  %4260 = vmatpush1.bf16.msra.mxu1 %v12316_v51  ;;  %v12399_v50 = vld [vmem:[%s17613_s1 + $0xbd4] ss:$16 sps:$4 sm:$0xff]   ;;  %v12402_v51 = vld [vmem:[%s17613_s1 + $0xbdc] ss:$16 sps:$4 sm:$0xff]  }
 0x148   :  { %4056 = vmatprep.subr.bf16.mxu0 %v12321_v52  ;;  %4261 = vmatprep.subr.bf16.mxu1 %v12324_v53  ;;  %v12397_v52 = vld [vmem:[%s17613_s1 + $0xbd0] ss:$16 sps:$4 sm:$0xff]   ;;  %v12400_v53 = vld [vmem:[%s17613_s1 + $0xbd8] ss:$16 sps:$4 sm:$0xff]  }
 0x14b   :  { %4057 = vmatpush1.bf16.msra.mxu0 %v12319_v54  ;;  %4262 = vmatpush1.bf16.msra.mxu1 %v12322_v55  ;;  %v12405_v54 = vld [vmem:[%s17613_s1 + $0xbf4] ss:$16 sps:$4 sm:$0xff]   ;;  %v12408_v55 = vld [vmem:[%s17613_s1 + $0xbfc] ss:$16 sps:$4 sm:$0xff]  }
 0x14c   :  { %4058 = vmatprep.subr.bf16.mxu0 %v12327_v56  ;;  %4263 = vmatprep.subr.bf16.mxu1 %v12330_v57  ;;  %v12403_v56 = vld [vmem:[%s17613_s1 + $0xbf0] ss:$16 sps:$4 sm:$0xff]   ;;  %v12406_v57 = vld [vmem:[%s17613_s1 + $0xbf8] ss:$16 sps:$4 sm:$0xff]  }
 0x14f   :  { %4059 = vmatpush1.bf16.msra.mxu0 %v12325_v58  ;;  %4264 = vmatpush1.bf16.msra.mxu1 %v12328_v59  ;;  %v12411_v58 = vld [vmem:[%s17613_s1 + $0xc14] ss:$16 sps:$4 sm:$0xff]   ;;  %v12414_v59 = vld [vmem:[%s17613_s1 + $0xc1c] ss:$16 sps:$4 sm:$0xff]  }
 0x150   :  { %4060 = vmatprep.subr.bf16.mxu0 %v12333_v60  ;;  %4265 = vmatprep.subr.bf16.mxu1 %v12336_v61  ;;  %v12409_v60 = vld [vmem:[%s17613_s1 + $0xc10] ss:$16 sps:$4 sm:$0xff]   ;;  %v12412_v61 = vld [vmem:[%s17613_s1 + $0xc18] ss:$16 sps:$4 sm:$0xff]  }
 0x153   :  { %4061 = vmatpush1.bf16.msra.mxu0 %v12331_v62  ;;  %4266 = vmatpush1.bf16.msra.mxu1 %v12334_v63  ;;  %v12417_v62 = vld [vmem:[%s17613_s1 + $0xc34] ss:$16 sps:$4 sm:$0xff]   ;;  %v12420_v63 = vld [vmem:[%s17613_s1 + $0xc3c] ss:$16 sps:$4 sm:$0xff]  }
 0x154   :  { %4062 = vmatprep.subr.bf16.mxu0 %v12339_v0  ;;  %4267 = vmatprep.subr.bf16.mxu1 %v12342_v1  ;;  %v12415_v0 = vld [vmem:[%s17613_s1 + $0xc30] ss:$16 sps:$4 sm:$0xff]   ;;  %v12418_v1 = vld [vmem:[%s17613_s1 + $0xc38] ss:$16 sps:$4 sm:$0xff]  }
 0x157   :  { %4063 = vmatpush1.bf16.msra.mxu0 %v12337_v2  ;;  %4268 = vmatpush1.bf16.msra.mxu1 %v12340_v3  ;;  %v12423_v2 = vld [vmem:[%s17613_s1 + $0xc54] ss:$16 sps:$4 sm:$0xff]   ;;  %v12426_v3 = vld [vmem:[%s17613_s1 + $0xc5c] ss:$16 sps:$4 sm:$0xff]  }
 0x158   :  { %4064 = vmatprep.subr.bf16.mxu0 %v12345_v4  ;;  %4269 = vmatprep.subr.bf16.mxu1 %v12348_v6  ;;  %v12421_v4 = vld [vmem:[%s17613_s1 + $0xc50] ss:$16 sps:$4 sm:$0xff]   ;;  %v12424_v6 = vld [vmem:[%s17613_s1 + $0xc58] ss:$16 sps:$4 sm:$0xff]  }
 0x15b   :  { %4065 = vmatpush1.bf16.msra.mxu0 %v12343_v7  ;;  %4270 = vmatpush1.bf16.msra.mxu1 %v12346_v8  ;;  %v12429_v7 = vld [vmem:[%s17613_s1 + $0xc74] ss:$16 sps:$4 sm:$0xff]   ;;  %v12432_v8 = vld [vmem:[%s17613_s1 + $0xc7c] ss:$16 sps:$4 sm:$0xff]  }
 0x15c   :  { %4066 = vmatprep.subr.bf16.mxu0 %v12351_v9  ;;  %4271 = vmatprep.subr.bf16.mxu1 %v12354_v11  ;;  %v12427_v9 = vld [vmem:[%s17613_s1 + $0xc70] ss:$16 sps:$4 sm:$0xff]   ;;  %v12430_v11 = vld [vmem:[%s17613_s1 + $0xc78] ss:$16 sps:$4 sm:$0xff]  }
 0x15f   :  { %4067 = vmatpush1.bf16.msra.mxu0 %v12349_v12  ;;  %4272 = vmatpush1.bf16.msra.mxu1 %v12352_v14  ;;  %v12435_v12 = vld [vmem:[%s17613_s1 + $0xc94] ss:$16 sps:$4 sm:$0xff]   ;;  %v12438_v14 = vld [vmem:[%s17613_s1 + $0xc9c] ss:$16 sps:$4 sm:$0xff]  }
 0x160   :  { %4068 = vmatprep.subr.bf16.mxu0 %v12357_v17  ;;  %4273 = vmatprep.subr.bf16.mxu1 %v12360_v18  ;;  %v12433_v17 = vld [vmem:[%s17613_s1 + $0xc90] ss:$16 sps:$4 sm:$0xff]   ;;  %v12436_v18 = vld [vmem:[%s17613_s1 + $0xc98] ss:$16 sps:$4 sm:$0xff]  }
 0x163   :  { %4069 = vmatpush1.bf16.msra.mxu0 %v12355_v19  ;;  %4274 = vmatpush1.bf16.msra.mxu1 %v12358_v22  ;;  %v12441_v19 = vld [vmem:[%s17613_s1 + $0xcb4] ss:$16 sps:$4 sm:$0xff]   ;;  %v12444_v22 = vld [vmem:[%s17613_s1 + $0xcbc] ss:$16 sps:$4 sm:$0xff]  }
 0x164   :  { %4070 = vmatprep.subr.bf16.mxu0 %v12363_v23  ;;  %4275 = vmatprep.subr.bf16.mxu1 %v12366_v24  ;;  %v12439_v23 = vld [vmem:[%s17613_s1 + $0xcb0] ss:$16 sps:$4 sm:$0xff]   ;;  %v12442_v24 = vld [vmem:[%s17613_s1 + $0xcb8] ss:$16 sps:$4 sm:$0xff]  }
 0x167   :  { %4071 = vmatpush1.bf16.msra.mxu0 %v12361_v25  ;;  %4276 = vmatpush1.bf16.msra.mxu1 %v12364_v26  ;;  %v12447_v25 = vld [vmem:[%s17613_s1 + $0xcd4] ss:$16 sps:$4 sm:$0xff]   ;;  %v12450_v26 = vld [vmem:[%s17613_s1 + $0xcdc] ss:$16 sps:$4 sm:$0xff]  }
 0x168   :  { %4081 = vmatprep.subr.bf16.mxu0 %v12369_v27  ;;  %4286 = vmatprep.subr.bf16.mxu1 %v12372_v28  ;;  %v12445_v27 = vld [vmem:[%s17613_s1 + $0xcd0] ss:$16 sps:$4 sm:$0xff]   ;;  %v12448_v28 = vld [vmem:[%s17613_s1 + $0xcd8] ss:$16 sps:$4 sm:$0xff]  }
 0x16a   :  { %4073 = vmatmul.mubr.bf16.vlgmr.msra.gmra.mrb[4].mxu0 %v13905_v5  ;;  %4278 = vmatmul.mubr.bf16.vlgmr.msra.gmra.mrb[4].mxu1 %v13905_v5 }
 0x16b   :  { %4082 = vmatpush1.bf16.msra.mxu0 %v12367_v31  ;;  %4287 = vmatpush1.bf16.msra.mxu1 %v12370_v32  ;;  %v12453_v31 = vld [vmem:[%s17613_s1 + $0xcf4] ss:$16 sps:$4 sm:$0xff]   ;;  %v12456_v32 = vld [vmem:[%s17613_s1 + $0xcfc] ss:$16 sps:$4 sm:$0xff]  }
 0x16c   :  { %4083 = vmatprep.subr.bf16.mxu0 %v12375_v33  ;;  %4288 = vmatprep.subr.bf16.mxu1 %v12378_v21  ;;  %v12451_v33 = vld [vmem:[%s17613_s1 + $0xcf0] ss:$16 sps:$4 sm:$0xff]   ;;  %v12454_v21 = vld [vmem:[%s17613_s1 + $0xcf8] ss:$16 sps:$4 sm:$0xff]  }
 0x16d   :  { %4113 = vmatprep.mubr.bf16.mxu0 %v13985_v30  ;;  %4318 = vmatprep.mubr.bf16.mxu1 %v13985_v30 }
 0x16f   :  { %4084 = vmatpush1.bf16.msra.mxu0 %v12373_v35  ;;  %4289 = vmatpush1.bf16.msra.mxu1 %v12376_v36  ;;  %v12459_v35 = vld [vmem:[%s17613_s1 + $0xd14] ss:$16 sps:$4 sm:$0xff]   ;;  %v12462_v36 = vld [vmem:[%s17613_s1 + $0xd1c] ss:$16 sps:$4 sm:$0xff]  }
 0x170   :  { %4085 = vmatprep.subr.bf16.mxu0 %v12381_v37  ;;  %4290 = vmatprep.subr.bf16.mxu1 %v12384_v38  ;;  %v12457_v37 = vld [vmem:[%s17613_s1 + $0xd10] ss:$16 sps:$4 sm:$0xff]   ;;  %v12460_v38 = vld [vmem:[%s17613_s1 + $0xd18] ss:$16 sps:$4 sm:$0xff]  }
 0x173   :  { %4086 = vmatpush1.bf16.msra.mxu0 %v12379_v39  ;;  %4291 = vmatpush1.bf16.msra.mxu1 %v12382_v40  ;;  %v12465_v39 = vld [vmem:[%s17613_s1 + $0xd34] ss:$16 sps:$4 sm:$0xff]   ;;  %v12468_v40 = vld [vmem:[%s17613_s1 + $0xd3c] ss:$16 sps:$4 sm:$0xff]  }
 0x174   :  { %4087 = vmatprep.subr.bf16.mxu0 %v12387_v41  ;;  %4292 = vmatprep.subr.bf16.mxu1 %v12390_v42  ;;  %v12463_v41 = vld [vmem:[%s17613_s1 + $0xd30] ss:$16 sps:$4 sm:$0xff]   ;;  %v12466_v42 = vld [vmem:[%s17613_s1 + $0xd38] ss:$16 sps:$4 sm:$0xff]  }
 0x177   :  { %4088 = vmatpush1.bf16.msra.mxu0 %v12385_v43  ;;  %4293 = vmatpush1.bf16.msra.mxu1 %v12388_v44  ;;  %v12471_v43 = vld [vmem:[%s17613_s1 + $0xd54] ss:$16 sps:$4 sm:$0xff]   ;;  %v12474_v44 = vld [vmem:[%s17613_s1 + $0xd5c] ss:$16 sps:$4 sm:$0xff]  }
 0x178   :  { %4089 = vmatprep.subr.bf16.mxu0 %v12393_v45  ;;  %4294 = vmatprep.subr.bf16.mxu1 %v12396_v46  ;;  %v12469_v45 = vld [vmem:[%s17613_s1 + $0xd50] ss:$16 sps:$4 sm:$0xff]   ;;  %v12472_v46 = vld [vmem:[%s17613_s1 + $0xd58] ss:$16 sps:$4 sm:$0xff]  }
 0x17b   :  { %4090 = vmatpush1.bf16.msra.mxu0 %v12391_v47  ;;  %4295 = vmatpush1.bf16.msra.mxu1 %v12394_v49  ;;  %v12477_v47 = vld [vmem:[%s17613_s1 + $0xd74] ss:$16 sps:$4 sm:$0xff]   ;;  %v12480_v49 = vld [vmem:[%s17613_s1 + $0xd7c] ss:$16 sps:$4 sm:$0xff]  }
 0x17c   :  { %4091 = vmatprep.subr.bf16.mxu0 %v12399_v50  ;;  %4296 = vmatprep.subr.bf16.mxu1 %v12402_v51  ;;  %v12475_v50 = vld [vmem:[%s17613_s1 + $0xd70] ss:$16 sps:$4 sm:$0xff]   ;;  %v12478_v51 = vld [vmem:[%s17613_s1 + $0xd78] ss:$16 sps:$4 sm:$0xff]  }
 0x17f   :  { %4092 = vmatpush1.bf16.msra.mxu0 %v12397_v52  ;;  %4297 = vmatpush1.bf16.msra.mxu1 %v12400_v53  ;;  %v12483_v52 = vld [vmem:[%s17613_s1 + $0xd94] ss:$16 sps:$4 sm:$0xff]   ;;  %v12486_v53 = vld [vmem:[%s17613_s1 + $0xd9c] ss:$16 sps:$4 sm:$0xff]  }
 0x180   :  { %4093 = vmatprep.subr.bf16.mxu0 %v12405_v54  ;;  %4298 = vmatprep.subr.bf16.mxu1 %v12408_v55  ;;  %v12481_v54 = vld [vmem:[%s17613_s1 + $0xd90] ss:$16 sps:$4 sm:$0xff]   ;;  %v12484_v55 = vld [vmem:[%s17613_s1 + $0xd98] ss:$16 sps:$4 sm:$0xff]  }
 0x183   :  { %4094 = vmatpush1.bf16.msra.mxu0 %v12403_v56  ;;  %4299 = vmatpush1.bf16.msra.mxu1 %v12406_v57  ;;  %v12489_v56 = vld [vmem:[%s17613_s1 + $0xdb4] ss:$16 sps:$4 sm:$0xff]   ;;  %v12492_v57 = vld [vmem:[%s17613_s1 + $0xdbc] ss:$16 sps:$4 sm:$0xff]  }
 0x184   :  { %4095 = vmatprep.subr.bf16.mxu0 %v12411_v58  ;;  %4300 = vmatprep.subr.bf16.mxu1 %v12414_v59  ;;  %v12487_v58 = vld [vmem:[%s17613_s1 + $0xdb0] ss:$16 sps:$4 sm:$0xff]   ;;  %v12490_v59 = vld [vmem:[%s17613_s1 + $0xdb8] ss:$16 sps:$4 sm:$0xff]  }
 0x187   :  { %4096 = vmatpush1.bf16.msra.mxu0 %v12409_v60  ;;  %4301 = vmatpush1.bf16.msra.mxu1 %v12412_v61  ;;  %v12495_v60 = vld [vmem:[%s17613_s1 + $0xdd4] ss:$16 sps:$4 sm:$0xff]   ;;  %v12498_v61 = vld [vmem:[%s17613_s1 + $0xddc] ss:$16 sps:$4 sm:$0xff]  }
 0x188   :  { %4097 = vmatprep.subr.bf16.mxu0 %v12417_v62  ;;  %4302 = vmatprep.subr.bf16.mxu1 %v12420_v63  ;;  %v12493_v62 = vld [vmem:[%s17613_s1 + $0xdd0] ss:$16 sps:$4 sm:$0xff]   ;;  %v12496_v63 = vld [vmem:[%s17613_s1 + $0xdd8] ss:$16 sps:$4 sm:$0xff]  }
 0x18b   :  { %4098 = vmatpush1.bf16.msra.mxu0 %v12415_v0  ;;  %4303 = vmatpush1.bf16.msra.mxu1 %v12418_v1  ;;  %v12501_v0 = vld [vmem:[%s17613_s1 + $0xdf4] ss:$16 sps:$4 sm:$0xff]   ;;  %v12504_v1 = vld [vmem:[%s17613_s1 + $0xdfc] ss:$16 sps:$4 sm:$0xff]  }
 0x18c   :  { %4099 = vmatprep.subr.bf16.mxu0 %v12423_v2  ;;  %4304 = vmatprep.subr.bf16.mxu1 %v12426_v3  ;;  %v12499_v2 = vld [vmem:[%s17613_s1 + $0xdf0] ss:$16 sps:$4 sm:$0xff]   ;;  %v12502_v3 = vld [vmem:[%s17613_s1 + $0xdf8] ss:$16 sps:$4 sm:$0xff]  }
 0x18f   :  { %4100 = vmatpush1.bf16.msra.mxu0 %v12421_v4  ;;  %4305 = vmatpush1.bf16.msra.mxu1 %v12424_v6  ;;  %v12507_v4 = vld [vmem:[%s17613_s1 + $0xe14] ss:$16 sps:$4 sm:$0xff]   ;;  %v12510_v6 = vld [vmem:[%s17613_s1 + $0xe1c] ss:$16 sps:$4 sm:$0xff]  }
 0x190   :  { %4101 = vmatprep.subr.bf16.mxu0 %v12429_v7  ;;  %4306 = vmatprep.subr.bf16.mxu1 %v12432_v8  ;;  %v12505_v7 = vld [vmem:[%s17613_s1 + $0xe10] ss:$16 sps:$4 sm:$0xff]   ;;  %v12508_v8 = vld [vmem:[%s17613_s1 + $0xe18] ss:$16 sps:$4 sm:$0xff]  }
 0x193   :  { %4102 = vmatpush1.bf16.msra.mxu0 %v12427_v9  ;;  %4307 = vmatpush1.bf16.msra.mxu1 %v12430_v11  ;;  %v12513_v9 = vld [vmem:[%s17613_s1 + $0xe34] ss:$16 sps:$4 sm:$0xff]   ;;  %v12516_v11 = vld [vmem:[%s17613_s1 + $0xe3c] ss:$16 sps:$4 sm:$0xff]  }
 0x194   :  { %4103 = vmatprep.subr.bf16.mxu0 %v12435_v12  ;;  %4308 = vmatprep.subr.bf16.mxu1 %v12438_v14  ;;  %v12511_v12 = vld [vmem:[%s17613_s1 + $0xe30] ss:$16 sps:$4 sm:$0xff]   ;;  %v12514_v14 = vld [vmem:[%s17613_s1 + $0xe38] ss:$16 sps:$4 sm:$0xff]  }
 0x197   :  { %4104 = vmatpush1.bf16.msra.mxu0 %v12433_v17  ;;  %4309 = vmatpush1.bf16.msra.mxu1 %v12436_v18  ;;  %v12519_v17 = vld [vmem:[%s17613_s1 + $0xe54] ss:$16 sps:$4 sm:$0xff]   ;;  %v12522_v18 = vld [vmem:[%s17613_s1 + $0xe5c] ss:$16 sps:$4 sm:$0xff]  }
 0x198   :  { %4105 = vmatprep.subr.bf16.mxu0 %v12441_v19  ;;  %4310 = vmatprep.subr.bf16.mxu1 %v12444_v22  ;;  %v12517_v19 = vld [vmem:[%s17613_s1 + $0xe50] ss:$16 sps:$4 sm:$0xff]   ;;  %v12520_v22 = vld [vmem:[%s17613_s1 + $0xe58] ss:$16 sps:$4 sm:$0xff]  }
 0x19b   :  { %4106 = vmatpush1.bf16.msra.mxu0 %v12439_v23  ;;  %4311 = vmatpush1.bf16.msra.mxu1 %v12442_v24  ;;  %v12525_v23 = vld [vmem:[%s17613_s1 + $0xe74] ss:$16 sps:$4 sm:$0xff]   ;;  %v12528_v24 = vld [vmem:[%s17613_s1 + $0xe7c] ss:$16 sps:$4 sm:$0xff]  }
 0x19c   :  { %4107 = vmatprep.subr.bf16.mxu0 %v12447_v25  ;;  %4312 = vmatprep.subr.bf16.mxu1 %v12450_v26  ;;  %v12523_v25 = vld [vmem:[%s17613_s1 + $0xe70] ss:$16 sps:$4 sm:$0xff]   ;;  %v12526_v26 = vld [vmem:[%s17613_s1 + $0xe78] ss:$16 sps:$4 sm:$0xff]  }
 0x19f   :  { %4108 = vmatpush1.bf16.msra.mxu0 %v12445_v27  ;;  %4313 = vmatpush1.bf16.msra.mxu1 %v12448_v28  ;;  %v12531_v27 = vld [vmem:[%s17613_s1 + $0xe94] ss:$16 sps:$4 sm:$0xff]   ;;  %v12534_v28 = vld [vmem:[%s17613_s1 + $0xe9c] ss:$16 sps:$4 sm:$0xff]  }
 0x1a0   :  { %4109 = vmatprep.subr.bf16.mxu0 %v12453_v31  ;;  %4314 = vmatprep.subr.bf16.mxu1 %v12456_v32  ;;  %v12529_v31 = vld [vmem:[%s17613_s1 + $0xe90] ss:$16 sps:$4 sm:$0xff]   ;;  %v12532_v32 = vld [vmem:[%s17613_s1 + $0xe98] ss:$16 sps:$4 sm:$0xff]  }
 0x1a3   :  { %4110 = vmatpush1.bf16.msra.mxu0 %v12451_v33  ;;  %4315 = vmatpush1.bf16.msra.mxu1 %v12454_v21  ;;  %v12537_v33 = vld [vmem:[%s17613_s1 + $0xeb4] ss:$16 sps:$4 sm:$0xff]   ;;  %v12540_v21 = vld [vmem:[%s17613_s1 + $0xebc] ss:$16 sps:$4 sm:$0xff]  }
 0x1a4   :  { %4111 = vmatprep.subr.bf16.mxu0 %v12459_v35  ;;  %4316 = vmatprep.subr.bf16.mxu1 %v12462_v36  ;;  %v12535_v35 = vld [vmem:[%s17613_s1 + $0xeb0] ss:$16 sps:$4 sm:$0xff]   ;;  %v12538_v36 = vld [vmem:[%s17613_s1 + $0xeb8] ss:$16 sps:$4 sm:$0xff]  }
 0x1a7   :  { %4112 = vmatpush1.bf16.msra.mxu0 %v12457_v37  ;;  %4317 = vmatpush1.bf16.msra.mxu1 %v12460_v38  ;;  %v12543_v37 = vld [vmem:[%s17613_s1 + $0xed4] ss:$16 sps:$4 sm:$0xff]   ;;  %v12546_v38 = vld [vmem:[%s17613_s1 + $0xedc] ss:$16 sps:$4 sm:$0xff]  }
 0x1a8   :  { %4122 = vmatprep.subr.bf16.mxu0 %v12465_v39  ;;  %4327 = vmatprep.subr.bf16.mxu1 %v12468_v40  ;;  %v12541_v39 = vld [vmem:[%s17613_s1 + $0xed0] ss:$16 sps:$4 sm:$0xff]   ;;  %v12544_v40 = vld [vmem:[%s17613_s1 + $0xed8] ss:$16 sps:$4 sm:$0xff]  }
 0x1aa   :  { %4114 = vmatmul.mubr.bf16.vlgmr.msra.gmra.mrb[4].mxu0 %v14114_v10  ;;  %4319 = vmatmul.mubr.bf16.vlgmr.msra.gmra.mrb[4].mxu1 %v14114_v10 }
 0x1ab   :  { %4123 = vmatpush1.bf16.msra.mxu0 %v12463_v41  ;;  %4328 = vmatpush1.bf16.msra.mxu1 %v12466_v42  ;;  %v12549_v41 = vld [vmem:[%s17613_s1 + $0xef4] ss:$16 sps:$4 sm:$0xff]   ;;  %v12552_v42 = vld [vmem:[%s17613_s1 + $0xefc] ss:$16 sps:$4 sm:$0xff]  }
 0x1ac   :  { %4124 = vmatprep.subr.bf16.mxu0 %v12471_v43  ;;  %4329 = vmatprep.subr.bf16.mxu1 %v12474_v44  ;;  %v12547_v43 = vld [vmem:[%s17613_s1 + $0xef0] ss:$16 sps:$4 sm:$0xff]   ;;  %v12550_v44 = vld [vmem:[%s17613_s1 + $0xef8] ss:$16 sps:$4 sm:$0xff]  }
 0x1ad   :  { %4154 = vmatprep.mubr.bf16.mxu0 %v14132_v15  ;;  %4359 = vmatprep.mubr.bf16.mxu1 %v14132_v15 }
 0x1af   :  { %4125 = vmatpush1.bf16.msra.mxu0 %v12469_v45  ;;  %4330 = vmatpush1.bf16.msra.mxu1 %v12472_v46  ;;  %v12555_v45 = vld [vmem:[%s17613_s1 + $0xf14] ss:$16 sps:$4 sm:$0xff]   ;;  %v12558_v46 = vld [vmem:[%s17613_s1 + $0xf1c] ss:$16 sps:$4 sm:$0xff]  }
 0x1b0   :  { %4126 = vmatprep.subr.bf16.mxu0 %v12477_v47  ;;  %4331 = vmatprep.subr.bf16.mxu1 %v12480_v49  ;;  %v12553_v47 = vld [vmem:[%s17613_s1 + $0xf10] ss:$16 sps:$4 sm:$0xff]   ;;  %v12556_v49 = vld [vmem:[%s17613_s1 + $0xf18] ss:$16 sps:$4 sm:$0xff]  }
 0x1b3   :  { %4127 = vmatpush1.bf16.msra.mxu0 %v12475_v50  ;;  %4332 = vmatpush1.bf16.msra.mxu1 %v12478_v51  ;;  %v12561_v50 = vld [vmem:[%s17613_s1 + $0xf34] ss:$16 sps:$4 sm:$0xff]   ;;  %v12564_v51 = vld [vmem:[%s17613_s1 + $0xf3c] ss:$16 sps:$4 sm:$0xff]  }
 0x1b4   :  { %4128 = vmatprep.subr.bf16.mxu0 %v12483_v52  ;;  %4333 = vmatprep.subr.bf16.mxu1 %v12486_v53  ;;  %v12559_v52 = vld [vmem:[%s17613_s1 + $0xf30] ss:$16 sps:$4 sm:$0xff]   ;;  %v12562_v53 = vld [vmem:[%s17613_s1 + $0xf38] ss:$16 sps:$4 sm:$0xff]  }
 0x1b7   :  { %4129 = vmatpush1.bf16.msra.mxu0 %v12481_v54  ;;  %4334 = vmatpush1.bf16.msra.mxu1 %v12484_v55  ;;  %v12567_v54 = vld [vmem:[%s17613_s1 + $0xf54] ss:$16 sps:$4 sm:$0xff]   ;;  %v12570_v55 = vld [vmem:[%s17613_s1 + $0xf5c] ss:$16 sps:$4 sm:$0xff]  }
 0x1b8   :  { %4130 = vmatprep.subr.bf16.mxu0 %v12489_v56  ;;  %4335 = vmatprep.subr.bf16.mxu1 %v12492_v57  ;;  %v12565_v56 = vld [vmem:[%s17613_s1 + $0xf50] ss:$16 sps:$4 sm:$0xff]   ;;  %v12568_v57 = vld [vmem:[%s17613_s1 + $0xf58] ss:$16 sps:$4 sm:$0xff]  }
 0x1bb   :  { %4131 = vmatpush1.bf16.msra.mxu0 %v12487_v58  ;;  %4336 = vmatpush1.bf16.msra.mxu1 %v12490_v59  ;;  %v12573_v58 = vld [vmem:[%s17613_s1 + $0xf74] ss:$16 sps:$4 sm:$0xff]   ;;  %v12576_v59 = vld [vmem:[%s17613_s1 + $0xf7c] ss:$16 sps:$4 sm:$0xff]  }
 0x1bc   :  { %4132 = vmatprep.subr.bf16.mxu0 %v12495_v60  ;;  %4337 = vmatprep.subr.bf16.mxu1 %v12498_v61  ;;  %v12571_v60 = vld [vmem:[%s17613_s1 + $0xf70] ss:$16 sps:$4 sm:$0xff]   ;;  %v12574_v61 = vld [vmem:[%s17613_s1 + $0xf78] ss:$16 sps:$4 sm:$0xff]  }
 0x1bf   :  { %4133 = vmatpush1.bf16.msra.mxu0 %v12493_v62  ;;  %4338 = vmatpush1.bf16.msra.mxu1 %v12496_v63  ;;  %v12579_v62 = vld [vmem:[%s17613_s1 + $0xf94] ss:$16 sps:$4 sm:$0xff]   ;;  %v12582_v63 = vld [vmem:[%s17613_s1 + $0xf9c] ss:$16 sps:$4 sm:$0xff]  }
 0x1c0   :  { %4134 = vmatprep.subr.bf16.mxu0 %v12501_v0  ;;  %4339 = vmatprep.subr.bf16.mxu1 %v12504_v1  ;;  %v12577_v0 = vld [vmem:[%s17613_s1 + $0xf90] ss:$16 sps:$4 sm:$0xff]   ;;  %v12580_v1 = vld [vmem:[%s17613_s1 + $0xf98] ss:$16 sps:$4 sm:$0xff]  }
 0x1c3   :  { %4135 = vmatpush1.bf16.msra.mxu0 %v12499_v2  ;;  %4340 = vmatpush1.bf16.msra.mxu1 %v12502_v3  ;;  %v12585_v2 = vld [vmem:[%s17613_s1 + $0xfb4] ss:$16 sps:$4 sm:$0xff]   ;;  %v12588_v3 = vld [vmem:[%s17613_s1 + $0xfbc] ss:$16 sps:$4 sm:$0xff]  }
 0x1c4   :  { %4136 = vmatprep.subr.bf16.mxu0 %v12507_v4  ;;  %4341 = vmatprep.subr.bf16.mxu1 %v12510_v6  ;;  %v12583_v4 = vld [vmem:[%s17613_s1 + $0xfb0] ss:$16 sps:$4 sm:$0xff]   ;;  %v12586_v6 = vld [vmem:[%s17613_s1 + $0xfb8] ss:$16 sps:$4 sm:$0xff]  }
 0x1c7   :  { %4137 = vmatpush1.bf16.msra.mxu0 %v12505_v7  ;;  %4342 = vmatpush1.bf16.msra.mxu1 %v12508_v8  ;;  %v12591_v7 = vld [vmem:[%s17613_s1 + $0xfd4] ss:$16 sps:$4 sm:$0xff]   ;;  %v12594_v8 = vld [vmem:[%s17613_s1 + $0xfdc] ss:$16 sps:$4 sm:$0xff]  }
 0x1c8   :  { %4138 = vmatprep.subr.bf16.mxu0 %v12513_v9  ;;  %4343 = vmatprep.subr.bf16.mxu1 %v12516_v11  ;;  %v12589_v9 = vld [vmem:[%s17613_s1 + $0xfd0] ss:$16 sps:$4 sm:$0xff]   ;;  %v12592_v11 = vld [vmem:[%s17613_s1 + $0xfd8] ss:$16 sps:$4 sm:$0xff]  }
 0x1cb   :  { %4139 = vmatpush1.bf16.msra.mxu0 %v12511_v12  ;;  %4344 = vmatpush1.bf16.msra.mxu1 %v12514_v14  ;;  %v12597_v12 = vld [vmem:[%s17613_s1 + $0xff4] ss:$16 sps:$4 sm:$0xff]   ;;  %v12600_v14 = vld [vmem:[%s17613_s1 + $0xffc] ss:$16 sps:$4 sm:$0xff]  }
 0x1cc   :  { %4140 = vmatprep.subr.bf16.mxu0 %v12519_v17  ;;  %4345 = vmatprep.subr.bf16.mxu1 %v12522_v18 }
 0x1cf   :  { %4141 = vmatpush1.bf16.msra.mxu0 %v12517_v19  ;;  %4346 = vmatpush1.bf16.msra.mxu1 %v12520_v22 }
 0x1d0   :  { %4142 = vmatprep.subr.bf16.mxu0 %v12525_v23  ;;  %4347 = vmatprep.subr.bf16.mxu1 %v12528_v24 }
 0x1d3   :  { %4143 = vmatpush1.bf16.msra.mxu0 %v12523_v25  ;;  %4348 = vmatpush1.bf16.msra.mxu1 %v12526_v26  ;;  %v12595_v25 = vld [vmem:[%s17613_s1 + $0xff0] ss:$16 sps:$4 sm:$0xff]   ;;  %v12598_v26 = vld [vmem:[%s17613_s1 + $0xff8] ss:$16 sps:$4 sm:$0xff]  }
 0x1d4   :  { %4144 = vmatprep.subr.bf16.mxu0 %v12531_v27  ;;  %4349 = vmatprep.subr.bf16.mxu1 %v12534_v28 }
 0x1d7   :  { %4145 = vmatpush1.bf16.msra.mxu0 %v12529_v31  ;;  %4350 = vmatpush1.bf16.msra.mxu1 %v12532_v32  ;;  %v12603_v31 = vld [vmem:[%s17613_s1 + $0x1014] ss:$16 sps:$4 sm:$0xff]   ;;  %v12606_v32 = vld [vmem:[%s17613_s1 + $0x101c] ss:$16 sps:$4 sm:$0xff]  }
 0x1d8   :  { %4146 = vmatprep.subr.bf16.mxu0 %v12537_v33  ;;  %4351 = vmatprep.subr.bf16.mxu1 %v12540_v21  ;;  %v12601_v33 = vld [vmem:[%s17613_s1 + $0x1010] ss:$16 sps:$4 sm:$0xff]   ;;  %v12604_v21 = vld [vmem:[%s17613_s1 + $0x1018] ss:$16 sps:$4 sm:$0xff]  }
 0x1db   :  { %4147 = vmatpush1.bf16.msra.mxu0 %v12535_v35  ;;  %4352 = vmatpush1.bf16.msra.mxu1 %v12538_v36  ;;  %v12609_v35 = vld [vmem:[%s17613_s1 + $0x1034] ss:$16 sps:$4 sm:$0xff]   ;;  %v12612_v36 = vld [vmem:[%s17613_s1 + $0x103c] ss:$16 sps:$4 sm:$0xff]  }
 0x1dc   :  { %4148 = vmatprep.subr.bf16.mxu0 %v12543_v37  ;;  %4353 = vmatprep.subr.bf16.mxu1 %v12546_v38  ;;  %v12607_v37 = vld [vmem:[%s17613_s1 + $0x1030] ss:$16 sps:$4 sm:$0xff]   ;;  %v12610_v38 = vld [vmem:[%s17613_s1 + $0x1038] ss:$16 sps:$4 sm:$0xff]  }
 0x1df   :  { %4149 = vmatpush1.bf16.msra.mxu0 %v12541_v39  ;;  %4354 = vmatpush1.bf16.msra.mxu1 %v12544_v40  ;;  %v12615_v39 = vld [vmem:[%s17613_s1 + $0x1054] ss:$16 sps:$4 sm:$0xff]   ;;  %v12618_v40 = vld [vmem:[%s17613_s1 + $0x105c] ss:$16 sps:$4 sm:$0xff]  }
 0x1e0   :  { %4150 = vmatprep.subr.bf16.mxu0 %v12549_v41  ;;  %4355 = vmatprep.subr.bf16.mxu1 %v12552_v42  ;;  %v12613_v41 = vld [vmem:[%s17613_s1 + $0x1050] ss:$16 sps:$4 sm:$0xff]   ;;  %v12616_v42 = vld [vmem:[%s17613_s1 + $0x1058] ss:$16 sps:$4 sm:$0xff]  }
 0x1e3   :  { %4151 = vmatpush1.bf16.msra.mxu0 %v12547_v43  ;;  %4356 = vmatpush1.bf16.msra.mxu1 %v12550_v44  ;;  %v12621_v43 = vld [vmem:[%s17613_s1 + $0x1074] ss:$16 sps:$4 sm:$0xff]   ;;  %v12624_v44 = vld [vmem:[%s17613_s1 + $0x107c] ss:$16 sps:$4 sm:$0xff]  }
 0x1e4   :  { %4152 = vmatprep.subr.bf16.mxu0 %v12555_v45  ;;  %4357 = vmatprep.subr.bf16.mxu1 %v12558_v46  ;;  %v12619_v45 = vld [vmem:[%s17613_s1 + $0x1070] ss:$16 sps:$4 sm:$0xff]   ;;  %v12622_v46 = vld [vmem:[%s17613_s1 + $0x1078] ss:$16 sps:$4 sm:$0xff]  }
 0x1e7   :  { %4153 = vmatpush1.bf16.msra.mxu0 %v12553_v47  ;;  %4358 = vmatpush1.bf16.msra.mxu1 %v12556_v49  ;;  %v12627_v47 = vld [vmem:[%s17613_s1 + $0x1094] ss:$16 sps:$4 sm:$0xff]   ;;  %v12630_v49 = vld [vmem:[%s17613_s1 + $0x109c] ss:$16 sps:$4 sm:$0xff]  }
 0x1e8   :  { %4163 = vmatprep.subr.bf16.mxu0 %v12561_v50  ;;  %4368 = vmatprep.subr.bf16.mxu1 %v12564_v51  ;;  %v12625_v50 = vld [vmem:[%s17613_s1 + $0x1090] ss:$16 sps:$4 sm:$0xff]   ;;  %v12628_v51 = vld [vmem:[%s17613_s1 + $0x1098] ss:$16 sps:$4 sm:$0xff]  }
 0x1ea   :  { %4155 = vmatmul.mubr.bf16.vlgmr.msra.gmra.mrb[4].mxu0 %v14326_v20  ;;  %4360 = vmatmul.mubr.bf16.vlgmr.msra.gmra.mrb[4].mxu1 %v14326_v20 }
 0x1eb   :  { %4164 = vmatpush1.bf16.msra.mxu0 %v12559_v52  ;;  %4369 = vmatpush1.bf16.msra.mxu1 %v12562_v53  ;;  %v12633_v52 = vld [vmem:[%s17613_s1 + $0x10b4] ss:$16 sps:$4 sm:$0xff]   ;;  %v12636_v53 = vld [vmem:[%s17613_s1 + $0x10bc] ss:$16 sps:$4 sm:$0xff]  }
 0x1ec   :  { %4165 = vmatprep.subr.bf16.mxu0 %v12567_v54  ;;  %4370 = vmatprep.subr.bf16.mxu1 %v12570_v55  ;;  %v12631_v54 = vld [vmem:[%s17613_s1 + $0x10b0] ss:$16 sps:$4 sm:$0xff]   ;;  %v12634_v55 = vld [vmem:[%s17613_s1 + $0x10b8] ss:$16 sps:$4 sm:$0xff]  }
 0x1ed   :  { %4195 = vmatprep.mubr.bf16.mxu0 %v14341_v13  ;;  %4400 = vmatprep.mubr.bf16.mxu1 %v14341_v13 }
 0x1ef   :  { %4166 = vmatpush1.bf16.msra.mxu0 %v12565_v56  ;;  %4371 = vmatpush1.bf16.msra.mxu1 %v12568_v57  ;;  %v12639_v56 = vld [vmem:[%s17613_s1 + $0x10d4] ss:$16 sps:$4 sm:$0xff]   ;;  %v12642_v57 = vld [vmem:[%s17613_s1 + $0x10dc] ss:$16 sps:$4 sm:$0xff]  }
 0x1f0   :  { %4167 = vmatprep.subr.bf16.mxu0 %v12573_v58  ;;  %4372 = vmatprep.subr.bf16.mxu1 %v12576_v59  ;;  %v12637_v58 = vld [vmem:[%s17613_s1 + $0x10d0] ss:$16 sps:$4 sm:$0xff]   ;;  %v12640_v59 = vld [vmem:[%s17613_s1 + $0x10d8] ss:$16 sps:$4 sm:$0xff]  }
 0x1f3   :  { %4168 = vmatpush1.bf16.msra.mxu0 %v12571_v60  ;;  %4373 = vmatpush1.bf16.msra.mxu1 %v12574_v61  ;;  %v12645_v60 = vld [vmem:[%s17613_s1 + $0x10f4] ss:$16 sps:$4 sm:$0xff]   ;;  %v12648_v61 = vld [vmem:[%s17613_s1 + $0x10fc] ss:$16 sps:$4 sm:$0xff]  }
 0x1f4   :  { %4169 = vmatprep.subr.bf16.mxu0 %v12579_v62  ;;  %4374 = vmatprep.subr.bf16.mxu1 %v12582_v63  ;;  %v12643_v62 = vld [vmem:[%s17613_s1 + $0x10f0] ss:$16 sps:$4 sm:$0xff]   ;;  %v12646_v63 = vld [vmem:[%s17613_s1 + $0x10f8] ss:$16 sps:$4 sm:$0xff]  }
 0x1f7   :  { %4170 = vmatpush1.bf16.msra.mxu0 %v12577_v0  ;;  %4375 = vmatpush1.bf16.msra.mxu1 %v12580_v1  ;;  %v12651_v0 = vld [vmem:[%s17613_s1 + $0x1114] ss:$16 sps:$4 sm:$0xff]   ;;  %v12654_v1 = vld [vmem:[%s17613_s1 + $0x111c] ss:$16 sps:$4 sm:$0xff]  }
 0x1f8   :  { %4171 = vmatprep.subr.bf16.mxu0 %v12585_v2  ;;  %4376 = vmatprep.subr.bf16.mxu1 %v12588_v3  ;;  %v12649_v2 = vld [vmem:[%s17613_s1 + $0x1110] ss:$16 sps:$4 sm:$0xff]   ;;  %v12652_v3 = vld [vmem:[%s17613_s1 + $0x1118] ss:$16 sps:$4 sm:$0xff]  }
 0x1fb   :  { %4172 = vmatpush1.bf16.msra.mxu0 %v12583_v4  ;;  %4377 = vmatpush1.bf16.msra.mxu1 %v12586_v6  ;;  %v12657_v4 = vld [vmem:[%s17613_s1 + $0x1134] ss:$16 sps:$4 sm:$0xff]   ;;  %v12660_v6 = vld [vmem:[%s17613_s1 + $0x113c] ss:$16 sps:$4 sm:$0xff]  }
 0x1fc   :  { %4173 = vmatprep.subr.bf16.mxu0 %v12591_v7  ;;  %4378 = vmatprep.subr.bf16.mxu1 %v12594_v8  ;;  %v12655_v7 = vld [vmem:[%s17613_s1 + $0x1130] ss:$16 sps:$4 sm:$0xff]   ;;  %v12658_v8 = vld [vmem:[%s17613_s1 + $0x1138] ss:$16 sps:$4 sm:$0xff]  }
 0x1fd   :  { %v15332_v17 = vpop.f32.mrb[0].mxu0  ;;  %v15334_v18 = vpop.f32.mrb[0].mxu1 }
 0x1fe   :  { %v15336_v19 = vpop.f32.mrb[1].mxu0  ;;  %v15338_v22 = vpop.f32.mrb[1].mxu1 }
 0x1ff   :  { %v2055_v23 = vpop.f32.mrb[2].mxu0  ;;  %v2260_v24 = vpop.f32.mrb[2].mxu1  ;;  %4174 = vmatpush1.bf16.msra.mxu0 %v12589_v9  ;;  %4379 = vmatpush1.bf16.msra.mxu1 %v12592_v11  ;;  %v12663_v9 = vld [vmem:[%s17613_s1 + $0x1154] ss:$16 sps:$4 sm:$0xff]   ;;  %v12666_v11 = vld [vmem:[%s17613_s1 + $0x115c] ss:$16 sps:$4 sm:$0xff]  }
 0x200   :  { %v2056_v27 = vpop.f32.mrb[3].mxu0  ;;  %v2261_v28 = vpop.f32.mrb[3].mxu1  ;;  %4175 = vmatprep.subr.bf16.mxu0 %v12597_v12  ;;  %4380 = vmatprep.subr.bf16.mxu1 %v12600_v14  ;;  %v12661_v12 = vld [vmem:[%s17613_s1 + $0x1150] ss:$16 sps:$4 sm:$0xff]   ;;  %v12664_v14 = vld [vmem:[%s17613_s1 + $0x1158] ss:$16 sps:$4 sm:$0xff]  }
 0x201   :  { %v12669_v23 = vld [vmem:[%s17613_s1 + $0x1174] ss:$16 sps:$4 sm:$0xff]   ;;  %v12672_v24 = vld [vmem:[%s17613_s1 + $0x117c] ss:$16 sps:$4 sm:$0xff]  }
 0x202   :  { %v12675_v27 = vld [vmem:[%s17613_s1 + $0x1194] ss:$16 sps:$4 sm:$0xff]   ;;  %v12678_v28 = vld [vmem:[%s17613_s1 + $0x119c] ss:$16 sps:$4 sm:$0xff]  }
 0x203   :  { %4176 = vmatpush1.bf16.msra.mxu0 %v12595_v25  ;;  %4381 = vmatpush1.bf16.msra.mxu1 %v12598_v26  ;;  %v12667_v25 = vld [vmem:[%s17613_s1 + $0x1170] ss:$16 sps:$4 sm:$0xff]   ;;  %v12670_v26 = vld [vmem:[%s17613_s1 + $0x1178] ss:$16 sps:$4 sm:$0xff]  }
 0x204   :  { %4177 = vmatprep.subr.bf16.mxu0 %v12603_v31  ;;  %4382 = vmatprep.subr.bf16.mxu1 %v12606_v32  ;;  %v12673_v31 = vld [vmem:[%s17613_s1 + $0x1190] ss:$16 sps:$4 sm:$0xff]   ;;  %v12676_v32 = vld [vmem:[%s17613_s1 + $0x1198] ss:$16 sps:$4 sm:$0xff]  }
 0x207   :  { %4178 = vmatpush1.bf16.msra.mxu0 %v12601_v33  ;;  %4383 = vmatpush1.bf16.msra.mxu1 %v12604_v21  ;;  %v12681_v33 = vld [vmem:[%s17613_s1 + $0x11b4] ss:$16 sps:$4 sm:$0xff]   ;;  %v12684_v21 = vld [vmem:[%s17613_s1 + $0x11bc] ss:$16 sps:$4 sm:$0xff]  }
 0x208   :  { %4179 = vmatprep.subr.bf16.mxu0 %v12609_v35  ;;  %4384 = vmatprep.subr.bf16.mxu1 %v12612_v36  ;;  %v12679_v35 = vld [vmem:[%s17613_s1 + $0x11b0] ss:$16 sps:$4 sm:$0xff]   ;;  %v12682_v36 = vld [vmem:[%s17613_s1 + $0x11b8] ss:$16 sps:$4 sm:$0xff]  }
 0x20b   :  { %4180 = vmatpush1.bf16.msra.mxu0 %v12607_v37  ;;  %4385 = vmatpush1.bf16.msra.mxu1 %v12610_v38  ;;  %v12687_v37 = vld [vmem:[%s17613_s1 + $0x11d4] ss:$16 sps:$4 sm:$0xff]   ;;  %v12690_v38 = vld [vmem:[%s17613_s1 + $0x11dc] ss:$16 sps:$4 sm:$0xff]  }
 0x20c   :  { %4181 = vmatprep.subr.bf16.mxu0 %v12615_v39  ;;  %4386 = vmatprep.subr.bf16.mxu1 %v12618_v40  ;;  %v12685_v39 = vld [vmem:[%s17613_s1 + $0x11d0] ss:$16 sps:$4 sm:$0xff]   ;;  %v12688_v40 = vld [vmem:[%s17613_s1 + $0x11d8] ss:$16 sps:$4 sm:$0xff]  }
 0x20f   :  { %4182 = vmatpush1.bf16.msra.mxu0 %v12613_v41  ;;  %4387 = vmatpush1.bf16.msra.mxu1 %v12616_v42  ;;  %v12693_v41 = vld [vmem:[%s17613_s1 + $0x11f4] ss:$16 sps:$4 sm:$0xff]   ;;  %v12696_v42 = vld [vmem:[%s17613_s1 + $0x11fc] ss:$16 sps:$4 sm:$0xff]  }
 0x210   :  { %4183 = vmatprep.subr.bf16.mxu0 %v12621_v43  ;;  %4388 = vmatprep.subr.bf16.mxu1 %v12624_v44  ;;  %v12691_v43 = vld [vmem:[%s17613_s1 + $0x11f0] ss:$16 sps:$4 sm:$0xff]   ;;  %v12694_v44 = vld [vmem:[%s17613_s1 + $0x11f8] ss:$16 sps:$4 sm:$0xff]  }
 0x213   :  { %4184 = vmatpush1.bf16.msra.mxu0 %v12619_v45  ;;  %4389 = vmatpush1.bf16.msra.mxu1 %v12622_v46  ;;  %v12699_v45 = vld [vmem:[%s17613_s1 + $0x1214] ss:$16 sps:$4 sm:$0xff]   ;;  %v12702_v46 = vld [vmem:[%s17613_s1 + $0x121c] ss:$16 sps:$4 sm:$0xff]  }
 0x214   :  { %4185 = vmatprep.subr.bf16.mxu0 %v12627_v47  ;;  %4390 = vmatprep.subr.bf16.mxu1 %v12630_v49  ;;  %v12697_v47 = vld [vmem:[%s17613_s1 + $0x1210] ss:$16 sps:$4 sm:$0xff]   ;;  %v12700_v49 = vld [vmem:[%s17613_s1 + $0x1218] ss:$16 sps:$4 sm:$0xff]  }
 0x217   :  { %4186 = vmatpush1.bf16.msra.mxu0 %v12625_v50  ;;  %4391 = vmatpush1.bf16.msra.mxu1 %v12628_v51  ;;  %v12705_v50 = vld [vmem:[%s17613_s1 + $0x1234] ss:$16 sps:$4 sm:$0xff]   ;;  %v12708_v51 = vld [vmem:[%s17613_s1 + $0x123c] ss:$16 sps:$4 sm:$0xff]  }
 0x218   :  { %4187 = vmatprep.subr.bf16.mxu0 %v12633_v52  ;;  %4392 = vmatprep.subr.bf16.mxu1 %v12636_v53  ;;  %v10046_v52 = vld [vmem:[%s17613_s1 + $0x1250] sm:$0xff]  ;;  %v10047_v53 = vld [vmem:[%s17613_s1 + $0x1258] sm:$0xff] }
 0x21b   :  { %4188 = vmatpush1.bf16.msra.mxu0 %v12631_v54  ;;  %4393 = vmatpush1.bf16.msra.mxu1 %v12634_v55  ;;  %v12703_v54 = vld [vmem:[%s17613_s1 + $0x1230] ss:$16 sps:$4 sm:$0xff]   ;;  %v12706_v55 = vld [vmem:[%s17613_s1 + $0x1238] ss:$16 sps:$4 sm:$0xff]  }
 0x21c   :  { %4189 = vmatprep.subr.bf16.mxu0 %v12639_v56  ;;  %4394 = vmatprep.subr.bf16.mxu1 %v12642_v57  ;;  %v10340_v56 = vcombine.low %v10046_v52, %v10046_v52  ;;  %v10341_v57 = vcombine.high %v10046_v52, %v10046_v52  ;;  %v12775_v52 = vld [vmem:[%s17613_s1 + $0x13a4] ss:$16 sps:$4 sm:$0xff]  }
 0x21f   :  { %4190 = vmatpush1.bf16.msra.mxu0 %v12637_v58  ;;  %4395 = vmatpush1.bf16.msra.mxu1 %v12640_v59  ;;  %v10343_v58 = vcombine.high %v10047_v53, %v10047_v53  ;;  %v10342_v59 = vcombine.low %v10047_v53, %v10047_v53  ;;  %v12778_v53 = vld [vmem:[%s17613_s1 + $0x13ac] ss:$16 sps:$4 sm:$0xff]  }
 0x220   :  { %4191 = vmatprep.subr.bf16.mxu0 %v12645_v60  ;;  %4396 = vmatprep.subr.bf16.mxu1 %v12648_v61  ;;  %v4029_v60 = vsel %vm1840_vm1, %v10340_v56, 0  ;;  %v12781_v56 = vld [vmem:[%s17613_s1 + $0x13c4] ss:$16 sps:$4 sm:$0xff]  }
 0x221   :  { %v4035_v61 = vsel %vm1840_vm1, %v10342_v59, 0  ;;  %v12782_v59 = vld [vmem:[%s17613_s1 + $0x13c8] ss:$16 sps:$4 sm:$0xff]  }
 0x223   :  { %4192 = vmatpush1.bf16.msra.mxu0 %v12643_v62  ;;  %4397 = vmatpush1.bf16.msra.mxu1 %v12646_v63  ;;  %v12715_v62 = vld [vmem:[%s17613_s1 + $0x1264] ss:$16 sps:$4 sm:$0xff]   ;;  %v12718_v63 = vld [vmem:[%s17613_s1 + $0x126c] ss:$16 sps:$4 sm:$0xff]  }
 0x224   :  { %4193 = vmatprep.subr.bf16.mxu0 %v12651_v0  ;;  %4398 = vmatprep.subr.bf16.mxu1 %v12654_v1  ;;  %v12713_v0 = vld [vmem:[%s17613_s1 + $0x1260] ss:$16 sps:$4 sm:$0xff]   ;;  %v12716_v1 = vld [vmem:[%s17613_s1 + $0x1268] ss:$16 sps:$4 sm:$0xff]  }
 0x227   :  { %4194 = vmatpush1.bf16.msra.mxu0 %v12649_v2  ;;  %4399 = vmatpush1.bf16.msra.mxu1 %v12652_v3  ;;  %v12721_v2 = vld [vmem:[%s17613_s1 + $0x1284] ss:$16 sps:$4 sm:$0xff]   ;;  %v12724_v3 = vld [vmem:[%s17613_s1 + $0x128c] ss:$16 sps:$4 sm:$0xff]  }
 0x228   :  { %4204 = vmatprep.subr.bf16.mxu0 %v12657_v4  ;;  %4409 = vmatprep.subr.bf16.mxu1 %v12660_v6  ;;  %v12719_v4 = vld [vmem:[%s17613_s1 + $0x1280] ss:$16 sps:$4 sm:$0xff]   ;;  %v12722_v6 = vld [vmem:[%s17613_s1 + $0x1288] ss:$16 sps:$4 sm:$0xff]  }
 0x22a   :  { %4196 = vmatmul.mubr.bf16.vlgmr.msra.gmra.mrb[4].mxu0 %v14532_v29  ;;  %4401 = vmatmul.mubr.bf16.vlgmr.msra.gmra.mrb[4].mxu1 %v14532_v29 }
 0x22b   :  { %4205 = vmatpush1.bf16.msra.mxu0 %v12655_v7  ;;  %4410 = vmatpush1.bf16.msra.mxu1 %v12658_v8  ;;  %v12727_v7 = vld [vmem:[%s17613_s1 + $0x12a4] ss:$16 sps:$4 sm:$0xff]   ;;  %v12730_v8 = vld [vmem:[%s17613_s1 + $0x12ac] ss:$16 sps:$4 sm:$0xff]  }
 0x22c   :  { %4206 = vmatprep.subr.bf16.mxu0 %v12663_v9  ;;  %4411 = vmatprep.subr.bf16.mxu1 %v12666_v11  ;;  %v12725_v9 = vld [vmem:[%s17613_s1 + $0x12a0] ss:$16 sps:$4 sm:$0xff]   ;;  %v12728_v11 = vld [vmem:[%s17613_s1 + $0x12a8] ss:$16 sps:$4 sm:$0xff]  }
 0x22d   :  { %10345 = vmatprep.mubr.msk.bf16.mxu0 %vm1836_vm0, %v14550_v34  ;;  %10347 = vmatprep.mubr.msk.bf16.mxu1 %vm1836_vm0, %v14550_v34 }
 0x22f   :  { %4207 = vmatpush1.bf16.msra.mxu0 %v12661_v12  ;;  %4412 = vmatpush1.bf16.msra.mxu1 %v12664_v14  ;;  %v12733_v12 = vld [vmem:[%s17613_s1 + $0x12c4] ss:$16 sps:$4 sm:$0xff]   ;;  %v12736_v14 = vld [vmem:[%s17613_s1 + $0x12cc] ss:$16 sps:$4 sm:$0xff]  }
 0x230   :  { %4208 = vmatprep.subr.bf16.mxu0 %v12669_v23  ;;  %4413 = vmatprep.subr.bf16.mxu1 %v12672_v24  ;;  %v12731_v23 = vld [vmem:[%s17613_s1 + $0x12c0] ss:$16 sps:$4 sm:$0xff]   ;;  %v12734_v24 = vld [vmem:[%s17613_s1 + $0x12c8] ss:$16 sps:$4 sm:$0xff]  }
 0x233   :  { %4209 = vmatpush1.bf16.msra.mxu0 %v12667_v25  ;;  %4414 = vmatpush1.bf16.msra.mxu1 %v12670_v26  ;;  %v12739_v25 = vld [vmem:[%s17613_s1 + $0x12e4] ss:$16 sps:$4 sm:$0xff]   ;;  %v12742_v26 = vld [vmem:[%s17613_s1 + $0x12ec] ss:$16 sps:$4 sm:$0xff]  }
 0x234   :  { %4210 = vmatprep.subr.bf16.mxu0 %v12675_v27  ;;  %4415 = vmatprep.subr.bf16.mxu1 %v12678_v28  ;;  %v12737_v27 = vld [vmem:[%s17613_s1 + $0x12e0] ss:$16 sps:$4 sm:$0xff]   ;;  %v12740_v28 = vld [vmem:[%s17613_s1 + $0x12e8] ss:$16 sps:$4 sm:$0xff]  }
 0x237   :  { %4211 = vmatpush1.bf16.msra.mxu0 %v12673_v31  ;;  %4416 = vmatpush1.bf16.msra.mxu1 %v12676_v32  ;;  %v12745_v31 = vld [vmem:[%s17613_s1 + $0x1304] ss:$16 sps:$4 sm:$0xff]   ;;  %v12748_v32 = vld [vmem:[%s17613_s1 + $0x130c] ss:$16 sps:$4 sm:$0xff]  }
 0x238   :  { %4212 = vmatprep.subr.bf16.mxu0 %v12681_v33  ;;  %4417 = vmatprep.subr.bf16.mxu1 %v12684_v21  ;;  %v12743_v33 = vld [vmem:[%s17613_s1 + $0x1300] ss:$16 sps:$4 sm:$0xff]   ;;  %v12746_v21 = vld [vmem:[%s17613_s1 + $0x1308] ss:$16 sps:$4 sm:$0xff]  }
 0x23b   :  { %4213 = vmatpush1.bf16.msra.mxu0 %v12679_v35  ;;  %4418 = vmatpush1.bf16.msra.mxu1 %v12682_v36  ;;  %v12751_v35 = vld [vmem:[%s17613_s1 + $0x1324] ss:$16 sps:$4 sm:$0xff]   ;;  %v12754_v36 = vld [vmem:[%s17613_s1 + $0x132c] ss:$16 sps:$4 sm:$0xff]  }
 0x23c   :  { %4214 = vmatprep.subr.bf16.mxu0 %v12687_v37  ;;  %4419 = vmatprep.subr.bf16.mxu1 %v12690_v38  ;;  %v12749_v37 = vld [vmem:[%s17613_s1 + $0x1320] ss:$16 sps:$4 sm:$0xff]   ;;  %v12752_v38 = vld [vmem:[%s17613_s1 + $0x1328] ss:$16 sps:$4 sm:$0xff]  }
 0x23f   :  { %4215 = vmatpush1.bf16.msra.mxu0 %v12685_v39  ;;  %4420 = vmatpush1.bf16.msra.mxu1 %v12688_v40  ;;  %v12757_v39 = vld [vmem:[%s17613_s1 + $0x1344] ss:$16 sps:$4 sm:$0xff]   ;;  %v12760_v40 = vld [vmem:[%s17613_s1 + $0x134c] ss:$16 sps:$4 sm:$0xff]  }
 0x240   :  { %4216 = vmatprep.subr.bf16.mxu0 %v12693_v41  ;;  %4421 = vmatprep.subr.bf16.mxu1 %v12696_v42  ;;  %v12755_v41 = vld [vmem:[%s17613_s1 + $0x1340] ss:$16 sps:$4 sm:$0xff]   ;;  %v12758_v42 = vld [vmem:[%s17613_s1 + $0x1348] ss:$16 sps:$4 sm:$0xff]  }
 0x243   :  { %4217 = vmatpush1.bf16.msra.mxu0 %v12691_v43  ;;  %4422 = vmatpush1.bf16.msra.mxu1 %v12694_v44  ;;  %v12763_v43 = vld [vmem:[%s17613_s1 + $0x1364] ss:$16 sps:$4 sm:$0xff]   ;;  %v12766_v44 = vld [vmem:[%s17613_s1 + $0x136c] ss:$16 sps:$4 sm:$0xff]  }
 0x244   :  { %4218 = vmatprep.subr.bf16.mxu0 %v12699_v45  ;;  %4423 = vmatprep.subr.bf16.mxu1 %v12702_v46  ;;  %v12761_v45 = vld [vmem:[%s17613_s1 + $0x1360] ss:$16 sps:$4 sm:$0xff]   ;;  %v12764_v46 = vld [vmem:[%s17613_s1 + $0x1368] ss:$16 sps:$4 sm:$0xff]  }
 0x247   :  { %4219 = vmatpush1.bf16.msra.mxu0 %v12697_v47  ;;  %4424 = vmatpush1.bf16.msra.mxu1 %v12700_v49  ;;  %v12769_v47 = vld [vmem:[%s17613_s1 + $0x1384] ss:$16 sps:$4 sm:$0xff]   ;;  %v12772_v49 = vld [vmem:[%s17613_s1 + $0x138c] ss:$16 sps:$4 sm:$0xff]  }
 0x248   :  { %4220 = vmatprep.subr.bf16.mxu0 %v12705_v50  ;;  %4425 = vmatprep.subr.bf16.mxu1 %v12708_v51  ;;  %v12767_v50 = vld [vmem:[%s17613_s1 + $0x1380] ss:$16 sps:$4 sm:$0xff]   ;;  %v12770_v51 = vld [vmem:[%s17613_s1 + $0x1388] ss:$16 sps:$4 sm:$0xff]  }
 0x24b   :  { %4221 = vmatpush1.bf16.msra.mxu0 %v12703_v54  ;;  %4426 = vmatpush1.bf16.msra.mxu1 %v12706_v55  ;;  %v12773_v54 = vld [vmem:[%s17613_s1 + $0x13a0] ss:$16 sps:$4 sm:$0xff]   ;;  %v12776_v55 = vld [vmem:[%s17613_s1 + $0x13a8] ss:$16 sps:$4 sm:$0xff]  }
 0x24c   :  { %10344 = vmatprep.subr.msk.bf16.mxu0 %vm1840_vm1, %v10341_v57  ;;  %10346 = vmatprep.subr.msk.bf16.mxu1 %vm1840_vm1, %v10343_v58  ;;  %v12784_v57 = vld [vmem:[%s17613_s1 + $0x13cc] ss:$16 sps:$4 sm:$0xff]   ;;  %v12779_v58 = vld [vmem:[%s17613_s1 + $0x13c0] ss:$16 sps:$4 sm:$0xff]  }
 0x24f   :  { %4223 = vmatpush1.bf16.msra.mxu0 %v4029_v60  ;;  %4428 = vmatpush1.bf16.msra.mxu1 %v4035_v61  ;;  %v12787_v60 = vld [vmem:[%s17613_s1 + $0x13e4] ss:$16 sps:$4 sm:$0xff]   ;;  %v12790_v61 = vld [vmem:[%s17613_s1 + $0x13ec] ss:$16 sps:$4 sm:$0xff]  }
 0x250   :  { %6231 = vmatprep.subr.bf16.mxu0 %v12715_v62  ;;  %6436 = vmatprep.subr.bf16.mxu1 %v12718_v63  ;;  %v12785_v62 = vld [vmem:[%s17613_s1 + $0x13e0] ss:$16 sps:$4 sm:$0xff]   ;;  %v12788_v63 = vld [vmem:[%s17613_s1 + $0x13e8] ss:$16 sps:$4 sm:$0xff]  }
 0x252   :  { %4237 = vmatmul.mubr.bf16.vlgmr.msra.gmra.mrb[4].mxu0 %v14666_v16  ;;  %4442 = vmatmul.mubr.bf16.vlgmr.msra.gmra.mrb[4].mxu1 %v14666_v16 }
 0x253   :  { %6232 = vmatpush1.bf16.msra.mxu0 %v12713_v0  ;;  %6437 = vmatpush1.bf16.msra.mxu1 %v12716_v1  ;;  %v12793_v0 = vld [vmem:[%s17613_s1 + $0x1404] ss:$16 sps:$4 sm:$0xff]   ;;  %v12796_v1 = vld [vmem:[%s17613_s1 + $0x140c] ss:$16 sps:$4 sm:$0xff]  }
 0x254   :  { %6233 = vmatprep.subr.bf16.mxu0 %v12721_v2  ;;  %6438 = vmatprep.subr.bf16.mxu1 %v12724_v3  ;;  %v12791_v2 = vld [vmem:[%s17613_s1 + $0x1400] ss:$16 sps:$4 sm:$0xff]   ;;  %v12794_v3 = vld [vmem:[%s17613_s1 + $0x1408] ss:$16 sps:$4 sm:$0xff]  }
 0x255   :  { %6263 = vmatprep.mubr.bf16.mxu0 %v13841_v48  ;;  %6468 = vmatprep.mubr.bf16.mxu1 %v13841_v48 }
 0x257   :  { %6234 = vmatpush1.bf16.msra.mxu0 %v12719_v4  ;;  %6439 = vmatpush1.bf16.msra.mxu1 %v12722_v6  ;;  %v12799_v4 = vld [vmem:[%s17613_s1 + $0x1424] ss:$16 sps:$4 sm:$0xff]   ;;  %v12802_v6 = vld [vmem:[%s17613_s1 + $0x142c] ss:$16 sps:$4 sm:$0xff]  }
 0x258   :  { %6235 = vmatprep.subr.bf16.mxu0 %v12727_v7  ;;  %6440 = vmatprep.subr.bf16.mxu1 %v12730_v8  ;;  %v12797_v7 = vld [vmem:[%s17613_s1 + $0x1420] ss:$16 sps:$4 sm:$0xff]   ;;  %v12800_v8 = vld [vmem:[%s17613_s1 + $0x1428] ss:$16 sps:$4 sm:$0xff]  }
 0x25b   :  { %6236 = vmatpush1.bf16.msra.mxu0 %v12725_v9  ;;  %6441 = vmatpush1.bf16.msra.mxu1 %v12728_v11  ;;  %v12805_v9 = vld [vmem:[%s17613_s1 + $0x1444] ss:$16 sps:$4 sm:$0xff]   ;;  %v12808_v11 = vld [vmem:[%s17613_s1 + $0x144c] ss:$16 sps:$4 sm:$0xff]  }
 0x25c   :  { %6237 = vmatprep.subr.bf16.mxu0 %v12733_v12  ;;  %6442 = vmatprep.subr.bf16.mxu1 %v12736_v14  ;;  %v12803_v12 = vld [vmem:[%s17613_s1 + $0x1440] ss:$16 sps:$4 sm:$0xff]   ;;  %v12806_v14 = vld [vmem:[%s17613_s1 + $0x1448] ss:$16 sps:$4 sm:$0xff]  }
 0x25f   :  { %6238 = vmatpush1.bf16.msra.mxu0 %v12731_v23  ;;  %6443 = vmatpush1.bf16.msra.mxu1 %v12734_v24  ;;  %v12811_v23 = vld [vmem:[%s17613_s1 + $0x1464] ss:$16 sps:$4 sm:$0xff]   ;;  %v12814_v24 = vld [vmem:[%s17613_s1 + $0x146c] ss:$16 sps:$4 sm:$0xff]  }
 0x260   :  { %6239 = vmatprep.subr.bf16.mxu0 %v12739_v25  ;;  %6444 = vmatprep.subr.bf16.mxu1 %v12742_v26  ;;  %v12809_v25 = vld [vmem:[%s17613_s1 + $0x1460] ss:$16 sps:$4 sm:$0xff]   ;;  %v12812_v26 = vld [vmem:[%s17613_s1 + $0x1468] ss:$16 sps:$4 sm:$0xff]  }
 0x263   :  { %6240 = vmatpush1.bf16.msra.mxu0 %v12737_v27  ;;  %6445 = vmatpush1.bf16.msra.mxu1 %v12740_v28  ;;  %v12817_v27 = vld [vmem:[%s17613_s1 + $0x1484] ss:$16 sps:$4 sm:$0xff]   ;;  %v12820_v28 = vld [vmem:[%s17613_s1 + $0x148c] ss:$16 sps:$4 sm:$0xff]  }
 0x264   :  { %6241 = vmatprep.subr.bf16.mxu0 %v12745_v31  ;;  %6446 = vmatprep.subr.bf16.mxu1 %v12748_v32  ;;  %v12815_v31 = vld [vmem:[%s17613_s1 + $0x1480] ss:$16 sps:$4 sm:$0xff]   ;;  %v12818_v32 = vld [vmem:[%s17613_s1 + $0x1488] ss:$16 sps:$4 sm:$0xff]  }
 0x267   :  { %6242 = vmatpush1.bf16.msra.mxu0 %v12743_v33  ;;  %6447 = vmatpush1.bf16.msra.mxu1 %v12746_v21  ;;  %v12823_v33 = vld [vmem:[%s17613_s1 + $0x14a4] ss:$16 sps:$4 sm:$0xff]   ;;  %v12826_v21 = vld [vmem:[%s17613_s1 + $0x14ac] ss:$16 sps:$4 sm:$0xff]  }
 0x268   :  { %6243 = vmatprep.subr.bf16.mxu0 %v12751_v35  ;;  %6448 = vmatprep.subr.bf16.mxu1 %v12754_v36  ;;  %v12821_v35 = vld [vmem:[%s17613_s1 + $0x14a0] ss:$16 sps:$4 sm:$0xff]   ;;  %v12824_v36 = vld [vmem:[%s17613_s1 + $0x14a8] ss:$16 sps:$4 sm:$0xff]  }
 0x26b   :  { %6244 = vmatpush1.bf16.msra.mxu0 %v12749_v37  ;;  %6449 = vmatpush1.bf16.msra.mxu1 %v12752_v38  ;;  %v12829_v37 = vld [vmem:[%s17613_s1 + $0x14c4] ss:$16 sps:$4 sm:$0xff]   ;;  %v12832_v38 = vld [vmem:[%s17613_s1 + $0x14cc] ss:$16 sps:$4 sm:$0xff]  }
 0x26c   :  { %6245 = vmatprep.subr.bf16.mxu0 %v12757_v39  ;;  %6450 = vmatprep.subr.bf16.mxu1 %v12760_v40  ;;  %v12827_v39 = vld [vmem:[%s17613_s1 + $0x14c0] ss:$16 sps:$4 sm:$0xff]   ;;  %v12830_v40 = vld [vmem:[%s17613_s1 + $0x14c8] ss:$16 sps:$4 sm:$0xff]  }
 0x26f   :  { %6246 = vmatpush1.bf16.msra.mxu0 %v12755_v41  ;;  %6451 = vmatpush1.bf16.msra.mxu1 %v12758_v42  ;;  %v12835_v41 = vld [vmem:[%s17613_s1 + $0x14e4] ss:$16 sps:$4 sm:$0xff]   ;;  %v12838_v42 = vld [vmem:[%s17613_s1 + $0x14ec] ss:$16 sps:$4 sm:$0xff]  }
 0x270   :  { %6247 = vmatprep.subr.bf16.mxu0 %v12763_v43  ;;  %6452 = vmatprep.subr.bf16.mxu1 %v12766_v44  ;;  %v12833_v43 = vld [vmem:[%s17613_s1 + $0x14e0] ss:$16 sps:$4 sm:$0xff]   ;;  %v12836_v44 = vld [vmem:[%s17613_s1 + $0x14e8] ss:$16 sps:$4 sm:$0xff]  }
 0x273   :  { %6248 = vmatpush1.bf16.msra.mxu0 %v12761_v45  ;;  %6453 = vmatpush1.bf16.msra.mxu1 %v12764_v46  ;;  %v12841_v45 = vld [vmem:[%s17613_s1 + $0x1504] ss:$16 sps:$4 sm:$0xff]   ;;  %v12844_v46 = vld [vmem:[%s17613_s1 + $0x150c] ss:$16 sps:$4 sm:$0xff]  }
 0x274   :  { %6249 = vmatprep.subr.bf16.mxu0 %v12769_v47  ;;  %6454 = vmatprep.subr.bf16.mxu1 %v12772_v49  ;;  %v12839_v47 = vld [vmem:[%s17613_s1 + $0x1500] ss:$16 sps:$4 sm:$0xff]   ;;  %v12842_v49 = vld [vmem:[%s17613_s1 + $0x1508] ss:$16 sps:$4 sm:$0xff]  }
 0x277   :  { %6250 = vmatpush1.bf16.msra.mxu0 %v12767_v50  ;;  %6455 = vmatpush1.bf16.msra.mxu1 %v12770_v51  ;;  %v12847_v50 = vld [vmem:[%s17613_s1 + $0x1524] ss:$16 sps:$4 sm:$0xff]   ;;  %v12850_v51 = vld [vmem:[%s17613_s1 + $0x152c] ss:$16 sps:$4 sm:$0xff]  }
 0x278   :  { %6251 = vmatprep.subr.bf16.mxu0 %v12775_v52  ;;  %6456 = vmatprep.subr.bf16.mxu1 %v12778_v53  ;;  %v12845_v52 = vld [vmem:[%s17613_s1 + $0x1520] ss:$16 sps:$4 sm:$0xff]   ;;  %v12848_v53 = vld [vmem:[%s17613_s1 + $0x1528] ss:$16 sps:$4 sm:$0xff]  }
 0x27b   :  { %6252 = vmatpush1.bf16.msra.mxu0 %v12773_v54  ;;  %6457 = vmatpush1.bf16.msra.mxu1 %v12776_v55  ;;  %v12853_v54 = vld [vmem:[%s17613_s1 + $0x1544] ss:$16 sps:$4 sm:$0xff]   ;;  %v12856_v55 = vld [vmem:[%s17613_s1 + $0x154c] ss:$16 sps:$4 sm:$0xff]  }
 0x27c   :  { %6253 = vmatprep.subr.bf16.mxu0 %v12781_v56  ;;  %6458 = vmatprep.subr.bf16.mxu1 %v12784_v57  ;;  %v12851_v56 = vld [vmem:[%s17613_s1 + $0x1540] ss:$16 sps:$4 sm:$0xff]   ;;  %v12854_v57 = vld [vmem:[%s17613_s1 + $0x1548] ss:$16 sps:$4 sm:$0xff]  }
 0x27f   :  { %6254 = vmatpush1.bf16.msra.mxu0 %v12779_v58  ;;  %6459 = vmatpush1.bf16.msra.mxu1 %v12782_v59  ;;  %v12859_v58 = vld [vmem:[%s17613_s1 + $0x1564] ss:$16 sps:$4 sm:$0xff]   ;;  %v12862_v59 = vld [vmem:[%s17613_s1 + $0x156c] ss:$16 sps:$4 sm:$0xff]  }
 0x280   :  { %6255 = vmatprep.subr.bf16.mxu0 %v12787_v60  ;;  %6460 = vmatprep.subr.bf16.mxu1 %v12790_v61  ;;  %v12857_v60 = vld [vmem:[%s17613_s1 + $0x1560] ss:$16 sps:$4 sm:$0xff]   ;;  %v12860_v61 = vld [vmem:[%s17613_s1 + $0x1568] ss:$16 sps:$4 sm:$0xff]  }
 0x283   :  { %6256 = vmatpush1.bf16.msra.mxu0 %v12785_v62  ;;  %6461 = vmatpush1.bf16.msra.mxu1 %v12788_v63  ;;  %v12865_v62 = vld [vmem:[%s17613_s1 + $0x1584] ss:$16 sps:$4 sm:$0xff]   ;;  %v12868_v63 = vld [vmem:[%s17613_s1 + $0x158c] ss:$16 sps:$4 sm:$0xff]  }
 0x284   :  { %6257 = vmatprep.subr.bf16.mxu0 %v12793_v0  ;;  %6462 = vmatprep.subr.bf16.mxu1 %v12796_v1  ;;  %v12863_v0 = vld [vmem:[%s17613_s1 + $0x1580] ss:$16 sps:$4 sm:$0xff]   ;;  %v12866_v1 = vld [vmem:[%s17613_s1 + $0x1588] ss:$16 sps:$4 sm:$0xff]  }
 0x287   :  { %6258 = vmatpush1.bf16.msra.mxu0 %v12791_v2  ;;  %6463 = vmatpush1.bf16.msra.mxu1 %v12794_v3  ;;  %v12871_v2 = vld [vmem:[%s17613_s1 + $0x15a4] ss:$16 sps:$4 sm:$0xff]   ;;  %v12874_v3 = vld [vmem:[%s17613_s1 + $0x15ac] ss:$16 sps:$4 sm:$0xff]  }
 0x288   :  { %6259 = vmatprep.subr.bf16.mxu0 %v12799_v4  ;;  %6464 = vmatprep.subr.bf16.mxu1 %v12802_v6  ;;  %v12869_v4 = vld [vmem:[%s17613_s1 + $0x15a0] ss:$16 sps:$4 sm:$0xff]   ;;  %v12872_v6 = vld [vmem:[%s17613_s1 + $0x15a8] ss:$16 sps:$4 sm:$0xff]  }
 0x28b   :  { %6260 = vmatpush1.bf16.msra.mxu0 %v12797_v7  ;;  %6465 = vmatpush1.bf16.msra.mxu1 %v12800_v8  ;;  %v12877_v7 = vld [vmem:[%s17613_s1 + $0x15c4] ss:$16 sps:$4 sm:$0xff]   ;;  %v12880_v8 = vld [vmem:[%s17613_s1 + $0x15cc] ss:$16 sps:$4 sm:$0xff]  }
 0x28c   :  { %6261 = vmatprep.subr.bf16.mxu0 %v12805_v9  ;;  %6466 = vmatprep.subr.bf16.mxu1 %v12808_v11  ;;  %v12875_v9 = vld [vmem:[%s17613_s1 + $0x15c0] ss:$16 sps:$4 sm:$0xff]   ;;  %v12878_v11 = vld [vmem:[%s17613_s1 + $0x15c8] ss:$16 sps:$4 sm:$0xff]  }
 0x28f   :  { %6262 = vmatpush1.bf16.msra.mxu0 %v12803_v12  ;;  %6467 = vmatpush1.bf16.msra.mxu1 %v12806_v14  ;;  %v12883_v12 = vld [vmem:[%s17613_s1 + $0x15e4] ss:$16 sps:$4 sm:$0xff]   ;;  %v12886_v14 = vld [vmem:[%s17613_s1 + $0x15ec] ss:$16 sps:$4 sm:$0xff]  }
 0x290   :  { %6272 = vmatprep.subr.bf16.mxu0 %v12811_v23  ;;  %6477 = vmatprep.subr.bf16.mxu1 %v12814_v24  ;;  %v12881_v23 = vld [vmem:[%s17613_s1 + $0x15e0] ss:$16 sps:$4 sm:$0xff]   ;;  %v12884_v24 = vld [vmem:[%s17613_s1 + $0x15e8] ss:$16 sps:$4 sm:$0xff]  }
 0x292   :  { %6264 = vmatmul.mubr.bf16.vlgmr.msra.gmra.mrb[8].mxu0 %v13905_v5  ;;  %6469 = vmatmul.mubr.bf16.vlgmr.msra.gmra.mrb[8].mxu1 %v13905_v5 }
 0x293   :  { %6273 = vmatpush1.bf16.msra.mxu0 %v12809_v25  ;;  %6478 = vmatpush1.bf16.msra.mxu1 %v12812_v26  ;;  %v12889_v25 = vld [vmem:[%s17613_s1 + $0x1604] ss:$16 sps:$4 sm:$0xff]   ;;  %v12892_v26 = vld [vmem:[%s17613_s1 + $0x160c] ss:$16 sps:$4 sm:$0xff]  }
 0x294   :  { %6274 = vmatprep.subr.bf16.mxu0 %v12817_v27  ;;  %6479 = vmatprep.subr.bf16.mxu1 %v12820_v28  ;;  %v12887_v27 = vld [vmem:[%s17613_s1 + $0x1600] ss:$16 sps:$4 sm:$0xff]   ;;  %v12890_v28 = vld [vmem:[%s17613_s1 + $0x1608] ss:$16 sps:$4 sm:$0xff]  }
 0x295   :  { %6304 = vmatprep.mubr.bf16.mxu0 %v13985_v30  ;;  %6509 = vmatprep.mubr.bf16.mxu1 %v13985_v30 }
 0x297   :  { %6275 = vmatpush1.bf16.msra.mxu0 %v12815_v31  ;;  %6480 = vmatpush1.bf16.msra.mxu1 %v12818_v32  ;;  %v12895_v31 = vld [vmem:[%s17613_s1 + $0x1624] ss:$16 sps:$4 sm:$0xff]   ;;  %v12898_v32 = vld [vmem:[%s17613_s1 + $0x162c] ss:$16 sps:$4 sm:$0xff]  }
 0x298   :  { %6276 = vmatprep.subr.bf16.mxu0 %v12823_v33  ;;  %6481 = vmatprep.subr.bf16.mxu1 %v12826_v21  ;;  %v12893_v33 = vld [vmem:[%s17613_s1 + $0x1620] ss:$16 sps:$4 sm:$0xff]   ;;  %v12896_v21 = vld [vmem:[%s17613_s1 + $0x1628] ss:$16 sps:$4 sm:$0xff]  }
 0x29b   :  { %6277 = vmatpush1.bf16.msra.mxu0 %v12821_v35  ;;  %6482 = vmatpush1.bf16.msra.mxu1 %v12824_v36  ;;  %v12901_v35 = vld [vmem:[%s17613_s1 + $0x1644] ss:$16 sps:$4 sm:$0xff]   ;;  %v12904_v36 = vld [vmem:[%s17613_s1 + $0x164c] ss:$16 sps:$4 sm:$0xff]  }
 0x29c   :  { %6278 = vmatprep.subr.bf16.mxu0 %v12829_v37  ;;  %6483 = vmatprep.subr.bf16.mxu1 %v12832_v38  ;;  %v12899_v37 = vld [vmem:[%s17613_s1 + $0x1640] ss:$16 sps:$4 sm:$0xff]   ;;  %v12902_v38 = vld [vmem:[%s17613_s1 + $0x1648] ss:$16 sps:$4 sm:$0xff]  }
 0x29f   :  { %6279 = vmatpush1.bf16.msra.mxu0 %v12827_v39  ;;  %6484 = vmatpush1.bf16.msra.mxu1 %v12830_v40  ;;  %v12907_v39 = vld [vmem:[%s17613_s1 + $0x1664] ss:$16 sps:$4 sm:$0xff]   ;;  %v12910_v40 = vld [vmem:[%s17613_s1 + $0x166c] ss:$16 sps:$4 sm:$0xff]  }
 0x2a0   :  { %6280 = vmatprep.subr.bf16.mxu0 %v12835_v41  ;;  %6485 = vmatprep.subr.bf16.mxu1 %v12838_v42  ;;  %v12905_v41 = vld [vmem:[%s17613_s1 + $0x1660] ss:$16 sps:$4 sm:$0xff]   ;;  %v12908_v42 = vld [vmem:[%s17613_s1 + $0x1668] ss:$16 sps:$4 sm:$0xff]  }
 0x2a3   :  { %6281 = vmatpush1.bf16.msra.mxu0 %v12833_v43  ;;  %6486 = vmatpush1.bf16.msra.mxu1 %v12836_v44  ;;  %v12913_v43 = vld [vmem:[%s17613_s1 + $0x1684] ss:$16 sps:$4 sm:$0xff]   ;;  %v12916_v44 = vld [vmem:[%s17613_s1 + $0x168c] ss:$16 sps:$4 sm:$0xff]  }
 0x2a4   :  { %6282 = vmatprep.subr.bf16.mxu0 %v12841_v45  ;;  %6487 = vmatprep.subr.bf16.mxu1 %v12844_v46  ;;  %v12911_v45 = vld [vmem:[%s17613_s1 + $0x1680] ss:$16 sps:$4 sm:$0xff]   ;;  %v12914_v46 = vld [vmem:[%s17613_s1 + $0x1688] ss:$16 sps:$4 sm:$0xff]  }
 0x2a7   :  { %6283 = vmatpush1.bf16.msra.mxu0 %v12839_v47  ;;  %6488 = vmatpush1.bf16.msra.mxu1 %v12842_v49  ;;  %v12919_v47 = vld [vmem:[%s17613_s1 + $0x16a4] ss:$16 sps:$4 sm:$0xff]   ;;  %v12922_v49 = vld [vmem:[%s17613_s1 + $0x16ac] ss:$16 sps:$4 sm:$0xff]  }
 0x2a8   :  { %6284 = vmatprep.subr.bf16.mxu0 %v12847_v50  ;;  %6489 = vmatprep.subr.bf16.mxu1 %v12850_v51  ;;  %v12917_v50 = vld [vmem:[%s17613_s1 + $0x16a0] ss:$16 sps:$4 sm:$0xff]   ;;  %v12920_v51 = vld [vmem:[%s17613_s1 + $0x16a8] ss:$16 sps:$4 sm:$0xff]  }
 0x2ab   :  { %6285 = vmatpush1.bf16.msra.mxu0 %v12845_v52  ;;  %6490 = vmatpush1.bf16.msra.mxu1 %v12848_v53  ;;  %v12925_v52 = vld [vmem:[%s17613_s1 + $0x16c4] ss:$16 sps:$4 sm:$0xff]   ;;  %v12928_v53 = vld [vmem:[%s17613_s1 + $0x16cc] ss:$16 sps:$4 sm:$0xff]  }
 0x2ac   :  { %6286 = vmatprep.subr.bf16.mxu0 %v12853_v54  ;;  %6491 = vmatprep.subr.bf16.mxu1 %v12856_v55  ;;  %v12923_v54 = vld [vmem:[%s17613_s1 + $0x16c0] ss:$16 sps:$4 sm:$0xff]   ;;  %v12926_v55 = vld [vmem:[%s17613_s1 + $0x16c8] ss:$16 sps:$4 sm:$0xff]  }
 0x2af   :  { %6287 = vmatpush1.bf16.msra.mxu0 %v12851_v56  ;;  %6492 = vmatpush1.bf16.msra.mxu1 %v12854_v57  ;;  %v12931_v56 = vld [vmem:[%s17613_s1 + $0x16e4] ss:$16 sps:$4 sm:$0xff]   ;;  %v12934_v57 = vld [vmem:[%s17613_s1 + $0x16ec] ss:$16 sps:$4 sm:$0xff]  }
 0x2b0   :  { %6288 = vmatprep.subr.bf16.mxu0 %v12859_v58  ;;  %6493 = vmatprep.subr.bf16.mxu1 %v12862_v59  ;;  %v12929_v58 = vld [vmem:[%s17613_s1 + $0x16e0] ss:$16 sps:$4 sm:$0xff]   ;;  %v12932_v59 = vld [vmem:[%s17613_s1 + $0x16e8] ss:$16 sps:$4 sm:$0xff]  }
 0x2b3   :  { %6289 = vmatpush1.bf16.msra.mxu0 %v12857_v60  ;;  %6494 = vmatpush1.bf16.msra.mxu1 %v12860_v61  ;;  %v12937_v60 = vld [vmem:[%s17613_s1 + $0x1704] ss:$16 sps:$4 sm:$0xff]   ;;  %v12940_v61 = vld [vmem:[%s17613_s1 + $0x170c] ss:$16 sps:$4 sm:$0xff]  }
 0x2b4   :  { %6290 = vmatprep.subr.bf16.mxu0 %v12865_v62  ;;  %6495 = vmatprep.subr.bf16.mxu1 %v12868_v63  ;;  %v12935_v62 = vld [vmem:[%s17613_s1 + $0x1700] ss:$16 sps:$4 sm:$0xff]   ;;  %v12938_v63 = vld [vmem:[%s17613_s1 + $0x1708] ss:$16 sps:$4 sm:$0xff]  }
 0x2b7   :  { %6291 = vmatpush1.bf16.msra.mxu0 %v12863_v0  ;;  %6496 = vmatpush1.bf16.msra.mxu1 %v12866_v1  ;;  %v12943_v0 = vld [vmem:[%s17613_s1 + $0x1724] ss:$16 sps:$4 sm:$0xff]   ;;  %v12946_v1 = vld [vmem:[%s17613_s1 + $0x172c] ss:$16 sps:$4 sm:$0xff]  }
 0x2b8   :  { %6292 = vmatprep.subr.bf16.mxu0 %v12871_v2  ;;  %6497 = vmatprep.subr.bf16.mxu1 %v12874_v3  ;;  %v12941_v2 = vld [vmem:[%s17613_s1 + $0x1720] ss:$16 sps:$4 sm:$0xff]   ;;  %v12944_v3 = vld [vmem:[%s17613_s1 + $0x1728] ss:$16 sps:$4 sm:$0xff]  }
 0x2bb   :  { %6293 = vmatpush1.bf16.msra.mxu0 %v12869_v4  ;;  %6498 = vmatpush1.bf16.msra.mxu1 %v12872_v6  ;;  %v12949_v4 = vld [vmem:[%s17613_s1 + $0x1744] ss:$16 sps:$4 sm:$0xff]   ;;  %v12952_v6 = vld [vmem:[%s17613_s1 + $0x174c] ss:$16 sps:$4 sm:$0xff]  }
 0x2bc   :  { %6294 = vmatprep.subr.bf16.mxu0 %v12877_v7  ;;  %6499 = vmatprep.subr.bf16.mxu1 %v12880_v8  ;;  %v12947_v7 = vld [vmem:[%s17613_s1 + $0x1740] ss:$16 sps:$4 sm:$0xff]   ;;  %v12950_v8 = vld [vmem:[%s17613_s1 + $0x1748] ss:$16 sps:$4 sm:$0xff]  }
 0x2bf   :  { %6295 = vmatpush1.bf16.msra.mxu0 %v12875_v9  ;;  %6500 = vmatpush1.bf16.msra.mxu1 %v12878_v11  ;;  %v12955_v9 = vld [vmem:[%s17613_s1 + $0x1764] ss:$16 sps:$4 sm:$0xff]   ;;  %v12958_v11 = vld [vmem:[%s17613_s1 + $0x176c] ss:$16 sps:$4 sm:$0xff]  }
 0x2c0   :  { %6296 = vmatprep.subr.bf16.mxu0 %v12883_v12  ;;  %6501 = vmatprep.subr.bf16.mxu1 %v12886_v14  ;;  %v12953_v12 = vld [vmem:[%s17613_s1 + $0x1760] ss:$16 sps:$4 sm:$0xff]   ;;  %v12956_v14 = vld [vmem:[%s17613_s1 + $0x1768] ss:$16 sps:$4 sm:$0xff]  }
 0x2c3   :  { %6297 = vmatpush1.bf16.msra.mxu0 %v12881_v23  ;;  %6502 = vmatpush1.bf16.msra.mxu1 %v12884_v24  ;;  %v12961_v23 = vld [vmem:[%s17613_s1 + $0x1784] ss:$16 sps:$4 sm:$0xff]   ;;  %v12964_v24 = vld [vmem:[%s17613_s1 + $0x178c] ss:$16 sps:$4 sm:$0xff]  }
 0x2c4   :  { %6298 = vmatprep.subr.bf16.mxu0 %v12889_v25  ;;  %6503 = vmatprep.subr.bf16.mxu1 %v12892_v26  ;;  %v12959_v25 = vld [vmem:[%s17613_s1 + $0x1780] ss:$16 sps:$4 sm:$0xff]   ;;  %v12962_v26 = vld [vmem:[%s17613_s1 + $0x1788] ss:$16 sps:$4 sm:$0xff]  }
 0x2c7   :  { %6299 = vmatpush1.bf16.msra.mxu0 %v12887_v27  ;;  %6504 = vmatpush1.bf16.msra.mxu1 %v12890_v28  ;;  %v12967_v27 = vld [vmem:[%s17613_s1 + $0x17a4] ss:$16 sps:$4 sm:$0xff]   ;;  %v12970_v28 = vld [vmem:[%s17613_s1 + $0x17ac] ss:$16 sps:$4 sm:$0xff]  }
 0x2c8   :  { %6300 = vmatprep.subr.bf16.mxu0 %v12895_v31  ;;  %6505 = vmatprep.subr.bf16.mxu1 %v12898_v32  ;;  %v12965_v31 = vld [vmem:[%s17613_s1 + $0x17a0] ss:$16 sps:$4 sm:$0xff]   ;;  %v12968_v32 = vld [vmem:[%s17613_s1 + $0x17a8] ss:$16 sps:$4 sm:$0xff]  }
 0x2cb   :  { %6301 = vmatpush1.bf16.msra.mxu0 %v12893_v33  ;;  %6506 = vmatpush1.bf16.msra.mxu1 %v12896_v21  ;;  %v12973_v33 = vld [vmem:[%s17613_s1 + $0x17c4] ss:$16 sps:$4 sm:$0xff]   ;;  %v12976_v21 = vld [vmem:[%s17613_s1 + $0x17cc] ss:$16 sps:$4 sm:$0xff]  }
 0x2cc   :  { %6302 = vmatprep.subr.bf16.mxu0 %v12901_v35  ;;  %6507 = vmatprep.subr.bf16.mxu1 %v12904_v36  ;;  %v12971_v35 = vld [vmem:[%s17613_s1 + $0x17c0] ss:$16 sps:$4 sm:$0xff]   ;;  %v12974_v36 = vld [vmem:[%s17613_s1 + $0x17c8] ss:$16 sps:$4 sm:$0xff]  }
 0x2cf   :  { %6303 = vmatpush1.bf16.msra.mxu0 %v12899_v37  ;;  %6508 = vmatpush1.bf16.msra.mxu1 %v12902_v38  ;;  %v12979_v37 = vld [vmem:[%s17613_s1 + $0x17e4] ss:$16 sps:$4 sm:$0xff]   ;;  %v12982_v38 = vld [vmem:[%s17613_s1 + $0x17ec] ss:$16 sps:$4 sm:$0xff]  }
 0x2d0   :  { %6313 = vmatprep.subr.bf16.mxu0 %v12907_v39  ;;  %6518 = vmatprep.subr.bf16.mxu1 %v12910_v40  ;;  %v12977_v39 = vld [vmem:[%s17613_s1 + $0x17e0] ss:$16 sps:$4 sm:$0xff]   ;;  %v12980_v40 = vld [vmem:[%s17613_s1 + $0x17e8] ss:$16 sps:$4 sm:$0xff]  }
 0x2d2   :  { %6305 = vmatmul.mubr.bf16.vlgmr.msra.gmra.mrb[8].mxu0 %v14114_v10  ;;  %6510 = vmatmul.mubr.bf16.vlgmr.msra.gmra.mrb[8].mxu1 %v14114_v10 }
 0x2d3   :  { %6314 = vmatpush1.bf16.msra.mxu0 %v12905_v41  ;;  %6519 = vmatpush1.bf16.msra.mxu1 %v12908_v42  ;;  %v12985_v41 = vld [vmem:[%s17613_s1 + $0x1804] ss:$16 sps:$4 sm:$0xff]   ;;  %v12988_v42 = vld [vmem:[%s17613_s1 + $0x180c] ss:$16 sps:$4 sm:$0xff]  }
 0x2d4   :  { %6315 = vmatprep.subr.bf16.mxu0 %v12913_v43  ;;  %6520 = vmatprep.subr.bf16.mxu1 %v12916_v44  ;;  %v12983_v43 = vld [vmem:[%s17613_s1 + $0x1800] ss:$16 sps:$4 sm:$0xff]   ;;  %v12986_v44 = vld [vmem:[%s17613_s1 + $0x1808] ss:$16 sps:$4 sm:$0xff]  }
 0x2d5   :  { %6345 = vmatprep.mubr.bf16.mxu0 %v14132_v15  ;;  %6550 = vmatprep.mubr.bf16.mxu1 %v14132_v15 }
 0x2d7   :  { %6316 = vmatpush1.bf16.msra.mxu0 %v12911_v45  ;;  %6521 = vmatpush1.bf16.msra.mxu1 %v12914_v46  ;;  %v12991_v45 = vld [vmem:[%s17613_s1 + $0x1824] ss:$16 sps:$4 sm:$0xff]   ;;  %v12994_v46 = vld [vmem:[%s17613_s1 + $0x182c] ss:$16 sps:$4 sm:$0xff]  }
 0x2d8   :  { %6317 = vmatprep.subr.bf16.mxu0 %v12919_v47  ;;  %6522 = vmatprep.subr.bf16.mxu1 %v12922_v49  ;;  %v12989_v47 = vld [vmem:[%s17613_s1 + $0x1820] ss:$16 sps:$4 sm:$0xff]   ;;  %v12992_v49 = vld [vmem:[%s17613_s1 + $0x1828] ss:$16 sps:$4 sm:$0xff]  }
 0x2db   :  { %6318 = vmatpush1.bf16.msra.mxu0 %v12917_v50  ;;  %6523 = vmatpush1.bf16.msra.mxu1 %v12920_v51  ;;  %v12997_v50 = vld [vmem:[%s17613_s1 + $0x1844] ss:$16 sps:$4 sm:$0xff]   ;;  %v13000_v51 = vld [vmem:[%s17613_s1 + $0x184c] ss:$16 sps:$4 sm:$0xff]  }
 0x2dc   :  { %6319 = vmatprep.subr.bf16.mxu0 %v12925_v52  ;;  %6524 = vmatprep.subr.bf16.mxu1 %v12928_v53  ;;  %v12995_v52 = vld [vmem:[%s17613_s1 + $0x1840] ss:$16 sps:$4 sm:$0xff]   ;;  %v12998_v53 = vld [vmem:[%s17613_s1 + $0x1848] ss:$16 sps:$4 sm:$0xff]  }
 0x2df   :  { %6320 = vmatpush1.bf16.msra.mxu0 %v12923_v54  ;;  %6525 = vmatpush1.bf16.msra.mxu1 %v12926_v55  ;;  %v13003_v54 = vld [vmem:[%s17613_s1 + $0x1864] ss:$16 sps:$4 sm:$0xff]   ;;  %v13006_v55 = vld [vmem:[%s17613_s1 + $0x186c] ss:$16 sps:$4 sm:$0xff]  }
 0x2e0   :  { %6321 = vmatprep.subr.bf16.mxu0 %v12931_v56  ;;  %6526 = vmatprep.subr.bf16.mxu1 %v12934_v57  ;;  %v13001_v56 = vld [vmem:[%s17613_s1 + $0x1860] ss:$16 sps:$4 sm:$0xff]   ;;  %v13004_v57 = vld [vmem:[%s17613_s1 + $0x1868] ss:$16 sps:$4 sm:$0xff]  }
 0x2e3   :  { %6322 = vmatpush1.bf16.msra.mxu0 %v12929_v58  ;;  %6527 = vmatpush1.bf16.msra.mxu1 %v12932_v59  ;;  %v13009_v58 = vld [vmem:[%s17613_s1 + $0x1884] ss:$16 sps:$4 sm:$0xff]   ;;  %v13012_v59 = vld [vmem:[%s17613_s1 + $0x188c] ss:$16 sps:$4 sm:$0xff]  }
 0x2e4   :  { %6323 = vmatprep.subr.bf16.mxu0 %v12937_v60  ;;  %6528 = vmatprep.subr.bf16.mxu1 %v12940_v61  ;;  %v13007_v60 = vld [vmem:[%s17613_s1 + $0x1880] ss:$16 sps:$4 sm:$0xff]   ;;  %v13010_v61 = vld [vmem:[%s17613_s1 + $0x1888] ss:$16 sps:$4 sm:$0xff]  }
 0x2e7   :  { %6324 = vmatpush1.bf16.msra.mxu0 %v12935_v62  ;;  %6529 = vmatpush1.bf16.msra.mxu1 %v12938_v63  ;;  %v13015_v62 = vld [vmem:[%s17613_s1 + $0x18a4] ss:$16 sps:$4 sm:$0xff]   ;;  %v13018_v63 = vld [vmem:[%s17613_s1 + $0x18ac] ss:$16 sps:$4 sm:$0xff]  }
 0x2e8   :  { %6325 = vmatprep.subr.bf16.mxu0 %v12943_v0  ;;  %6530 = vmatprep.subr.bf16.mxu1 %v12946_v1  ;;  %v13013_v0 = vld [vmem:[%s17613_s1 + $0x18a0] ss:$16 sps:$4 sm:$0xff]   ;;  %v13016_v1 = vld [vmem:[%s17613_s1 + $0x18a8] ss:$16 sps:$4 sm:$0xff]  }
 0x2eb   :  { %6326 = vmatpush1.bf16.msra.mxu0 %v12941_v2  ;;  %6531 = vmatpush1.bf16.msra.mxu1 %v12944_v3  ;;  %v13021_v2 = vld [vmem:[%s17613_s1 + $0x18c4] ss:$16 sps:$4 sm:$0xff]   ;;  %v13024_v3 = vld [vmem:[%s17613_s1 + $0x18cc] ss:$16 sps:$4 sm:$0xff]  }
 0x2ec   :  { %6327 = vmatprep.subr.bf16.mxu0 %v12949_v4  ;;  %6532 = vmatprep.subr.bf16.mxu1 %v12952_v6  ;;  %v13019_v4 = vld [vmem:[%s17613_s1 + $0x18c0] ss:$16 sps:$4 sm:$0xff]   ;;  %v13022_v6 = vld [vmem:[%s17613_s1 + $0x18c8] ss:$16 sps:$4 sm:$0xff]  }
 0x2ef   :  { %6328 = vmatpush1.bf16.msra.mxu0 %v12947_v7  ;;  %6533 = vmatpush1.bf16.msra.mxu1 %v12950_v8  ;;  %v13027_v7 = vld [vmem:[%s17613_s1 + $0x18e4] ss:$16 sps:$4 sm:$0xff]   ;;  %v13030_v8 = vld [vmem:[%s17613_s1 + $0x18ec] ss:$16 sps:$4 sm:$0xff]  }
 0x2f0   :  { %6329 = vmatprep.subr.bf16.mxu0 %v12955_v9  ;;  %6534 = vmatprep.subr.bf16.mxu1 %v12958_v11  ;;  %v13025_v9 = vld [vmem:[%s17613_s1 + $0x18e0] ss:$16 sps:$4 sm:$0xff]   ;;  %v13028_v11 = vld [vmem:[%s17613_s1 + $0x18e8] ss:$16 sps:$4 sm:$0xff]  }
 0x2f3   :  { %6330 = vmatpush1.bf16.msra.mxu0 %v12953_v12  ;;  %6535 = vmatpush1.bf16.msra.mxu1 %v12956_v14  ;;  %v13033_v12 = vld [vmem:[%s17613_s1 + $0x1904] ss:$16 sps:$4 sm:$0xff]   ;;  %v13036_v14 = vld [vmem:[%s17613_s1 + $0x190c] ss:$16 sps:$4 sm:$0xff]  }
 0x2f4   :  { %6331 = vmatprep.subr.bf16.mxu0 %v12961_v23  ;;  %6536 = vmatprep.subr.bf16.mxu1 %v12964_v24  ;;  %v13031_v23 = vld [vmem:[%s17613_s1 + $0x1900] ss:$16 sps:$4 sm:$0xff]   ;;  %v13034_v24 = vld [vmem:[%s17613_s1 + $0x1908] ss:$16 sps:$4 sm:$0xff]  }
 0x2f7   :  { %6332 = vmatpush1.bf16.msra.mxu0 %v12959_v25  ;;  %6537 = vmatpush1.bf16.msra.mxu1 %v12962_v26  ;;  %v13039_v25 = vld [vmem:[%s17613_s1 + $0x1924] ss:$16 sps:$4 sm:$0xff]   ;;  %v13042_v26 = vld [vmem:[%s17613_s1 + $0x192c] ss:$16 sps:$4 sm:$0xff]  }
 0x2f8   :  { %6333 = vmatprep.subr.bf16.mxu0 %v12967_v27  ;;  %6538 = vmatprep.subr.bf16.mxu1 %v12970_v28 }
 0x2fb   :  { %6334 = vmatpush1.bf16.msra.mxu0 %v12965_v31  ;;  %6539 = vmatpush1.bf16.msra.mxu1 %v12968_v32 }
 0x2fc   :  { %6335 = vmatprep.subr.bf16.mxu0 %v12973_v33  ;;  %6540 = vmatprep.subr.bf16.mxu1 %v12976_v21 }
 0x2ff   :  { %6336 = vmatpush1.bf16.msra.mxu0 %v12971_v35  ;;  %6541 = vmatpush1.bf16.msra.mxu1 %v12974_v36 }
 0x300   :  { %6337 = vmatprep.subr.bf16.mxu0 %v12979_v37  ;;  %6542 = vmatprep.subr.bf16.mxu1 %v12982_v38 }
 0x303   :  { %6338 = vmatpush1.bf16.msra.mxu0 %v12977_v39  ;;  %6543 = vmatpush1.bf16.msra.mxu1 %v12980_v40  ;;  %v13037_v39 = vld [vmem:[%s17613_s1 + $0x1920] ss:$16 sps:$4 sm:$0xff]   ;;  %v13040_v40 = vld [vmem:[%s17613_s1 + $0x1928] ss:$16 sps:$4 sm:$0xff]  }
 0x304   :  { %6339 = vmatprep.subr.bf16.mxu0 %v12985_v41  ;;  %6544 = vmatprep.subr.bf16.mxu1 %v12988_v42 }
 0x307   :  { %6340 = vmatpush1.bf16.msra.mxu0 %v12983_v43  ;;  %6545 = vmatpush1.bf16.msra.mxu1 %v12986_v44  ;;  %v13045_v43 = vld [vmem:[%s17613_s1 + $0x1944] ss:$16 sps:$4 sm:$0xff]   ;;  %v13048_v44 = vld [vmem:[%s17613_s1 + $0x194c] ss:$16 sps:$4 sm:$0xff]  }
 0x308   :  { %6341 = vmatprep.subr.bf16.mxu0 %v12991_v45  ;;  %6546 = vmatprep.subr.bf16.mxu1 %v12994_v46  ;;  %v13043_v45 = vld [vmem:[%s17613_s1 + $0x1940] ss:$16 sps:$4 sm:$0xff]   ;;  %v13046_v46 = vld [vmem:[%s17613_s1 + $0x1948] ss:$16 sps:$4 sm:$0xff]  }
 0x30b   :  { %6342 = vmatpush1.bf16.msra.mxu0 %v12989_v47  ;;  %6547 = vmatpush1.bf16.msra.mxu1 %v12992_v49  ;;  %v13051_v47 = vld [vmem:[%s17613_s1 + $0x1964] ss:$16 sps:$4 sm:$0xff]   ;;  %v13054_v49 = vld [vmem:[%s17613_s1 + $0x196c] ss:$16 sps:$4 sm:$0xff]  }
 0x30c   :  { %6343 = vmatprep.subr.bf16.mxu0 %v12997_v50  ;;  %6548 = vmatprep.subr.bf16.mxu1 %v13000_v51  ;;  %v13049_v50 = vld [vmem:[%s17613_s1 + $0x1960] ss:$16 sps:$4 sm:$0xff]   ;;  %v13052_v51 = vld [vmem:[%s17613_s1 + $0x1968] ss:$16 sps:$4 sm:$0xff]  }
 0x30f   :  { %6344 = vmatpush1.bf16.msra.mxu0 %v12995_v52  ;;  %6549 = vmatpush1.bf16.msra.mxu1 %v12998_v53  ;;  %v13057_v52 = vld [vmem:[%s17613_s1 + $0x1984] ss:$16 sps:$4 sm:$0xff]   ;;  %v13060_v53 = vld [vmem:[%s17613_s1 + $0x198c] ss:$16 sps:$4 sm:$0xff]  }
 0x310   :  { %6354 = vmatprep.subr.bf16.mxu0 %v13003_v54  ;;  %6559 = vmatprep.subr.bf16.mxu1 %v13006_v55  ;;  %v13055_v54 = vld [vmem:[%s17613_s1 + $0x1980] ss:$16 sps:$4 sm:$0xff]   ;;  %v13058_v55 = vld [vmem:[%s17613_s1 + $0x1988] ss:$16 sps:$4 sm:$0xff]  }
 0x312   :  { %6346 = vmatmul.mubr.bf16.vlgmr.msra.gmra.mrb[8].mxu0 %v14326_v20  ;;  %6551 = vmatmul.mubr.bf16.vlgmr.msra.gmra.mrb[8].mxu1 %v14326_v20 }
 0x313   :  { %6355 = vmatpush1.bf16.msra.mxu0 %v13001_v56  ;;  %6560 = vmatpush1.bf16.msra.mxu1 %v13004_v57  ;;  %v13063_v56 = vld [vmem:[%s17613_s1 + $0x19a4] ss:$16 sps:$4 sm:$0xff]   ;;  %v13066_v57 = vld [vmem:[%s17613_s1 + $0x19ac] ss:$16 sps:$4 sm:$0xff]  }
 0x314   :  { %6356 = vmatprep.subr.bf16.mxu0 %v13009_v58  ;;  %6561 = vmatprep.subr.bf16.mxu1 %v13012_v59  ;;  %v13061_v58 = vld [vmem:[%s17613_s1 + $0x19a0] ss:$16 sps:$4 sm:$0xff]   ;;  %v13064_v59 = vld [vmem:[%s17613_s1 + $0x19a8] ss:$16 sps:$4 sm:$0xff]  }
 0x315   :  { %6386 = vmatprep.mubr.bf16.mxu0 %v14341_v13  ;;  %6591 = vmatprep.mubr.bf16.mxu1 %v14341_v13 }
 0x317   :  { %6357 = vmatpush1.bf16.msra.mxu0 %v13007_v60  ;;  %6562 = vmatpush1.bf16.msra.mxu1 %v13010_v61  ;;  %v13069_v60 = vld [vmem:[%s17613_s1 + $0x19c4] ss:$16 sps:$4 sm:$0xff]   ;;  %v13072_v61 = vld [vmem:[%s17613_s1 + $0x19cc] ss:$16 sps:$4 sm:$0xff]  }
 0x318   :  { %6358 = vmatprep.subr.bf16.mxu0 %v13015_v62  ;;  %6563 = vmatprep.subr.bf16.mxu1 %v13018_v63  ;;  %v13067_v62 = vld [vmem:[%s17613_s1 + $0x19c0] ss:$16 sps:$4 sm:$0xff]   ;;  %v13070_v63 = vld [vmem:[%s17613_s1 + $0x19c8] ss:$16 sps:$4 sm:$0xff]  }
 0x31b   :  { %6359 = vmatpush1.bf16.msra.mxu0 %v13013_v0  ;;  %6564 = vmatpush1.bf16.msra.mxu1 %v13016_v1  ;;  %v13075_v0 = vld [vmem:[%s17613_s1 + $0x19e4] ss:$16 sps:$4 sm:$0xff]   ;;  %v13078_v1 = vld [vmem:[%s17613_s1 + $0x19ec] ss:$16 sps:$4 sm:$0xff]  }
 0x31c   :  { %6360 = vmatprep.subr.bf16.mxu0 %v13021_v2  ;;  %6565 = vmatprep.subr.bf16.mxu1 %v13024_v3  ;;  %v13073_v2 = vld [vmem:[%s17613_s1 + $0x19e0] ss:$16 sps:$4 sm:$0xff]   ;;  %v13076_v3 = vld [vmem:[%s17613_s1 + $0x19e8] ss:$16 sps:$4 sm:$0xff]  }
 0x31f   :  { %6361 = vmatpush1.bf16.msra.mxu0 %v13019_v4  ;;  %6566 = vmatpush1.bf16.msra.mxu1 %v13022_v6  ;;  %v13081_v4 = vld [vmem:[%s17613_s1 + $0x1a04] ss:$16 sps:$4 sm:$0xff]   ;;  %v13084_v6 = vld [vmem:[%s17613_s1 + $0x1a0c] ss:$16 sps:$4 sm:$0xff]  }
 0x320   :  { %6362 = vmatprep.subr.bf16.mxu0 %v13027_v7  ;;  %6567 = vmatprep.subr.bf16.mxu1 %v13030_v8  ;;  %v13079_v7 = vld [vmem:[%s17613_s1 + $0x1a00] ss:$16 sps:$4 sm:$0xff]   ;;  %v13082_v8 = vld [vmem:[%s17613_s1 + $0x1a08] ss:$16 sps:$4 sm:$0xff]  }
 0x323   :  { %6363 = vmatpush1.bf16.msra.mxu0 %v13025_v9  ;;  %6568 = vmatpush1.bf16.msra.mxu1 %v13028_v11  ;;  %v13087_v9 = vld [vmem:[%s17613_s1 + $0x1a24] ss:$16 sps:$4 sm:$0xff]   ;;  %v13090_v11 = vld [vmem:[%s17613_s1 + $0x1a2c] ss:$16 sps:$4 sm:$0xff]  }
 0x324   :  { %6364 = vmatprep.subr.bf16.mxu0 %v13033_v12  ;;  %6569 = vmatprep.subr.bf16.mxu1 %v13036_v14  ;;  %v13085_v12 = vld [vmem:[%s17613_s1 + $0x1a20] ss:$16 sps:$4 sm:$0xff]   ;;  %v13088_v14 = vld [vmem:[%s17613_s1 + $0x1a28] ss:$16 sps:$4 sm:$0xff]  }
 0x325   :  { %v16248_v27 = vpop.f32.mrb[4].mxu0  ;;  %v16250_v28 = vpop.f32.mrb[4].mxu1 }
 0x326   :  { %v4450_v31 = vmax.f32 %v15332_v17, %v16248_v27  ;;  %v4452_v32 = vmax.f32 %v15334_v18, %v16250_v28  ;;  %v16256_v33 = vpop.f32.mrb[5].mxu0  ;;  %v16258_v21 = vpop.f32.mrb[5].mxu1  ;;  %v13479_v18 = vld [vmem:[%s17613_s1 + $0x2250] ss:$16 sps:$4 sm:$0xff]   ;;  %v13482_v28 = vld [vmem:[%s17613_s1 + $0x2258] ss:$16 sps:$4 sm:$0xff]  }
 0x327   :  { %v4451_v35 = vmax.f32 %v15336_v19, %v16256_v33  ;;  %v4453_v36 = vmax.f32 %v15338_v22, %v16258_v21  ;;  %v4242_v37 = vpop.f32.mrb[6].mxu0  ;;  %v4447_v38 = vpop.f32.mrb[6].mxu1  ;;  %6365 = vmatpush1.bf16.msra.mxu0 %v13031_v23  ;;  %6570 = vmatpush1.bf16.msra.mxu1 %v13034_v24  ;;  %v13093_v23 = vld [vmem:[%s17613_s1 + $0x1a44] ss:$16 sps:$4 sm:$0xff]   ;;  %v13096_v24 = vld [vmem:[%s17613_s1 + $0x1a4c] ss:$16 sps:$4 sm:$0xff]  }
 0x328   :  { %v4243_v41 = vpop.f32.mrb[7].mxu0  ;;  %v4448_v42 = vpop.f32.mrb[7].mxu1  ;;  %6366 = vmatprep.subr.bf16.mxu0 %v13039_v25  ;;  %6571 = vmatprep.subr.bf16.mxu1 %v13042_v26  ;;  %v13091_v25 = vld [vmem:[%s17613_s1 + $0x1a40] ss:$16 sps:$4 sm:$0xff]   ;;  %v13094_v26 = vld [vmem:[%s17613_s1 + $0x1a48] ss:$16 sps:$4 sm:$0xff]  }
 0x329   :  { %v13099_v37 = vld [vmem:[%s17613_s1 + $0x1a64] ss:$16 sps:$4 sm:$0xff]   ;;  %v13102_v38 = vld [vmem:[%s17613_s1 + $0x1a6c] ss:$16 sps:$4 sm:$0xff]   ;;  %v13485_v33 = vld [vmem:[%s17613_s1 + $0x2270] ss:$16 sps:$4 sm:$0xff]  }
 0x32a   :  { %v13105_v41 = vld [vmem:[%s17613_s1 + $0x1a84] ss:$16 sps:$4 sm:$0xff]   ;;  %v13108_v42 = vld [vmem:[%s17613_s1 + $0x1a8c] ss:$16 sps:$4 sm:$0xff]   ;;  %v13488_v21 = vld [vmem:[%s17613_s1 + $0x2278] ss:$16 sps:$4 sm:$0xff]  }
 0x32b   :  { %6367 = vmatpush1.bf16.msra.mxu0 %v13037_v39  ;;  %6572 = vmatpush1.bf16.msra.mxu1 %v13040_v40  ;;  %v13097_v39 = vld [vmem:[%s17613_s1 + $0x1a60] ss:$16 sps:$4 sm:$0xff]   ;;  %v13100_v40 = vld [vmem:[%s17613_s1 + $0x1a68] ss:$16 sps:$4 sm:$0xff]   ;;  %v13487_v22 = vld [vmem:[%s17613_s1 + $0x2274] ss:$16 sps:$4 sm:$0xff]  }
 0x32c   :  { %6368 = vmatprep.subr.bf16.mxu0 %v13045_v43  ;;  %6573 = vmatprep.subr.bf16.mxu1 %v13048_v44  ;;  %v13103_v43 = vld [vmem:[%s17613_s1 + $0x1a80] ss:$16 sps:$4 sm:$0xff]   ;;  %v13106_v44 = vld [vmem:[%s17613_s1 + $0x1a88] ss:$16 sps:$4 sm:$0xff]  }
 0x32f   :  { %6369 = vmatpush1.bf16.msra.mxu0 %v13043_v45  ;;  %6574 = vmatpush1.bf16.msra.mxu1 %v13046_v46  ;;  %v13111_v45 = vld [vmem:[%s17613_s1 + $0x1aa4] ss:$16 sps:$4 sm:$0xff]   ;;  %v13114_v46 = vld [vmem:[%s17613_s1 + $0x1aac] ss:$16 sps:$4 sm:$0xff]  }
 0x330   :  { %6370 = vmatprep.subr.bf16.mxu0 %v13051_v47  ;;  %6575 = vmatprep.subr.bf16.mxu1 %v13054_v49  ;;  %v13109_v47 = vld [vmem:[%s17613_s1 + $0x1aa0] ss:$16 sps:$4 sm:$0xff]   ;;  %v13112_v49 = vld [vmem:[%s17613_s1 + $0x1aa8] ss:$16 sps:$4 sm:$0xff]  }
 0x333   :  { %6371 = vmatpush1.bf16.msra.mxu0 %v13049_v50  ;;  %6576 = vmatpush1.bf16.msra.mxu1 %v13052_v51  ;;  %v13117_v50 = vld [vmem:[%s17613_s1 + $0x1ac4] ss:$16 sps:$4 sm:$0xff]   ;;  %v13120_v51 = vld [vmem:[%s17613_s1 + $0x1acc] ss:$16 sps:$4 sm:$0xff]  }
 0x334   :  { %6372 = vmatprep.subr.bf16.mxu0 %v13057_v52  ;;  %6577 = vmatprep.subr.bf16.mxu1 %v13060_v53  ;;  %v13115_v52 = vld [vmem:[%s17613_s1 + $0x1ac0] ss:$16 sps:$4 sm:$0xff]   ;;  %v13118_v53 = vld [vmem:[%s17613_s1 + $0x1ac8] ss:$16 sps:$4 sm:$0xff]  }
 0x337   :  { %6373 = vmatpush1.bf16.msra.mxu0 %v13055_v54  ;;  %6578 = vmatpush1.bf16.msra.mxu1 %v13058_v55  ;;  %v13123_v54 = vld [vmem:[%s17613_s1 + $0x1ae4] ss:$16 sps:$4 sm:$0xff]   ;;  %v13126_v55 = vld [vmem:[%s17613_s1 + $0x1aec] ss:$16 sps:$4 sm:$0xff]  }
 0x338   :  { %6374 = vmatprep.subr.bf16.mxu0 %v13063_v56  ;;  %6579 = vmatprep.subr.bf16.mxu1 %v13066_v57  ;;  %v13121_v56 = vld [vmem:[%s17613_s1 + $0x1ae0] ss:$16 sps:$4 sm:$0xff]   ;;  %v13124_v57 = vld [vmem:[%s17613_s1 + $0x1ae8] ss:$16 sps:$4 sm:$0xff]  }
 0x33b   :  { %6375 = vmatpush1.bf16.msra.mxu0 %v13061_v58  ;;  %6580 = vmatpush1.bf16.msra.mxu1 %v13064_v59  ;;  %v13129_v58 = vld [vmem:[%s17613_s1 + $0x1b04] ss:$16 sps:$4 sm:$0xff]   ;;  %v13132_v59 = vld [vmem:[%s17613_s1 + $0x1b0c] ss:$16 sps:$4 sm:$0xff]  }
 0x33c   :  { %6376 = vmatprep.subr.bf16.mxu0 %v13069_v60  ;;  %6581 = vmatprep.subr.bf16.mxu1 %v13072_v61  ;;  %v13127_v60 = vld [vmem:[%s17613_s1 + $0x1b00] ss:$16 sps:$4 sm:$0xff]   ;;  %v13130_v61 = vld [vmem:[%s17613_s1 + $0x1b08] ss:$16 sps:$4 sm:$0xff]  }
 0x33f   :  { %6377 = vmatpush1.bf16.msra.mxu0 %v13067_v62  ;;  %6582 = vmatpush1.bf16.msra.mxu1 %v13070_v63  ;;  %v13135_v62 = vld [vmem:[%s17613_s1 + $0x1b24] ss:$16 sps:$4 sm:$0xff]   ;;  %v13138_v63 = vld [vmem:[%s17613_s1 + $0x1b2c] ss:$16 sps:$4 sm:$0xff]  }
 0x340   :  { %6378 = vmatprep.subr.bf16.mxu0 %v13075_v0  ;;  %6583 = vmatprep.subr.bf16.mxu1 %v13078_v1  ;;  %v13133_v0 = vld [vmem:[%s17613_s1 + $0x1b20] ss:$16 sps:$4 sm:$0xff]   ;;  %v13136_v1 = vld [vmem:[%s17613_s1 + $0x1b28] ss:$16 sps:$4 sm:$0xff]  }
 0x343   :  { %6379 = vmatpush1.bf16.msra.mxu0 %v13073_v2  ;;  %6584 = vmatpush1.bf16.msra.mxu1 %v13076_v3  ;;  %v13141_v2 = vld [vmem:[%s17613_s1 + $0x1b44] ss:$16 sps:$4 sm:$0xff]   ;;  %v13144_v3 = vld [vmem:[%s17613_s1 + $0x1b4c] ss:$16 sps:$4 sm:$0xff]  }
 0x344   :  { %6380 = vmatprep.subr.bf16.mxu0 %v13081_v4  ;;  %6585 = vmatprep.subr.bf16.mxu1 %v13084_v6  ;;  %v13139_v4 = vld [vmem:[%s17613_s1 + $0x1b40] ss:$16 sps:$4 sm:$0xff]   ;;  %v13142_v6 = vld [vmem:[%s17613_s1 + $0x1b48] ss:$16 sps:$4 sm:$0xff]  }
 0x347   :  { %6381 = vmatpush1.bf16.msra.mxu0 %v13079_v7  ;;  %6586 = vmatpush1.bf16.msra.mxu1 %v13082_v8  ;;  %v13147_v7 = vld [vmem:[%s17613_s1 + $0x1b64] ss:$16 sps:$4 sm:$0xff]   ;;  %v13150_v8 = vld [vmem:[%s17613_s1 + $0x1b6c] ss:$16 sps:$4 sm:$0xff]  }
 0x348   :  { %6382 = vmatprep.subr.bf16.mxu0 %v13087_v9  ;;  %6587 = vmatprep.subr.bf16.mxu1 %v13090_v11  ;;  %v10640_v9 = vld [vmem:[%s17613_s1 + $0x1b80] sm:$0xff]  ;;  %v10641_v11 = vld [vmem:[%s17613_s1 + $0x1b88] sm:$0xff] }
 0x34b   :  { %6383 = vmatpush1.bf16.msra.mxu0 %v13085_v12  ;;  %6588 = vmatpush1.bf16.msra.mxu1 %v13088_v14  ;;  %v13145_v12 = vld [vmem:[%s17613_s1 + $0x1b60] ss:$16 sps:$4 sm:$0xff]   ;;  %v13148_v14 = vld [vmem:[%s17613_s1 + $0x1b68] ss:$16 sps:$4 sm:$0xff]  }
 0x34c   :  { %6384 = vmatprep.subr.bf16.mxu0 %v13093_v23  ;;  %6589 = vmatprep.subr.bf16.mxu1 %v13096_v24  ;;  %v10935_v23 = vcombine.high %v10640_v9, %v10640_v9  ;;  %v10937_v24 = vcombine.high %v10641_v11, %v10641_v11 }
 0x34f   :  { %6385 = vmatpush1.bf16.msra.mxu0 %v13091_v25  ;;  %6590 = vmatpush1.bf16.msra.mxu1 %v13094_v26  ;;  %v10934_v25 = vcombine.low %v10640_v9, %v10640_v9  ;;  %v10936_v26 = vcombine.low %v10641_v11, %v10641_v11  ;;  %v13208_v9 = vld [vmem:[%s17613_s1 + $0x1c9c] ss:$16 sps:$4 sm:$0xff]   ;;  %v13203_v11 = vld [vmem:[%s17613_s1 + $0x1c90] ss:$16 sps:$4 sm:$0xff]  }
 0x350   :  { %6395 = vmatprep.subr.bf16.mxu0 %v13099_v37  ;;  %6600 = vmatprep.subr.bf16.mxu1 %v13102_v38 }
 0x351   :  { %v6220_v37 = vsel %vm1840_vm1, %v10934_v25, 0  ;;  %v6226_v38 = vsel %vm1840_vm1, %v10936_v26, 0  ;;  %v13212_v25 = vld [vmem:[%s17613_s1 + $0x1cb8] ss:$16 sps:$4 sm:$0xff]   ;;  %v13217_v26 = vld [vmem:[%s17613_s1 + $0x1cd4] ss:$16 sps:$4 sm:$0xff]  }
 0x352   :  { %6387 = vmatmul.mubr.bf16.vlgmr.msra.gmra.mrb[8].mxu0 %v14532_v29  ;;  %6592 = vmatmul.mubr.bf16.vlgmr.msra.gmra.mrb[8].mxu1 %v14532_v29 }
 0x353   :  { %6396 = vmatpush1.bf16.msra.mxu0 %v13097_v39  ;;  %6601 = vmatpush1.bf16.msra.mxu1 %v13100_v40  ;;  %v13157_v39 = vld [vmem:[%s17613_s1 + $0x1b94] ss:$16 sps:$4 sm:$0xff]   ;;  %v13160_v40 = vld [vmem:[%s17613_s1 + $0x1b9c] ss:$16 sps:$4 sm:$0xff]  }
 0x354   :  { %6397 = vmatprep.subr.bf16.mxu0 %v13105_v41  ;;  %6602 = vmatprep.subr.bf16.mxu1 %v13108_v42  ;;  %v13155_v41 = vld [vmem:[%s17613_s1 + $0x1b90] ss:$16 sps:$4 sm:$0xff]   ;;  %v13158_v42 = vld [vmem:[%s17613_s1 + $0x1b98] ss:$16 sps:$4 sm:$0xff]  }
 0x355   :  { %10939 = vmatprep.mubr.msk.bf16.mxu0 %vm1836_vm0, %v14550_v34  ;;  %10941 = vmatprep.mubr.msk.bf16.mxu1 %vm1836_vm0, %v14550_v34 }
 0x357   :  { %6398 = vmatpush1.bf16.msra.mxu0 %v13103_v43  ;;  %6603 = vmatpush1.bf16.msra.mxu1 %v13106_v44  ;;  %v13163_v43 = vld [vmem:[%s17613_s1 + $0x1bb4] ss:$16 sps:$4 sm:$0xff]   ;;  %v13166_v44 = vld [vmem:[%s17613_s1 + $0x1bbc] ss:$16 sps:$4 sm:$0xff]  }
 0x358   :  { %6399 = vmatprep.subr.bf16.mxu0 %v13111_v45  ;;  %6604 = vmatprep.subr.bf16.mxu1 %v13114_v46  ;;  %v13161_v45 = vld [vmem:[%s17613_s1 + $0x1bb0] ss:$16 sps:$4 sm:$0xff]   ;;  %v13164_v46 = vld [vmem:[%s17613_s1 + $0x1bb8] ss:$16 sps:$4 sm:$0xff]  }
 0x35b   :  { %6400 = vmatpush1.bf16.msra.mxu0 %v13109_v47  ;;  %6605 = vmatpush1.bf16.msra.mxu1 %v13112_v49  ;;  %v13169_v47 = vld [vmem:[%s17613_s1 + $0x1bd4] ss:$16 sps:$4 sm:$0xff]   ;;  %v13172_v49 = vld [vmem:[%s17613_s1 + $0x1bdc] ss:$16 sps:$4 sm:$0xff]  }
 0x35c   :  { %6401 = vmatprep.subr.bf16.mxu0 %v13117_v50  ;;  %6606 = vmatprep.subr.bf16.mxu1 %v13120_v51  ;;  %v13167_v50 = vld [vmem:[%s17613_s1 + $0x1bd0] ss:$16 sps:$4 sm:$0xff]   ;;  %v13170_v51 = vld [vmem:[%s17613_s1 + $0x1bd8] ss:$16 sps:$4 sm:$0xff]  }
 0x35f   :  { %6402 = vmatpush1.bf16.msra.mxu0 %v13115_v52  ;;  %6607 = vmatpush1.bf16.msra.mxu1 %v13118_v53  ;;  %v13175_v52 = vld [vmem:[%s17613_s1 + $0x1bf4] ss:$16 sps:$4 sm:$0xff]   ;;  %v13173_v53 = vld [vmem:[%s17613_s1 + $0x1bf0] ss:$16 sps:$4 sm:$0xff]  }
 0x360   :  { %6403 = vmatprep.subr.bf16.mxu0 %v13123_v54  ;;  %6608 = vmatprep.subr.bf16.mxu1 %v13126_v55  ;;  %v13176_v54 = vld [vmem:[%s17613_s1 + $0x1bf8] ss:$16 sps:$4 sm:$0xff]   ;;  %v13181_v55 = vld [vmem:[%s17613_s1 + $0x1c14] ss:$16 sps:$4 sm:$0xff]  }
 0x363   :  { %6404 = vmatpush1.bf16.msra.mxu0 %v13121_v56  ;;  %6609 = vmatpush1.bf16.msra.mxu1 %v13124_v57  ;;  %v13184_v56 = vld [vmem:[%s17613_s1 + $0x1c1c] ss:$16 sps:$4 sm:$0xff]   ;;  %v13179_v57 = vld [vmem:[%s17613_s1 + $0x1c10] ss:$16 sps:$4 sm:$0xff]  }
 0x364   :  { %6405 = vmatprep.subr.bf16.mxu0 %v13129_v58  ;;  %6610 = vmatprep.subr.bf16.mxu1 %v13132_v59  ;;  %v13182_v58 = vld [vmem:[%s17613_s1 + $0x1c18] ss:$16 sps:$4 sm:$0xff]   ;;  %v13187_v59 = vld [vmem:[%s17613_s1 + $0x1c34] ss:$16 sps:$4 sm:$0xff]  }
 0x367   :  { %6406 = vmatpush1.bf16.msra.mxu0 %v13127_v60  ;;  %6611 = vmatpush1.bf16.msra.mxu1 %v13130_v61  ;;  %v13190_v60 = vld [vmem:[%s17613_s1 + $0x1c3c] ss:$16 sps:$4 sm:$0xff]   ;;  %v13185_v61 = vld [vmem:[%s17613_s1 + $0x1c30] ss:$16 sps:$4 sm:$0xff]  }
 0x368   :  { %6407 = vmatprep.subr.bf16.mxu0 %v13135_v62  ;;  %6612 = vmatprep.subr.bf16.mxu1 %v13138_v63  ;;  %v13188_v62 = vld [vmem:[%s17613_s1 + $0x1c38] ss:$16 sps:$4 sm:$0xff]   ;;  %v13193_v63 = vld [vmem:[%s17613_s1 + $0x1c54] ss:$16 sps:$4 sm:$0xff]  }
 0x36b   :  { %6408 = vmatpush1.bf16.msra.mxu0 %v13133_v0  ;;  %6613 = vmatpush1.bf16.msra.mxu1 %v13136_v1  ;;  %v13196_v0 = vld [vmem:[%s17613_s1 + $0x1c5c] ss:$16 sps:$4 sm:$0xff]   ;;  %v13191_v1 = vld [vmem:[%s17613_s1 + $0x1c50] ss:$16 sps:$4 sm:$0xff]  }
 0x36c   :  { %6409 = vmatprep.subr.bf16.mxu0 %v13141_v2  ;;  %6614 = vmatprep.subr.bf16.mxu1 %v13144_v3  ;;  %v13194_v2 = vld [vmem:[%s17613_s1 + $0x1c58] ss:$16 sps:$4 sm:$0xff]   ;;  %v13199_v3 = vld [vmem:[%s17613_s1 + $0x1c74] ss:$16 sps:$4 sm:$0xff]  }
 0x36f   :  { %6410 = vmatpush1.bf16.msra.mxu0 %v13139_v4  ;;  %6615 = vmatpush1.bf16.msra.mxu1 %v13142_v6  ;;  %v13202_v4 = vld [vmem:[%s17613_s1 + $0x1c7c] ss:$16 sps:$4 sm:$0xff]   ;;  %v13197_v6 = vld [vmem:[%s17613_s1 + $0x1c70] ss:$16 sps:$4 sm:$0xff]  }
 0x370   :  { %6411 = vmatprep.subr.bf16.mxu0 %v13147_v7  ;;  %6616 = vmatprep.subr.bf16.mxu1 %v13150_v8  ;;  %v13200_v7 = vld [vmem:[%s17613_s1 + $0x1c78] ss:$16 sps:$4 sm:$0xff]   ;;  %v13205_v8 = vld [vmem:[%s17613_s1 + $0x1c94] ss:$16 sps:$4 sm:$0xff]  }
 0x373   :  { %6412 = vmatpush1.bf16.msra.mxu0 %v13145_v12  ;;  %6617 = vmatpush1.bf16.msra.mxu1 %v13148_v14  ;;  %v13206_v12 = vld [vmem:[%s17613_s1 + $0x1c98] ss:$16 sps:$4 sm:$0xff]   ;;  %v13211_v14 = vld [vmem:[%s17613_s1 + $0x1cb4] ss:$16 sps:$4 sm:$0xff]  }
 0x374   :  { %10938 = vmatprep.subr.msk.bf16.mxu0 %vm1840_vm1, %v10935_v23  ;;  %10940 = vmatprep.subr.msk.bf16.mxu1 %vm1840_vm1, %v10937_v24  ;;  %v13214_v23 = vld [vmem:[%s17613_s1 + $0x1cbc] ss:$16 sps:$4 sm:$0xff]   ;;  %v13209_v24 = vld [vmem:[%s17613_s1 + $0x1cb0] ss:$16 sps:$4 sm:$0xff]  }
 0x377   :  { %6414 = vmatpush1.bf16.msra.mxu0 %v6220_v37  ;;  %6619 = vmatpush1.bf16.msra.mxu1 %v6226_v38  ;;  %v13220_v37 = vld [vmem:[%s17613_s1 + $0x1cdc] ss:$16 sps:$4 sm:$0xff]   ;;  %v13215_v38 = vld [vmem:[%s17613_s1 + $0x1cd0] ss:$16 sps:$4 sm:$0xff]  }
 0x378   :  { %8422 = vmatprep.subr.bf16.mxu0 %v13157_v39  ;;  %8627 = vmatprep.subr.bf16.mxu1 %v13160_v40  ;;  %v13218_v39 = vld [vmem:[%s17613_s1 + $0x1cd8] ss:$16 sps:$4 sm:$0xff]   ;;  %v13223_v40 = vld [vmem:[%s17613_s1 + $0x1cf4] ss:$16 sps:$4 sm:$0xff]  }
 0x37a   :  { %6428 = vmatmul.mubr.bf16.vlgmr.msra.gmra.mrb[8].mxu0 %v14666_v16  ;;  %6633 = vmatmul.mubr.bf16.vlgmr.msra.gmra.mrb[8].mxu1 %v14666_v16 }
 0x37b   :  { %8423 = vmatpush1.bf16.msra.mxu0 %v13155_v41  ;;  %8628 = vmatpush1.bf16.msra.mxu1 %v13158_v42  ;;  %v13226_v41 = vld [vmem:[%s17613_s1 + $0x1cfc] ss:$16 sps:$4 sm:$0xff]   ;;  %v13221_v42 = vld [vmem:[%s17613_s1 + $0x1cf0] ss:$16 sps:$4 sm:$0xff]  }
 0x37c   :  { %8424 = vmatprep.subr.bf16.mxu0 %v13163_v43  ;;  %8629 = vmatprep.subr.bf16.mxu1 %v13166_v44  ;;  %v13224_v43 = vld [vmem:[%s17613_s1 + $0x1cf8] ss:$16 sps:$4 sm:$0xff]   ;;  %v13229_v44 = vld [vmem:[%s17613_s1 + $0x1d14] ss:$16 sps:$4 sm:$0xff]  }
 0x37d   :  { %8454 = vmatprep.mubr.bf16.mxu0 %v13841_v48  ;;  %8659 = vmatprep.mubr.bf16.mxu1 %v13841_v48  ;;  %v13178_v48 = vld [vmem:[%s17613_s1 + $0x1bfc] ss:$16 sps:$4 sm:$0xff]  }
 0x37f   :  { %8425 = vmatpush1.bf16.msra.mxu0 %v13161_v45  ;;  %8630 = vmatpush1.bf16.msra.mxu1 %v13164_v46  ;;  %v13232_v45 = vld [vmem:[%s17613_s1 + $0x1d1c] ss:$16 sps:$4 sm:$0xff]   ;;  %v13227_v46 = vld [vmem:[%s17613_s1 + $0x1d10] ss:$16 sps:$4 sm:$0xff]  }
 0x380   :  { %8426 = vmatprep.subr.bf16.mxu0 %v13169_v47  ;;  %8631 = vmatprep.subr.bf16.mxu1 %v13172_v49  ;;  %v13230_v47 = vld [vmem:[%s17613_s1 + $0x1d18] ss:$16 sps:$4 sm:$0xff]   ;;  %v13235_v49 = vld [vmem:[%s17613_s1 + $0x1d34] ss:$16 sps:$4 sm:$0xff]  }
 0x383   :  { %8427 = vmatpush1.bf16.msra.mxu0 %v13167_v50  ;;  %8632 = vmatpush1.bf16.msra.mxu1 %v13170_v51  ;;  %v13238_v50 = vld [vmem:[%s17613_s1 + $0x1d3c] ss:$16 sps:$4 sm:$0xff]   ;;  %v13233_v51 = vld [vmem:[%s17613_s1 + $0x1d30] ss:$16 sps:$4 sm:$0xff]  }
 0x384   :  { %8428 = vmatprep.subr.bf16.mxu0 %v13175_v52  ;;  %8633 = vmatprep.subr.bf16.mxu1 %v13178_v48  ;;  %v13236_v52 = vld [vmem:[%s17613_s1 + $0x1d38] ss:$16 sps:$4 sm:$0xff]   ;;  %v13241_v48 = vld [vmem:[%s17613_s1 + $0x1d54] ss:$16 sps:$4 sm:$0xff]  }
 0x387   :  { %8429 = vmatpush1.bf16.msra.mxu0 %v13173_v53  ;;  %8634 = vmatpush1.bf16.msra.mxu1 %v13176_v54  ;;  %v13244_v53 = vld [vmem:[%s17613_s1 + $0x1d5c] ss:$16 sps:$4 sm:$0xff]   ;;  %v13239_v54 = vld [vmem:[%s17613_s1 + $0x1d50] ss:$16 sps:$4 sm:$0xff]  }
 0x388   :  { %8430 = vmatprep.subr.bf16.mxu0 %v13181_v55  ;;  %8635 = vmatprep.subr.bf16.mxu1 %v13184_v56  ;;  %v13242_v55 = vld [vmem:[%s17613_s1 + $0x1d58] ss:$16 sps:$4 sm:$0xff]   ;;  %v13247_v56 = vld [vmem:[%s17613_s1 + $0x1d74] ss:$16 sps:$4 sm:$0xff]  }
 0x38b   :  { %8431 = vmatpush1.bf16.msra.mxu0 %v13179_v57  ;;  %8636 = vmatpush1.bf16.msra.mxu1 %v13182_v58  ;;  %v13250_v57 = vld [vmem:[%s17613_s1 + $0x1d7c] ss:$16 sps:$4 sm:$0xff]   ;;  %v13245_v58 = vld [vmem:[%s17613_s1 + $0x1d70] ss:$16 sps:$4 sm:$0xff]  }
 0x38c   :  { %8432 = vmatprep.subr.bf16.mxu0 %v13187_v59  ;;  %8637 = vmatprep.subr.bf16.mxu1 %v13190_v60  ;;  %v13248_v59 = vld [vmem:[%s17613_s1 + $0x1d78] ss:$16 sps:$4 sm:$0xff]   ;;  %v13253_v60 = vld [vmem:[%s17613_s1 + $0x1d94] ss:$16 sps:$4 sm:$0xff]  }
 0x38f   :  { %8433 = vmatpush1.bf16.msra.mxu0 %v13185_v61  ;;  %8638 = vmatpush1.bf16.msra.mxu1 %v13188_v62  ;;  %v13256_v61 = vld [vmem:[%s17613_s1 + $0x1d9c] ss:$16 sps:$4 sm:$0xff]   ;;  %v13251_v62 = vld [vmem:[%s17613_s1 + $0x1d90] ss:$16 sps:$4 sm:$0xff]  }
 0x390   :  { %8434 = vmatprep.subr.bf16.mxu0 %v13193_v63  ;;  %8639 = vmatprep.subr.bf16.mxu1 %v13196_v0  ;;  %v13254_v63 = vld [vmem:[%s17613_s1 + $0x1d98] ss:$16 sps:$4 sm:$0xff]   ;;  %v13259_v0 = vld [vmem:[%s17613_s1 + $0x1db4] ss:$16 sps:$4 sm:$0xff]  }
 0x393   :  { %8435 = vmatpush1.bf16.msra.mxu0 %v13191_v1  ;;  %8640 = vmatpush1.bf16.msra.mxu1 %v13194_v2  ;;  %v13262_v1 = vld [vmem:[%s17613_s1 + $0x1dbc] ss:$16 sps:$4 sm:$0xff]   ;;  %v13257_v2 = vld [vmem:[%s17613_s1 + $0x1db0] ss:$16 sps:$4 sm:$0xff]  }
 0x394   :  { %8436 = vmatprep.subr.bf16.mxu0 %v13199_v3  ;;  %8641 = vmatprep.subr.bf16.mxu1 %v13202_v4  ;;  %v13260_v3 = vld [vmem:[%s17613_s1 + $0x1db8] ss:$16 sps:$4 sm:$0xff]   ;;  %v13265_v4 = vld [vmem:[%s17613_s1 + $0x1dd4] ss:$16 sps:$4 sm:$0xff]  }
 0x397   :  { %8437 = vmatpush1.bf16.msra.mxu0 %v13197_v6  ;;  %8642 = vmatpush1.bf16.msra.mxu1 %v13200_v7  ;;  %v13263_v6 = vld [vmem:[%s17613_s1 + $0x1dd0] ss:$16 sps:$4 sm:$0xff]   ;;  %v13266_v7 = vld [vmem:[%s17613_s1 + $0x1dd8] ss:$16 sps:$4 sm:$0xff]  }
 0x398   :  { %8438 = vmatprep.subr.bf16.mxu0 %v13205_v8  ;;  %8643 = vmatprep.subr.bf16.mxu1 %v13208_v9  ;;  %v13271_v8 = vld [vmem:[%s17613_s1 + $0x1df4] ss:$16 sps:$4 sm:$0xff]   ;;  %v13269_v9 = vld [vmem:[%s17613_s1 + $0x1df0] ss:$16 sps:$4 sm:$0xff]  }
 0x39b   :  { %8439 = vmatpush1.bf16.msra.mxu0 %v13203_v11  ;;  %8644 = vmatpush1.bf16.msra.mxu1 %v13206_v12  ;;  %v13272_v11 = vld [vmem:[%s17613_s1 + $0x1df8] ss:$16 sps:$4 sm:$0xff]   ;;  %v13277_v12 = vld [vmem:[%s17613_s1 + $0x1e14] ss:$16 sps:$4 sm:$0xff]  }
 0x39c   :  { %8440 = vmatprep.subr.bf16.mxu0 %v13211_v14  ;;  %8645 = vmatprep.subr.bf16.mxu1 %v13214_v23  ;;  %v13280_v14 = vld [vmem:[%s17613_s1 + $0x1e1c] ss:$16 sps:$4 sm:$0xff]   ;;  %v13275_v23 = vld [vmem:[%s17613_s1 + $0x1e10] ss:$16 sps:$4 sm:$0xff]  }
 0x39f   :  { %8441 = vmatpush1.bf16.msra.mxu0 %v13209_v24  ;;  %8646 = vmatpush1.bf16.msra.mxu1 %v13212_v25  ;;  %v13278_v24 = vld [vmem:[%s17613_s1 + $0x1e18] ss:$16 sps:$4 sm:$0xff]   ;;  %v13283_v25 = vld [vmem:[%s17613_s1 + $0x1e34] ss:$16 sps:$4 sm:$0xff]  }
 0x3a0   :  { %8442 = vmatprep.subr.bf16.mxu0 %v13217_v26  ;;  %8647 = vmatprep.subr.bf16.mxu1 %v13220_v37  ;;  %v13286_v26 = vld [vmem:[%s17613_s1 + $0x1e3c] ss:$16 sps:$4 sm:$0xff]   ;;  %v13281_v37 = vld [vmem:[%s17613_s1 + $0x1e30] ss:$16 sps:$4 sm:$0xff]  }
 0x3a3   :  { %8443 = vmatpush1.bf16.msra.mxu0 %v13215_v38  ;;  %8648 = vmatpush1.bf16.msra.mxu1 %v13218_v39  ;;  %v13284_v38 = vld [vmem:[%s17613_s1 + $0x1e38] ss:$16 sps:$4 sm:$0xff]   ;;  %v13289_v39 = vld [vmem:[%s17613_s1 + $0x1e54] ss:$16 sps:$4 sm:$0xff]  }
 0x3a4   :  { %8444 = vmatprep.subr.bf16.mxu0 %v13223_v40  ;;  %8649 = vmatprep.subr.bf16.mxu1 %v13226_v41  ;;  %v13292_v40 = vld [vmem:[%s17613_s1 + $0x1e5c] ss:$16 sps:$4 sm:$0xff]   ;;  %v13287_v41 = vld [vmem:[%s17613_s1 + $0x1e50] ss:$16 sps:$4 sm:$0xff]  }
 0x3a7   :  { %8445 = vmatpush1.bf16.msra.mxu0 %v13221_v42  ;;  %8650 = vmatpush1.bf16.msra.mxu1 %v13224_v43  ;;  %v13290_v42 = vld [vmem:[%s17613_s1 + $0x1e58] ss:$16 sps:$4 sm:$0xff]   ;;  %v13295_v43 = vld [vmem:[%s17613_s1 + $0x1e74] ss:$16 sps:$4 sm:$0xff]  }
 0x3a8   :  { %8446 = vmatprep.subr.bf16.mxu0 %v13229_v44  ;;  %8651 = vmatprep.subr.bf16.mxu1 %v13232_v45  ;;  %v13298_v44 = vld [vmem:[%s17613_s1 + $0x1e7c] ss:$16 sps:$4 sm:$0xff]   ;;  %v13293_v45 = vld [vmem:[%s17613_s1 + $0x1e70] ss:$16 sps:$4 sm:$0xff]  }
 0x3ab   :  { %8447 = vmatpush1.bf16.msra.mxu0 %v13227_v46  ;;  %8652 = vmatpush1.bf16.msra.mxu1 %v13230_v47  ;;  %v13296_v46 = vld [vmem:[%s17613_s1 + $0x1e78] ss:$16 sps:$4 sm:$0xff]   ;;  %v13301_v47 = vld [vmem:[%s17613_s1 + $0x1e94] ss:$16 sps:$4 sm:$0xff]  }
 0x3ac   :  { %8448 = vmatprep.subr.bf16.mxu0 %v13235_v49  ;;  %8653 = vmatprep.subr.bf16.mxu1 %v13238_v50  ;;  %v13304_v49 = vld [vmem:[%s17613_s1 + $0x1e9c] ss:$16 sps:$4 sm:$0xff]   ;;  %v13299_v50 = vld [vmem:[%s17613_s1 + $0x1e90] ss:$16 sps:$4 sm:$0xff]  }
 0x3af   :  { %8449 = vmatpush1.bf16.msra.mxu0 %v13233_v51  ;;  %8654 = vmatpush1.bf16.msra.mxu1 %v13236_v52  ;;  %v13302_v51 = vld [vmem:[%s17613_s1 + $0x1e98] ss:$16 sps:$4 sm:$0xff]   ;;  %v13307_v52 = vld [vmem:[%s17613_s1 + $0x1eb4] ss:$16 sps:$4 sm:$0xff]  }
 0x3b0   :  { %8450 = vmatprep.subr.bf16.mxu0 %v13241_v48  ;;  %8655 = vmatprep.subr.bf16.mxu1 %v13244_v53  ;;  %v13310_v48 = vld [vmem:[%s17613_s1 + $0x1ebc] ss:$16 sps:$4 sm:$0xff]   ;;  %v13305_v53 = vld [vmem:[%s17613_s1 + $0x1eb0] ss:$16 sps:$4 sm:$0xff]  }
 0x3b3   :  { %8451 = vmatpush1.bf16.msra.mxu0 %v13239_v54  ;;  %8656 = vmatpush1.bf16.msra.mxu1 %v13242_v55  ;;  %v13308_v54 = vld [vmem:[%s17613_s1 + $0x1eb8] ss:$16 sps:$4 sm:$0xff]   ;;  %v13313_v55 = vld [vmem:[%s17613_s1 + $0x1ed4] ss:$16 sps:$4 sm:$0xff]  }
 0x3b4   :  { %8452 = vmatprep.subr.bf16.mxu0 %v13247_v56  ;;  %8657 = vmatprep.subr.bf16.mxu1 %v13250_v57  ;;  %v13316_v56 = vld [vmem:[%s17613_s1 + $0x1edc] ss:$16 sps:$4 sm:$0xff]   ;;  %v13311_v57 = vld [vmem:[%s17613_s1 + $0x1ed0] ss:$16 sps:$4 sm:$0xff]  }
 0x3b7   :  { %8453 = vmatpush1.bf16.msra.mxu0 %v13245_v58  ;;  %8658 = vmatpush1.bf16.msra.mxu1 %v13248_v59  ;;  %v13314_v58 = vld [vmem:[%s17613_s1 + $0x1ed8] ss:$16 sps:$4 sm:$0xff]   ;;  %v13319_v59 = vld [vmem:[%s17613_s1 + $0x1ef4] ss:$16 sps:$4 sm:$0xff]  }
 0x3b8   :  { %8463 = vmatprep.subr.bf16.mxu0 %v13253_v60  ;;  %8668 = vmatprep.subr.bf16.mxu1 %v13256_v61  ;;  %v13322_v60 = vld [vmem:[%s17613_s1 + $0x1efc] ss:$16 sps:$4 sm:$0xff]   ;;  %v13317_v61 = vld [vmem:[%s17613_s1 + $0x1ef0] ss:$16 sps:$4 sm:$0xff]  }
 0x3ba   :  { %8455 = vmatmul.mubr.bf16.vlgmr.msra.gmra.mrb[12].mxu0 %v13905_v5  ;;  %8660 = vmatmul.mubr.bf16.vlgmr.msra.gmra.mrb[12].mxu1 %v13905_v5  ;;  %v13268_v5 = vld [vmem:[%s17613_s1 + $0x1ddc] ss:$16 sps:$4 sm:$0xff]  }
 0x3bb   :  { %8464 = vmatpush1.bf16.msra.mxu0 %v13251_v62  ;;  %8669 = vmatpush1.bf16.msra.mxu1 %v13254_v63  ;;  %v13320_v62 = vld [vmem:[%s17613_s1 + $0x1ef8] ss:$16 sps:$4 sm:$0xff]   ;;  %v13325_v63 = vld [vmem:[%s17613_s1 + $0x1f14] ss:$16 sps:$4 sm:$0xff]  }
 0x3bc   :  { %8465 = vmatprep.subr.bf16.mxu0 %v13259_v0  ;;  %8670 = vmatprep.subr.bf16.mxu1 %v13262_v1  ;;  %v13328_v0 = vld [vmem:[%s17613_s1 + $0x1f1c] ss:$16 sps:$4 sm:$0xff]   ;;  %v13323_v1 = vld [vmem:[%s17613_s1 + $0x1f10] ss:$16 sps:$4 sm:$0xff]  }
 0x3bd   :  { %8495 = vmatprep.mubr.bf16.mxu0 %v13985_v30  ;;  %8700 = vmatprep.mubr.bf16.mxu1 %v13985_v30  ;;  %v13274_v30 = vld [vmem:[%s17613_s1 + $0x1dfc] ss:$16 sps:$4 sm:$0xff]  }
 0x3bf   :  { %8466 = vmatpush1.bf16.msra.mxu0 %v13257_v2  ;;  %8671 = vmatpush1.bf16.msra.mxu1 %v13260_v3  ;;  %v13326_v2 = vld [vmem:[%s17613_s1 + $0x1f18] ss:$16 sps:$4 sm:$0xff]   ;;  %v13331_v3 = vld [vmem:[%s17613_s1 + $0x1f34] ss:$16 sps:$4 sm:$0xff]  }
 0x3c0   :  { %8467 = vmatprep.subr.bf16.mxu0 %v13265_v4  ;;  %8672 = vmatprep.subr.bf16.mxu1 %v13268_v5  ;;  %v13334_v4 = vld [vmem:[%s17613_s1 + $0x1f3c] ss:$16 sps:$4 sm:$0xff]   ;;  %v13329_v5 = vld [vmem:[%s17613_s1 + $0x1f30] ss:$16 sps:$4 sm:$0xff]  }
 0x3c3   :  { %8468 = vmatpush1.bf16.msra.mxu0 %v13263_v6  ;;  %8673 = vmatpush1.bf16.msra.mxu1 %v13266_v7  ;;  %v13332_v6 = vld [vmem:[%s17613_s1 + $0x1f38] ss:$16 sps:$4 sm:$0xff]   ;;  %v13337_v7 = vld [vmem:[%s17613_s1 + $0x1f54] ss:$16 sps:$4 sm:$0xff]  }
 0x3c4   :  { %8469 = vmatprep.subr.bf16.mxu0 %v13271_v8  ;;  %8674 = vmatprep.subr.bf16.mxu1 %v13274_v30  ;;  %v13340_v8 = vld [vmem:[%s17613_s1 + $0x1f5c] ss:$16 sps:$4 sm:$0xff]   ;;  %v13335_v30 = vld [vmem:[%s17613_s1 + $0x1f50] ss:$16 sps:$4 sm:$0xff]  }
 0x3c7   :  { %8470 = vmatpush1.bf16.msra.mxu0 %v13269_v9  ;;  %8675 = vmatpush1.bf16.msra.mxu1 %v13272_v11  ;;  %v13338_v9 = vld [vmem:[%s17613_s1 + $0x1f58] ss:$16 sps:$4 sm:$0xff]   ;;  %v13343_v11 = vld [vmem:[%s17613_s1 + $0x1f74] ss:$16 sps:$4 sm:$0xff]  }
 0x3c8   :  { %8471 = vmatprep.subr.bf16.mxu0 %v13277_v12  ;;  %8676 = vmatprep.subr.bf16.mxu1 %v13280_v14  ;;  %v13346_v12 = vld [vmem:[%s17613_s1 + $0x1f7c] ss:$16 sps:$4 sm:$0xff]   ;;  %v13341_v14 = vld [vmem:[%s17613_s1 + $0x1f70] ss:$16 sps:$4 sm:$0xff]  }
 0x3cb   :  { %8472 = vmatpush1.bf16.msra.mxu0 %v13275_v23  ;;  %8677 = vmatpush1.bf16.msra.mxu1 %v13278_v24  ;;  %v13344_v23 = vld [vmem:[%s17613_s1 + $0x1f78] ss:$16 sps:$4 sm:$0xff]   ;;  %v13349_v24 = vld [vmem:[%s17613_s1 + $0x1f94] ss:$16 sps:$4 sm:$0xff]  }
 0x3cc   :  { %8473 = vmatprep.subr.bf16.mxu0 %v13283_v25  ;;  %8678 = vmatprep.subr.bf16.mxu1 %v13286_v26  ;;  %v13352_v25 = vld [vmem:[%s17613_s1 + $0x1f9c] ss:$16 sps:$4 sm:$0xff]   ;;  %v13347_v26 = vld [vmem:[%s17613_s1 + $0x1f90] ss:$16 sps:$4 sm:$0xff]  }
 0x3cf   :  { %8474 = vmatpush1.bf16.msra.mxu0 %v13281_v37  ;;  %8679 = vmatpush1.bf16.msra.mxu1 %v13284_v38  ;;  %v13350_v37 = vld [vmem:[%s17613_s1 + $0x1f98] ss:$16 sps:$4 sm:$0xff]   ;;  %v13355_v38 = vld [vmem:[%s17613_s1 + $0x1fb4] ss:$16 sps:$4 sm:$0xff]  }
 0x3d0   :  { %8475 = vmatprep.subr.bf16.mxu0 %v13289_v39  ;;  %8680 = vmatprep.subr.bf16.mxu1 %v13292_v40  ;;  %v13358_v39 = vld [vmem:[%s17613_s1 + $0x1fbc] ss:$16 sps:$4 sm:$0xff]   ;;  %v13353_v40 = vld [vmem:[%s17613_s1 + $0x1fb0] ss:$16 sps:$4 sm:$0xff]  }
 0x3d3   :  { %8476 = vmatpush1.bf16.msra.mxu0 %v13287_v41  ;;  %8681 = vmatpush1.bf16.msra.mxu1 %v13290_v42  ;;  %v13356_v41 = vld [vmem:[%s17613_s1 + $0x1fb8] ss:$16 sps:$4 sm:$0xff]   ;;  %v13361_v42 = vld [vmem:[%s17613_s1 + $0x1fd4] ss:$16 sps:$4 sm:$0xff]  }
 0x3d4   :  { %8477 = vmatprep.subr.bf16.mxu0 %v13295_v43  ;;  %8682 = vmatprep.subr.bf16.mxu1 %v13298_v44  ;;  %v13359_v43 = vld [vmem:[%s17613_s1 + $0x1fd0] ss:$16 sps:$4 sm:$0xff]   ;;  %v13362_v44 = vld [vmem:[%s17613_s1 + $0x1fd8] ss:$16 sps:$4 sm:$0xff]  }
 0x3d7   :  { %8478 = vmatpush1.bf16.msra.mxu0 %v13293_v45  ;;  %8683 = vmatpush1.bf16.msra.mxu1 %v13296_v46  ;;  %v13367_v45 = vld [vmem:[%s17613_s1 + $0x1ff4] ss:$16 sps:$4 sm:$0xff]   ;;  %v13365_v46 = vld [vmem:[%s17613_s1 + $0x1ff0] ss:$16 sps:$4 sm:$0xff]  }
 0x3d8   :  { %8479 = vmatprep.subr.bf16.mxu0 %v13301_v47  ;;  %8684 = vmatprep.subr.bf16.mxu1 %v13304_v49  ;;  %v13368_v47 = vld [vmem:[%s17613_s1 + $0x1ff8] ss:$16 sps:$4 sm:$0xff]   ;;  %v13373_v49 = vld [vmem:[%s17613_s1 + $0x2014] ss:$16 sps:$4 sm:$0xff]  }
 0x3db   :  { %8480 = vmatpush1.bf16.msra.mxu0 %v13299_v50  ;;  %8685 = vmatpush1.bf16.msra.mxu1 %v13302_v51  ;;  %v13376_v50 = vld [vmem:[%s17613_s1 + $0x201c] ss:$16 sps:$4 sm:$0xff]   ;;  %v13371_v51 = vld [vmem:[%s17613_s1 + $0x2010] ss:$16 sps:$4 sm:$0xff]  }
 0x3dc   :  { %8481 = vmatprep.subr.bf16.mxu0 %v13307_v52  ;;  %8686 = vmatprep.subr.bf16.mxu1 %v13310_v48  ;;  %v13374_v52 = vld [vmem:[%s17613_s1 + $0x2018] ss:$16 sps:$4 sm:$0xff]   ;;  %v13379_v48 = vld [vmem:[%s17613_s1 + $0x2034] ss:$16 sps:$4 sm:$0xff]  }
 0x3df   :  { %8482 = vmatpush1.bf16.msra.mxu0 %v13305_v53  ;;  %8687 = vmatpush1.bf16.msra.mxu1 %v13308_v54  ;;  %v13382_v53 = vld [vmem:[%s17613_s1 + $0x203c] ss:$16 sps:$4 sm:$0xff]   ;;  %v13377_v54 = vld [vmem:[%s17613_s1 + $0x2030] ss:$16 sps:$4 sm:$0xff]  }
 0x3e0   :  { %8483 = vmatprep.subr.bf16.mxu0 %v13313_v55  ;;  %8688 = vmatprep.subr.bf16.mxu1 %v13316_v56  ;;  %v13380_v55 = vld [vmem:[%s17613_s1 + $0x2038] ss:$16 sps:$4 sm:$0xff]   ;;  %v13385_v56 = vld [vmem:[%s17613_s1 + $0x2054] ss:$16 sps:$4 sm:$0xff]  }
 0x3e3   :  { %8484 = vmatpush1.bf16.msra.mxu0 %v13311_v57  ;;  %8689 = vmatpush1.bf16.msra.mxu1 %v13314_v58  ;;  %v13388_v57 = vld [vmem:[%s17613_s1 + $0x205c] ss:$16 sps:$4 sm:$0xff]   ;;  %v13383_v58 = vld [vmem:[%s17613_s1 + $0x2050] ss:$16 sps:$4 sm:$0xff]  }
 0x3e4   :  { %8485 = vmatprep.subr.bf16.mxu0 %v13319_v59  ;;  %8690 = vmatprep.subr.bf16.mxu1 %v13322_v60  ;;  %v13386_v59 = vld [vmem:[%s17613_s1 + $0x2058] ss:$16 sps:$4 sm:$0xff]   ;;  %v13391_v60 = vld [vmem:[%s17613_s1 + $0x2074] ss:$16 sps:$4 sm:$0xff]  }
 0x3e7   :  { %8486 = vmatpush1.bf16.msra.mxu0 %v13317_v61  ;;  %8691 = vmatpush1.bf16.msra.mxu1 %v13320_v62  ;;  %v13394_v61 = vld [vmem:[%s17613_s1 + $0x207c] ss:$16 sps:$4 sm:$0xff]   ;;  %v13389_v62 = vld [vmem:[%s17613_s1 + $0x2070] ss:$16 sps:$4 sm:$0xff]  }
 0x3e8   :  { %8487 = vmatprep.subr.bf16.mxu0 %v13325_v63  ;;  %8692 = vmatprep.subr.bf16.mxu1 %v13328_v0  ;;  %v13392_v63 = vld [vmem:[%s17613_s1 + $0x2078] ss:$16 sps:$4 sm:$0xff]   ;;  %v13397_v0 = vld [vmem:[%s17613_s1 + $0x2094] ss:$16 sps:$4 sm:$0xff]  }
 0x3eb   :  { %8488 = vmatpush1.bf16.msra.mxu0 %v13323_v1  ;;  %8693 = vmatpush1.bf16.msra.mxu1 %v13326_v2  ;;  %v13400_v1 = vld [vmem:[%s17613_s1 + $0x209c] ss:$16 sps:$4 sm:$0xff]   ;;  %v13395_v2 = vld [vmem:[%s17613_s1 + $0x2090] ss:$16 sps:$4 sm:$0xff]  }
 0x3ec   :  { %8489 = vmatprep.subr.bf16.mxu0 %v13331_v3  ;;  %8694 = vmatprep.subr.bf16.mxu1 %v13334_v4  ;;  %v13398_v3 = vld [vmem:[%s17613_s1 + $0x2098] ss:$16 sps:$4 sm:$0xff]   ;;  %v13403_v4 = vld [vmem:[%s17613_s1 + $0x20b4] ss:$16 sps:$4 sm:$0xff]  }
 0x3ef   :  { %8490 = vmatpush1.bf16.msra.mxu0 %v13329_v5  ;;  %8695 = vmatpush1.bf16.msra.mxu1 %v13332_v6  ;;  %v13406_v5 = vld [vmem:[%s17613_s1 + $0x20bc] ss:$16 sps:$4 sm:$0xff]   ;;  %v13401_v6 = vld [vmem:[%s17613_s1 + $0x20b0] ss:$16 sps:$4 sm:$0xff]  }
 0x3f0   :  { %8491 = vmatprep.subr.bf16.mxu0 %v13337_v7  ;;  %8696 = vmatprep.subr.bf16.mxu1 %v13340_v8  ;;  %v13404_v7 = vld [vmem:[%s17613_s1 + $0x20b8] ss:$16 sps:$4 sm:$0xff]   ;;  %v13409_v8 = vld [vmem:[%s17613_s1 + $0x20d4] ss:$16 sps:$4 sm:$0xff]  }
 0x3f3   :  { %8492 = vmatpush1.bf16.msra.mxu0 %v13335_v30  ;;  %8697 = vmatpush1.bf16.msra.mxu1 %v13338_v9  ;;  %v13412_v30 = vld [vmem:[%s17613_s1 + $0x20dc] ss:$16 sps:$4 sm:$0xff]   ;;  %v13407_v9 = vld [vmem:[%s17613_s1 + $0x20d0] ss:$16 sps:$4 sm:$0xff]  }
 0x3f4   :  { %8493 = vmatprep.subr.bf16.mxu0 %v13343_v11  ;;  %8698 = vmatprep.subr.bf16.mxu1 %v13346_v12  ;;  %v13410_v11 = vld [vmem:[%s17613_s1 + $0x20d8] ss:$16 sps:$4 sm:$0xff]   ;;  %v13415_v12 = vld [vmem:[%s17613_s1 + $0x20f4] ss:$16 sps:$4 sm:$0xff]  }
 0x3f7   :  { %8494 = vmatpush1.bf16.msra.mxu0 %v13341_v14  ;;  %8699 = vmatpush1.bf16.msra.mxu1 %v13344_v23  ;;  %v13418_v14 = vld [vmem:[%s17613_s1 + $0x20fc] ss:$16 sps:$4 sm:$0xff]   ;;  %v13413_v23 = vld [vmem:[%s17613_s1 + $0x20f0] ss:$16 sps:$4 sm:$0xff]  }
 0x3f8   :  { %8504 = vmatprep.subr.bf16.mxu0 %v13349_v24  ;;  %8709 = vmatprep.subr.bf16.mxu1 %v13352_v25  ;;  %v13416_v24 = vld [vmem:[%s17613_s1 + $0x20f8] ss:$16 sps:$4 sm:$0xff]   ;;  %v13421_v25 = vld [vmem:[%s17613_s1 + $0x2114] ss:$16 sps:$4 sm:$0xff]  }
 0x3fa   :  { %8496 = vmatmul.mubr.bf16.vlgmr.msra.gmra.mrb[12].mxu0 %v14114_v10  ;;  %8701 = vmatmul.mubr.bf16.vlgmr.msra.gmra.mrb[12].mxu1 %v14114_v10  ;;  %v13364_v10 = vld [vmem:[%s17613_s1 + $0x1fdc] ss:$16 sps:$4 sm:$0xff]  }
 0x3fb   :  { %8505 = vmatpush1.bf16.msra.mxu0 %v13347_v26  ;;  %8710 = vmatpush1.bf16.msra.mxu1 %v13350_v37  ;;  %v13424_v26 = vld [vmem:[%s17613_s1 + $0x211c] ss:$16 sps:$4 sm:$0xff]   ;;  %v13419_v37 = vld [vmem:[%s17613_s1 + $0x2110] ss:$16 sps:$4 sm:$0xff]  }
 0x3fc   :  { %8506 = vmatprep.subr.bf16.mxu0 %v13355_v38  ;;  %8711 = vmatprep.subr.bf16.mxu1 %v13358_v39  ;;  %v13422_v38 = vld [vmem:[%s17613_s1 + $0x2118] ss:$16 sps:$4 sm:$0xff]   ;;  %v13427_v39 = vld [vmem:[%s17613_s1 + $0x2134] ss:$16 sps:$4 sm:$0xff]  }
 0x3fd   :  { %8536 = vmatprep.mubr.bf16.mxu0 %v14132_v15  ;;  %8741 = vmatprep.mubr.bf16.mxu1 %v14132_v15  ;;  %v13370_v15 = vld [vmem:[%s17613_s1 + $0x1ffc] ss:$16 sps:$4 sm:$0xff]  }
 0x3ff   :  { %8507 = vmatpush1.bf16.msra.mxu0 %v13353_v40  ;;  %8712 = vmatpush1.bf16.msra.mxu1 %v13356_v41  ;;  %v13430_v40 = vld [vmem:[%s17613_s1 + $0x213c] ss:$16 sps:$4 sm:$0xff]   ;;  %v13425_v41 = vld [vmem:[%s17613_s1 + $0x2130] ss:$16 sps:$4 sm:$0xff]  }
 0x400   :  { %8508 = vmatprep.subr.bf16.mxu0 %v13361_v42  ;;  %8713 = vmatprep.subr.bf16.mxu1 %v13364_v10  ;;  %v13428_v42 = vld [vmem:[%s17613_s1 + $0x2138] ss:$16 sps:$4 sm:$0xff]   ;;  %v13433_v10 = vld [vmem:[%s17613_s1 + $0x2154] ss:$16 sps:$4 sm:$0xff]  }
 0x403   :  { %8509 = vmatpush1.bf16.msra.mxu0 %v13359_v43  ;;  %8714 = vmatpush1.bf16.msra.mxu1 %v13362_v44  ;;  %v13436_v43 = vld [vmem:[%s17613_s1 + $0x215c] ss:$16 sps:$4 sm:$0xff]   ;;  %v13431_v44 = vld [vmem:[%s17613_s1 + $0x2150] ss:$16 sps:$4 sm:$0xff]  }
 0x404   :  { %8510 = vmatprep.subr.bf16.mxu0 %v13367_v45  ;;  %8715 = vmatprep.subr.bf16.mxu1 %v13370_v15  ;;  %v13434_v45 = vld [vmem:[%s17613_s1 + $0x2158] ss:$16 sps:$4 sm:$0xff]   ;;  %v13439_v15 = vld [vmem:[%s17613_s1 + $0x2174] ss:$16 sps:$4 sm:$0xff]  }
 0x407   :  { %8511 = vmatpush1.bf16.msra.mxu0 %v13365_v46  ;;  %8716 = vmatpush1.bf16.msra.mxu1 %v13368_v47  ;;  %v13442_v46 = vld [vmem:[%s17613_s1 + $0x217c] ss:$16 sps:$4 sm:$0xff]   ;;  %v13437_v47 = vld [vmem:[%s17613_s1 + $0x2170] ss:$16 sps:$4 sm:$0xff]  }
 0x408   :  { %8512 = vmatprep.subr.bf16.mxu0 %v13373_v49  ;;  %8717 = vmatprep.subr.bf16.mxu1 %v13376_v50  ;;  %v13440_v49 = vld [vmem:[%s17613_s1 + $0x2178] ss:$16 sps:$4 sm:$0xff]   ;;  %v13445_v50 = vld [vmem:[%s17613_s1 + $0x2194] ss:$16 sps:$4 sm:$0xff]  }
 0x40b   :  { %8513 = vmatpush1.bf16.msra.mxu0 %v13371_v51  ;;  %8718 = vmatpush1.bf16.msra.mxu1 %v13374_v52  ;;  %v13448_v51 = vld [vmem:[%s17613_s1 + $0x219c] ss:$16 sps:$4 sm:$0xff]   ;;  %v13443_v52 = vld [vmem:[%s17613_s1 + $0x2190] ss:$16 sps:$4 sm:$0xff]  }
 0x40c   :  { %8514 = vmatprep.subr.bf16.mxu0 %v13379_v48  ;;  %8719 = vmatprep.subr.bf16.mxu1 %v13382_v53  ;;  %v13446_v48 = vld [vmem:[%s17613_s1 + $0x2198] ss:$16 sps:$4 sm:$0xff]   ;;  %v13451_v53 = vld [vmem:[%s17613_s1 + $0x21b4] ss:$16 sps:$4 sm:$0xff]  }
 0x40f   :  { %8515 = vmatpush1.bf16.msra.mxu0 %v13377_v54  ;;  %8720 = vmatpush1.bf16.msra.mxu1 %v13380_v55  ;;  %v13454_v54 = vld [vmem:[%s17613_s1 + $0x21bc] ss:$16 sps:$4 sm:$0xff]   ;;  %v13449_v55 = vld [vmem:[%s17613_s1 + $0x21b0] ss:$16 sps:$4 sm:$0xff]  }
 0x410   :  { %8516 = vmatprep.subr.bf16.mxu0 %v13385_v56  ;;  %8721 = vmatprep.subr.bf16.mxu1 %v13388_v57  ;;  %v13452_v56 = vld [vmem:[%s17613_s1 + $0x21b8] ss:$16 sps:$4 sm:$0xff]   ;;  %v13457_v57 = vld [vmem:[%s17613_s1 + $0x21d4] ss:$16 sps:$4 sm:$0xff]  }
 0x413   :  { %8517 = vmatpush1.bf16.msra.mxu0 %v13383_v58  ;;  %8722 = vmatpush1.bf16.msra.mxu1 %v13386_v59  ;;  %v13460_v58 = vld [vmem:[%s17613_s1 + $0x21dc] ss:$16 sps:$4 sm:$0xff]   ;;  %v13455_v59 = vld [vmem:[%s17613_s1 + $0x21d0] ss:$16 sps:$4 sm:$0xff]  }
 0x414   :  { %8518 = vmatprep.subr.bf16.mxu0 %v13391_v60  ;;  %8723 = vmatprep.subr.bf16.mxu1 %v13394_v61  ;;  %v13463_v60 = vld [vmem:[%s17613_s1 + $0x21f4] ss:$16 sps:$4 sm:$0xff]   ;;  %v13466_v61 = vld [vmem:[%s17613_s1 + $0x21fc] ss:$16 sps:$4 sm:$0xff]  }
 0x417   :  { %8519 = vmatpush1.bf16.msra.mxu0 %v13389_v62  ;;  %8724 = vmatpush1.bf16.msra.mxu1 %v13392_v63  ;;  %v13464_v62 = vld [vmem:[%s17613_s1 + $0x21f8] ss:$16 sps:$4 sm:$0xff]   ;;  %v13469_v63 = vld [vmem:[%s17613_s1 + $0x2214] ss:$16 sps:$4 sm:$0xff]  }
 0x418   :  { %8520 = vmatprep.subr.bf16.mxu0 %v13397_v0  ;;  %8725 = vmatprep.subr.bf16.mxu1 %v13400_v1  ;;  %v13472_v0 = vld [vmem:[%s17613_s1 + $0x221c] ss:$16 sps:$4 sm:$0xff]   ;;  %v13467_v1 = vld [vmem:[%s17613_s1 + $0x2210] ss:$16 sps:$4 sm:$0xff]  }
 0x41b   :  { %8521 = vmatpush1.bf16.msra.mxu0 %v13395_v2  ;;  %8726 = vmatpush1.bf16.msra.mxu1 %v13398_v3  ;;  %v13470_v2 = vld [vmem:[%s17613_s1 + $0x2218] ss:$16 sps:$4 sm:$0xff]   ;;  %v13475_v3 = vld [vmem:[%s17613_s1 + $0x2234] ss:$16 sps:$4 sm:$0xff]  }
 0x41c   :  { %8522 = vmatprep.subr.bf16.mxu0 %v13403_v4  ;;  %8727 = vmatprep.subr.bf16.mxu1 %v13406_v5  ;;  %v13478_v4 = vld [vmem:[%s17613_s1 + $0x223c] ss:$16 sps:$4 sm:$0xff]   ;;  %v13473_v5 = vld [vmem:[%s17613_s1 + $0x2230] ss:$16 sps:$4 sm:$0xff]  }
 0x41f   :  { %8523 = vmatpush1.bf16.msra.mxu0 %v13401_v6  ;;  %8728 = vmatpush1.bf16.msra.mxu1 %v13404_v7  ;;  %v13476_v6 = vld [vmem:[%s17613_s1 + $0x2238] ss:$16 sps:$4 sm:$0xff]   ;;  %v13481_v7 = vld [vmem:[%s17613_s1 + $0x2254] ss:$16 sps:$4 sm:$0xff]  }
 0x420   :  { %8524 = vmatprep.subr.bf16.mxu0 %v13409_v8  ;;  %8729 = vmatprep.subr.bf16.mxu1 %v13412_v30  ;;  %v13484_v8 = vld [vmem:[%s17613_s1 + $0x225c] ss:$16 sps:$4 sm:$0xff]  }
 0x423   :  { %8525 = vmatpush1.bf16.msra.mxu0 %v13407_v9  ;;  %8730 = vmatpush1.bf16.msra.mxu1 %v13410_v11 }
 0x424   :  { %8526 = vmatprep.subr.bf16.mxu0 %v13415_v12  ;;  %8731 = vmatprep.subr.bf16.mxu1 %v13418_v14 }
 0x427   :  { %8527 = vmatpush1.bf16.msra.mxu0 %v13413_v23  ;;  %8732 = vmatpush1.bf16.msra.mxu1 %v13416_v24 }
 0x428   :  { %8528 = vmatprep.subr.bf16.mxu0 %v13421_v25  ;;  %8733 = vmatprep.subr.bf16.mxu1 %v13424_v26  ;;  %v13491_v26 = vld [vmem:[%s17613_s1 + $0x2290] ss:$16 sps:$4 sm:$0xff]  }
 0x42b   :  { %8529 = vmatpush1.bf16.msra.mxu0 %v13419_v37  ;;  %8734 = vmatpush1.bf16.msra.mxu1 %v13422_v38  ;;  %v13494_v37 = vld [vmem:[%s17613_s1 + $0x2298] ss:$16 sps:$4 sm:$0xff]   ;;  %v13499_v38 = vld [vmem:[%s17613_s1 + $0x22b4] ss:$16 sps:$4 sm:$0xff]  }
 0x42c   :  { %8530 = vmatprep.subr.bf16.mxu0 %v13427_v39  ;;  %8735 = vmatprep.subr.bf16.mxu1 %v13430_v40  ;;  %v13502_v39 = vld [vmem:[%s17613_s1 + $0x22bc] ss:$16 sps:$4 sm:$0xff]   ;;  %v13497_v40 = vld [vmem:[%s17613_s1 + $0x22b0] ss:$16 sps:$4 sm:$0xff]  }
 0x42f   :  { %8531 = vmatpush1.bf16.msra.mxu0 %v13425_v41  ;;  %8736 = vmatpush1.bf16.msra.mxu1 %v13428_v42  ;;  %v13500_v41 = vld [vmem:[%s17613_s1 + $0x22b8] ss:$16 sps:$4 sm:$0xff]   ;;  %v13505_v42 = vld [vmem:[%s17613_s1 + $0x22d4] ss:$16 sps:$4 sm:$0xff]  }
 0x430   :  { %8532 = vmatprep.subr.bf16.mxu0 %v13433_v10  ;;  %8737 = vmatprep.subr.bf16.mxu1 %v13436_v43  ;;  %v13508_v10 = vld [vmem:[%s17613_s1 + $0x22dc] ss:$16 sps:$4 sm:$0xff]   ;;  %v13503_v43 = vld [vmem:[%s17613_s1 + $0x22d0] ss:$16 sps:$4 sm:$0xff]  }
 0x433   :  { %8533 = vmatpush1.bf16.msra.mxu0 %v13431_v44  ;;  %8738 = vmatpush1.bf16.msra.mxu1 %v13434_v45  ;;  %v13506_v44 = vld [vmem:[%s17613_s1 + $0x22d8] ss:$16 sps:$4 sm:$0xff]   ;;  %v13511_v45 = vld [vmem:[%s17613_s1 + $0x22f4] ss:$16 sps:$4 sm:$0xff]  }
 0x434   :  { %8534 = vmatprep.subr.bf16.mxu0 %v13439_v15  ;;  %8739 = vmatprep.subr.bf16.mxu1 %v13442_v46  ;;  %v13514_v15 = vld [vmem:[%s17613_s1 + $0x22fc] ss:$16 sps:$4 sm:$0xff]   ;;  %v13509_v46 = vld [vmem:[%s17613_s1 + $0x22f0] ss:$16 sps:$4 sm:$0xff]  }
 0x437   :  { %8535 = vmatpush1.bf16.msra.mxu0 %v13437_v47  ;;  %8740 = vmatpush1.bf16.msra.mxu1 %v13440_v49  ;;  %v13512_v47 = vld [vmem:[%s17613_s1 + $0x22f8] ss:$16 sps:$4 sm:$0xff]   ;;  %v13517_v49 = vld [vmem:[%s17613_s1 + $0x2314] ss:$16 sps:$4 sm:$0xff]  }
 0x438   :  { %8545 = vmatprep.subr.bf16.mxu0 %v13445_v50  ;;  %8750 = vmatprep.subr.bf16.mxu1 %v13448_v51  ;;  %v13520_v50 = vld [vmem:[%s17613_s1 + $0x231c] ss:$16 sps:$4 sm:$0xff]   ;;  %v13515_v51 = vld [vmem:[%s17613_s1 + $0x2310] ss:$16 sps:$4 sm:$0xff]  }
 0x43a   :  { %8537 = vmatmul.mubr.bf16.vlgmr.msra.gmra.mrb[12].mxu0 %v14326_v20  ;;  %8742 = vmatmul.mubr.bf16.vlgmr.msra.gmra.mrb[12].mxu1 %v14326_v20  ;;  %v13458_v20 = vld [vmem:[%s17613_s1 + $0x21d8] ss:$16 sps:$4 sm:$0xff]  }
 0x43b   :  { %8546 = vmatpush1.bf16.msra.mxu0 %v13443_v52  ;;  %8751 = vmatpush1.bf16.msra.mxu1 %v13446_v48  ;;  %v13518_v52 = vld [vmem:[%s17613_s1 + $0x2318] ss:$16 sps:$4 sm:$0xff]   ;;  %v13523_v48 = vld [vmem:[%s17613_s1 + $0x2334] ss:$16 sps:$4 sm:$0xff]  }
 0x43c   :  { %8547 = vmatprep.subr.bf16.mxu0 %v13451_v53  ;;  %8752 = vmatprep.subr.bf16.mxu1 %v13454_v54  ;;  %v13526_v53 = vld [vmem:[%s17613_s1 + $0x233c] ss:$16 sps:$4 sm:$0xff]   ;;  %v13521_v54 = vld [vmem:[%s17613_s1 + $0x2330] ss:$16 sps:$4 sm:$0xff]  }
 0x43d   :  { %8577 = vmatprep.mubr.bf16.mxu0 %v14341_v13  ;;  %8782 = vmatprep.mubr.bf16.mxu1 %v14341_v13  ;;  %v13461_v13 = vld [vmem:[%s17613_s1 + $0x21f0] ss:$16 sps:$4 sm:$0xff]  }
 0x43f   :  { %8548 = vmatpush1.bf16.msra.mxu0 %v13449_v55  ;;  %8753 = vmatpush1.bf16.msra.mxu1 %v13452_v56  ;;  %v13524_v55 = vld [vmem:[%s17613_s1 + $0x2338] ss:$16 sps:$4 sm:$0xff]   ;;  %v13529_v56 = vld [vmem:[%s17613_s1 + $0x2354] ss:$16 sps:$4 sm:$0xff]  }
 0x440   :  { %8549 = vmatprep.subr.bf16.mxu0 %v13457_v57  ;;  %8754 = vmatprep.subr.bf16.mxu1 %v13460_v58  ;;  %v13532_v57 = vld [vmem:[%s17613_s1 + $0x235c] ss:$16 sps:$4 sm:$0xff]   ;;  %v13527_v58 = vld [vmem:[%s17613_s1 + $0x2350] ss:$16 sps:$4 sm:$0xff]  }
 0x443   :  { %8550 = vmatpush1.bf16.msra.mxu0 %v13455_v59  ;;  %8755 = vmatpush1.bf16.msra.mxu1 %v13458_v20  ;;  %v13530_v59 = vld [vmem:[%s17613_s1 + $0x2358] ss:$16 sps:$4 sm:$0xff]   ;;  %v13535_v20 = vld [vmem:[%s17613_s1 + $0x2374] ss:$16 sps:$4 sm:$0xff]  }
 0x444   :  { %8551 = vmatprep.subr.bf16.mxu0 %v13463_v60  ;;  %8756 = vmatprep.subr.bf16.mxu1 %v13466_v61  ;;  %v13538_v60 = vld [vmem:[%s17613_s1 + $0x237c] ss:$16 sps:$4 sm:$0xff]   ;;  %v13533_v61 = vld [vmem:[%s17613_s1 + $0x2370] ss:$16 sps:$4 sm:$0xff]  }
 0x447   :  { %8552 = vmatpush1.bf16.msra.mxu0 %v13461_v13  ;;  %8757 = vmatpush1.bf16.msra.mxu1 %v13464_v62  ;;  %v13536_v13 = vld [vmem:[%s17613_s1 + $0x2378] ss:$16 sps:$4 sm:$0xff]   ;;  %v13541_v62 = vld [vmem:[%s17613_s1 + $0x2394] ss:$16 sps:$4 sm:$0xff]  }
 0x448   :  { %8553 = vmatprep.subr.bf16.mxu0 %v13469_v63  ;;  %8758 = vmatprep.subr.bf16.mxu1 %v13472_v0  ;;  %v13544_v63 = vld [vmem:[%s17613_s1 + $0x239c] ss:$16 sps:$4 sm:$0xff]   ;;  %v13539_v0 = vld [vmem:[%s17613_s1 + $0x2390] ss:$16 sps:$4 sm:$0xff]  }
 0x44b   :  { %8554 = vmatpush1.bf16.msra.mxu0 %v13467_v1  ;;  %8759 = vmatpush1.bf16.msra.mxu1 %v13470_v2  ;;  %v13542_v1 = vld [vmem:[%s17613_s1 + $0x2398] ss:$16 sps:$4 sm:$0xff]   ;;  %v13547_v2 = vld [vmem:[%s17613_s1 + $0x23b4] ss:$16 sps:$4 sm:$0xff]  }
 0x44c   :  { %8555 = vmatprep.subr.bf16.mxu0 %v13475_v3  ;;  %8760 = vmatprep.subr.bf16.mxu1 %v13478_v4  ;;  %v13550_v3 = vld [vmem:[%s17613_s1 + $0x23bc] ss:$16 sps:$4 sm:$0xff]   ;;  %v13545_v4 = vld [vmem:[%s17613_s1 + $0x23b0] ss:$16 sps:$4 sm:$0xff]  }
 0x44d   :  { %v6429_v30 = vpop.f32.mrb[8].mxu0  ;;  %v6634_v9 = vpop.f32.mrb[8].mxu1 }
 0x44e   :  { %v17175_v11 = vmax.f32 %v4450_v31, %v6429_v30  ;;  %v17180_v12 = vmax.f32 %v4452_v32, %v6634_v9  ;;  %v6431_v14 = vpop.f32.mrb[9].mxu0  ;;  %v6636_v23 = vpop.f32.mrb[9].mxu1  ;;  %v13490_v32 = vld [vmem:[%s17613_s1 + $0x227c] ss:$16 sps:$4 sm:$0xff]   ;;  %v13559_v30 = vld [vmem:[%s17613_s1 + $0x23f4] ss:$16 sps:$4 sm:$0xff]  }
 0x44f   :  { %v17185_v24 = vmax.f32 %v4451_v35, %v6431_v14  ;;  %v17190_v25 = vmax.f32 %v4453_v36, %v6636_v23  ;;  %v6433_v17 = vpop.f32.mrb[10].mxu0  ;;  %v6638_v27 = vpop.f32.mrb[10].mxu1  ;;  %8556 = vmatpush1.bf16.msra.mxu0 %v13473_v5  ;;  %8761 = vmatpush1.bf16.msra.mxu1 %v13476_v6  ;;  %v13493_v35 = vld [vmem:[%s17613_s1 + $0x2294] ss:$16 sps:$4 sm:$0xff]   ;;  %v13496_v36 = vld [vmem:[%s17613_s1 + $0x229c] ss:$16 sps:$4 sm:$0xff]  }
 0x450   :  { %v6434_v19 = vpop.f32.mrb[11].mxu0  ;;  %v6639_v31 = vpop.f32.mrb[11].mxu1  ;;  %8557 = vmatprep.subr.bf16.mxu0 %v13481_v7  ;;  %8762 = vmatprep.subr.bf16.mxu1 %v13484_v8  ;;  %v13548_v5 = vld [vmem:[%s17613_s1 + $0x23b8] ss:$16 sps:$4 sm:$0xff]   ;;  %v13553_v6 = vld [vmem:[%s17613_s1 + $0x23d4] ss:$16 sps:$4 sm:$0xff]  }
 0x451   :  { %v13551_v7 = vld [vmem:[%s17613_s1 + $0x23d0] ss:$16 sps:$4 sm:$0xff]   ;;  %v13554_v8 = vld [vmem:[%s17613_s1 + $0x23d8] ss:$16 sps:$4 sm:$0xff]   ;;  %v13565_v23 = vld [vmem:[%s17613_s1 + $0x2414] ss:$16 sps:$4 sm:$0xff]  }
 0x452   :  { %v13557_v9 = vld [vmem:[%s17613_s1 + $0x23f0] ss:$16 sps:$4 sm:$0xff]   ;;  %v13560_v14 = vld [vmem:[%s17613_s1 + $0x23f8] ss:$16 sps:$4 sm:$0xff]   ;;  %v13568_v17 = vld [vmem:[%s17613_s1 + $0x241c] ss:$16 sps:$4 sm:$0xff]  }
 0x453   :  { %8558 = vmatpush1.bf16.msra.mxu0 %v13479_v18  ;;  %8763 = vmatpush1.bf16.msra.mxu1 %v13482_v28  ;;  %v13563_v27 = vld [vmem:[%s17613_s1 + $0x2410] ss:$16 sps:$4 sm:$0xff]   ;;  %v13566_v18 = vld [vmem:[%s17613_s1 + $0x2418] ss:$16 sps:$4 sm:$0xff]   ;;  %v13571_v28 = vld [vmem:[%s17613_s1 + $0x2434] ss:$16 sps:$4 sm:$0xff]  }
 0x454   :  { %8559 = vmatprep.subr.bf16.mxu0 %v13487_v22  ;;  %8764 = vmatprep.subr.bf16.mxu1 %v13490_v32  ;;  %v13574_v19 = vld [vmem:[%s17613_s1 + $0x243c] ss:$16 sps:$4 sm:$0xff]   ;;  %v13569_v31 = vld [vmem:[%s17613_s1 + $0x2430] ss:$16 sps:$4 sm:$0xff]   ;;  %v13572_v22 = vld [vmem:[%s17613_s1 + $0x2438] ss:$16 sps:$4 sm:$0xff]  }
 0x455   :  { %v13577_v32 = vld [vmem:[%s17613_s1 + $0x2454] ss:$16 sps:$4 sm:$0xff]  }
 0x457   :  { %8560 = vmatpush1.bf16.msra.mxu0 %v13485_v33  ;;  %8765 = vmatpush1.bf16.msra.mxu1 %v13488_v21  ;;  %v13580_v33 = vld [vmem:[%s17613_s1 + $0x245c] ss:$16 sps:$4 sm:$0xff]   ;;  %v13575_v21 = vld [vmem:[%s17613_s1 + $0x2450] ss:$16 sps:$4 sm:$0xff]  }
 0x458   :  { %8561 = vmatprep.subr.bf16.mxu0 %v13493_v35  ;;  %8766 = vmatprep.subr.bf16.mxu1 %v13496_v36  ;;  %v13578_v35 = vld [vmem:[%s17613_s1 + $0x2458] ss:$16 sps:$4 sm:$0xff]   ;;  %v13583_v36 = vld [vmem:[%s17613_s1 + $0x2474] ss:$16 sps:$4 sm:$0xff]  }
 0x45b   :  { %8562 = vmatpush1.bf16.msra.mxu0 %v13491_v26  ;;  %8767 = vmatpush1.bf16.msra.mxu1 %v13494_v37  ;;  %v13586_v26 = vld [vmem:[%s17613_s1 + $0x247c] ss:$16 sps:$4 sm:$0xff]   ;;  %v13581_v37 = vld [vmem:[%s17613_s1 + $0x2470] ss:$16 sps:$4 sm:$0xff]  }
 0x45c   :  { %8563 = vmatprep.subr.bf16.mxu0 %v13499_v38  ;;  %8768 = vmatprep.subr.bf16.mxu1 %v13502_v39  ;;  %v13584_v38 = vld [vmem:[%s17613_s1 + $0x2478] ss:$16 sps:$4 sm:$0xff]   ;;  %v13589_v39 = vld [vmem:[%s17613_s1 + $0x2494] ss:$16 sps:$4 sm:$0xff]  }
 0x45f   :  { %8564 = vmatpush1.bf16.msra.mxu0 %v13497_v40  ;;  %8769 = vmatpush1.bf16.msra.mxu1 %v13500_v41  ;;  %v13592_v40 = vld [vmem:[%s17613_s1 + $0x249c] ss:$16 sps:$4 sm:$0xff]   ;;  %v11234_v41 = vld [vmem:[%s17613_s1 + $0x24b0] sm:$0xff] }
 0x460   :  { %8565 = vmatprep.subr.bf16.mxu0 %v13505_v42  ;;  %8770 = vmatprep.subr.bf16.mxu1 %v13508_v10  ;;  %v11235_v42 = vld [vmem:[%s17613_s1 + $0x24b8] sm:$0xff]  ;;  %v13587_v10 = vld [vmem:[%s17613_s1 + $0x2490] ss:$16 sps:$4 sm:$0xff]  }
 0x463   :  { %8566 = vmatpush1.bf16.msra.mxu0 %v13503_v43  ;;  %8771 = vmatpush1.bf16.msra.mxu1 %v13506_v44  ;;  %v13590_v43 = vld [vmem:[%s17613_s1 + $0x2498] ss:$16 sps:$4 sm:$0xff]   ;;  %v11529_v44 = vcombine.high %v11234_v41, %v11234_v41 }
 0x464   :  { %8567 = vmatprep.subr.bf16.mxu0 %v13511_v45  ;;  %8772 = vmatprep.subr.bf16.mxu1 %v13514_v15  ;;  %v11531_v45 = vcombine.high %v11235_v42, %v11235_v42  ;;  %v11528_v15 = vcombine.low %v11234_v41, %v11234_v41 }
 0x467   :  { %8568 = vmatpush1.bf16.msra.mxu0 %v13509_v46  ;;  %8773 = vmatpush1.bf16.msra.mxu1 %v13512_v47  ;;  %v11530_v46 = vcombine.low %v11235_v42, %v11235_v42  ;;  %v8411_v47 = vsel %vm1840_vm1, %v11528_v15, 0 }
 0x468   :  { %8569 = vmatprep.subr.bf16.mxu0 %v13517_v49  ;;  %8774 = vmatprep.subr.bf16.mxu1 %v13520_v50  ;;  %v13597_v50 = vld [vmem:[%s17615_s3 + $0x40] sm:$0xff]  }
 0x469   :  { %v8417_v49 = vsel %vm1840_vm1, %v11530_v46, 0 }
 0x46b   :  { %8570 = vmatpush1.bf16.msra.mxu0 %v13515_v51  ;;  %8775 = vmatpush1.bf16.msra.mxu1 %v13518_v52  ;;  %v13598_v51 = vld [vmem:[%s17615_s3 + $0xc0] sm:$0xff]  }
 0x46c   :  { %8571 = vmatprep.subr.bf16.mxu0 %v13523_v48  ;;  %8776 = vmatprep.subr.bf16.mxu1 %v13526_v53  ;;  %v13599_v52 = vld [vmem:[%s17615_s3] sm:$0xff]   ;;  %v13601_v53 = vld [vmem:[%s17615_s3 + $0x48] sm:$0xff]  }
 0x46d   :  { %v13600_v48 = vld [vmem:[%s17615_s3 + $0x80] sm:$0xff]  }
 0x46f   :  { %8572 = vmatpush1.bf16.msra.mxu0 %v13521_v54  ;;  %8777 = vmatpush1.bf16.msra.mxu1 %v13524_v55  ;;  %v13602_v54 = vld [vmem:[%s17615_s3 + $0xc8] sm:$0xff]  }
 0x470   :  { %8573 = vmatprep.subr.bf16.mxu0 %v13529_v56  ;;  %8778 = vmatprep.subr.bf16.mxu1 %v13532_v57  ;;  %v13603_v55 = vld [vmem:[%s17615_s3 + $0x8] sm:$0xff]   ;;  %v13605_v57 = vld [vmem:[%s17615_s3 + $0x50] sm:$0xff]  }
 0x471   :  { %v13604_v56 = vld [vmem:[%s17615_s3 + $0x88] sm:$0xff]  }
 0x473   :  { %8574 = vmatpush1.bf16.msra.mxu0 %v13527_v58  ;;  %8779 = vmatpush1.bf16.msra.mxu1 %v13530_v59  ;;  %v13607_v58 = vld [vmem:[%s17615_s3 + $0x10] sm:$0xff]  }
 0x474   :  { %8575 = vmatprep.subr.bf16.mxu0 %v13535_v20  ;;  %8780 = vmatprep.subr.bf16.mxu1 %v13538_v60  ;;  %v13608_v59 = vld [vmem:[%s17615_s3 + $0x90] sm:$0xff]   ;;  %v13609_v20 = vld [vmem:[%s17615_s3 + $0x58] sm:$0xff]  }
 0x475   :  { %v13610_v60 = vld [vmem:[%s17615_s3 + $0xd8] sm:$0xff]  }
 0x477   :  { %8576 = vmatpush1.bf16.msra.mxu0 %v13533_v61  ;;  %8781 = vmatpush1.bf16.msra.mxu1 %v13536_v13  ;;  %v13611_v61 = vld [vmem:[%s17615_s3 + $0x18] sm:$0xff]  }
 0x478   :  { %8586 = vmatprep.subr.bf16.mxu0 %v13541_v62  ;;  %8791 = vmatprep.subr.bf16.mxu1 %v13544_v63  ;;  %v13612_v13 = vld [vmem:[%s17615_s3 + $0x98] sm:$0xff]   ;;  %v13613_v62 = vld [vmem:[%s17615_s3 + $0x60] sm:$0xff]  }
 0x479   :  { %v13614_v63 = vld [vmem:[%s17615_s3 + $0xe0] sm:$0xff]  }
 0x47a   :  { %8578 = vmatmul.mubr.bf16.vlgmr.msra.gmra.mrb[12].mxu0 %v14532_v29  ;;  %8783 = vmatmul.mubr.bf16.vlgmr.msra.gmra.mrb[12].mxu1 %v14532_v29  ;;  %v13556_v29 = vld [vmem:[%s17613_s1 + $0x23dc] ss:$16 sps:$4 sm:$0xff]  }
 0x47b   :  { %8587 = vmatpush1.bf16.msra.mxu0 %v13539_v0  ;;  %8792 = vmatpush1.bf16.msra.mxu1 %v13542_v1  ;;  %v13615_v0 = vld [vmem:[%s17615_s3 + $0x20] sm:$0xff]  }
 0x47c   :  { %8588 = vmatprep.subr.bf16.mxu0 %v13547_v2  ;;  %8793 = vmatprep.subr.bf16.mxu1 %v13550_v3  ;;  %v13616_v1 = vld [vmem:[%s17615_s3 + $0xa0] sm:$0xff]   ;;  %v13617_v2 = vld [vmem:[%s17615_s3 + $0x68] sm:$0xff]  }
 0x47d   :  { %11533 = vmatprep.mubr.msk.bf16.mxu0 %vm1836_vm0, %v14550_v34  ;;  %11535 = vmatprep.mubr.msk.bf16.mxu1 %vm1836_vm0, %v14550_v34  ;;  %v13562_v34 = vld [vmem:[%s17613_s1 + $0x23fc] ss:$16 sps:$4 sm:$0xff]  }
 0x47e   :  { %v13618_v3 = vld [vmem:[%s17615_s3 + $0xe8] sm:$0xff]  }
 0x47f   :  { %8589 = vmatpush1.bf16.msra.mxu0 %v13545_v4  ;;  %8794 = vmatpush1.bf16.msra.mxu1 %v13548_v5  ;;  %v13619_v4 = vld [vmem:[%s17615_s3 + $0x28] sm:$0xff]  }
 0x480   :  { %8590 = vmatprep.subr.bf16.mxu0 %v13553_v6  ;;  %8795 = vmatprep.subr.bf16.mxu1 %v13556_v29  ;;  %v13620_v5 = vld [vmem:[%s17615_s3 + $0xa8] sm:$0xff]   ;;  %v13621_v6 = vld [vmem:[%s17615_s3 + $0x70] sm:$0xff]  }
 0x481   :  { %v13622_v29 = vld [vmem:[%s17615_s3 + $0xf0] sm:$0xff]  }
 0x483   :  { %8591 = vmatpush1.bf16.msra.mxu0 %v13551_v7  ;;  %8796 = vmatpush1.bf16.msra.mxu1 %v13554_v8  ;;  %v13623_v7 = vld [vmem:[%s17615_s3 + $0x30] sm:$0xff]  }
 0x484   :  { %8592 = vmatprep.subr.bf16.mxu0 %v13559_v30  ;;  %8797 = vmatprep.subr.bf16.mxu1 %v13562_v34  ;;  %v13624_v8 = vld [vmem:[%s17615_s3 + $0xb0] sm:$0xff]   ;;  %v13625_v30 = vld [vmem:[%s17615_s3 + $0x78] sm:$0xff]  }
 0x485   :  { %v13626_v34 = vld [vmem:[%s17615_s3 + $0xf8] sm:$0xff]  }
 0x487   :  { %8593 = vmatpush1.bf16.msra.mxu0 %v13557_v9  ;;  %8798 = vmatpush1.bf16.msra.mxu1 %v13560_v14  ;;  %v13627_v9 = vld [vmem:[%s17615_s3 + $0x38] sm:$0xff]  }
 0x488   :  { %8594 = vmatprep.subr.bf16.mxu0 %v13565_v23  ;;  %8799 = vmatprep.subr.bf16.mxu1 %v13568_v17  ;;  %v13628_v14 = vld [vmem:[%s17615_s3 + $0xb8] sm:$0xff]   ;;  %v13645_v23 = vmov 0.0   ;;  %v8838_v17 = vlaneseq }
 0x48b   :  { %8595 = vmatpush1.bf16.msra.mxu0 %v13563_v27  ;;  %8800 = vmatpush1.bf16.msra.mxu1 %v13566_v18  ;;  %v8839_v27 = vshrl.u32 %v8838_v17, 7 }
 0x48c   :  { %8596 = vmatprep.subr.bf16.mxu0 %v13571_v28  ;;  %8801 = vmatprep.subr.bf16.mxu1 %v13574_v19  ;;  %v8836_v19 = vld [vmem:[%s17617_s2] sm:$0xf] }
 0x48d   :  { %v8840_v18 = vsub.s32 0, %v8839_v27  ;;  %v8848_v28 = vsub.s32 2, %v8839_v27 }
 0x48f   :  { %8597 = vmatpush1.bf16.msra.mxu0 %v13569_v31  ;;  %8802 = vmatpush1.bf16.msra.mxu1 %v13572_v22  ;;  %v8844_v31 = vsub.s32 1, %v8839_v27  ;;  %v8852_v22 = vsub.s32 3, %v8839_v27  ;;  %v13643_v27 = vld [vmem:[%s17618_s7 + $0x30] sm:$0xff]  }
 0x490   :  { %8598 = vmatprep.subr.bf16.mxu0 %v13577_v32  ;;  %8803 = vmatprep.subr.bf16.mxu1 %v13580_v33  ;;  %v8841_v32 = vrot.slane %v8836_v19, %v8840_v18  ;;  %v8849_v33 = vrot.slane %v8836_v19, %v8848_v28  ;;  %v13644_v18 = vld [vmem:[%s17618_s7 + $0x38] sm:$0xff]   ;;  %v11569_v28 = vld [vmem:[%s17620_s6] ss:$0 sm:$0xff] }
 0x493   :  { %8599 = vmatpush1.bf16.msra.mxu0 %v13575_v21  ;;  %8804 = vmatpush1.bf16.msra.mxu1 %v13578_v35 }
 0x494   :  { %8600 = vmatprep.subr.bf16.mxu0 %v13583_v36  ;;  %8805 = vmatprep.subr.bf16.mxu1 %v13586_v26  ;;  %v8845_v36 = vrot.slane %v8836_v19, %v8844_v31  ;;  %v8853_v26 = vrot.slane %v8836_v19, %v8852_v22 }
 0x497   :  { %8601 = vmatpush1.bf16.msra.mxu0 %v13581_v37  ;;  %8806 = vmatpush1.bf16.msra.mxu1 %v13584_v38 }
 0x498   :  { %8602 = vmatprep.subr.bf16.mxu0 %v13589_v39  ;;  %8807 = vmatprep.subr.bf16.mxu1 %v13592_v40 }
 0x49b   :  { %8603 = vmatpush1.bf16.msra.mxu0 %v13587_v10  ;;  %8808 = vmatpush1.bf16.msra.mxu1 %v13590_v43 }
 0x49c   :  { %11532 = vmatprep.subr.msk.bf16.mxu0 %vm1840_vm1, %v11529_v44  ;;  %11534 = vmatprep.subr.msk.bf16.mxu1 %vm1840_vm1, %v11531_v45 }
 0x49f   :  { %8605 = vmatpush1.bf16.msra.mxu0 %v8411_v47  ;;  %8810 = vmatpush1.bf16.msra.mxu1 %v8417_v49 }
 0x4a0   :  { %11587 = vmatprep.subr.bf16.mxu0 %v13597_v50  ;;  %11609 = vmatprep.subr.bf16.mxu1 %v13598_v51 }
 0x4a2   :  { %8619 = vmatmul.mubr.bf16.vlgmr.msra.gmra.mrb[12].mxu0 %v14666_v16  ;;  %8824 = vmatmul.mubr.bf16.vlgmr.msra.gmra.mrb[12].mxu1 %v14666_v16  ;;  %v13606_v16 = vld [vmem:[%s17615_s3 + $0xd0] sm:$0xff]  }
 0x4a3   :  { %11588 = vmatpush3.bf16.msra.mxu0 %v13599_v52  ;;  %11610 = vmatpush3.bf16.msra.mxu1 %v13600_v48 }
 0x4a4   :  { %11589 = vmatprep.subr.bf16.mxu0 %v13601_v53  ;;  %11611 = vmatprep.subr.bf16.mxu1 %v13602_v54  ;;  %v13630_v54 = vld [vmem:[%s17616_s5 + $0x8] sm:$0xff]  }
 0x4a7   :  { %11590 = vmatpush3.bf16.msra.mxu0 %v13603_v55  ;;  %11612 = vmatpush3.bf16.msra.mxu1 %v13604_v56  ;;  %v13631_v55 = vld [vmem:[%s17616_s5 + $0x10] sm:$0xff]   ;;  %v13632_v56 = vld [vmem:[%s17616_s5 + $0x18] sm:$0xff]  }
 0x4a8   :  { %11591 = vmatprep.subr.bf16.mxu0 %v13605_v57  ;;  %11613 = vmatprep.subr.bf16.mxu1 %v13606_v16  ;;  %v13633_v57 = vld [vmem:[%s17616_s5 + $0x20] sm:$0xff]   ;;  %v13634_v16 = vld [vmem:[%s17616_s5 + $0x28] sm:$0xff]  }
 0x4ab   :  { %11592 = vmatpush3.bf16.msra.mxu0 %v13607_v58  ;;  %11614 = vmatpush3.bf16.msra.mxu1 %v13608_v59  ;;  %v13635_v58 = vld [vmem:[%s17616_s5 + $0x30] sm:$0xff]   ;;  %v13636_v59 = vld [vmem:[%s17616_s5 + $0x38] sm:$0xff]  }
 0x4ac   :  { %11593 = vmatprep.subr.bf16.mxu0 %v13609_v20  ;;  %11615 = vmatprep.subr.bf16.mxu1 %v13610_v60  ;;  %v13637_v20 = vld [vmem:[%s17618_s7] sm:$0xff]   ;;  %v13638_v60 = vld [vmem:[%s17618_s7 + $0x8] sm:$0xff]  }
 0x4af   :  { %11594 = vmatpush3.bf16.msra.mxu0 %v13611_v61  ;;  %11616 = vmatpush3.bf16.msra.mxu1 %v13612_v13  ;;  %v13639_v61 = vld [vmem:[%s17618_s7 + $0x10] sm:$0xff]   ;;  %v13640_v13 = vld [vmem:[%s17618_s7 + $0x18] sm:$0xff]  }
 0x4b0   :  { %11595 = vmatprep.subr.bf16.mxu0 %v13613_v62  ;;  %11617 = vmatprep.subr.bf16.mxu1 %v13614_v63  ;;  %v13641_v62 = vld [vmem:[%s17618_s7 + $0x20] sm:$0xff]   ;;  %v13642_v63 = vld [vmem:[%s17618_s7 + $0x28] sm:$0xff]  }
 0x4b3   :  { %11596 = vmatpush3.bf16.msra.mxu0 %v13615_v0  ;;  %11618 = vmatpush3.bf16.msra.mxu1 %v13616_v1 }
 0x4b4   :  { %11597 = vmatprep.subr.bf16.mxu0 %v13617_v2  ;;  %11619 = vmatprep.subr.bf16.mxu1 %v13618_v3  ;;  %v11536_v2 = vld [vmem:[%s17619_s4] ss:$0 sm:$0xff] }
 0x4b7   :  { %11598 = vmatpush3.bf16.msra.mxu0 %v13619_v4  ;;  %11620 = vmatpush3.bf16.msra.mxu1 %v13620_v5 }
 0x4b8   :  { %11599 = vmatprep.subr.bf16.mxu0 %v13621_v6  ;;  %11621 = vmatprep.subr.bf16.mxu1 %v13622_v29 }
 0x4bb   :  { %11600 = vmatpush3.bf16.msra.mxu0 %v13623_v7  ;;  %11622 = vmatpush3.bf16.msra.mxu1 %v13624_v8 }
 0x4bc   :  { %11601 = vmatprep.subr.bf16.mxu0 %v13625_v30  ;;  %11623 = vmatprep.subr.bf16.mxu1 %v13626_v34 }
 0x4bf   :  { %11602 = vmatpush3.bf16.msra.mxu0 %v13627_v9  ;;  %11624 = vmatpush3.bf16.msra.mxu1 %v13628_v14 }
 0x4c0   :  { %11649 = vmatprep.subr.bf16.mxu0 %v13645_v23  ;;  %11669 = vmatprep.subr.bf16.mxu1 %v13645_v23 }
 0x575   :  { %v8620_v21 = vpop.f32.mrb[12].mxu0  ;;  %v8825_v35 = vpop.f32.mrb[12].mxu1 }
 0x576   :  { %v8832_v37 = vmax.f32 %v17175_v11, %v8620_v21  ;;  %v8834_v38 = vmax.f32 %v17180_v12, %v8825_v35  ;;  %v8622_v39 = vpop.f32.mrb[13].mxu0  ;;  %v8827_v40 = vpop.f32.mrb[13].mxu1 }
 0x577   :  { %v8833_v41 = vmax.f32 %v17185_v24, %v8622_v39  ;;  %v8835_v42 = vmax.f32 %v17190_v25, %v8827_v40  ;;  %v8624_v10 = vpop.f32.mrb[14].mxu0  ;;  %v8829_v43 = vpop.f32.mrb[14].mxu1  ;;  %v13629_v24 = vld [vmem:[%s17616_s5] sm:$0xff]  }
 0x578   :  { %v8858_v44 = vadd.f32 %v8841_v32, %v8832_v37  ;;  %v8860_v45 = vadd.f32 %v8849_v33, %v8834_v38  ;;  %v8625_v15 = vpop.f32.mrb[15].mxu0  ;;  %v8830_v46 = vpop.f32.mrb[15].mxu1 }
 0x579   :  { %v8859_v47 = vadd.f32 %v8845_v36, %v8833_v41  ;;  %v8861_v49 = vadd.f32 %v8853_v26, %v8835_v42 }
 0x57a   :  { %v8862_v50 = vmax.f32 %v8858_v44, 0.0  ;;  %v8864_v51 = vmax.f32 %v8860_v45, 0.0 }
 0x57b   :  { %v8863_v52 = vmax.f32 %v8859_v47, 0.0  ;;  %v8865_v11 = vmax.f32 %v8861_v49, 0.0 }
 0x57c   :  { %v8866_v53 = vpack.c.bf16 %v8862_v50, %v8862_v50  ;;  %v8868_v25 = vpack.c.bf16 %v8864_v51, %v8864_v51 }
 0x57d   :  { %v8867_v48 = vpack.c.bf16 %v8863_v52, %v8863_v52  ;;  %v8869_v12 = vpack.c.bf16 %v8865_v11, %v8865_v11 }
 0x57f   :  { %9165 = vmatprep.mubr.bf16.mxu0 %v8867_v48  ;;  %9205 = vmatprep.mubr.bf16.mxu1 %v8869_v12 }
 0x580   :  { %9166 = vmatmul.mubr.bf16.vlgmr.msra.gmra.mrb[16].mxu0 %v8866_v53  ;;  %9206 = vmatmul.mubr.bf16.vlgmr.msra.gmra.mrb[16].mxu1 %v8868_v25 }
 0x581   :  { %11650 = vmatpush3.bf16.msra.mxu0 %v13629_v24  ;;  %11665 = vmatprep.mubr.msk.bf16.mxu0 %vm13646_vm2, %v13645_v23 }
 0x582   :  { %11651 = vmatprep.subr.bf16.mxu0 %v13645_v23  ;;  %11685 = vmatprep.mubr.msk.bf16.mxu1 %vm13646_vm2, %v13645_v23 }
 0x583   :  { %11670 = vmatpush3.bf16.msra.mxu1 %v13637_v20 }
 0x584   :  { %11671 = vmatprep.subr.bf16.mxu1 %v13645_v23 }
 0x585   :  { %11652 = vmatpush3.bf16.msra.mxu0 %v13630_v54 }
 0x586   :  { %11653 = vmatprep.subr.bf16.mxu0 %v13645_v23 }
 0x587   :  { %11672 = vmatpush3.bf16.msra.mxu1 %v13638_v60 }
 0x588   :  { %11673 = vmatprep.subr.bf16.mxu1 %v13645_v23 }
 0x589   :  { %11654 = vmatpush3.bf16.msra.mxu0 %v13631_v55 }
 0x58a   :  { %11655 = vmatprep.subr.bf16.mxu0 %v13645_v23 }
 0x58b   :  { %11674 = vmatpush3.bf16.msra.mxu1 %v13639_v61 }
 0x58c   :  { %11675 = vmatprep.subr.bf16.mxu1 %v13645_v23 }
 0x58d   :  { %11656 = vmatpush3.bf16.msra.mxu0 %v13632_v56 }
 0x58e   :  { %11657 = vmatprep.subr.bf16.mxu0 %v13645_v23 }
 0x58f   :  { %11676 = vmatpush3.bf16.msra.mxu1 %v13640_v13 }
 0x590   :  { %11677 = vmatprep.subr.bf16.mxu1 %v13645_v23 }
 0x591   :  { %11658 = vmatpush3.bf16.msra.mxu0 %v13633_v57 }
 0x592   :  { %11659 = vmatprep.subr.bf16.mxu0 %v13645_v23 }
 0x593   :  { %11678 = vmatpush3.bf16.msra.mxu1 %v13641_v62 }
 0x594   :  { %11679 = vmatprep.subr.bf16.mxu1 %v13645_v23 }
 0x595   :  { %11660 = vmatpush3.bf16.msra.mxu0 %v13634_v16 }
 0x596   :  { %11661 = vmatprep.subr.bf16.mxu0 %v13645_v23 }
 0x597   :  { %11680 = vmatpush3.bf16.msra.mxu1 %v13642_v63 }
 0x598   :  { %11681 = vmatprep.subr.bf16.mxu1 %v13645_v23 }
 0x599   :  { %11662 = vmatpush3.bf16.msra.mxu0 %v13635_v58 }
 0x59a   :  { %11663 = vmatprep.subr.bf16.mxu0 %v13645_v23 }
 0x59b   :  { %11682 = vmatpush3.bf16.msra.mxu1 %v13643_v27 }
 0x59c   :  { %11683 = vmatprep.subr.bf16.mxu1 %v13645_v23  ;;  %v11578_v23 = vld [vmem:[%s17621_s8] ss:$0 sm:$0xff] }
 0x59d   :  { %11664 = vmatpush3.bf16.msra.mxu0 %v13636_v59 }
 0x59f   :  { %11684 = vmatpush3.bf16.msra.mxu1 %v13644_v18 }
 0x653   :  { %v11603_v0 = vpop.f32.mrb[16].mxu0  ;;  %v11625_v1 = vpop.f32.mrb[16].mxu1 }
 0x654   :  { %v11604_v3 = vpop.f32.mrb[17].mxu0  ;;  %v11626_v4 = vpop.f32.mrb[17].mxu1 }
 0x655   :  { %v11605_v5 = vadd.f32 %v11604_v3, %v11603_v0  ;;  %v11627_v6 = vadd.f32 %v11626_v4, %v11625_v1  ;;  %v11606_v29 = vpop.f32.mrb[18].mxu0  ;;  %v11628_v7 = vpop.f32.mrb[18].mxu1 }
 0x656   :  { %v11607_v8 = vpop.f32.mrb[19].mxu0  ;;  %v11629_v30 = vpop.f32.mrb[19].mxu1 }
 0x657   :  { %v9168_v34 = vadd.f32 %v11605_v5, %v11536_v2 }
 0x659   :  { %v9208_v9 = vadd.f32 %v11627_v6, %v9168_v34 }
 0x65b   :  { %v9213_v14 = vmax.f32 %v9208_v9, 0.0 }
 0x65d   :  { %v9214_v17 = vpack.c.bf16 %v9213_v14, %v9213_v14 }
 0x65f   :  { %11666 = vmatmul.mubr.bf16.vlgmr.msra.gmra.mrb[20].mxu0 %v9214_v17 }
 0x732   :  { %v9320_v19 = vpop.f32.mrb[20].mxu0 }
 0x733   :  { %v9321_v31 = vadd.f32 %v11569_v28, %v9320_v19  ;;  %v11667_v22 = vpop.f32.mrb[21].mxu0 }
 0x734   :  { %v9323_v32 = vpop.f32.mrb[22].mxu0 }
 0x735   :  { %v9326_v33 = vmax.f32 %v9321_v31, 0.0  ;;  %v11668_v21 = vpop.f32.mrb[23].mxu0 }
 0x737   :  { %v9327_v35 = vpack.c.bf16 %v9326_v33, %v9326_v33 }
 0x739   :  { %11686 = vmatmul.mubr.bf16.vlgmr.msra.gmra.mrb[20].mxu1 %v9327_v35 }
 0x80c   :  { %v9433_v36 = vpop.f32.mrb[20].mxu1 }
 0x80d   :  { %v9434_v26 = vadd.f32 %v11578_v23, %v9433_v36  ;;  %v11687_v37 = vpop.f32.mrb[21].mxu1 }
 0x80e   :  { %v9436_v38 = vpop.f32.mrb[22].mxu1 }
 0x80f   :  { %9439 = vst [vmem:[%s17622_s9] sm:$0xff] %v9434_v26  ;;  %v11688_v39 = vpop.f32.mrb[23].mxu1 }

</bundles_post_ra>
